<compile_context>
chip_gen: v7x
topology: tpu7x:2x2x1
jax: 0.10.0
libtpu: 0.0.40
codegen_flags: <defaults>
</compile_context>

<pallas_src>
import functools

import jax
import jax.numpy as jnp
from jax import lax
from jax.experimental import pallas as pl
from jax.experimental.pallas import tpu as pltpu

_SQRT_HALF = 0.7071067811865476


# ---------------------------------------------------------------------------
# small in-kernel helpers (pure value functions / VMEM-scratch conv)
# ---------------------------------------------------------------------------

def _instance_norm(x, eps=1e-5):
    """InstanceNorm2d (affine=False) on an (N, C) tile: per-channel stats over N."""
    mean = jnp.mean(x, axis=0, keepdims=True)
    var = jnp.mean((x - mean) ** 2, axis=0, keepdims=True)
    return (x - mean) * lax.rsqrt(var + eps)


def _gelu(x):
    # exact erf GELU (PyTorch nn.GELU default)
    return 0.5 * x * (1.0 + lax.erf(x * _SQRT_HALF))


def _l2norm_rows(x):
    # F.normalize(x, dim=-1): x / max(||x||, 1e-12)  (== x * rsqrt(max(ss, 1e-24)))
    ss = jnp.sum(x * x, axis=-1, keepdims=True)
    return x * lax.rsqrt(jnp.maximum(ss, 1e-24))


def _dwconv3x3(x_img, w_ref, b_ref, pad_ref):
    """Depthwise 3x3 conv, padding=1.  x_img: (H, W, C) f32 value.
    pad_ref: VMEM scratch (H+2, W+2, C) used as the zero-padded image."""
    H, W, C = x_img.shape
    pad_ref[...] = jnp.zeros_like(pad_ref)
    pad_ref[pl.ds(1, H), pl.ds(1, W), :] = x_img
    xp = pad_ref[...]
    w = w_ref[...].astype(jnp.float32)
    acc = jnp.zeros((H, W, C), jnp.float32)
    for dy in range(3):
        for dx in range(3):
            acc = acc + xp[dy:dy + H, dx:dx + W, :] * w[dy, dx, :]
    return acc + b_ref[...].astype(jnp.float32)


# ---------------------------------------------------------------------------
# kernel 1: ChanLayerNorm + to_qkv + dwconv branch + conv-half of combine + x
# ---------------------------------------------------------------------------

def _ln_qkv_conv_kernel(x_ref, g_ref, bln_ref, wqkvt_ref, wdw_ref, bdw_ref,
                        wcc_ref, bcomb_ref, qkv_o_ref, pc_o_ref, pad_ref,
                        *, H, W, eps):
    N, C = x_ref.shape[1], x_ref.shape[2]

    x_nc = x_ref[0].astype(jnp.float32)                     # (N, C) channel-last
    x_cn = x_nc.T                                           # (C, N) channel-first

    # ChanLayerNorm: normalize over the channel axis (sublane-side reduce).
    mean = jnp.mean(x_cn, axis=0, keepdims=True)
    var = jnp.mean((x_cn - mean) ** 2, axis=0, keepdims=True)
    xn_cn = (x_cn - mean) * lax.rsqrt(var + eps)
    xn_cn = xn_cn * g_ref[...].astype(jnp.float32) + bln_ref[...].astype(jnp.float32)

    # to_qkv (1x1 conv, no bias), computed channel-first so the per-(chunk, head)
    # (dim_head*H, W) views needed by DPSA are a free bitcast reshape in HBM.
    qkv_t = jnp.dot(wqkvt_ref[...], xn_cn.astype(jnp.bfloat16),
                    preferred_element_type=jnp.float32)      # (3*inner, N) lane-dense
    qkv_o_ref[0] = qkv_t.astype(qkv_o_ref.dtype)

    # Depthwise-conv branch + its half of the split combine weight + bias + residual:
    #   partial = dwconv(x) @ W_comb[C:] + b_comb + x
    conv = _dwconv3x3(x_nc.reshape(H, W, C), wdw_ref, bdw_ref, pad_ref).reshape(N, C)
    pcomb = (jnp.dot(conv.astype(jnp.bfloat16), wcc_ref[...],
                     preferred_element_type=jnp.float32)
             + bcomb_ref[...].astype(jnp.float32) + x_nc)
    pc_o_ref[0] = pcomb.astype(pc_o_ref.dtype)


# ---------------------------------------------------------------------------
# kernel 2: DPSA attention (all heads in one grid step) + to_out + attn-half
#           of the combine conv, added onto kernel 1's partial result.
# ---------------------------------------------------------------------------

def _dpsa_combine_kernel(qkv_ref, pc_ref, wout_ref, bout_ref, wca_ref, o_ref,
                         *, heads):
    # qkv_ref: (1, 3*heads, L, W) with L = dim_head*H (== H*W since dim_head == W)
    N, C = pc_ref.shape[1], pc_ref.shape[2]

    qkv_all = qkv_ref[0].astype(jnp.float32)                 # (3*heads, L, W)
    wout_all = wout_ref[...]                                 # (heads, dim_head, C) bf16

    attn = jnp.zeros((N, C), jnp.float32) + bout_ref[...].astype(jnp.float32)
    for h in range(heads):
        q = qkv_all[0 * heads + h]                           # (L, W)
        k = qkv_all[1 * heads + h]
        v = qkv_all[2 * heads + h]
        qn = _l2norm_rows(q)
        kn = _l2norm_rows(k)
        s = jnp.dot(qn.astype(jnp.bfloat16), kn.T.astype(jnp.bfloat16),
                    preferred_element_type=jnp.float32)      # (L, L), L == N
        s = s - jnp.max(s, axis=-1, keepdims=True)
        p = jnp.exp(s)
        p = p * pl.reciprocal(jnp.sum(p, axis=-1, keepdims=True), approx=True)
        o_h = jnp.dot(p.astype(jnp.bfloat16), v.astype(jnp.bfloat16),
                      preferred_element_type=jnp.float32)    # (L, dim_head)
        attn = attn + jnp.dot(o_h.astype(jnp.bfloat16), wout_all[h],
                              preferred_element_type=jnp.float32)

    comb = pc_ref[0].astype(jnp.float32) + jnp.dot(
        attn.astype(jnp.bfloat16), wca_ref[...], preferred_element_type=jnp.float32)
    o_ref[0] = comb.astype(o_ref.dtype)


# ---------------------------------------------------------------------------
# kernel 3: full feed-forward (conv1x1 + IN + GELU + dw3x3 residual + conv1x1 + IN)
# ---------------------------------------------------------------------------

def _ff_kernel(a_ref, wff1_ref, bff1_ref, wdw_ref, bdw_ref, wff2_ref, bff2_ref,
               o_ref, pad_ref, *, H, W, eps):
    N, C = a_ref.shape[1], a_ref.shape[2]
    Fi = wff1_ref.shape[1]

    a = a_ref[0].astype(jnp.float32)                         # (N, C)

    # conv1x1 -> InstanceNorm -> GELU
    h1 = (jnp.dot(a.astype(jnp.bfloat16), wff1_ref[...],
                  preferred_element_type=jnp.float32)
          + bff1_ref[...].astype(jnp.float32))               # (N, Fi)
    h1 = _gelu(_instance_norm(h1, eps))

    # Residual( depthwise 3x3 -> InstanceNorm -> GELU )
    h2 = _dwconv3x3(h1.reshape(H, W, Fi), wdw_ref, bdw_ref, pad_ref).reshape(N, Fi)
    h2 = _gelu(_instance_norm(h2, eps)) + h1

    # conv1x1 -> final InstanceNorm; store channel-first (lane-dense, NCHW-ready)
    h3 = (jnp.dot(h2.astype(jnp.bfloat16), wff2_ref[...],
                  preferred_element_type=jnp.float32)
          + bff2_ref[...].astype(jnp.float32))               # (N, C)
    y = _instance_norm(h3, eps)
    o_ref[0] = y.T.astype(o_ref.dtype)                       # (C, N)


# ---------------------------------------------------------------------------
# Parameters (deterministic synthetic init, shapes from HPB.__init__)
# ---------------------------------------------------------------------------

def init_hpb_params(key, dim, dim_head, heads, ff_mult):
    inner = heads * dim_head
    ff_inner = dim * ff_mult
    ks = jax.random.split(key, 13)

    def w(k, shape, scale=0.1):
        return scale * jax.random.normal(k, shape, jnp.float32)

    return dict(
        ln_g=jnp.ones((dim,), jnp.float32),          # ChanLayerNorm.g
        ln_b=jnp.zeros((dim,), jnp.float32),         # ChanLayerNorm.b
        w_qkv=w(ks[0], (dim, 3 * inner)),            # to_qkv (no bias)
        w_attn_out=w(ks[1], (inner, dim)),           # DPSA.to_out
        b_attn_out=w(ks[2], (dim,)),
        w_dw=w(ks[3], (3, 3, dim)),                  # HPB.dwconv (depthwise)
        b_dw=w(ks[4], (dim,)),
        w_comb=w(ks[5], (2 * dim, dim)),             # attn_parallel_combine_out
        b_comb=w(ks[6], (dim,)),
        w_ff1=w(ks[7], (dim, ff_inner)),             # ff conv1x1 in
        b_ff1=w(ks[8], (ff_inner,)),
        w_ffdw=w(ks[9], (3, 3, ff_inner)),           # ff depthwise 3x3
        b_ffdw=w(ks[10], (ff_inner,)),
        w_ff2=w(ks[11], (ff_inner, dim)),            # ff conv1x1 out
        b_ff2=w(ks[12], (dim,)),
    )


# ---------------------------------------------------------------------------
# HPB forward
# ---------------------------------------------------------------------------

def hpb_forward(x_nchw, params, *, dim_head, heads,
                height_top_k=16, width_top_k=16):
    B, C, H, W = x_nchw.shape
    inner = heads * dim_head
    N = H * W
    Fi = params["w_ff1"].shape[1]

    if height_top_k < H or width_top_k < W:
        # TODO(synk): DPSA dual top-k pruning path (topk + gather) not implemented.
        raise NotImplementedError("DPSA top-k pruning path not implemented")
    assert dim_head == W, "reference DPSA rearranges require dim_head == W"

    dsem = pltpu.CompilerParams(dimension_semantics=("parallel",))
    bf16 = jnp.bfloat16

    # Single tiny boundary layout change (NCHW -> channel-last); everything else
    # is fused — the reference's to_bh / post-attention rearranges never hit XLA.
    x_nc = jnp.transpose(x_nchw, (0, 2, 3, 1)).reshape(B, N, C)

    # bf16 weights for every MXU contraction (f32 accumulation in-kernel).
    w_qkv_t = params["w_qkv"].T.astype(bf16)                     # (3*inner, C)
    w_out_h = params["w_attn_out"].reshape(heads, dim_head, C).astype(bf16)
    w_comb_attn = params["w_comb"][:C].astype(bf16)              # attn half of cat weight
    w_comb_conv = params["w_comb"][C:].astype(bf16)              # conv half of cat weight
    w_ff1 = params["w_ff1"].astype(bf16)
    w_ff2 = params["w_ff2"].astype(bf16)

    full = lambda shape: pl.BlockSpec(shape, lambda i: (0,) * len(shape))

    # ---- kernel 1: LN + to_qkv + dwconv branch + conv-half of combine + residual ----
    qkv, pcomb = pl.pallas_call(
        functools.partial(_ln_qkv_conv_kernel, H=H, W=W, eps=1e-5),
        out_shape=(jax.ShapeDtypeStruct((B, 3 * inner, N), jnp.float32),
                   jax.ShapeDtypeStruct((B, N, C), jnp.float32)),
        grid=(B,),
        in_specs=[
            pl.BlockSpec((1, N, C), lambda i: (i, 0, 0)),
            full((C, 1)), full((C, 1)),
            full((3 * inner, C)),
            full((3, 3, C)), full((1, C)),
            full((C, C)), full((1, C)),
        ],
        out_specs=(pl.BlockSpec((1, 3 * inner, N), lambda i: (i, 0, 0)),
                   pl.BlockSpec((1, N, C), lambda i: (i, 0, 0))),
        scratch_shapes=[pltpu.VMEM((H + 2, W + 2, C), jnp.float32)],
        compiler_params=dsem,
    )(x_nc, params["ln_g"].reshape(C, 1), params["ln_b"].reshape(C, 1),
      w_qkv_t, params["w_dw"], params["b_dw"].reshape(1, C),
      w_comb_conv, params["b_comb"].reshape(1, C))

    # Free (bitcast) reshape: channel-first qkv -> per-(chunk, head) (dim_head*H, W),
    # reproducing 'b (h c) x y -> (b h) c x y -> b (...) d' with zero data movement.
    qkv = qkv.reshape(B, 3 * heads, dim_head * H, W)

    # ---- kernel 2: DPSA (all heads per step) + to_out + attn-half of combine ----
    comb = pl.pallas_call(
        functools.partial(_dpsa_combine_kernel, heads=heads),
        out_shape=jax.ShapeDtypeStruct((B, N, C), jnp.float32),
        grid=(B,),
        in_specs=[
            pl.BlockSpec((1, 3 * heads, dim_head * H, W), lambda i: (i, 0, 0, 0)),
            pl.BlockSpec((1, N, C), lambda i: (i, 0, 0)),
            full((heads, dim_head, C)), full((1, C)), full((C, C)),
        ],
        out_specs=pl.BlockSpec((1, N, C), lambda i: (i, 0, 0)),
        compiler_params=dsem,
    )(qkv, pcomb, w_out_h, params["b_attn_out"].reshape(1, C), w_comb_attn)

    # ---- kernel 3: full feed-forward, writes lane-dense (B, C, N) == NCHW order ----
    y_cn = pl.pallas_call(
        functools.partial(_ff_kernel, H=H, W=W, eps=1e-5),
        out_shape=jax.ShapeDtypeStruct((B, C, N), jnp.float32),
        grid=(B,),
        in_specs=[
            pl.BlockSpec((1, N, C), lambda i: (i, 0, 0)),
            full((C, Fi)), full((1, Fi)),
            full((3, 3, Fi)), full((1, Fi)),
            full((Fi, C)), full((1, C)),
        ],
        out_specs=pl.BlockSpec((1, C, N), lambda i: (i, 0, 0)),
        scratch_shapes=[pltpu.VMEM((H + 2, W + 2, Fi), jnp.float32)],
        compiler_params=dsem,
    )(comb, w_ff1, params["b_ff1"].reshape(1, Fi),
      params["w_ffdw"], params["b_ffdw"].reshape(1, Fi),
      w_ff2, params["b_ff2"].reshape(1, C))

    return y_cn.reshape(B, C, H, W)     # pure reshape back to NCHW (no transpose)


# ---------------------------------------------------------------------------

if __name__ == "__main__":
    # dim_head == W is required by the reference DPSA rearranges, and
    # H <= 16, W <= 16 keeps the default top-k pruning path inactive.
    B, DIM, H, W = 2, 8, 16, 8
    HEADS, DIM_HEAD, FF_MULT = 2, 8, 4

    key = jax.random.PRNGKey(0)
    kx, kp = jax.random.split(key)
    x = jax.random.normal(kx, (B, DIM, H, W), jnp.float32)   # NCHW like PyTorch
    params = init_hpb_params(kp, DIM, DIM_HEAD, HEADS, FF_MULT)

    fwd = jax.jit(functools.partial(hpb_forward, dim_head=DIM_HEAD, heads=HEADS))
    y = fwd(x, params)
    jax.block_until_ready(y)
    assert y.shape == (B, DIM, H, W)
    assert bool(jnp.all(jnp.isfinite(y)))
    print("KERNEL_OK")
</pallas_src>

<mosaic_0001>
module attributes {stable_mosaic.version = 11 : i64} {
  func.func @_dpsa_combine_kernel(%arg0: i32, %arg1: memref<1x6x128x8xf32, #tpu.memory_space<vmem>>, %arg2: memref<1x128x8xf32, #tpu.memory_space<vmem>>, %arg3: memref<2x8x8xbf16, #tpu.memory_space<vmem>>, %arg4: memref<1x8xf32, #tpu.memory_space<vmem>>, %arg5: memref<8x8xbf16, #tpu.memory_space<vmem>>, %arg6: memref<1x128x8xf32, #tpu.memory_space<vmem>>) attributes {dimension_semantics = [#tpu.dimension_semantics<parallel>], iteration_bounds = array<i64: 2>, scalar_prefetch = 0 : i64, scratch_operands = 0 : i64, tpu.core_type = #tpu.core_type<tc>, window_params = [{transform_indices = @transform_0, window_bounds = array<i64: 1, 6, 128, 8>}, {transform_indices = @transform_1, window_bounds = array<i64: 1, 128, 8>}, {pipeline_mode = #tpu.pipeline_mode<synchronous>, transform_indices = @transform_2, window_bounds = array<i64: 2, 8, 8>}, {pipeline_mode = #tpu.pipeline_mode<synchronous>, transform_indices = @transform_3, window_bounds = array<i64: 1, 8>}, {pipeline_mode = #tpu.pipeline_mode<synchronous>, transform_indices = @transform_4, window_bounds = array<i64: 8, 8>}, {transform_indices = @transform_5, window_bounds = array<i64: 1, 128, 8>}]} {
    %c0 = arith.constant 0 : index
    %c0_0 = arith.constant 0 : index
    %c0_1 = arith.constant 0 : index
    %c0_2 = arith.constant 0 : index
    %0 = vector.load %arg1[%c0, %c0_0, %c0_1, %c0_2] : memref<1x6x128x8xf32, #tpu.memory_space<vmem>>, vector<1x6x128x8xf32>
    %1 = vector.shape_cast %0 : vector<1x6x128x8xf32> to vector<6x128x8xf32>
    %c0_3 = arith.constant 0 : index
    %c0_4 = arith.constant 0 : index
    %c0_5 = arith.constant 0 : index
    %2 = vector.load %arg3[%c0_3, %c0_4, %c0_5] : memref<2x8x8xbf16, #tpu.memory_space<vmem>>, vector<2x8x8xbf16>
    %cst = arith.constant 0.000000e+00 : f32
    %3 = vector.broadcast %cst : f32 to vector<128x8xf32>
    %c0_6 = arith.constant 0 : index
    %c0_7 = arith.constant 0 : index
    %4 = vector.load %arg4[%c0_6, %c0_7] : memref<1x8xf32, #tpu.memory_space<vmem>>, vector<1x8xf32>
    %5 = vector.broadcast %4 : vector<1x8xf32> to vector<128x8xf32>
    %6 = arith.addf %3, %5 : vector<128x8xf32>
    %7 = vector.extract_strided_slice %1 {offsets = [0, 0, 0], sizes = [1, 128, 8], strides = [1, 1, 1]} : vector<6x128x8xf32> to vector<1x128x8xf32>
    %8 = vector.shape_cast %7 : vector<1x128x8xf32> to vector<128x8xf32>
    %9 = vector.extract_strided_slice %1 {offsets = [2, 0, 0], sizes = [1, 128, 8], strides = [1, 1, 1]} : vector<6x128x8xf32> to vector<1x128x8xf32>
    %10 = vector.shape_cast %9 : vector<1x128x8xf32> to vector<128x8xf32>
    %11 = vector.extract_strided_slice %1 {offsets = [4, 0, 0], sizes = [1, 128, 8], strides = [1, 1, 1]} : vector<6x128x8xf32> to vector<1x128x8xf32>
    %12 = vector.shape_cast %11 : vector<1x128x8xf32> to vector<128x8xf32>
    %13 = arith.mulf %8, %8 : vector<128x8xf32>
    %cst_8 = arith.constant dense<0.000000e+00> : vector<128xf32>
    %14 = vector.multi_reduction <add>, %13, %cst_8 [1] : vector<128x8xf32> to vector<128xf32>
    %15 = vector.shape_cast %14 : vector<128xf32> to vector<128x1xf32>
    %cst_9 = arith.constant 1.000000e-24 : f32
    %16 = vector.broadcast %cst_9 : f32 to vector<128x1xf32>
    %17 = arith.maximumf %15, %16 : vector<128x1xf32>
    %18 = math.rsqrt %17 : vector<128x1xf32>
    %19 = vector.broadcast %18 : vector<128x1xf32> to vector<128x8xf32>
    %20 = arith.mulf %8, %19 : vector<128x8xf32>
    %21 = arith.mulf %10, %10 : vector<128x8xf32>
    %cst_10 = arith.constant dense<0.000000e+00> : vector<128xf32>
    %22 = vector.multi_reduction <add>, %21, %cst_10 [1] : vector<128x8xf32> to vector<128xf32>
    %23 = vector.shape_cast %22 : vector<128xf32> to vector<128x1xf32>
    %cst_11 = arith.constant 1.000000e-24 : f32
    %24 = vector.broadcast %cst_11 : f32 to vector<128x1xf32>
    %25 = arith.maximumf %23, %24 : vector<128x1xf32>
    %26 = math.rsqrt %25 : vector<128x1xf32>
    %27 = vector.broadcast %26 : vector<128x1xf32> to vector<128x8xf32>
    %28 = arith.mulf %10, %27 : vector<128x8xf32>
    %29 = arith.truncf %20 : vector<128x8xf32> to vector<128x8xbf16>
    %30 = tpu.transpose %28, [1, 0] : vector<128x8xf32> -> vector<8x128xf32>
    %31 = arith.truncf %30 : vector<8x128xf32> to vector<8x128xbf16>
    %cst_12 = arith.constant dense<0.000000e+00> : vector<128x128xf32>
    %32 = tpu.matmul %29, %31, %cst_12 {dimension_numbers = #tpu.dot_dimension_numbers<[1], [0], [0], [1], [0, 0, 1, 1], [], []>} : vector<128x8xbf16>, vector<8x128xbf16>, vector<128x128xf32> -> vector<128x128xf32>
    %cst_13 = arith.constant dense<0xFF800000> : vector<128xf32>
    %33 = vector.multi_reduction <maximumf>, %32, %cst_13 [1] : vector<128x128xf32> to vector<128xf32>
    %34 = vector.shape_cast %33 : vector<128xf32> to vector<128x1xf32>
    %35 = vector.broadcast %34 : vector<128x1xf32> to vector<128x128xf32>
    %36 = arith.subf %32, %35 : vector<128x128xf32>
    %37 = math.exp %36 : vector<128x128xf32>
    %cst_14 = arith.constant dense<0.000000e+00> : vector<128xf32>
    %38 = vector.multi_reduction <add>, %37, %cst_14 [1] : vector<128x128xf32> to vector<128xf32>
    %39 = vector.shape_cast %38 : vector<128xf32> to vector<128x1xf32>
    %40 = tpu.reciprocal %39 {approx = true} : vector<128x1xf32> -> vector<128x1xf32>
    %41 = vector.broadcast %40 : vector<128x1xf32> to vector<128x128xf32>
    %42 = arith.mulf %37, %41 : vector<128x128xf32>
    %43 = arith.truncf %42 : vector<128x128xf32> to vector<128x128xbf16>
    %44 = arith.truncf %12 : vector<128x8xf32> to vector<128x8xbf16>
    %cst_15 = arith.constant dense<0.000000e+00> : vector<128x8xf32>
    %45 = tpu.matmul %43, %44, %cst_15 {dimension_numbers = #tpu.dot_dimension_numbers<[1], [0], [0], [1], [0, 0, 1, 1], [], []>} : vector<128x128xbf16>, vector<128x8xbf16>, vector<128x8xf32> -> vector<128x8xf32>
    %46 = arith.truncf %45 : vector<128x8xf32> to vector<128x8xbf16>
    %47 = vector.extract_strided_slice %2 {offsets = [0, 0, 0], sizes = [1, 8, 8], strides = [1, 1, 1]} : vector<2x8x8xbf16> to vector<1x8x8xbf16>
    %48 = vector.shape_cast %47 : vector<1x8x8xbf16> to vector<8x8xbf16>
    %cst_16 = arith.constant dense<0.000000e+00> : vector<128x8xf32>
    %49 = tpu.matmul %46, %48, %cst_16 {dimension_numbers = #tpu.dot_dimension_numbers<[1], [0], [0], [1], [0, 0, 1, 1], [], []>} : vector<128x8xbf16>, vector<8x8xbf16>, vector<128x8xf32> -> vector<128x8xf32>
    %50 = arith.addf %6, %49 : vector<128x8xf32>
    %51 = vector.extract_strided_slice %1 {offsets = [1, 0, 0], sizes = [1, 128, 8], strides = [1, 1, 1]} : vector<6x128x8xf32> to vector<1x128x8xf32>
    %52 = vector.shape_cast %51 : vector<1x128x8xf32> to vector<128x8xf32>
    %53 = vector.extract_strided_slice %1 {offsets = [3, 0, 0], sizes = [1, 128, 8], strides = [1, 1, 1]} : vector<6x128x8xf32> to vector<1x128x8xf32>
    %54 = vector.shape_cast %53 : vector<1x128x8xf32> to vector<128x8xf32>
    %55 = vector.extract_strided_slice %1 {offsets = [5, 0, 0], sizes = [1, 128, 8], strides = [1, 1, 1]} : vector<6x128x8xf32> to vector<1x128x8xf32>
    %56 = vector.shape_cast %55 : vector<1x128x8xf32> to vector<128x8xf32>
    %57 = arith.mulf %52, %52 : vector<128x8xf32>
    %cst_17 = arith.constant dense<0.000000e+00> : vector<128xf32>
    %58 = vector.multi_reduction <add>, %57, %cst_17 [1] : vector<128x8xf32> to vector<128xf32>
    %59 = vector.shape_cast %58 : vector<128xf32> to vector<128x1xf32>
    %cst_18 = arith.constant 1.000000e-24 : f32
    %60 = vector.broadcast %cst_18 : f32 to vector<128x1xf32>
    %61 = arith.maximumf %59, %60 : vector<128x1xf32>
    %62 = math.rsqrt %61 : vector<128x1xf32>
    %63 = vector.broadcast %62 : vector<128x1xf32> to vector<128x8xf32>
    %64 = arith.mulf %52, %63 : vector<128x8xf32>
    %65 = arith.mulf %54, %54 : vector<128x8xf32>
    %cst_19 = arith.constant dense<0.000000e+00> : vector<128xf32>
    %66 = vector.multi_reduction <add>, %65, %cst_19 [1] : vector<128x8xf32> to vector<128xf32>
    %67 = vector.shape_cast %66 : vector<128xf32> to vector<128x1xf32>
    %cst_20 = arith.constant 1.000000e-24 : f32
    %68 = vector.broadcast %cst_20 : f32 to vector<128x1xf32>
    %69 = arith.maximumf %67, %68 : vector<128x1xf32>
    %70 = math.rsqrt %69 : vector<128x1xf32>
    %71 = vector.broadcast %70 : vector<128x1xf32> to vector<128x8xf32>
    %72 = arith.mulf %54, %71 : vector<128x8xf32>
    %73 = arith.truncf %64 : vector<128x8xf32> to vector<128x8xbf16>
    %74 = tpu.transpose %72, [1, 0] : vector<128x8xf32> -> vector<8x128xf32>
    %75 = arith.truncf %74 : vector<8x128xf32> to vector<8x128xbf16>
    %cst_21 = arith.constant dense<0.000000e+00> : vector<128x128xf32>
    %76 = tpu.matmul %73, %75, %cst_21 {dimension_numbers = #tpu.dot_dimension_numbers<[1], [0], [0], [1], [0, 0, 1, 1], [], []>} : vector<128x8xbf16>, vector<8x128xbf16>, vector<128x128xf32> -> vector<128x128xf32>
    %cst_22 = arith.constant dense<0xFF800000> : vector<128xf32>
    %77 = vector.multi_reduction <maximumf>, %76, %cst_22 [1] : vector<128x128xf32> to vector<128xf32>
    %78 = vector.shape_cast %77 : vector<128xf32> to vector<128x1xf32>
    %79 = vector.broadcast %78 : vector<128x1xf32> to vector<128x128xf32>
    %80 = arith.subf %76, %79 : vector<128x128xf32>
    %81 = math.exp %80 : vector<128x128xf32>
    %cst_23 = arith.constant dense<0.000000e+00> : vector<128xf32>
    %82 = vector.multi_reduction <add>, %81, %cst_23 [1] : vector<128x128xf32> to vector<128xf32>
    %83 = vector.shape_cast %82 : vector<128xf32> to vector<128x1xf32>
    %84 = tpu.reciprocal %83 {approx = true} : vector<128x1xf32> -> vector<128x1xf32>
    %85 = vector.broadcast %84 : vector<128x1xf32> to vector<128x128xf32>
    %86 = arith.mulf %81, %85 : vector<128x128xf32>
    %87 = arith.truncf %86 : vector<128x128xf32> to vector<128x128xbf16>
    %88 = arith.truncf %56 : vector<128x8xf32> to vector<128x8xbf16>
    %cst_24 = arith.constant dense<0.000000e+00> : vector<128x8xf32>
    %89 = tpu.matmul %87, %88, %cst_24 {dimension_numbers = #tpu.dot_dimension_numbers<[1], [0], [0], [1], [0, 0, 1, 1], [], []>} : vector<128x128xbf16>, vector<128x8xbf16>, vector<128x8xf32> -> vector<128x8xf32>
    %90 = arith.truncf %89 : vector<128x8xf32> to vector<128x8xbf16>
    %91 = vector.extract_strided_slice %2 {offsets = [1, 0, 0], sizes = [1, 8, 8], strides = [1, 1, 1]} : vector<2x8x8xbf16> to vector<1x8x8xbf16>
    %92 = vector.shape_cast %91 : vector<1x8x8xbf16> to vector<8x8xbf16>
    %cst_25 = arith.constant dense<0.000000e+00> : vector<128x8xf32>
    %93 = tpu.matmul %90, %92, %cst_25 {dimension_numbers = #tpu.dot_dimension_numbers<[1], [0], [0], [1], [0, 0, 1, 1], [], []>} : vector<128x8xbf16>, vector<8x8xbf16>, vector<128x8xf32> -> vector<128x8xf32>
    %94 = arith.addf %50, %93 : vector<128x8xf32>
    %c0_26 = arith.constant 0 : index
    %c0_27 = arith.constant 0 : index
    %c0_28 = arith.constant 0 : index
    %95 = vector.load %arg2[%c0_26, %c0_27, %c0_28] : memref<1x128x8xf32, #tpu.memory_space<vmem>>, vector<1x128x8xf32>
    %96 = vector.shape_cast %95 : vector<1x128x8xf32> to vector<128x8xf32>
    %97 = arith.truncf %94 : vector<128x8xf32> to vector<128x8xbf16>
    %c0_29 = arith.constant 0 : index
    %c0_30 = arith.constant 0 : index
    %98 = vector.load %arg5[%c0_29, %c0_30] : memref<8x8xbf16, #tpu.memory_space<vmem>>, vector<8x8xbf16>
    %cst_31 = arith.constant dense<0.000000e+00> : vector<128x8xf32>
    %99 = tpu.matmul %97, %98, %cst_31 {dimension_numbers = #tpu.dot_dimension_numbers<[1], [0], [0], [1], [0, 0, 1, 1], [], []>} : vector<128x8xbf16>, vector<8x8xbf16>, vector<128x8xf32> -> vector<128x8xf32>
    %100 = arith.addf %96, %99 : vector<128x8xf32>
    %c0_32 = arith.constant 0 : index
    %c0_33 = arith.constant 0 : index
    %c0_34 = arith.constant 0 : index
    %101 = vector.load %arg6[%c0_32, %c0_33, %c0_34] : memref<1x128x8xf32, #tpu.memory_space<vmem>>, vector<1x128x8xf32>
    %102 = vector.shape_cast %101 : vector<1x128x8xf32> to vector<128x8xf32>
    %103 = vector.shape_cast %100 : vector<128x8xf32> to vector<1x128x8xf32>
    tpu.vector_store %arg6[%c0_32, %c0_33, %c0_34], %103 {strides = array<i32>} : memref<1x128x8xf32, #tpu.memory_space<vmem>>, vector<1x128x8xf32>,
    return
  }
  func.func @transform_0(%arg0: i32) -> (i32, i32, i32, i32) {
    %c0_i32 = arith.constant 0 : i32
    %c0_i32_0 = arith.constant 0 : i32
    %c0_i32_1 = arith.constant 0 : i32
    %c0_i32_2 = arith.constant 0 : i32
    return %arg0, %c0_i32, %c0_i32_0, %c0_i32_1 : i32, i32, i32, i32
  }
  func.func @transform_1(%arg0: i32) -> (i32, i32, i32) {
    %c0_i32 = arith.constant 0 : i32
    %c0_i32_0 = arith.constant 0 : i32
    %c0_i32_1 = arith.constant 0 : i32
    return %arg0, %c0_i32, %c0_i32_0 : i32, i32, i32
  }
  func.func @transform_2(%arg0: i32) -> (i32, i32, i32) {
    %c0_i32 = arith.constant 0 : i32
    %c0_i32_0 = arith.constant 0 : i32
    %c0_i32_1 = arith.constant 0 : i32
    %c0_i32_2 = arith.constant 0 : i32
    return %c0_i32, %c0_i32_0, %c0_i32_1 : i32, i32, i32
  }
  func.func @transform_3(%arg0: i32) -> (i32, i32) {
    %c0_i32 = arith.constant 0 : i32
    %c0_i32_0 = arith.constant 0 : i32
    %c0_i32_1 = arith.constant 0 : i32
    return %c0_i32, %c0_i32_0 : i32, i32
  }
  func.func @transform_4(%arg0: i32) -> (i32, i32) {
    %c0_i32 = arith.constant 0 : i32
    %c0_i32_0 = arith.constant 0 : i32
    %c0_i32_1 = arith.constant 0 : i32
    return %c0_i32, %c0_i32_0 : i32, i32
  }
  func.func @transform_5(%arg0: i32) -> (i32, i32, i32) {
    %c0_i32 = arith.constant 0 : i32
    %c0_i32_0 = arith.constant 0 : i32
    %c0_i32_1 = arith.constant 0 : i32
    return %arg0, %c0_i32, %c0_i32_0 : i32, i32, i32
  }
}

module attributes {stable_mosaic.version = 11 : i64} {
  func.func @_ln_qkv_conv_kernel(%arg0: i32, %arg1: memref<1x128x8xf32, #tpu.memory_space<vmem>>, %arg2: memref<8x1xf32, #tpu.memory_space<vmem>>, %arg3: memref<8x1xf32, #tpu.memory_space<vmem>>, %arg4: memref<48x8xbf16, #tpu.memory_space<vmem>>, %arg5: memref<3x3x8xf32, #tpu.memory_space<vmem>>, %arg6: memref<1x8xf32, #tpu.memory_space<vmem>>, %arg7: memref<8x8xbf16, #tpu.memory_space<vmem>>, %arg8: memref<1x8xf32, #tpu.memory_space<vmem>>, %arg9: memref<1x48x128xf32, #tpu.memory_space<vmem>>, %arg10: memref<1x128x8xf32, #tpu.memory_space<vmem>>, %arg11: memref<18x10x8xf32, #tpu.memory_space<vmem>>) attributes {dimension_semantics = [#tpu.dimension_semantics<parallel>], iteration_bounds = array<i64: 2>, scalar_prefetch = 0 : i64, scratch_operands = 1 : i64, tpu.core_type = #tpu.core_type<tc>, window_params = [{transform_indices = @transform_0, window_bounds = array<i64: 1, 128, 8>}, {pipeline_mode = #tpu.pipeline_mode<synchronous>, transform_indices = @transform_1, window_bounds = array<i64: 8, 1>}, {pipeline_mode = #tpu.pipeline_mode<synchronous>, transform_indices = @transform_2, window_bounds = array<i64: 8, 1>}, {pipeline_mode = #tpu.pipeline_mode<synchronous>, transform_indices = @transform_3, window_bounds = array<i64: 48, 8>}, {pipeline_mode = #tpu.pipeline_mode<synchronous>, transform_indices = @transform_4, window_bounds = array<i64: 3, 3, 8>}, {pipeline_mode = #tpu.pipeline_mode<synchronous>, transform_indices = @transform_5, window_bounds = array<i64: 1, 8>}, {pipeline_mode = #tpu.pipeline_mode<synchronous>, transform_indices = @transform_6, window_bounds = array<i64: 8, 8>}, {pipeline_mode = #tpu.pipeline_mode<synchronous>, transform_indices = @transform_7, window_bounds = array<i64: 1, 8>}, {transform_indices = @transform_8, window_bounds = array<i64: 1, 48, 128>}, {transform_indices = @transform_9, window_bounds = array<i64: 1, 128, 8>}]} {
    %c0 = arith.constant 0 : index
    %c0_0 = arith.constant 0 : index
    %c0_1 = arith.constant 0 : index
    %0 = vector.load %arg1[%c0, %c0_0, %c0_1] : memref<1x128x8xf32, #tpu.memory_space<vmem>>, vector<1x128x8xf32>
    %1 = vector.shape_cast %0 : vector<1x128x8xf32> to vector<128x8xf32>
    %2 = tpu.transpose %1, [1, 0] : vector<128x8xf32> -> vector<8x128xf32>
    %cst = arith.constant dense<0.000000e+00> : vector<128xf32>
    %3 = vector.multi_reduction <add>, %2, %cst [0] : vector<8x128xf32> to vector<128xf32>
    %4 = vector.shape_cast %3 : vector<128xf32> to vector<1x128xf32>
    %cst_2 = arith.constant 8.000000e+00 : f32
    %5 = vector.broadcast %cst_2 : f32 to vector<1x128xf32>
    %6 = arith.divf %4, %5 : vector<1x128xf32>
    %7 = vector.broadcast %6 : vector<1x128xf32> to vector<8x128xf32>
    %8 = arith.subf %2, %7 : vector<8x128xf32>
    %9 = arith.mulf %8, %8 : vector<8x128xf32>
    %cst_3 = arith.constant dense<0.000000e+00> : vector<128xf32>
    %10 = vector.multi_reduction <add>, %9, %cst_3 [0] : vector<8x128xf32> to vector<128xf32>
    %11 = vector.shape_cast %10 : vector<128xf32> to vector<1x128xf32>
    %cst_4 = arith.constant 8.000000e+00 : f32
    %12 = vector.broadcast %cst_4 : f32 to vector<1x128xf32>
    %13 = arith.divf %11, %12 : vector<1x128xf32>
    %14 = vector.broadcast %6 : vector<1x128xf32> to vector<8x128xf32>
    %15 = arith.subf %2, %14 : vector<8x128xf32>
    %cst_5 = arith.constant 9.99999974E-6 : f32
    %16 = vector.broadcast %cst_5 : f32 to vector<1x128xf32>
    %17 = arith.addf %13, %16 : vector<1x128xf32>
    %18 = math.rsqrt %17 : vector<1x128xf32>
    %19 = vector.broadcast %18 : vector<1x128xf32> to vector<8x128xf32>
    %20 = arith.mulf %15, %19 : vector<8x128xf32>
    %c0_6 = arith.constant 0 : index
    %c0_7 = arith.constant 0 : index
    %21 = vector.load %arg2[%c0_6, %c0_7] : memref<8x1xf32, #tpu.memory_space<vmem>>, vector<8x1xf32>
    %22 = vector.broadcast %21 : vector<8x1xf32> to vector<8x128xf32>
    %23 = arith.mulf %20, %22 : vector<8x128xf32>
    %c0_8 = arith.constant 0 : index
    %c0_9 = arith.constant 0 : index
    %24 = vector.load %arg3[%c0_8, %c0_9] : memref<8x1xf32, #tpu.memory_space<vmem>>, vector<8x1xf32>
    %25 = vector.broadcast %24 : vector<8x1xf32> to vector<8x128xf32>
    %26 = arith.addf %23, %25 : vector<8x128xf32>
    %c0_10 = arith.constant 0 : index
    %c0_11 = arith.constant 0 : index
    %27 = vector.load %arg4[%c0_10, %c0_11] : memref<48x8xbf16, #tpu.memory_space<vmem>>, vector<48x8xbf16>
    %28 = arith.truncf %26 : vector<8x128xf32> to vector<8x128xbf16>
    %cst_12 = arith.constant dense<0.000000e+00> : vector<48x128xf32>
    %29 = tpu.matmul %27, %28, %cst_12 {dimension_numbers = #tpu.dot_dimension_numbers<[1], [0], [0], [1], [0, 0, 1, 1], [], []>} : vector<48x8xbf16>, vector<8x128xbf16>, vector<48x128xf32> -> vector<48x128xf32>
    %c0_13 = arith.constant 0 : index
    %c0_14 = arith.constant 0 : index
    %c0_15 = arith.constant 0 : index
    %30 = vector.load %arg9[%c0_13, %c0_14, %c0_15] : memref<1x48x128xf32, #tpu.memory_space<vmem>>, vector<1x48x128xf32>
    %31 = vector.shape_cast %30 : vector<1x48x128xf32> to vector<48x128xf32>
    %32 = vector.shape_cast %29 : vector<48x128xf32> to vector<1x48x128xf32>
    tpu.vector_store %arg9[%c0_13, %c0_14, %c0_15], %32 {strides = array<i32>} : memref<1x48x128xf32, #tpu.memory_space<vmem>>, vector<1x48x128xf32>,
    %33 = vector.shape_cast %1 : vector<128x8xf32> to vector<16x8x8xf32>
    %cst_16 = arith.constant 0.000000e+00 : f32
    %34 = vector.broadcast %cst_16 : f32 to vector<18x10x8xf32>
    %c0_17 = arith.constant 0 : index
    %c0_18 = arith.constant 0 : index
    %c0_19 = arith.constant 0 : index
    %35 = vector.load %arg11[%c0_17, %c0_18, %c0_19] : memref<18x10x8xf32, #tpu.memory_space<vmem>>, vector<18x10x8xf32>
    tpu.vector_store %arg11[%c0_17, %c0_18, %c0_19], %34 {strides = array<i32>} : memref<18x10x8xf32, #tpu.memory_space<vmem>>, vector<18x10x8xf32>,
    %c1 = arith.constant 1 : index
    %c1_20 = arith.constant 1 : index
    %c0_21 = arith.constant 0 : index
    %36 = vector.load %arg11[%c1, %c1_20, %c0_21] : memref<18x10x8xf32, #tpu.memory_space<vmem>>, vector<16x8x8xf32>
    tpu.vector_store %arg11[%c1, %c1_20, %c0_21], %33 {strides = array<i32>} : memref<18x10x8xf32, #tpu.memory_space<vmem>>, vector<16x8x8xf32>,
    %c0_22 = arith.constant 0 : index
    %c0_23 = arith.constant 0 : index
    %c0_24 = arith.constant 0 : index
    %37 = vector.load %arg11[%c0_22, %c0_23, %c0_24] : memref<18x10x8xf32, #tpu.memory_space<vmem>>, vector<18x10x8xf32>
    %c0_25 = arith.constant 0 : index
    %c0_26 = arith.constant 0 : index
    %c0_27 = arith.constant 0 : index
    %38 = vector.load %arg5[%c0_25, %c0_26, %c0_27] : memref<3x3x8xf32, #tpu.memory_space<vmem>>, vector<3x3x8xf32>
    %cst_28 = arith.constant 0.000000e+00 : f32
    %39 = vector.broadcast %cst_28 : f32 to vector<16x8x8xf32>
    %40 = vector.extract_strided_slice %37 {offsets = [0, 0, 0], sizes = [16, 8, 8], strides = [1, 1, 1]} : vector<18x10x8xf32> to vector<16x8x8xf32>
    %41 = vector.extract_strided_slice %38 {offsets = [0, 0, 0], sizes = [1, 1, 8], strides = [1, 1, 1]} : vector<3x3x8xf32> to vector<1x1x8xf32>
    %42 = vector.shape_cast %41 : vector<1x1x8xf32> to vector<8xf32>
    %43 = vector.shape_cast %42 : vector<8xf32> to vector<1x1x8xf32>
    %44 = vector.broadcast %43 : vector<1x1x8xf32> to vector<16x8x8xf32>
    %45 = arith.mulf %40, %44 : vector<16x8x8xf32>
    %46 = arith.addf %39, %45 : vector<16x8x8xf32>
    %47 = vector.extract_strided_slice %37 {offsets = [0, 1, 0], sizes = [16, 8, 8], strides = [1, 1, 1]} : vector<18x10x8xf32> to vector<16x8x8xf32>
    %48 = vector.extract_strided_slice %38 {offsets = [0, 1, 0], sizes = [1, 1, 8], strides = [1, 1, 1]} : vector<3x3x8xf32> to vector<1x1x8xf32>
    %49 = vector.shape_cast %48 : vector<1x1x8xf32> to vector<8xf32>
    %50 = vector.shape_cast %49 : vector<8xf32> to vector<1x1x8xf32>
    %51 = vector.broadcast %50 : vector<1x1x8xf32> to vector<16x8x8xf32>
    %52 = arith.mulf %47, %51 : vector<16x8x8xf32>
    %53 = arith.addf %46, %52 : vector<16x8x8xf32>
    %54 = vector.extract_strided_slice %37 {offsets = [0, 2, 0], sizes = [16, 8, 8], strides = [1, 1, 1]} : vector<18x10x8xf32> to vector<16x8x8xf32>
    %55 = vector.extract_strided_slice %38 {offsets = [0, 2, 0], sizes = [1, 1, 8], strides = [1, 1, 1]} : vector<3x3x8xf32> to vector<1x1x8xf32>
    %56 = vector.shape_cast %55 : vector<1x1x8xf32> to vector<8xf32>
    %57 = vector.shape_cast %56 : vector<8xf32> to vector<1x1x8xf32>
    %58 = vector.broadcast %57 : vector<1x1x8xf32> to vector<16x8x8xf32>
    %59 = arith.mulf %54, %58 : vector<16x8x8xf32>
    %60 = arith.addf %53, %59 : vector<16x8x8xf32>
    %61 = vector.extract_strided_slice %37 {offsets = [1, 0, 0], sizes = [16, 8, 8], strides = [1, 1, 1]} : vector<18x10x8xf32> to vector<16x8x8xf32>
    %62 = vector.extract_strided_slice %38 {offsets = [1, 0, 0], sizes = [1, 1, 8], strides = [1, 1, 1]} : vector<3x3x8xf32> to vector<1x1x8xf32>
    %63 = vector.shape_cast %62 : vector<1x1x8xf32> to vector<8xf32>
    %64 = vector.shape_cast %63 : vector<8xf32> to vector<1x1x8xf32>
    %65 = vector.broadcast %64 : vector<1x1x8xf32> to vector<16x8x8xf32>
    %66 = arith.mulf %61, %65 : vector<16x8x8xf32>
    %67 = arith.addf %60, %66 : vector<16x8x8xf32>
    %68 = vector.extract_strided_slice %37 {offsets = [1, 1, 0], sizes = [16, 8, 8], strides = [1, 1, 1]} : vector<18x10x8xf32> to vector<16x8x8xf32>
    %69 = vector.extract_strided_slice %38 {offsets = [1, 1, 0], sizes = [1, 1, 8], strides = [1, 1, 1]} : vector<3x3x8xf32> to vector<1x1x8xf32>
    %70 = vector.shape_cast %69 : vector<1x1x8xf32> to vector<8xf32>
    %71 = vector.shape_cast %70 : vector<8xf32> to vector<1x1x8xf32>
    %72 = vector.broadcast %71 : vector<1x1x8xf32> to vector<16x8x8xf32>
    %73 = arith.mulf %68, %72 : vector<16x8x8xf32>
    %74 = arith.addf %67, %73 : vector<16x8x8xf32>
    %75 = vector.extract_strided_slice %37 {offsets = [1, 2, 0], sizes = [16, 8, 8], strides = [1, 1, 1]} : vector<18x10x8xf32> to vector<16x8x8xf32>
    %76 = vector.extract_strided_slice %38 {offsets = [1, 2, 0], sizes = [1, 1, 8], strides = [1, 1, 1]} : vector<3x3x8xf32> to vector<1x1x8xf32>
    %77 = vector.shape_cast %76 : vector<1x1x8xf32> to vector<8xf32>
    %78 = vector.shape_cast %77 : vector<8xf32> to vector<1x1x8xf32>
    %79 = vector.broadcast %78 : vector<1x1x8xf32> to vector<16x8x8xf32>
    %80 = arith.mulf %75, %79 : vector<16x8x8xf32>
    %81 = arith.addf %74, %80 : vector<16x8x8xf32>
    %82 = vector.extract_strided_slice %37 {offsets = [2, 0, 0], sizes = [16, 8, 8], strides = [1, 1, 1]} : vector<18x10x8xf32> to vector<16x8x8xf32>
    %83 = vector.extract_strided_slice %38 {offsets = [2, 0, 0], sizes = [1, 1, 8], strides = [1, 1, 1]} : vector<3x3x8xf32> to vector<1x1x8xf32>
    %84 = vector.shape_cast %83 : vector<1x1x8xf32> to vector<8xf32>
    %85 = vector.shape_cast %84 : vector<8xf32> to vector<1x1x8xf32>
    %86 = vector.broadcast %85 : vector<1x1x8xf32> to vector<16x8x8xf32>
    %87 = arith.mulf %82, %86 : vector<16x8x8xf32>
    %88 = arith.addf %81, %87 : vector<16x8x8xf32>
    %89 = vector.extract_strided_slice %37 {offsets = [2, 1, 0], sizes = [16, 8, 8], strides = [1, 1, 1]} : vector<18x10x8xf32> to vector<16x8x8xf32>
    %90 = vector.extract_strided_slice %38 {offsets = [2, 1, 0], sizes = [1, 1, 8], strides = [1, 1, 1]} : vector<3x3x8xf32> to vector<1x1x8xf32>
    %91 = vector.shape_cast %90 : vector<1x1x8xf32> to vector<8xf32>
    %92 = vector.shape_cast %91 : vector<8xf32> to vector<1x1x8xf32>
    %93 = vector.broadcast %92 : vector<1x1x8xf32> to vector<16x8x8xf32>
    %94 = arith.mulf %89, %93 : vector<16x8x8xf32>
    %95 = arith.addf %88, %94 : vector<16x8x8xf32>
    %96 = vector.extract_strided_slice %37 {offsets = [2, 2, 0], sizes = [16, 8, 8], strides = [1, 1, 1]} : vector<18x10x8xf32> to vector<16x8x8xf32>
    %97 = vector.extract_strided_slice %38 {offsets = [2, 2, 0], sizes = [1, 1, 8], strides = [1, 1, 1]} : vector<3x3x8xf32> to vector<1x1x8xf32>
    %98 = vector.shape_cast %97 : vector<1x1x8xf32> to vector<8xf32>
    %99 = vector.shape_cast %98 : vector<8xf32> to vector<1x1x8xf32>
    %100 = vector.broadcast %99 : vector<1x1x8xf32> to vector<16x8x8xf32>
    %101 = arith.mulf %96, %100 : vector<16x8x8xf32>
    %102 = arith.addf %95, %101 : vector<16x8x8xf32>
    %c0_29 = arith.constant 0 : index
    %c0_30 = arith.constant 0 : index
    %103 = vector.load %arg6[%c0_29, %c0_30] : memref<1x8xf32, #tpu.memory_space<vmem>>, vector<1x8xf32>
    %104 = vector.shape_cast %103 : vector<1x8xf32> to vector<1x1x8xf32>
    %105 = vector.broadcast %104 : vector<1x1x8xf32> to vector<16x8x8xf32>
    %106 = arith.addf %102, %105 : vector<16x8x8xf32>
    %107 = vector.shape_cast %106 : vector<16x8x8xf32> to vector<128x8xf32>
    %108 = arith.truncf %107 : vector<128x8xf32> to vector<128x8xbf16>
    %c0_31 = arith.constant 0 : index
    %c0_32 = arith.constant 0 : index
    %109 = vector.load %arg7[%c0_31, %c0_32] : memref<8x8xbf16, #tpu.memory_space<vmem>>, vector<8x8xbf16>
    %cst_33 = arith.constant dense<0.000000e+00> : vector<128x8xf32>
    %110 = tpu.matmul %108, %109, %cst_33 {dimension_numbers = #tpu.dot_dimension_numbers<[1], [0], [0], [1], [0, 0, 1, 1], [], []>} : vector<128x8xbf16>, vector<8x8xbf16>, vector<128x8xf32> -> vector<128x8xf32>
    %c0_34 = arith.constant 0 : index
    %c0_35 = arith.constant 0 : index
    %111 = vector.load %arg8[%c0_34, %c0_35] : memref<1x8xf32, #tpu.memory_space<vmem>>, vector<1x8xf32>
    %112 = vector.broadcast %111 : vector<1x8xf32> to vector<128x8xf32>
    %113 = arith.addf %110, %112 : vector<128x8xf32>
    %114 = arith.addf %113, %1 : vector<128x8xf32>
    %c0_36 = arith.constant 0 : index
    %c0_37 = arith.constant 0 : index
    %c0_38 = arith.constant 0 : index
    %115 = vector.load %arg10[%c0_36, %c0_37, %c0_38] : memref<1x128x8xf32, #tpu.memory_space<vmem>>, vector<1x128x8xf32>
    %116 = vector.shape_cast %115 : vector<1x128x8xf32> to vector<128x8xf32>
    %117 = vector.shape_cast %114 : vector<128x8xf32> to vector<1x128x8xf32>
    tpu.vector_store %arg10[%c0_36, %c0_37, %c0_38], %117 {strides = array<i32>} : memref<1x128x8xf32, #tpu.memory_space<vmem>>, vector<1x128x8xf32>,
    return
  }
  func.func @transform_0(%arg0: i32) -> (i32, i32, i32) {
    %c0_i32 = arith.constant 0 : i32
    %c0_i32_0 = arith.constant 0 : i32
    %c0_i32_1 = arith.constant 0 : i32
    return %arg0, %c0_i32, %c0_i32_0 : i32, i32, i32
  }
  func.func @transform_1(%arg0: i32) -> (i32, i32) {
    %c0_i32 = arith.constant 0 : i32
    %c0_i32_0 = arith.constant 0 : i32
    %c0_i32_1 = arith.constant 0 : i32
    return %c0_i32, %c0_i32_0 : i32, i32
  }
  func.func @transform_2(%arg0: i32) -> (i32, i32) {
    %c0_i32 = arith.constant 0 : i32
    %c0_i32_0 = arith.constant 0 : i32
    %c0_i32_1 = arith.constant 0 : i32
    return %c0_i32, %c0_i32_0 : i32, i32
  }
  func.func @transform_3(%arg0: i32) -> (i32, i32) {
    %c0_i32 = arith.constant 0 : i32
    %c0_i32_0 = arith.constant 0 : i32
    %c0_i32_1 = arith.constant 0 : i32
    return %c0_i32, %c0_i32_0 : i32, i32
  }
  func.func @transform_4(%arg0: i32) -> (i32, i32, i32) {
    %c0_i32 = arith.constant 0 : i32
    %c0_i32_0 = arith.constant 0 : i32
    %c0_i32_1 = arith.constant 0 : i32
    %c0_i32_2 = arith.constant 0 : i32
    return %c0_i32, %c0_i32_0, %c0_i32_1 : i32, i32, i32
  }
  func.func @transform_5(%arg0: i32) -> (i32, i32) {
    %c0_i32 = arith.constant 0 : i32
    %c0_i32_0 = arith.constant 0 : i32
    %c0_i32_1 = arith.constant 0 : i32
    return %c0_i32, %c0_i32_0 : i32, i32
  }
  func.func @transform_6(%arg0: i32) -> (i32, i32) {
    %c0_i32 = arith.constant 0 : i32
    %c0_i32_0 = arith.constant 0 : i32
    %c0_i32_1 = arith.constant 0 : i32
    return %c0_i32, %c0_i32_0 : i32, i32
  }
  func.func @transform_7(%arg0: i32) -> (i32, i32) {
    %c0_i32 = arith.constant 0 : i32
    %c0_i32_0 = arith.constant 0 : i32
    %c0_i32_1 = arith.constant 0 : i32
    return %c0_i32, %c0_i32_0 : i32, i32
  }
  func.func @transform_8(%arg0: i32) -> (i32, i32, i32) {
    %c0_i32 = arith.constant 0 : i32
    %c0_i32_0 = arith.constant 0 : i32
    %c0_i32_1 = arith.constant 0 : i32
    return %arg0, %c0_i32, %c0_i32_0 : i32, i32, i32
  }
  func.func @transform_9(%arg0: i32) -> (i32, i32, i32) {
    %c0_i32 = arith.constant 0 : i32
    %c0_i32_0 = arith.constant 0 : i32
    %c0_i32_1 = arith.constant 0 : i32
    return %arg0, %c0_i32, %c0_i32_0 : i32, i32, i32
  }
}

module attributes {stable_mosaic.version = 11 : i64} {
  func.func @_ff_kernel(%arg0: i32, %arg1: memref<1x128x8xf32, #tpu.memory_space<vmem>>, %arg2: memref<8x32xbf16, #tpu.memory_space<vmem>>, %arg3: memref<1x32xf32, #tpu.memory_space<vmem>>, %arg4: memref<3x3x32xf32, #tpu.memory_space<vmem>>, %arg5: memref<1x32xf32, #tpu.memory_space<vmem>>, %arg6: memref<32x8xbf16, #tpu.memory_space<vmem>>, %arg7: memref<1x8xf32, #tpu.memory_space<vmem>>, %arg8: memref<1x8x128xf32, #tpu.memory_space<vmem>>, %arg9: memref<18x10x32xf32, #tpu.memory_space<vmem>>) attributes {dimension_semantics = [#tpu.dimension_semantics<parallel>], iteration_bounds = array<i64: 2>, scalar_prefetch = 0 : i64, scratch_operands = 1 : i64, tpu.core_type = #tpu.core_type<tc>, window_params = [{transform_indices = @transform_0, window_bounds = array<i64: 1, 128, 8>}, {pipeline_mode = #tpu.pipeline_mode<synchronous>, transform_indices = @transform_1, window_bounds = array<i64: 8, 32>}, {pipeline_mode = #tpu.pipeline_mode<synchronous>, transform_indices = @transform_2, window_bounds = array<i64: 1, 32>}, {pipeline_mode = #tpu.pipeline_mode<synchronous>, transform_indices = @transform_3, window_bounds = array<i64: 3, 3, 32>}, {pipeline_mode = #tpu.pipeline_mode<synchronous>, transform_indices = @transform_4, window_bounds = array<i64: 1, 32>}, {pipeline_mode = #tpu.pipeline_mode<synchronous>, transform_indices = @transform_5, window_bounds = array<i64: 32, 8>}, {pipeline_mode = #tpu.pipeline_mode<synchronous>, transform_indices = @transform_6, window_bounds = array<i64: 1, 8>}, {transform_indices = @transform_7, window_bounds = array<i64: 1, 8, 128>}]} {
    %c0 = arith.constant 0 : index
    %c0_0 = arith.constant 0 : index
    %c0_1 = arith.constant 0 : index
    %0 = vector.load %arg1[%c0, %c0_0, %c0_1] : memref<1x128x8xf32, #tpu.memory_space<vmem>>, vector<1x128x8xf32>
    %1 = vector.shape_cast %0 : vector<1x128x8xf32> to vector<128x8xf32>
    %2 = arith.truncf %1 : vector<128x8xf32> to vector<128x8xbf16>
    %c0_2 = arith.constant 0 : index
    %c0_3 = arith.constant 0 : index
    %3 = vector.load %arg2[%c0_2, %c0_3] : memref<8x32xbf16, #tpu.memory_space<vmem>>, vector<8x32xbf16>
    %cst = arith.constant dense<0.000000e+00> : vector<128x32xf32>
    %4 = tpu.matmul %2, %3, %cst {dimension_numbers = #tpu.dot_dimension_numbers<[1], [0], [0], [1], [0, 0, 1, 1], [], []>} : vector<128x8xbf16>, vector<8x32xbf16>, vector<128x32xf32> -> vector<128x32xf32>
    %c0_4 = arith.constant 0 : index
    %c0_5 = arith.constant 0 : index
    %5 = vector.load %arg3[%c0_4, %c0_5] : memref<1x32xf32, #tpu.memory_space<vmem>>, vector<1x32xf32>
    %6 = vector.broadcast %5 : vector<1x32xf32> to vector<128x32xf32>
    %7 = arith.addf %4, %6 : vector<128x32xf32>
    %cst_6 = arith.constant dense<0.000000e+00> : vector<32xf32>
    %8 = vector.multi_reduction <add>, %7, %cst_6 [0] : vector<128x32xf32> to vector<32xf32>
    %9 = vector.shape_cast %8 : vector<32xf32> to vector<1x32xf32>
    %cst_7 = arith.constant 1.280000e+02 : f32
    %10 = vector.broadcast %cst_7 : f32 to vector<1x32xf32>
    %11 = arith.divf %9, %10 : vector<1x32xf32>
    %12 = vector.broadcast %11 : vector<1x32xf32> to vector<128x32xf32>
    %13 = arith.subf %7, %12 : vector<128x32xf32>
    %14 = arith.mulf %13, %13 : vector<128x32xf32>
    %cst_8 = arith.constant dense<0.000000e+00> : vector<32xf32>
    %15 = vector.multi_reduction <add>, %14, %cst_8 [0] : vector<128x32xf32> to vector<32xf32>
    %16 = vector.shape_cast %15 : vector<32xf32> to vector<1x32xf32>
    %cst_9 = arith.constant 1.280000e+02 : f32
    %17 = vector.broadcast %cst_9 : f32 to vector<1x32xf32>
    %18 = arith.divf %16, %17 : vector<1x32xf32>
    %19 = vector.broadcast %11 : vector<1x32xf32> to vector<128x32xf32>
    %20 = arith.subf %7, %19 : vector<128x32xf32>
    %cst_10 = arith.constant 9.99999974E-6 : f32
    %21 = vector.broadcast %cst_10 : f32 to vector<1x32xf32>
    %22 = arith.addf %18, %21 : vector<1x32xf32>
    %23 = math.rsqrt %22 : vector<1x32xf32>
    %24 = vector.broadcast %23 : vector<1x32xf32> to vector<128x32xf32>
    %25 = arith.mulf %20, %24 : vector<128x32xf32>
    %cst_11 = arith.constant 5.000000e-01 : f32
    %26 = vector.broadcast %cst_11 : f32 to vector<128x32xf32>
    %27 = arith.mulf %26, %25 : vector<128x32xf32>
    %cst_12 = arith.constant 0.707106769 : f32
    %28 = vector.broadcast %cst_12 : f32 to vector<128x32xf32>
    %29 = arith.mulf %25, %28 : vector<128x32xf32>
    %30 = math.erf %29 : vector<128x32xf32>
    %cst_13 = arith.constant 1.000000e+00 : f32
    %31 = vector.broadcast %cst_13 : f32 to vector<128x32xf32>
    %32 = arith.addf %31, %30 : vector<128x32xf32>
    %33 = arith.mulf %27, %32 : vector<128x32xf32>
    %34 = vector.shape_cast %33 : vector<128x32xf32> to vector<16x8x32xf32>
    %cst_14 = arith.constant 0.000000e+00 : f32
    %35 = vector.broadcast %cst_14 : f32 to vector<18x10x32xf32>
    %c0_15 = arith.constant 0 : index
    %c0_16 = arith.constant 0 : index
    %c0_17 = arith.constant 0 : index
    %36 = vector.load %arg9[%c0_15, %c0_16, %c0_17] : memref<18x10x32xf32, #tpu.memory_space<vmem>>, vector<18x10x32xf32>
    tpu.vector_store %arg9[%c0_15, %c0_16, %c0_17], %35 {strides = array<i32>} : memref<18x10x32xf32, #tpu.memory_space<vmem>>, vector<18x10x32xf32>,
    %c1 = arith.constant 1 : index
    %c1_18 = arith.constant 1 : index
    %c0_19 = arith.constant 0 : index
    %37 = vector.load %arg9[%c1, %c1_18, %c0_19] : memref<18x10x32xf32, #tpu.memory_space<vmem>>, vector<16x8x32xf32>
    tpu.vector_store %arg9[%c1, %c1_18, %c0_19], %34 {strides = array<i32>} : memref<18x10x32xf32, #tpu.memory_space<vmem>>, vector<16x8x32xf32>,
    %c0_20 = arith.constant 0 : index
    %c0_21 = arith.constant 0 : index
    %c0_22 = arith.constant 0 : index
    %38 = vector.load %arg9[%c0_20, %c0_21, %c0_22] : memref<18x10x32xf32, #tpu.memory_space<vmem>>, vector<18x10x32xf32>
    %c0_23 = arith.constant 0 : index
    %c0_24 = arith.constant 0 : index
    %c0_25 = arith.constant 0 : index
    %39 = vector.load %arg4[%c0_23, %c0_24, %c0_25] : memref<3x3x32xf32, #tpu.memory_space<vmem>>, vector<3x3x32xf32>
    %cst_26 = arith.constant 0.000000e+00 : f32
    %40 = vector.broadcast %cst_26 : f32 to vector<16x8x32xf32>
    %41 = vector.extract_strided_slice %38 {offsets = [0, 0, 0], sizes = [16, 8, 32], strides = [1, 1, 1]} : vector<18x10x32xf32> to vector<16x8x32xf32>
    %42 = vector.extract_strided_slice %39 {offsets = [0, 0, 0], sizes = [1, 1, 32], strides = [1, 1, 1]} : vector<3x3x32xf32> to vector<1x1x32xf32>
    %43 = vector.shape_cast %42 : vector<1x1x32xf32> to vector<32xf32>
    %44 = vector.shape_cast %43 : vector<32xf32> to vector<1x1x32xf32>
    %45 = vector.broadcast %44 : vector<1x1x32xf32> to vector<16x8x32xf32>
    %46 = arith.mulf %41, %45 : vector<16x8x32xf32>
    %47 = arith.addf %40, %46 : vector<16x8x32xf32>
    %48 = vector.extract_strided_slice %38 {offsets = [0, 1, 0], sizes = [16, 8, 32], strides = [1, 1, 1]} : vector<18x10x32xf32> to vector<16x8x32xf32>
    %49 = vector.extract_strided_slice %39 {offsets = [0, 1, 0], sizes = [1, 1, 32], strides = [1, 1, 1]} : vector<3x3x32xf32> to vector<1x1x32xf32>
    %50 = vector.shape_cast %49 : vector<1x1x32xf32> to vector<32xf32>
    %51 = vector.shape_cast %50 : vector<32xf32> to vector<1x1x32xf32>
    %52 = vector.broadcast %51 : vector<1x1x32xf32> to vector<16x8x32xf32>
    %53 = arith.mulf %48, %52 : vector<16x8x32xf32>
    %54 = arith.addf %47, %53 : vector<16x8x32xf32>
    %55 = vector.extract_strided_slice %38 {offsets = [0, 2, 0], sizes = [16, 8, 32], strides = [1, 1, 1]} : vector<18x10x32xf32> to vector<16x8x32xf32>
    %56 = vector.extract_strided_slice %39 {offsets = [0, 2, 0], sizes = [1, 1, 32], strides = [1, 1, 1]} : vector<3x3x32xf32> to vector<1x1x32xf32>
    %57 = vector.shape_cast %56 : vector<1x1x32xf32> to vector<32xf32>
    %58 = vector.shape_cast %57 : vector<32xf32> to vector<1x1x32xf32>
    %59 = vector.broadcast %58 : vector<1x1x32xf32> to vector<16x8x32xf32>
    %60 = arith.mulf %55, %59 : vector<16x8x32xf32>
    %61 = arith.addf %54, %60 : vector<16x8x32xf32>
    %62 = vector.extract_strided_slice %38 {offsets = [1, 0, 0], sizes = [16, 8, 32], strides = [1, 1, 1]} : vector<18x10x32xf32> to vector<16x8x32xf32>
    %63 = vector.extract_strided_slice %39 {offsets = [1, 0, 0], sizes = [1, 1, 32], strides = [1, 1, 1]} : vector<3x3x32xf32> to vector<1x1x32xf32>
    %64 = vector.shape_cast %63 : vector<1x1x32xf32> to vector<32xf32>
    %65 = vector.shape_cast %64 : vector<32xf32> to vector<1x1x32xf32>
    %66 = vector.broadcast %65 : vector<1x1x32xf32> to vector<16x8x32xf32>
    %67 = arith.mulf %62, %66 : vector<16x8x32xf32>
    %68 = arith.addf %61, %67 : vector<16x8x32xf32>
    %69 = vector.extract_strided_slice %38 {offsets = [1, 1, 0], sizes = [16, 8, 32], strides = [1, 1, 1]} : vector<18x10x32xf32> to vector<16x8x32xf32>
    %70 = vector.extract_strided_slice %39 {offsets = [1, 1, 0], sizes = [1, 1, 32], strides = [1, 1, 1]} : vector<3x3x32xf32> to vector<1x1x32xf32>
    %71 = vector.shape_cast %70 : vector<1x1x32xf32> to vector<32xf32>
    %72 = vector.shape_cast %71 : vector<32xf32> to vector<1x1x32xf32>
    %73 = vector.broadcast %72 : vector<1x1x32xf32> to vector<16x8x32xf32>
    %74 = arith.mulf %69, %73 : vector<16x8x32xf32>
    %75 = arith.addf %68, %74 : vector<16x8x32xf32>
    %76 = vector.extract_strided_slice %38 {offsets = [1, 2, 0], sizes = [16, 8, 32], strides = [1, 1, 1]} : vector<18x10x32xf32> to vector<16x8x32xf32>
    %77 = vector.extract_strided_slice %39 {offsets = [1, 2, 0], sizes = [1, 1, 32], strides = [1, 1, 1]} : vector<3x3x32xf32> to vector<1x1x32xf32>
    %78 = vector.shape_cast %77 : vector<1x1x32xf32> to vector<32xf32>
    %79 = vector.shape_cast %78 : vector<32xf32> to vector<1x1x32xf32>
    %80 = vector.broadcast %79 : vector<1x1x32xf32> to vector<16x8x32xf32>
    %81 = arith.mulf %76, %80 : vector<16x8x32xf32>
    %82 = arith.addf %75, %81 : vector<16x8x32xf32>
    %83 = vector.extract_strided_slice %38 {offsets = [2, 0, 0], sizes = [16, 8, 32], strides = [1, 1, 1]} : vector<18x10x32xf32> to vector<16x8x32xf32>
    %84 = vector.extract_strided_slice %39 {offsets = [2, 0, 0], sizes = [1, 1, 32], strides = [1, 1, 1]} : vector<3x3x32xf32> to vector<1x1x32xf32>
    %85 = vector.shape_cast %84 : vector<1x1x32xf32> to vector<32xf32>
    %86 = vector.shape_cast %85 : vector<32xf32> to vector<1x1x32xf32>
    %87 = vector.broadcast %86 : vector<1x1x32xf32> to vector<16x8x32xf32>
    %88 = arith.mulf %83, %87 : vector<16x8x32xf32>
    %89 = arith.addf %82, %88 : vector<16x8x32xf32>
    %90 = vector.extract_strided_slice %38 {offsets = [2, 1, 0], sizes = [16, 8, 32], strides = [1, 1, 1]} : vector<18x10x32xf32> to vector<16x8x32xf32>
    %91 = vector.extract_strided_slice %39 {offsets = [2, 1, 0], sizes = [1, 1, 32], strides = [1, 1, 1]} : vector<3x3x32xf32> to vector<1x1x32xf32>
    %92 = vector.shape_cast %91 : vector<1x1x32xf32> to vector<32xf32>
    %93 = vector.shape_cast %92 : vector<32xf32> to vector<1x1x32xf32>
    %94 = vector.broadcast %93 : vector<1x1x32xf32> to vector<16x8x32xf32>
    %95 = arith.mulf %90, %94 : vector<16x8x32xf32>
    %96 = arith.addf %89, %95 : vector<16x8x32xf32>
    %97 = vector.extract_strided_slice %38 {offsets = [2, 2, 0], sizes = [16, 8, 32], strides = [1, 1, 1]} : vector<18x10x32xf32> to vector<16x8x32xf32>
    %98 = vector.extract_strided_slice %39 {offsets = [2, 2, 0], sizes = [1, 1, 32], strides = [1, 1, 1]} : vector<3x3x32xf32> to vector<1x1x32xf32>
    %99 = vector.shape_cast %98 : vector<1x1x32xf32> to vector<32xf32>
    %100 = vector.shape_cast %99 : vector<32xf32> to vector<1x1x32xf32>
    %101 = vector.broadcast %100 : vector<1x1x32xf32> to vector<16x8x32xf32>
    %102 = arith.mulf %97, %101 : vector<16x8x32xf32>
    %103 = arith.addf %96, %102 : vector<16x8x32xf32>
    %c0_27 = arith.constant 0 : index
    %c0_28 = arith.constant 0 : index
    %104 = vector.load %arg5[%c0_27, %c0_28] : memref<1x32xf32, #tpu.memory_space<vmem>>, vector<1x32xf32>
    %105 = vector.shape_cast %104 : vector<1x32xf32> to vector<1x1x32xf32>
    %106 = vector.broadcast %105 : vector<1x1x32xf32> to vector<16x8x32xf32>
    %107 = arith.addf %103, %106 : vector<16x8x32xf32>
    %108 = vector.shape_cast %107 : vector<16x8x32xf32> to vector<128x32xf32>
    %cst_29 = arith.constant dense<0.000000e+00> : vector<32xf32>
    %109 = vector.multi_reduction <add>, %108, %cst_29 [0] : vector<128x32xf32> to vector<32xf32>
    %110 = vector.shape_cast %109 : vector<32xf32> to vector<1x32xf32>
    %cst_30 = arith.constant 1.280000e+02 : f32
    %111 = vector.broadcast %cst_30 : f32 to vector<1x32xf32>
    %112 = arith.divf %110, %111 : vector<1x32xf32>
    %113 = vector.broadcast %112 : vector<1x32xf32> to vector<128x32xf32>
    %114 = arith.subf %108, %113 : vector<128x32xf32>
    %115 = arith.mulf %114, %114 : vector<128x32xf32>
    %cst_31 = arith.constant dense<0.000000e+00> : vector<32xf32>
    %116 = vector.multi_reduction <add>, %115, %cst_31 [0] : vector<128x32xf32> to vector<32xf32>
    %117 = vector.shape_cast %116 : vector<32xf32> to vector<1x32xf32>
    %cst_32 = arith.constant 1.280000e+02 : f32
    %118 = vector.broadcast %cst_32 : f32 to vector<1x32xf32>
    %119 = arith.divf %117, %118 : vector<1x32xf32>
    %120 = vector.broadcast %112 : vector<1x32xf32> to vector<128x32xf32>
    %121 = arith.subf %108, %120 : vector<128x32xf32>
    %cst_33 = arith.constant 9.99999974E-6 : f32
    %122 = vector.broadcast %cst_33 : f32 to vector<1x32xf32>
    %123 = arith.addf %119, %122 : vector<1x32xf32>
    %124 = math.rsqrt %123 : vector<1x32xf32>
    %125 = vector.broadcast %124 : vector<1x32xf32> to vector<128x32xf32>
    %126 = arith.mulf %121, %125 : vector<128x32xf32>
    %cst_34 = arith.constant 5.000000e-01 : f32
    %127 = vector.broadcast %cst_34 : f32 to vector<128x32xf32>
    %128 = arith.mulf %127, %126 : vector<128x32xf32>
    %cst_35 = arith.constant 0.707106769 : f32
    %129 = vector.broadcast %cst_35 : f32 to vector<128x32xf32>
    %130 = arith.mulf %126, %129 : vector<128x32xf32>
    %131 = math.erf %130 : vector<128x32xf32>
    %cst_36 = arith.constant 1.000000e+00 : f32
    %132 = vector.broadcast %cst_36 : f32 to vector<128x32xf32>
    %133 = arith.addf %132, %131 : vector<128x32xf32>
    %134 = arith.mulf %128, %133 : vector<128x32xf32>
    %135 = arith.addf %134, %33 : vector<128x32xf32>
    %136 = arith.truncf %135 : vector<128x32xf32> to vector<128x32xbf16>
    %c0_37 = arith.constant 0 : index
    %c0_38 = arith.constant 0 : index
    %137 = vector.load %arg6[%c0_37, %c0_38] : memref<32x8xbf16, #tpu.memory_space<vmem>>, vector<32x8xbf16>
    %cst_39 = arith.constant dense<0.000000e+00> : vector<128x8xf32>
    %138 = tpu.matmul %136, %137, %cst_39 {dimension_numbers = #tpu.dot_dimension_numbers<[1], [0], [0], [1], [0, 0, 1, 1], [], []>} : vector<128x32xbf16>, vector<32x8xbf16>, vector<128x8xf32> -> vector<128x8xf32>
    %c0_40 = arith.constant 0 : index
    %c0_41 = arith.constant 0 : index
    %139 = vector.load %arg7[%c0_40, %c0_41] : memref<1x8xf32, #tpu.memory_space<vmem>>, vector<1x8xf32>
    %140 = vector.broadcast %139 : vector<1x8xf32> to vector<128x8xf32>
    %141 = arith.addf %138, %140 : vector<128x8xf32>
    %cst_42 = arith.constant dense<0.000000e+00> : vector<8xf32>
    %142 = vector.multi_reduction <add>, %141, %cst_42 [0] : vector<128x8xf32> to vector<8xf32>
    %143 = vector.shape_cast %142 : vector<8xf32> to vector<1x8xf32>
    %cst_43 = arith.constant 1.280000e+02 : f32
    %144 = vector.broadcast %cst_43 : f32 to vector<1x8xf32>
    %145 = arith.divf %143, %144 : vector<1x8xf32>
    %146 = vector.broadcast %145 : vector<1x8xf32> to vector<128x8xf32>
    %147 = arith.subf %141, %146 : vector<128x8xf32>
    %148 = arith.mulf %147, %147 : vector<128x8xf32>
    %cst_44 = arith.constant dense<0.000000e+00> : vector<8xf32>
    %149 = vector.multi_reduction <add>, %148, %cst_44 [0] : vector<128x8xf32> to vector<8xf32>
    %150 = vector.shape_cast %149 : vector<8xf32> to vector<1x8xf32>
    %cst_45 = arith.constant 1.280000e+02 : f32
    %151 = vector.broadcast %cst_45 : f32 to vector<1x8xf32>
    %152 = arith.divf %150, %151 : vector<1x8xf32>
    %153 = vector.broadcast %145 : vector<1x8xf32> to vector<128x8xf32>
    %154 = arith.subf %141, %153 : vector<128x8xf32>
    %cst_46 = arith.constant 9.99999974E-6 : f32
    %155 = vector.broadcast %cst_46 : f32 to vector<1x8xf32>
    %156 = arith.addf %152, %155 : vector<1x8xf32>
    %157 = math.rsqrt %156 : vector<1x8xf32>
    %158 = vector.broadcast %157 : vector<1x8xf32> to vector<128x8xf32>
    %159 = arith.mulf %154, %158 : vector<128x8xf32>
    %160 = tpu.transpose %159, [1, 0] : vector<128x8xf32> -> vector<8x128xf32>
    %c0_47 = arith.constant 0 : index
    %c0_48 = arith.constant 0 : index
    %c0_49 = arith.constant 0 : index
    %161 = vector.load %arg8[%c0_47, %c0_48, %c0_49] : memref<1x8x128xf32, #tpu.memory_space<vmem>>, vector<1x8x128xf32>
    %162 = vector.shape_cast %161 : vector<1x8x128xf32> to vector<8x128xf32>
    %163 = vector.shape_cast %160 : vector<8x128xf32> to vector<1x8x128xf32>
    tpu.vector_store %arg8[%c0_47, %c0_48, %c0_49], %163 {strides = array<i32>} : memref<1x8x128xf32, #tpu.memory_space<vmem>>, vector<1x8x128xf32>,
    return
  }
  func.func @transform_0(%arg0: i32) -> (i32, i32, i32) {
    %c0_i32 = arith.constant 0 : i32
    %c0_i32_0 = arith.constant 0 : i32
    %c0_i32_1 = arith.constant 0 : i32
    return %arg0, %c0_i32, %c0_i32_0 : i32, i32, i32
  }
  func.func @transform_1(%arg0: i32) -> (i32, i32) {
    %c0_i32 = arith.constant 0 : i32
    %c0_i32_0 = arith.constant 0 : i32
    %c0_i32_1 = arith.constant 0 : i32
    return %c0_i32, %c0_i32_0 : i32, i32
  }
  func.func @transform_2(%arg0: i32) -> (i32, i32) {
    %c0_i32 = arith.constant 0 : i32
    %c0_i32_0 = arith.constant 0 : i32
    %c0_i32_1 = arith.constant 0 : i32
    return %c0_i32, %c0_i32_0 : i32, i32
  }
  func.func @transform_3(%arg0: i32) -> (i32, i32, i32) {
    %c0_i32 = arith.constant 0 : i32
    %c0_i32_0 = arith.constant 0 : i32
    %c0_i32_1 = arith.constant 0 : i32
    %c0_i32_2 = arith.constant 0 : i32
    return %c0_i32, %c0_i32_0, %c0_i32_1 : i32, i32, i32
  }
  func.func @transform_4(%arg0: i32) -> (i32, i32) {
    %c0_i32 = arith.constant 0 : i32
    %c0_i32_0 = arith.constant 0 : i32
    %c0_i32_1 = arith.constant 0 : i32
    return %c0_i32, %c0_i32_0 : i32, i32
  }
  func.func @transform_5(%arg0: i32) -> (i32, i32) {
    %c0_i32 = arith.constant 0 : i32
    %c0_i32_0 = arith.constant 0 : i32
    %c0_i32_1 = arith.constant 0 : i32
    return %c0_i32, %c0_i32_0 : i32, i32
  }
  func.func @transform_6(%arg0: i32) -> (i32, i32) {
    %c0_i32 = arith.constant 0 : i32
    %c0_i32_0 = arith.constant 0 : i32
    %c0_i32_1 = arith.constant 0 : i32
    return %c0_i32, %c0_i32_0 : i32, i32
  }
  func.func @transform_7(%arg0: i32) -> (i32, i32, i32) {
    %c0_i32 = arith.constant 0 : i32
    %c0_i32_0 = arith.constant 0 : i32
    %c0_i32_1 = arith.constant 0 : i32
    return %arg0, %c0_i32, %c0_i32_0 : i32, i32, i32
  }
}

</mosaic_0001>

<bundles_post_ra>
// kernel: hpb_forward.3
= control target key start
LH: loop header
LB: loop body
LE: loop exit
PB: predicated region body
PF: predicated region fallthrough
CT: control target
= control target key end

     0   :  { %s2059_s30 = smov 0   ;;  %s3078_s0 = inlined_call_operand.vmem [shape: f32[2,128,8], index: 0, kind: input, shape index: {}]   ;;  %s3079_s1 = inlined_call_operand.vmem [shape: f32[8,1], index: 1, kind: input, shape index: {}]   ;;  %s3080_s2 = inlined_call_operand.vmem [shape: f32[8,1], index: 2, kind: input, shape index: {}]   ;;  %s3081_s3 = inlined_call_operand.vmem [shape: bf16[48,8], index: 3, kind: input, shape index: {}]   ;;  %s3082_s4 = inlined_call_operand.vmem [shape: f32[3,3,8], index: 4, kind: input, shape index: {}]   ;;  %s3083_s5 = inlined_call_operand.vmem [shape: f32[1,8], index: 5, kind: input, shape index: {}]   ;;  %s3084_s6 = inlined_call_operand.vmem [shape: bf16[8,8], index: 6, kind: input, shape index: {}]   ;;  %s3085_s7 = inlined_call_operand.vmem [shape: f32[1,8], index: 7, kind: input, shape index: {}]   ;;  %s3086_s8 = inlined_call_operand.vmem [shape: f32[2,48,128], index: 8, kind: output, shape index: {0}]   ;;  %s3087_s9 = inlined_call_operand.vmem [shape: f32[2,128,8], index: 9, kind: output, shape index: {1}]  }
   0x1 LB: > { %s1902_s10 = sadd.s32 4294967295, %s2004_s30   ;;  %p1906_p0 = scmp.ge.s32.totalorder %s2004_s30, 1  ;;  %s2004_s30 = sphi %s2059_s30, %s20_s30  }
   0x2   : > { %p290_p1 = scmp.lt.s32.totalorder %s2004_s30, 3 }
   0x4   : > { %p291_p2 = pnand %p1906_p0, %p290_p1 }
   0x5   : > { %p2069_p3 = scmp.lt.s32.totalorder (!%p291_p2), %s1902_s10, 1  ;;  %vm451_vm0 = vcmask (!%p291_p2), 64512   ;;  %vm529_vm1 = vcmask (!%p291_p2), 58368   ;;  %v415_v0 = vld [vmem:[%s3079_s1] sm:$0xff] (!%p291_p2)  ;;  %v2006_v1 = vmov (!%p291_p2), 0.0   ;;  %v2007_v2 = vmov (!%p291_p2), 0  }
   0x6   : > { %294 = sbr.rel (%p291_p2) target bundleno = 435 (0x1b3), region = 52  ;;  %531 = vst.msk [vmem:[#allocation2 + $0x10] sm:$0xff] (!%p291_p2), %vm451_vm0, %v2006_v1  ;;  %528 = vst.msk [vmem:[#allocation2] sm:$0xff] (!%p291_p2), %vm451_vm0, %v2006_v1  ;;  %1990 = vset.pattern.permute.xlu1 (!%p291_p2), %v2007_v2  ;;  %1945 = vmatprep.subr.bf16.mxu0 (!%p291_p2), %v2006_v1  ;;  %v422_v3 = vld [vmem:[%s3080_s2] sm:$0xff] (!%p291_p2)  ;;  %v621_v20 = vlaneseq (!%p291_p2)  ;;  %vm725_vm2 = vcmask (!%p291_p2), 1046528   ;;  %vm874_vm3 = vcmask (!%p291_p2), 1045504  }
   0x7   : > { %532 = vst.msk [vmem:[#allocation2 + $0x18] sm:$0x3] (!%p291_p2), %vm529_vm1, %v2006_v1  ;;  %530 = vst.msk [vmem:[#allocation2 + $0x8] sm:$0x3] (!%p291_p2), %vm529_vm1, %v2006_v1  ;;  %418 = vperm.xlu1 (!%p291_p2), %1990, %v415_v0   ;;  %v618_v23 = vld [vmem:[%s3082_s4] sm:$0x7] (!%p291_p2) }
   0x8   : > { %533 = vst.msk [vmem:[#allocation2 + $0x20] sm:$0xff] (!%p291_p2), %vm451_vm0, %v2006_v1  ;;  %535 = vst.msk [vmem:[#allocation2 + $0x30] sm:$0xff] (!%p291_p2), %vm451_vm0, %v2006_v1  ;;  %v622_v21 = vshrl.u32 (!%p291_p2), %v621_v20, 7  ;;  %v619_v49 = vld [vmem:[%s3082_s4 + $0x4] sm:$0x7] (!%p291_p2)  ;;  %vm461_vm4 = vcmask (!%p291_p2), 1043456  }
   0x9   : > { %534 = vst.msk [vmem:[#allocation2 + $0x28] sm:$0x3] (!%p291_p2), %vm529_vm1, %v2006_v1  ;;  %536 = vst.msk [vmem:[#allocation2 + $0x38] sm:$0x3] (!%p291_p2), %vm529_vm1, %v2006_v1  ;;  %vm2008_vm5 = vmmov (!%p291_p2), 0  }
   0xa   : > { %537 = vst.msk [vmem:[#allocation2 + $0x40] sm:$0xff] (!%p291_p2), %vm451_vm0, %v2006_v1  ;;  %539 = vst.msk [vmem:[#allocation2 + $0x50] sm:$0xff] (!%p291_p2), %vm451_vm0, %v2006_v1  ;;  %v2251_v22 = vsub.s32 (!%p291_p2), 1, %v622_v21  ;;  %v2259_v25 = vsub.s32 (!%p291_p2), 2, %v622_v21  ;;  %v2261_v29 = vsub.s32 (!%p291_p2), 0, %v622_v21  ;;  %1947 = vmatprep.mubr.msk.bf16.mxu0 (!%p291_p2), %vm2008_vm5, %v2006_v1 }
   0xb   : > { %538 = vst.msk [vmem:[#allocation2 + $0x48] sm:$0x3] (!%p291_p2), %vm529_vm1, %v2006_v1  ;;  %540 = vst.msk [vmem:[#allocation2 + $0x58] sm:$0x3] (!%p291_p2), %vm529_vm1, %v2006_v1  ;;  %425 = vperm.xlu1 (!%p291_p2), %1990, %v422_v3  }
   0xc   : > { %541 = vst.msk [vmem:[#allocation2 + $0x60] sm:$0xff] (!%p291_p2), %vm451_vm0, %v2006_v1  ;;  %543 = vst.msk [vmem:[#allocation2 + $0x70] sm:$0xff] (!%p291_p2), %vm451_vm0, %v2006_v1  ;;  %v2257_v24 = vrot.slane (!%p291_p2), %v618_v23, %v2251_v22  ;;  %v2272_v36 = vrot.slane (!%p291_p2), %v618_v23, %v2259_v25  ;;  %v2277_v38 = vrot.slane (!%p291_p2), %v618_v23, %v2261_v29 }
   0xd   : > { %542 = vst.msk [vmem:[#allocation2 + $0x68] sm:$0x3] %vm529_vm1, %v2006_v1  ;;  %544 = vst.msk [vmem:[#allocation2 + $0x78] sm:$0x3] %vm529_vm1, %v2006_v1  ;;  %s3090_s10 = smov (!%p2069_p3, %s1902_s10), 1  ;;  %v582_v26 = vld [vmem:[#allocation2] sm:$0xff]  ;;  %v2309_v0 = vrot.slane %v619_v49, %v2261_v29  ;;  %v2312_v3 = vrot.slane %v619_v49, %v2251_v22  ;;  %v2316_v21 = vrot.slane %v619_v49, %v2259_v25 }
   0xe   : > { %545 = vst.msk [vmem:[#allocation2 + $0x80] sm:$0xff] %vm451_vm0, %v2006_v1  ;;  %547 = vst.msk [vmem:[#allocation2 + $0x90] sm:$0xff] %vm451_vm0, %v2006_v1  ;;  %s1930_s16 = sshll.u32 %s3090_s10, 7  ;;  %v583_v27 = vld [vmem:[#allocation2 + $0x8] sm:$0x3]  ;;  %v661_v33 = vmul.f32 %v2257_v24, %v582_v26  ;;  %v625_v46 = vmul.f32 %v2277_v38, %v582_v26  ;;  %v810_v53 = vmul.f32 %v2272_v36, %v582_v26 }
   0xf   : > { %546 = vst.msk [vmem:[#allocation2 + $0x88] sm:$0x3] %vm529_vm1, %v2006_v1  ;;  %548 = vst.msk [vmem:[#allocation2 + $0x98] sm:$0x3] %vm529_vm1, %v2006_v1  ;;  %s2165_s19 = scalar_lea.vmem %s3078_s0, %s1930_s16  ;;  %v662_v34 = vmul.f32 %v2257_v24, %v583_v27  ;;  %v811_v56 = vmul.f32 %v2272_v36, %v583_v27  ;;  %s3006_s24 = scalar_lea.vmem %s3087_s9, %s1930_s16 }
  0x10   : > { %549 = vst.msk [vmem:[#allocation2 + $0xa0] sm:$0xff] %vm451_vm0, %v2006_v1  ;;  %551 = vst.msk [vmem:[#allocation2 + $0xb0] sm:$0xff] %vm451_vm0, %v2006_v1  ;;  %v2168_v4 = vld [vmem:[%s2165_s19] sm:$0xff]  ;;  %v2171_v5 = vld [vmem:[%s2165_s19 + $0x8] sm:$0xff]  ;;  %v726_v43 = vrot.slane %v661_v33, 1  ;;  %v875_v60 = vrot.slane %v810_v53, 2 }
  0x11   : > { %550 = vst.msk [vmem:[#allocation2 + $0xa8] sm:$0x3] %vm529_vm1, %v2006_v1  ;;  %552 = vst.msk [vmem:[#allocation2 + $0xb8] sm:$0x3] %vm529_vm1, %v2006_v1  ;;  %v2174_v6 = vld [vmem:[%s2165_s19 + $0x10] sm:$0xff]  ;;  %363 = vxpose.xlu0.b32.start [1/16] (narrow) %v2168_v4, 8 }
  0x12   : > { %553 = vst.msk [vmem:[#allocation2 + $0xc0] sm:$0xff] %vm451_vm0, %v2006_v1  ;;  %555 = vst.msk [vmem:[#allocation2 + $0xd0] sm:$0xff] %vm451_vm0, %v2006_v1  ;;  %v2184_v7 = vld [vmem:[%s2165_s19 + $0x18] sm:$0xff]  ;;  %v2187_v8 = vld [vmem:[%s2165_s19 + $0x20] sm:$0xff]  ;;  %v727_v44 = vrot.slane %v662_v34, 1  ;;  %v876_v62 = vrot.slane %v811_v56, 2 }
  0x13   : > { %554 = vst.msk [vmem:[#allocation2 + $0xc8] sm:$0x3] %vm529_vm1, %v2006_v1  ;;  %556 = vst.msk [vmem:[#allocation2 + $0xd8] sm:$0x3] %vm529_vm1, %v2006_v1  ;;  %v2190_v9 = vld [vmem:[%s2165_s19 + $0x28] sm:$0xff]  ;;  %v2199_v10 = vld [vmem:[%s2165_s19 + $0x30] sm:$0xff] }
  0x14   : > { %557 = vst.msk [vmem:[#allocation2 + $0xe0] sm:$0xff] %vm451_vm0, %v2006_v1  ;;  %559 = vst.msk [vmem:[#allocation2 + $0xf0] sm:$0xff] %vm451_vm0, %v2006_v1  ;;  %v2202_v11 = vld [vmem:[%s2165_s19 + $0x38] sm:$0xff]  ;;  %v2205_v12 = vld [vmem:[%s2165_s19 + $0x40] sm:$0xff]  ;;  %v728_v50 = vsel %vm725_vm2, %v726_v43, %v727_v44  ;;  %v877_v27 = vsel %vm874_vm3, %v875_v60, %v876_v62  ;;  %s1978_s16 = smul.u32 48, %s3090_s10 }
  0x15   : > { %558 = vst.msk [vmem:[#allocation2 + $0xe8] sm:$0x3] %vm529_vm1, %v2006_v1  ;;  %560 = vst.msk [vmem:[#allocation2 + $0xf8] sm:$0x3] %vm529_vm1, %v2006_v1  ;;  %v2214_v13 = vld [vmem:[%s2165_s19 + $0x48] sm:$0xff]  ;;  %v2217_v14 = vld [vmem:[%s2165_s19 + $0x50] sm:$0xff]  ;;  %v790_v55 = vadd.f32 %v728_v50, %v625_v46 }
  0x16   : > { %561 = vst.msk [vmem:[#allocation2 + $0x100] sm:$0xff] %vm451_vm0, %v2006_v1  ;;  %563 = vst.msk [vmem:[#allocation2 + $0x110] sm:$0xff] %vm451_vm0, %v2006_v1  ;;  %v2220_v15 = vld [vmem:[%s2165_s19 + $0x58] sm:$0xff]  ;;  %v2229_v16 = vld [vmem:[%s2165_s19 + $0x60] sm:$0xff]  ;;  %364 = vxpose.xlu0.b32.cont [2/16] (narrow) %v2171_v5, 8  ;;  %s340_s27 = scalar_lea.vmem %s3086_s8, %s1978_s16 }
  0x17   : > { %562 = vst.msk [vmem:[#allocation2 + $0x108] sm:$0x3] %vm529_vm1, %v2006_v1  ;;  %564 = vst.msk [vmem:[#allocation2 + $0x118] sm:$0x3] %vm529_vm1, %v2006_v1  ;;  %v2232_v17 = vld [vmem:[%s2165_s19 + $0x68] sm:$0xff]  ;;  %v2235_v18 = vld [vmem:[%s2165_s19 + $0x70] sm:$0xff]  ;;  %v939_v43 = vadd.f32 %v877_v27, %v790_v55 }
  0x18   : > { %566 = vst.msk [vmem:[#allocation2 + $0x11] sm:$0xff] %vm451_vm0, %v2168_v4  ;;  %567 = vst.msk [vmem:[#allocation2 + $0x21] sm:$0xff] %vm451_vm0, %v2171_v5  ;;  %v2245_v19 = vld [vmem:[%s2165_s19 + $0x78] sm:$0xff]  ;;  %v620_v46 = vld [vmem:[%s3082_s4 + $0x8] sm:$0x7] }
  0x19   : > { %568 = vst.msk [vmem:[#allocation2 + $0x31] sm:$0xff] %vm451_vm0, %v2174_v6  ;;  %569 = vst.msk [vmem:[#allocation2 + $0x41] sm:$0xff] %vm451_vm0, %v2184_v7 }
  0x1a   : > { %570 = vst.msk [vmem:[#allocation2 + $0x51] sm:$0xff] %vm451_vm0, %v2187_v8  ;;  %571 = vst.msk [vmem:[#allocation2 + $0x61] sm:$0xff] %vm451_vm0, %v2190_v9  ;;  %365 = vxpose.xlu0.b32.cont [3/16] (narrow) %v2174_v6, 8 }
  0x1b   : > { %572 = vst.msk [vmem:[#allocation2 + $0x71] sm:$0xff] %vm451_vm0, %v2199_v10  ;;  %573 = vst.msk [vmem:[#allocation2 + $0x81] sm:$0xff] %vm451_vm0, %v2202_v11 }
  0x1c   : > { %574 = vst.msk [vmem:[#allocation2 + $0x91] sm:$0xff] %vm451_vm0, %v2205_v12  ;;  %575 = vst.msk [vmem:[#allocation2 + $0xa1] sm:$0xff] %vm451_vm0, %v2214_v13 }
  0x1d   : > { %576 = vst.msk [vmem:[#allocation2 + $0xb1] sm:$0xff] %vm451_vm0, %v2217_v14  ;;  %577 = vst.msk [vmem:[#allocation2 + $0xc1] sm:$0xff] %vm451_vm0, %v2220_v15 }
  0x1e   : > { %578 = vst.msk [vmem:[#allocation2 + $0xd1] sm:$0xff] %vm451_vm0, %v2229_v16  ;;  %579 = vst.msk [vmem:[#allocation2 + $0xe1] sm:$0xff] %vm451_vm0, %v2232_v17  ;;  %366 = vxpose.xlu0.b32.cont [4/16] (narrow) %v2184_v7, 8 }
  0x1f   : > { %580 = vst.msk [vmem:[#allocation2 + $0xf1] sm:$0xff] %vm451_vm0, %v2235_v18  ;;  %581 = vst.msk [vmem:[#allocation2 + $0x101] sm:$0xff] %vm451_vm0, %v2245_v19  ;;  %v584_v28 = vld [vmem:[#allocation2 + $0x10] sm:$0xff]  ;;  %v585_v30 = vld [vmem:[#allocation2 + $0x18] sm:$0x3] }
  0x20   : > { %v2264_v31 = vld [vmem:[#allocation2 + $0x20] sm:$0xff]  ;;  %v2266_v32 = vld [vmem:[#allocation2 + $0x28] sm:$0x3]  ;;  %v663_v35 = vmul.f32 %v2257_v24, %v584_v28  ;;  %v2274_v37 = vld [vmem:[#allocation2 + $0x38] sm:$0x3]  ;;  %v664_v39 = vmul.f32 %v2257_v24, %v585_v30  ;;  %v626_v47 = vmul.f32 %v2277_v38, %v584_v28  ;;  %v812_v57 = vmul.f32 %v2272_v36, %v584_v28 }
  0x21   : > { %v2282_v40 = vmul.f32 %v2257_v24, %v2266_v32  ;;  %v2286_v41 = vmul.f32 %v2257_v24, %v2264_v31  ;;  %v2290_v42 = vmul.f32 %v2257_v24, %v2274_v37  ;;  %v813_v59 = vmul.f32 %v2272_v36, %v585_v30  ;;  %v2306_v61 = vld [vmem:[#allocation2 + $0x30] sm:$0xff] }
  0x22   : > { %367 = vxpose.xlu0.b32.cont [5/16] (narrow) %v2187_v8, 8  ;;  %v729_v45 = vrot.slane %v663_v35, 1  ;;  %v730_v48 = vrot.slane %v664_v39, 1  ;;  %v878_v63 = vrot.slane %v812_v57, 2  ;;  %v2320_v23 = vmul.f32 %v2277_v38, %v2264_v31 }
  0x23   : > { %v733_v51 = vrot.slane %v2282_v40, 1  ;;  %v736_v52 = vrot.slane %v2290_v42, 1  ;;  %v879_v20 = vrot.slane %v813_v59, 2  ;;  %v2324_v26 = vmul.f32 %v2277_v38, %v2306_v61 }
  0x24   : > { %v731_v54 = vsel %vm725_vm2, %v729_v45, %v730_v48  ;;  %v959_v33 = vmul.f32 %v2309_v0, %v584_v28  ;;  %v960_v34 = vmul.f32 %v2309_v0, %v2264_v31  ;;  %v995_v35 = vmul.f32 %v2312_v3, %v584_v28 }
  0x25   : > { %v791_v58 = vadd.f32 %v731_v54, %v626_v47  ;;  %v880_v39 = vsel %vm874_vm3, %v878_v63, %v879_v20  ;;  %v996_v44 = vmul.f32 %v2312_v3, %v585_v30  ;;  %v997_v45 = vmul.f32 %v2312_v3, %v2264_v31 }
  0x26   : > { %368 = vxpose.xlu0.b32.cont [6/16] (narrow) %v2190_v9, 8  ;;  %v998_v48 = vmul.f32 %v2312_v3, %v2266_v32  ;;  %v1059_v49 = vrot.slane %v995_v35, 1  ;;  %v1143_v50 = vmul.f32 %v2316_v21, %v584_v28  ;;  %v975_v53 = vadd.f32 %v959_v33, %v939_v43 }
  0x27   : > { %v940_v47 = vadd.f32 %v880_v39, %v791_v58  ;;  %v1060_v54 = vrot.slane %v996_v44, 1  ;;  %v1062_v55 = vrot.slane %v997_v45, 1  ;;  %v1144_v56 = vmul.f32 %v2316_v21, %v585_v30 }
  0x28   : > { %v1063_v59 = vrot.slane %v998_v48, 1  ;;  %v1145_v60 = vmul.f32 %v2316_v21, %v2264_v31  ;;  %v1146_v58 = vmul.f32 %v2316_v21, %v2266_v32  ;;  %v1207_v63 = vrot.slane %v1143_v50, 2 }
  0x29   : > { %v976_v57 = vadd.f32 %v960_v34, %v940_v47  ;;  %v1061_v62 = vsel %vm725_vm2, %v1059_v49, %v1060_v54  ;;  %v1208_v20 = vrot.slane %v1144_v56, 2  ;;  %v2349_v28 = vrot.slane %v620_v46, %v2261_v29 }
  0x2a   : > { %369 = vxpose.xlu0.b32.cont [7/16] (narrow) %v2199_v10, 8  ;;  %v1064_v27 = vsel %vm725_vm2, %v1062_v55, %v1063_v59  ;;  %v1123_v33 = vadd.f32 %v1061_v62, %v975_v53  ;;  %v1210_v35 = vrot.slane %v1145_v60, 2  ;;  %v1211_v30 = vrot.slane %v1146_v58, 2  ;;  %v1650_v55 = vld [vmem:[%s3084_s6] sm:$0xf] }
  0x2b   : > { %v1124_v34 = vadd.f32 %v1064_v27, %v976_v57  ;;  %v1209_v39 = vsel %vm874_vm3, %v1207_v63, %v1208_v20  ;;  %v1291_v43 = vmul.f32 %v2349_v28, %v2264_v31  ;;  %v1292_v44 = vmul.f32 %v2349_v28, %v2306_v61  ;;  %1977 = vmatprep.subr.msk.bf16.mxu1 %vm461_vm4, %v1650_v55 }
  0x2c   : > { %v1212_v45 = vsel %vm874_vm3, %v1210_v35, %v1211_v30  ;;  %v1271_v29 = vadd.f32 %v1209_v39, %v1123_v33  ;;  %v2360_v47 = vrot.slane %v620_v46, %v2251_v22  ;;  %v2363_v48 = vrot.slane %v620_v46, %v2259_v25 }
  0x2d   : > { %v1272_v49 = vadd.f32 %v1212_v45, %v1124_v34  ;;  %v667_v50 = vmul.f32 %v2257_v24, %v2306_v61  ;;  %v732_v53 = vrot.slane %v2286_v41, 1  ;;  %v814_v54 = vmul.f32 %v2272_v36, %v2264_v31 }
  0x2e   : > { %370 = vxpose.xlu0.b32.cont [8/16] (narrow) %v2202_v11, 8  ;;  %v1307_v56 = vadd.f32 %v1291_v43, %v1271_v29  ;;  %v1327_v22 = vmul.f32 %v2360_v47, %v2264_v31  ;;  %v1328_v25 = vmul.f32 %v2360_v47, %v2266_v32  ;;  %v1683_v41 = vsel %vm461_vm4, %v1650_v55, 0 }
  0x2f   : > { %v1308_v46 = vadd.f32 %v1292_v44, %v1272_v49  ;;  %v1329_v57 = vmul.f32 %v2360_v47, %v2306_v61  ;;  %v1330_v59 = vmul.f32 %v2360_v47, %v2274_v37  ;;  %1960 = vmatpush3.bf16.msra.mxu1 %v1683_v41  ;;  %v1475_v62 = vmul.f32 %v2363_v48, %v2264_v31  ;;  %v2406_v41 = vld [vmem:[#allocation2 + $0x40] sm:$0xff] }
  0x30   : > { %v1391_v60 = vrot.slane %v1327_v22, 1  ;;  %v1392_v58 = vrot.slane %v1328_v25, 1  ;;  %v1476_v63 = vmul.f32 %v2363_v48, %v2266_v32  ;;  %v1477_v33 = vmul.f32 %v2363_v48, %v2306_v61  ;;  %v2402_v22 = vld [vmem:[%s3083_s5] ss:$0 sm:$0xff] }
  0x31   : > { %v1394_v20 = vrot.slane %v1329_v57, 1  ;;  %v1395_v27 = vrot.slane %v1330_v59, 1  ;;  %v1478_v35 = vmul.f32 %v2363_v48, %v2274_v37  ;;  %v1539_v34 = vrot.slane %v1475_v62, 2 }
  0x32   : > { %371 = vxpose.xlu0.b32.cont [9/16] (narrow) %v2205_v12, 8  ;;  %v1393_v30 = vsel %vm725_vm2, %v1391_v60, %v1392_v58  ;;  %v1540_v39 = vrot.slane %v1476_v63, 2  ;;  %v734_v43 = vsel %vm725_vm2, %v732_v53, %v733_v51  ;;  %v1542_v45 = vrot.slane %v1477_v33, 2  ;;  %v2419_v58 = vld [vmem:[#allocation2 + $0x48] sm:$0x3] }
  0x33   : > { %v1396_v31 = vsel %vm725_vm2, %v1394_v20, %v1395_v27  ;;  %v1455_v44 = vadd.f32 %v1393_v30, %v1307_v56  ;;  %v1543_v29 = vrot.slane %v1478_v35, 2  ;;  %v735_v25 = vrot.slane %v667_v50, 1 }
  0x34   : > { %v1456_v49 = vadd.f32 %v1396_v31, %v1308_v46  ;;  %v1541_v55 = vsel %vm874_vm3, %v1539_v34, %v1540_v39  ;;  %v792_v40 = vadd.f32 %v734_v43, %v2320_v23  ;;  %v815_v56 = vmul.f32 %v2272_v36, %v2266_v32 }
  0x35   : > { %v1544_v51 = vsel %vm874_vm3, %v1542_v45, %v1543_v29  ;;  %v1603_v53 = vadd.f32 %v1541_v55, %v1455_v44  ;;  %v816_v46 = vmul.f32 %v2272_v36, %v2306_v61  ;;  %v737_v59 = vsel %vm725_vm2, %v735_v25, %v736_v52 }
  0x36   : > { %372 = vxpose.xlu0.b32.cont [10/16] (narrow) %v2214_v13, 8  ;;  %v1604_v57 = vadd.f32 %v1544_v51, %v1456_v49  ;;  %v817_v50 = vmul.f32 %v2272_v36, %v2274_v37  ;;  %v881_v23 = vrot.slane %v814_v54, 2  ;;  %v793_v32 = vadd.f32 %v737_v59, %v2324_v26 }
  0x37   : > { %v1626_v60 = vadd.f32 %v2402_v22, %v1603_v53  ;;  %v882_v62 = vrot.slane %v815_v56, 2  ;;  %v884_v63 = vrot.slane %v816_v46, 2  ;;  %v961_v42 = vmul.f32 %v2309_v0, %v2306_v61 }
  0x38   : > { %v1627_v20 = vadd.f32 %v2402_v22, %v1604_v57  ;;  %v885_v27 = vrot.slane %v817_v50, 2  ;;  %v962_v52 = vmul.f32 %v2309_v0, %v2406_v41  ;;  %v999_v33 = vmul.f32 %v2312_v3, %v2306_v61 }
  0x39   : > { %v883_v54 = vsel %vm874_vm3, %v881_v23, %v882_v62  ;;  %v1000_v35 = vmul.f32 %v2312_v3, %v2274_v37  ;;  %v1001_v26 = vmul.f32 %v2312_v3, %v2406_v41  ;;  %v1002_v43 = vmul.f32 %v2312_v3, %v2419_v58 }
  0x3a   : > { %373 = vxpose.xlu0.b32.cont [11/16] (narrow) %v2217_v14, 8  ;;  %v1642_v30 = vpack.c.bf16 %v1627_v20, %v1626_v60  ;;  %v886_v34 = vsel %vm874_vm3, %v884_v63, %v885_v27  ;;  %v941_v39 = vadd.f32 %v883_v54, %v792_v40  ;;  %v1065_v44 = vrot.slane %v999_v33, 1  ;;  %v2454_v63 = vld [vmem:[#allocation2 + $0x58] sm:$0x3] }
  0x3b   : > { %v942_v31 = vadd.f32 %v886_v34, %v793_v32  ;;  %v1066_v45 = vrot.slane %v1000_v35, 1  ;;  %v1068_v29 = vrot.slane %v1001_v26, 1  ;;  %v1069_v55 = vrot.slane %v1002_v43, 1 }
  0x3c   : > { %1961 = vmatprep.mubr.msk.bf16.mxu1 %vm451_vm0, %v1642_v30  ;;  %v977_v49 = vadd.f32 %v961_v42, %v941_v39  ;;  %v1147_v25 = vmul.f32 %v2316_v21, %v2306_v61  ;;  %v1148_v51 = vmul.f32 %v2316_v21, %v2274_v37  ;;  %v1149_v56 = vmul.f32 %v2316_v21, %v2406_v41  ;;  %v2450_v61 = vld [vmem:[#allocation2 + $0x50] sm:$0xff] }
  0x3d   : > { %v978_v40 = vadd.f32 %v962_v52, %v942_v31  ;;  %v1067_v53 = vsel %vm725_vm2, %v1065_v44, %v1066_v45  ;;  %v1150_v46 = vmul.f32 %v2316_v21, %v2419_v58  ;;  %v1070_v57 = vsel %vm725_vm2, %v1068_v29, %v1069_v55 }
  0x3e   : > { %374 = vxpose.xlu0.b32.cont [12/16] (narrow) %v2220_v15, 8  ;;  %v1125_v59 = vadd.f32 %v1067_v53, %v977_v49  ;;  %v1213_v50 = vrot.slane %v1147_v25, 2  ;;  %v1214_v23 = vrot.slane %v1148_v51, 2  ;;  %v1216_v37 = vrot.slane %v1149_v56, 2 }
  0x3f   : > { %v1126_v60 = vadd.f32 %v1070_v57, %v978_v40  ;;  %v1217_v32 = vrot.slane %v1150_v46, 2  ;;  %v1293_v62 = vmul.f32 %v2349_v28, %v2406_v41  ;;  %v1294_v27 = vmul.f32 %v2349_v28, %v2450_v61 }
  0x40   : > { %v1215_v20 = vsel %vm874_vm3, %v1213_v50, %v1214_v23  ;;  %v1331_v42 = vmul.f32 %v2360_v47, %v2406_v41  ;;  %v1332_v52 = vmul.f32 %v2360_v47, %v2419_v58  ;;  %v1333_v35 = vmul.f32 %v2360_v47, %v2450_v61 }
  0x41   : > { %v1218_v54 = vsel %vm874_vm3, %v1216_v37, %v1217_v32  ;;  %v1273_v33 = vadd.f32 %v1215_v20, %v1125_v59  ;;  %v1334_v26 = vmul.f32 %v2360_v47, %v2454_v63  ;;  %v1479_v43 = vmul.f32 %v2363_v48, %v2406_v41 }
  0x42   : > { %375 = vxpose.xlu0.b32.cont [13/16] (narrow) %v2229_v16, 8  ;;  %v1274_v30 = vadd.f32 %v1218_v54, %v1126_v60  ;;  %v1397_v34 = vrot.slane %v1331_v42, 1  ;;  %v1398_v39 = vrot.slane %v1332_v52, 1  ;;  %v1400_v44 = vrot.slane %v1333_v35, 1 }
  0x43   : > { %v1309_v31 = vadd.f32 %v1293_v62, %v1273_v33  ;;  %v1401_v45 = vrot.slane %v1334_v26, 1  ;;  %v1480_v29 = vmul.f32 %v2363_v48, %v2419_v58  ;;  %v1481_v25 = vmul.f32 %v2363_v48, %v2450_v61 }
  0x44   : > { %v1310_v49 = vadd.f32 %v1294_v27, %v1274_v30  ;;  %v1399_v55 = vsel %vm725_vm2, %v1397_v34, %v1398_v39  ;;  %v1482_v51 = vmul.f32 %v2363_v48, %v2454_v63  ;;  %v1545_v56 = vrot.slane %v1479_v43, 2 }
  0x45   : > { %v1402_v40 = vsel %vm725_vm2, %v1400_v44, %v1401_v45  ;;  %v1457_v53 = vadd.f32 %v1399_v55, %v1309_v31  ;;  %v1546_v46 = vrot.slane %v1480_v29, 2  ;;  %v1548_v59 = vrot.slane %v1481_v25, 2 }
  0x46   : > { %376 = vxpose.xlu0.b32.cont [14/16] (narrow) %v2232_v17, 8  ;;  %v1458_v57 = vadd.f32 %v1402_v40, %v1310_v49  ;;  %v1549_v50 = vrot.slane %v1482_v51, 2  ;;  %v629_v23 = vmul.f32 %v2277_v38, %v2406_v41  ;;  %v630_v37 = vmul.f32 %v2277_v38, %v2450_v61  ;;  %v2506_v40 = vld [vmem:[#allocation2 + $0x60] sm:$0xff] }
  0x47   : > { %v1547_v60 = vsel %vm874_vm3, %v1545_v56, %v1546_v46  ;;  %v669_v32 = vmul.f32 %v2257_v24, %v2406_v41  ;;  %v670_v62 = vmul.f32 %v2257_v24, %v2419_v58  ;;  %v671_v42 = vmul.f32 %v2257_v24, %v2450_v61 }
  0x48   : > { %v1550_v20 = vsel %vm874_vm3, %v1548_v59, %v1549_v50  ;;  %v1605_v27 = vadd.f32 %v1547_v60, %v1457_v53  ;;  %v672_v52 = vmul.f32 %v2257_v24, %v2454_v63  ;;  %v818_v26 = vmul.f32 %v2272_v36, %v2406_v41 }
  0x49   : > { %v1606_v54 = vadd.f32 %v1550_v20, %v1458_v57  ;;  %v738_v33 = vrot.slane %v669_v32, 1  ;;  %v739_v35 = vrot.slane %v670_v62, 1  ;;  %v741_v34 = vrot.slane %v671_v42, 1 }
  0x4a   : > { %377 = vxpose.xlu0.b32.cont [15/16] (narrow) %v2235_v18, 8  ;;  %v1628_v30 = vadd.f32 %v2402_v22, %v1605_v27  ;;  %v742_v39 = vrot.slane %v672_v52, 1  ;;  %v819_v43 = vmul.f32 %v2272_v36, %v2419_v58  ;;  %v820_v45 = vmul.f32 %v2272_v36, %v2450_v61 }
  0x4b   : > { %v1629_v31 = vadd.f32 %v2402_v22, %v1606_v54  ;;  %v740_v44 = vsel %vm725_vm2, %v738_v33, %v739_v35  ;;  %v821_v29 = vmul.f32 %v2272_v36, %v2454_v63  ;;  %v887_v55 = vrot.slane %v818_v26, 2 }
  0x4c   : > { %v743_v49 = vsel %vm725_vm2, %v741_v34, %v742_v39  ;;  %v794_v41 = vadd.f32 %v740_v44, %v629_v23  ;;  %v888_v25 = vrot.slane %v819_v43, 2  ;;  %v890_v58 = vrot.slane %v820_v45, 2  ;;  %v2516_v23 = vld [vmem:[#allocation2 + $0x68] sm:$0x3] }
  0x4d   : > { %v1643_v51 = vpack.c.bf16 %v1629_v31, %v1628_v30  ;;  %v795_v53 = vadd.f32 %v743_v49, %v630_v37  ;;  %v891_v56 = vrot.slane %v821_v29, 2  ;;  %v963_v57 = vmul.f32 %v2309_v0, %v2450_v61  ;;  %v2536_v29 = vld [vmem:[#allocation2 + $0x70] sm:$0xff] }
  0x4e   : > { %378 = vxpose.xlu0.b32.end [16/16] (narrow) %v2245_v19, 8  ;;  %v889_v46 = vsel %vm874_vm3, %v887_v55, %v888_v25  ;;  %v964_v59 = vmul.f32 %v2309_v0, %v2506_v40  ;;  %v1003_v50 = vmul.f32 %v2312_v3, %v2450_v61  ;;  %v1004_v32 = vmul.f32 %v2312_v3, %v2454_v63 }
  0x4f   : > { %1962 = vmatmul.mubr.msk.bf16.vlgmr.msra.gmra.mrb[0].mxu1 %vm451_vm0, %v1643_v51  ;;  %v892_v60 = vsel %vm874_vm3, %v890_v58, %v891_v56  ;;  %v943_v37 = vadd.f32 %v889_v46, %v794_v41  ;;  %v1005_v62 = vmul.f32 %v2312_v3, %v2506_v40  ;;  %v1006_v27 = vmul.f32 %v2312_v3, %v2516_v23  ;;  %v2544_v56 = vld [vmem:[#allocation2 + $0x78] sm:$0x3] }
  0x50   : > { %v944_v20 = vadd.f32 %v892_v60, %v795_v53  ;;  %v1071_v42 = vrot.slane %v1003_v50, 1  ;;  %v1151_v52 = vmul.f32 %v2316_v21, %v2450_v61  ;;  %v1072_v33 = vrot.slane %v1004_v32, 1 }
  0x51   : > { %v979_v54 = vadd.f32 %v963_v57, %v943_v37  ;;  %v1074_v35 = vrot.slane %v1005_v62, 1  ;;  %v1152_v26 = vmul.f32 %v2316_v21, %v2454_v63  ;;  %v1075_v34 = vrot.slane %v1006_v27, 1 }
  0x52   : > { %v980_v30 = vadd.f32 %v964_v59, %v944_v20  ;;  %v1153_v39 = vmul.f32 %v2316_v21, %v2506_v40  ;;  %v1154_v43 = vmul.f32 %v2316_v21, %v2516_v23  ;;  %v1073_v31 = vsel %vm725_vm2, %v1071_v42, %v1072_v33 }
  0x53   : > { %v1219_v44 = vrot.slane %v1151_v52, 2  ;;  %v1220_v45 = vrot.slane %v1152_v26, 2  ;;  %v1295_v61 = vmul.f32 %v2349_v28, %v2506_v40  ;;  %v1076_v49 = vsel %vm725_vm2, %v1074_v35, %v1075_v34 }
  0x54   : > { %v1127_v63 = vadd.f32 %v1073_v31, %v979_v54  ;;  %v1222_v41 = vrot.slane %v1153_v39, 2  ;;  %v1223_v55 = vrot.slane %v1154_v43, 2  ;;  %v1128_v25 = vadd.f32 %v1076_v49, %v980_v30 }
  0x55   : > { %v1221_v51 = vsel %vm874_vm3, %v1219_v44, %v1220_v45  ;;  %v1296_v53 = vmul.f32 %v2349_v28, %v2536_v29  ;;  %v1335_v58 = vmul.f32 %v2360_v47, %v2506_v40  ;;  %v1336_v59 = vmul.f32 %v2360_v47, %v2516_v23 }
  0x56   : > { %v1224_v46 = vsel %vm874_vm3, %v1222_v41, %v1223_v55  ;;  %v1275_v57 = vadd.f32 %v1221_v51, %v1127_v63  ;;  %v1337_v50 = vmul.f32 %v2360_v47, %v2536_v29  ;;  %v1338_v37 = vmul.f32 %v2360_v47, %v2544_v56 }
  0x57   : > { %v1276_v60 = vadd.f32 %v1224_v46, %v1128_v25  ;;  %v1403_v32 = vrot.slane %v1335_v58, 1  ;;  %v1483_v62 = vmul.f32 %v2363_v48, %v2506_v40  ;;  %v1404_v27 = vrot.slane %v1336_v59, 1 }
  0x58   : > { %v1311_v20 = vadd.f32 %v1295_v61, %v1275_v57  ;;  %v1406_v42 = vrot.slane %v1337_v50, 1  ;;  %v1484_v52 = vmul.f32 %v2363_v48, %v2516_v23  ;;  %v1407_v33 = vrot.slane %v1338_v37, 1 }
  0x59   : > { %v1312_v54 = vadd.f32 %v1296_v53, %v1276_v60  ;;  %v1485_v35 = vmul.f32 %v2363_v48, %v2536_v29  ;;  %v1486_v26 = vmul.f32 %v2363_v48, %v2544_v56  ;;  %v1405_v30 = vsel %vm725_vm2, %v1403_v32, %v1404_v27  ;;  %v2583_v27 = vld [vmem:[#allocation2 + $0x80] sm:$0xff] }
  0x5a   : > { %v1551_v34 = vrot.slane %v1483_v62, 2  ;;  %v1552_v39 = vrot.slane %v1484_v52, 2  ;;  %v631_v43 = vmul.f32 %v2277_v38, %v2506_v40  ;;  %v1408_v31 = vsel %vm725_vm2, %v1406_v42, %v1407_v33 }
  0x5b   : > { %v1459_v44 = vadd.f32 %v1405_v30, %v1311_v20  ;;  %v1554_v45 = vrot.slane %v1485_v35, 2  ;;  %v1555_v61 = vrot.slane %v1486_v26, 2  ;;  %v1460_v49 = vadd.f32 %v1408_v31, %v1312_v54 }
  0x5c   : > { %v1553_v63 = vsel %vm874_vm3, %v1551_v34, %v1552_v39  ;;  %v632_v41 = vmul.f32 %v2277_v38, %v2536_v29  ;;  %v673_v55 = vmul.f32 %v2257_v24, %v2506_v40  ;;  %v674_v53 = vmul.f32 %v2257_v24, %v2516_v23 }
  0x5d   : > { %v1556_v25 = vsel %vm874_vm3, %v1554_v45, %v1555_v61  ;;  %v1607_v51 = vadd.f32 %v1553_v63, %v1459_v44  ;;  %v675_v58 = vmul.f32 %v2257_v24, %v2536_v29  ;;  %v676_v57 = vmul.f32 %v2257_v24, %v2544_v56 }
  0x5e   : > { %v1608_v46 = vadd.f32 %v1556_v25, %v1460_v49  ;;  %v744_v59 = vrot.slane %v673_v55, 1  ;;  %v822_v50 = vmul.f32 %v2272_v36, %v2506_v40  ;;  %v745_v37 = vrot.slane %v674_v53, 1 }
  0x5f   : > { %v1630_v60 = vadd.f32 %v2402_v22, %v1607_v51  ;;  %v747_v32 = vrot.slane %v675_v58, 1  ;;  %v823_v62 = vmul.f32 %v2272_v36, %v2516_v23  ;;  %v748_v42 = vrot.slane %v676_v57, 1  ;;  %v2592_v23 = vld [vmem:[#allocation2 + $0x88] sm:$0x3] }
  0x60   : > { %v1631_v20 = vadd.f32 %v2402_v22, %v1608_v46  ;;  %v824_v52 = vmul.f32 %v2272_v36, %v2536_v29  ;;  %v825_v54 = vmul.f32 %v2272_v36, %v2544_v56  ;;  %v746_v40 = vsel %vm725_vm2, %v744_v59, %v745_v37 }
  0x61   : > { %v893_v33 = vrot.slane %v822_v50, 2  ;;  %v894_v35 = vrot.slane %v823_v62, 2  ;;  %v965_v26 = vmul.f32 %v2309_v0, %v2536_v29  ;;  %v749_v34 = vsel %vm725_vm2, %v747_v32, %v748_v42 }
  0x62   : > { %v1644_v30 = vpack.c.bf16 %v1631_v20, %v1630_v60  ;;  %v796_v39 = vadd.f32 %v746_v40, %v631_v43  ;;  %v896_v31 = vrot.slane %v824_v52, 2  ;;  %v797_v44 = vadd.f32 %v749_v34, %v632_v41 }
  0x63   : > { %v895_v45 = vsel %vm874_vm3, %v893_v33, %v894_v35  ;;  %v897_v61 = vrot.slane %v825_v54, 2  ;;  %v966_v49 = vmul.f32 %v2309_v0, %v2583_v27  ;;  %v1007_v55 = vmul.f32 %v2312_v3, %v2536_v29  ;;  %v2617_v54 = vld [vmem:[#allocation2 + $0x90] sm:$0xff] }
  0x64   : > { %1965 = vmatprep.mubr.msk.bf16.mxu1 %vm451_vm0, %v1644_v30  ;;  %v945_v63 = vadd.f32 %v895_v45, %v796_v39  ;;  %v1008_v25 = vmul.f32 %v2312_v3, %v2544_v56  ;;  %v1009_v43 = vmul.f32 %v2312_v3, %v2583_v27  ;;  %v1010_v51 = vmul.f32 %v2312_v3, %v2592_v23 }
  0x65   : > { %v898_v41 = vsel %vm874_vm3, %v896_v31, %v897_v61  ;;  %v1155_v53 = vmul.f32 %v2316_v21, %v2536_v29  ;;  %v1156_v58 = vmul.f32 %v2316_v21, %v2544_v56  ;;  %v1077_v59 = vrot.slane %v1007_v55, 1  ;;  %v2625_v31 = vld [vmem:[#allocation2 + $0x98] sm:$0x3] }
  0x66   : > { %v946_v46 = vadd.f32 %v898_v41, %v797_v44  ;;  %v981_v57 = vadd.f32 %v965_v26, %v945_v63  ;;  %v1078_v50 = vrot.slane %v1008_v25, 1  ;;  %v1080_v60 = vrot.slane %v1009_v43, 1 }
  0x67   : > { %v1081_v37 = vrot.slane %v1010_v51, 1  ;;  %v1157_v32 = vmul.f32 %v2316_v21, %v2583_v27  ;;  %v1158_v62 = vmul.f32 %v2316_v21, %v2592_v23  ;;  %v1225_v52 = vrot.slane %v1155_v53, 2 }
  0x68   : > { %v982_v20 = vadd.f32 %v966_v49, %v946_v46  ;;  %v1079_v42 = vsel %vm725_vm2, %v1077_v59, %v1078_v50  ;;  %v1226_v29 = vrot.slane %v1156_v58, 2  ;;  %v1297_v34 = vmul.f32 %v2349_v28, %v2583_v27 }
  0x69   : > { %v1082_v56 = vsel %vm725_vm2, %v1080_v60, %v1081_v37  ;;  %v1129_v40 = vadd.f32 %v1079_v42, %v981_v57  ;;  %v1228_v33 = vrot.slane %v1157_v32, 2  ;;  %v1229_v35 = vrot.slane %v1158_v62, 2 }
  0x6a   : > { %v1130_v26 = vadd.f32 %v1082_v56, %v982_v20  ;;  %v1227_v30 = vsel %vm874_vm3, %v1225_v52, %v1226_v29  ;;  %v1298_v39 = vmul.f32 %v2349_v28, %v2617_v54  ;;  %v1339_v61 = vmul.f32 %v2360_v47, %v2583_v27 }
  0x6b   : > { %v1230_v44 = vsel %vm874_vm3, %v1228_v33, %v1229_v35  ;;  %v1277_v45 = vadd.f32 %v1227_v30, %v1129_v40  ;;  %v1340_v49 = vmul.f32 %v2360_v47, %v2592_v23  ;;  %v1341_v55 = vmul.f32 %v2360_v47, %v2617_v54 }
  0x6c   : > { %v1278_v63 = vadd.f32 %v1230_v44, %v1130_v26  ;;  %v1342_v25 = vmul.f32 %v2360_v47, %v2625_v31  ;;  %v1487_v43 = vmul.f32 %v2363_v48, %v2583_v27  ;;  %v1409_v51 = vrot.slane %v1339_v61, 1 }
  0x6d   : > { %v1313_v41 = vadd.f32 %v1297_v34, %v1277_v45  ;;  %v1410_v53 = vrot.slane %v1340_v49, 1  ;;  %v1488_v58 = vmul.f32 %v2363_v48, %v2592_v23  ;;  %v1412_v57 = vrot.slane %v1341_v55, 1 }
  0x6e   : > { %v1314_v46 = vadd.f32 %v1298_v39, %v1278_v63  ;;  %v1413_v59 = vrot.slane %v1342_v25, 1  ;;  %v1489_v50 = vmul.f32 %v2363_v48, %v2617_v54  ;;  %v1490_v37 = vmul.f32 %v2363_v48, %v2625_v31 }
  0x6f   : > { %v1411_v60 = vsel %vm725_vm2, %v1409_v51, %v1410_v53  ;;  %v1557_v32 = vrot.slane %v1487_v43, 2  ;;  %v1558_v62 = vrot.slane %v1488_v58, 2  ;;  %v633_v33 = vmul.f32 %v2277_v38, %v2583_v27 }
  0x70   : > { %v1414_v20 = vsel %vm725_vm2, %v1412_v57, %v1413_v59  ;;  %v1461_v42 = vadd.f32 %v1411_v60, %v1313_v41  ;;  %v1560_v52 = vrot.slane %v1489_v50, 2  ;;  %v1561_v40 = vrot.slane %v1490_v37, 2 }
  0x71   : > { %v1462_v29 = vadd.f32 %v1414_v20, %v1314_v46  ;;  %v1559_v56 = vsel %vm874_vm3, %v1557_v32, %v1558_v62  ;;  %v634_v26 = vmul.f32 %v2277_v38, %v2617_v54  ;;  %v677_v30 = vmul.f32 %v2257_v24, %v2583_v27  ;;  %v2675_v32 = vld [vmem:[#allocation2 + $0xa0] sm:$0xff] }
  0x72   : > { %v1609_v35 = vadd.f32 %v1559_v56, %v1461_v42  ;;  %v1562_v34 = vsel %vm874_vm3, %v1560_v52, %v1561_v40  ;;  %v679_v39 = vmul.f32 %v2257_v24, %v2617_v54  ;;  %v680_v44 = vmul.f32 %v2257_v24, %v2625_v31  ;;  %v2679_v42 = vld [vmem:[#allocation2 + $0xa8] sm:$0x3] }
  0x73   : > { %v826_v45 = vmul.f32 %v2272_v36, %v2583_v27  ;;  %v1610_v61 = vadd.f32 %v1562_v34, %v1462_v29  ;;  %v750_v63 = vrot.slane %v677_v30, 1  ;;  %v827_v41 = vmul.f32 %v2272_v36, %v2592_v23 }
  0x74   : > { %v1632_v49 = vadd.f32 %v2402_v22, %v1609_v35  ;;  %v753_v25 = vrot.slane %v679_v39, 1  ;;  %v754_v43 = vrot.slane %v680_v44, 1  ;;  %v828_v51 = vmul.f32 %v2272_v36, %v2617_v54 }
  0x75   : > { %v1633_v53 = vadd.f32 %v2402_v22, %v1610_v61  ;;  %v829_v27 = vmul.f32 %v2272_v36, %v2625_v31  ;;  %v899_v46 = vrot.slane %v826_v45, 2  ;;  %v900_v50 = vrot.slane %v827_v41, 2 }
  0x76   : > { %v755_v57 = vsel %vm725_vm2, %v753_v25, %v754_v43  ;;  %v902_v60 = vrot.slane %v828_v51, 2  ;;  %v967_v20 = vmul.f32 %v2309_v0, %v2617_v54  ;;  %v968_v29 = vmul.f32 %v2309_v0, %v2675_v32 }
  0x77   : > { %1991 = vset.pattern.permute.xlu0 %v2007_v2  ;;  %v678_v2 = vmul.f32 %v2257_v24, %v2592_v23  ;;  %v1645_v37 = vpack.c.bf16 %v1633_v53, %v1632_v49  ;;  %v799_v23 = vadd.f32 %v755_v57, %v634_v26  ;;  %v903_v62 = vrot.slane %v829_v27, 2  ;;  %v2704_v27 = vld [vmem:[#allocation2 + $0xb0] sm:$0xff] }
  0x78   : > { %v901_v52 = vsel %vm874_vm3, %v899_v46, %v900_v50  ;;  %v1011_v56 = vmul.f32 %v2312_v3, %v2617_v54  ;;  %v1012_v40 = vmul.f32 %v2312_v3, %v2625_v31  ;;  %v1013_v26 = vmul.f32 %v2312_v3, %v2675_v32  ;;  %v2708_v50 = vld [vmem:[#allocation2 + $0xb8] sm:$0x3] }
  0x79   : > { %v751_v55 = vrot.slane %v678_v2, 1  ;;  %1966 = vmatmul.mubr.msk.bf16.gmra.mrb[4].mxu1 %vm451_vm0, %v1645_v37  ;;  %v1014_v30 = vmul.f32 %v2312_v3, %v2679_v42  ;;  %v1159_v44 = vmul.f32 %v2316_v21, %v2617_v54  ;;  %v1161_v43 = vmul.f32 %v2316_v21, %v2675_v32 }
  0x7a   : > { %v1083_v34 = vrot.slane %v1011_v56, 1  ;;  %v1084_v39 = vrot.slane %v1012_v40, 1  ;;  %v1086_v61 = vrot.slane %v1013_v26, 1  ;;  %v1162_v41 = vmul.f32 %v2316_v21, %v2679_v42 }
  0x7b   : > { %v752_v58 = vsel %vm725_vm2, %v750_v63, %v751_v55  ;;  %v1087_v49 = vrot.slane %v1014_v30, 1  ;;  %v1160_v63 = vmul.f32 %v2316_v21, %v2625_v31  ;;  %v1234_v57 = vrot.slane %v1161_v43, 2 }
  0x7c   : > { %v798_v59 = vadd.f32 %v752_v58, %v633_v33  ;;  %v904_v33 = vsel %vm874_vm3, %v902_v60, %v903_v62  ;;  %v1085_v25 = vsel %vm725_vm2, %v1083_v34, %v1084_v39  ;;  %v1231_v58 = vrot.slane %v1159_v44, 2 }
  0x7d   : > { %v948_v2 = vadd.f32 %v904_v33, %v799_v23  ;;  %v1088_v51 = vsel %vm725_vm2, %v1086_v61, %v1087_v49  ;;  %v1232_v54 = vrot.slane %v1160_v63, 2  ;;  %v1299_v31 = vmul.f32 %v2349_v28, %v2675_v32 }
  0x7e   : > { %v947_v35 = vadd.f32 %v901_v52, %v798_v59  ;;  %v1235_v59 = vrot.slane %v1162_v41, 2  ;;  %v1300_v37 = vmul.f32 %v2349_v28, %v2704_v27  ;;  %v1343_v23 = vmul.f32 %v2360_v47, %v2675_v32 }
  0x7f   : > { %v984_v55 = vadd.f32 %v968_v29, %v948_v2  ;;  %v1233_v60 = vsel %vm874_vm3, %v1231_v58, %v1232_v54  ;;  %v1344_v62 = vmul.f32 %v2360_v47, %v2679_v42  ;;  %v1345_v29 = vmul.f32 %v2360_v47, %v2704_v27 }
  0x80   : > { %v983_v45 = vadd.f32 %v967_v20, %v947_v35  ;;  %v1236_v20 = vsel %vm874_vm3, %v1234_v57, %v1235_v59  ;;  %v1346_v56 = vmul.f32 %v2360_v47, %v2708_v50  ;;  %v1415_v33 = vrot.slane %v1343_v23, 1 }
  0x81   : > { %v1132_v46 = vadd.f32 %v1088_v51, %v984_v55  ;;  %v1416_v35 = vrot.slane %v1344_v62, 1  ;;  %v1491_v26 = vmul.f32 %v2363_v48, %v2675_v32  ;;  %v1418_v2 = vrot.slane %v1345_v29, 1 }
  0x82   : > { %v1131_v53 = vadd.f32 %v1085_v25, %v983_v45  ;;  %v1419_v34 = vrot.slane %v1346_v56, 1  ;;  %v1492_v39 = vmul.f32 %v2363_v48, %v2679_v42  ;;  %v1493_v61 = vmul.f32 %v2363_v48, %v2704_v27 }
  0x83   : > { %v1280_v40 = vadd.f32 %v1236_v20, %v1132_v46  ;;  %v1417_v45 = vsel %vm725_vm2, %v1415_v33, %v1416_v35  ;;  %v1494_v49 = vmul.f32 %v2363_v48, %v2708_v50  ;;  %v1563_v25 = vrot.slane %v1491_v26, 2 }
  0x84   : > { %v1279_v52 = vadd.f32 %v1233_v60, %v1131_v53  ;;  %v1420_v63 = vsel %vm725_vm2, %v1418_v2, %v1419_v34  ;;  %v1564_v43 = vrot.slane %v1492_v39, 2  ;;  %v1566_v51 = vrot.slane %v1493_v61, 2  ;;  %v2754_v2 = vld [vmem:[#allocation2 + $0xc0] sm:$0xff] }
  0x85   : > { %v1316_v44 = vadd.f32 %v1300_v37, %v1280_v40  ;;  %v1567_v53 = vrot.slane %v1494_v49, 2  ;;  %v635_v58 = vmul.f32 %v2277_v38, %v2675_v32  ;;  %v636_v46 = vmul.f32 %v2277_v38, %v2704_v27 }
  0x86   : > { %v1315_v30 = vadd.f32 %v1299_v31, %v1279_v52  ;;  %v1565_v54 = vsel %vm874_vm3, %v1563_v25, %v1564_v43  ;;  %v681_v57 = vmul.f32 %v2257_v24, %v2675_v32  ;;  %v682_v59 = vmul.f32 %v2257_v24, %v2679_v42 }
  0x87   : > { %v1464_v41 = vadd.f32 %v1420_v63, %v1316_v44  ;;  %v1568_v31 = vsel %vm874_vm3, %v1566_v51, %v1567_v53  ;;  %v683_v37 = vmul.f32 %v2257_v24, %v2704_v27  ;;  %v684_v23 = vmul.f32 %v2257_v24, %v2708_v50  ;;  %v2763_v63 = vld [vmem:[#allocation2 + $0xc8] sm:$0x3] }
  0x88   : > { %v1463_v55 = vadd.f32 %v1417_v45, %v1315_v30  ;;  %v756_v20 = vrot.slane %v681_v57, 1  ;;  %v757_v52 = vrot.slane %v682_v59, 1  ;;  %v830_v29 = vmul.f32 %v2272_v36, %v2675_v32 }
  0x89   : > { %v1612_v62 = vadd.f32 %v1568_v31, %v1464_v41  ;;  %v759_v40 = vrot.slane %v683_v37, 1  ;;  %v760_v33 = vrot.slane %v684_v23, 1  ;;  %v831_v35 = vmul.f32 %v2272_v36, %v2679_v42 }
  0x8a   : > { %v1611_v60 = vadd.f32 %v1565_v54, %v1463_v55  ;;  %v758_v34 = vsel %vm725_vm2, %v756_v20, %v757_v52  ;;  %v832_v39 = vmul.f32 %v2272_v36, %v2704_v27  ;;  %v833_v32 = vmul.f32 %v2272_v36, %v2708_v50 }
  0x8b   : > { %v1635_v30 = vadd.f32 %v2402_v22, %v1612_v62  ;;  %v761_v45 = vsel %vm725_vm2, %v759_v40, %v760_v33  ;;  %v800_v61 = vadd.f32 %v758_v34, %v635_v58  ;;  %v905_v42 = vrot.slane %v830_v29, 2 }
  0x8c   : > { %v1634_v56 = vadd.f32 %v2402_v22, %v1611_v60  ;;  %v801_v55 = vadd.f32 %v761_v45, %v636_v46  ;;  %v906_v25 = vrot.slane %v831_v35, 2  ;;  %v908_v43 = vrot.slane %v832_v39, 2 }
  0x8d   : > { %v909_v51 = vrot.slane %v833_v32, 2  ;;  %v969_v53 = vmul.f32 %v2309_v0, %v2704_v27  ;;  %v970_v54 = vmul.f32 %v2309_v0, %v2754_v2  ;;  %v1015_v57 = vmul.f32 %v2312_v3, %v2704_v27 }
  0x8e   : > { %v1646_v49 = vpack.c.bf16 %v1635_v30, %v1634_v56  ;;  %v907_v58 = vsel %vm874_vm3, %v905_v42, %v906_v25  ;;  %v1016_v46 = vmul.f32 %v2312_v3, %v2708_v50  ;;  %v1017_v59 = vmul.f32 %v2312_v3, %v2754_v2 }
  0x8f   : > { %v910_v60 = vsel %vm874_vm3, %v908_v43, %v909_v51  ;;  %v949_v37 = vadd.f32 %v907_v58, %v800_v61  ;;  %v1018_v23 = vmul.f32 %v2312_v3, %v2763_v63  ;;  %v1089_v20 = vrot.slane %v1015_v57, 1 }
  0x90   : > { %1969 = vmatprep.mubr.msk.bf16.mxu1 %vm451_vm0, %v1646_v49  ;;  %v950_v62 = vadd.f32 %v910_v60, %v801_v55  ;;  %v1090_v52 = vrot.slane %v1016_v46, 1  ;;  %v1092_v29 = vrot.slane %v1017_v59, 1  ;;  %v1163_v35 = vmul.f32 %v2316_v21, %v2704_v27  ;;  %v2791_v49 = vld [vmem:[#allocation2 + $0xd0] sm:$0xff] }
  0x91   : > { %v985_v40 = vadd.f32 %v969_v53, %v949_v37  ;;  %v1093_v33 = vrot.slane %v1018_v23, 1  ;;  %v1164_v39 = vmul.f32 %v2316_v21, %v2708_v50  ;;  %v1165_v32 = vmul.f32 %v2316_v21, %v2754_v2 }
  0x92   : > { %v2751_v26 = vpop.trf.xlu0  ;;  %v986_v30 = vadd.f32 %v970_v54, %v950_v62  ;;  %v1091_v34 = vsel %vm725_vm2, %v1089_v20, %v1090_v52  ;;  %v1166_v42 = vmul.f32 %v2316_v21, %v2763_v63  ;;  %v1237_v27 = vrot.slane %v1163_v35, 2  ;;  %v2797_v54 = vld [vmem:[#allocation2 + $0xd8] sm:$0x3] }
  0x93   : > { %v395_v44 = vrot.slane %v2751_v26, 4  ;;  %v1094_v45 = vsel %vm725_vm2, %v1092_v29, %v1093_v33  ;;  %v1133_v61 = vadd.f32 %v1091_v34, %v985_v40  ;;  %v1238_v25 = vrot.slane %v1164_v39, 2 }
  0x94   : > { %v1134_v55 = vadd.f32 %v1094_v45, %v986_v30  ;;  %v1240_v43 = vrot.slane %v1165_v32, 2  ;;  %v1241_v51 = vrot.slane %v1166_v42, 2  ;;  %v1301_v50 = vmul.f32 %v2349_v28, %v2754_v2 }
  0x95   : > { %v396_v41 = vadd.f32 %v395_v44, %v2751_v26  ;;  %v1302_v53 = vmul.f32 %v2349_v28, %v2791_v49  ;;  %v1239_v58 = vsel %vm874_vm3, %v1237_v27, %v1238_v25  ;;  %v1347_v57 = vmul.f32 %v2360_v47, %v2754_v2 }
  0x96   : > { %v1348_v46 = vmul.f32 %v2360_v47, %v2763_v63  ;;  %v1349_v59 = vmul.f32 %v2360_v47, %v2791_v49  ;;  %v1242_v60 = vsel %vm874_vm3, %v1240_v43, %v1241_v51  ;;  %v1281_v37 = vadd.f32 %v1239_v58, %v1133_v61 }
  0x97   : > { %v397_v31 = vrot.slane %v396_v41, 2  ;;  %v1350_v23 = vmul.f32 %v2360_v47, %v2797_v54  ;;  %v1282_v62 = vadd.f32 %v1242_v60, %v1134_v55  ;;  %v1421_v20 = vrot.slane %v1347_v57, 1 }
  0x98   : > { %v1422_v52 = vrot.slane %v1348_v46, 1  ;;  %v1424_v29 = vrot.slane %v1349_v59, 1  ;;  %v1317_v40 = vadd.f32 %v1301_v50, %v1281_v37  ;;  %v1495_v35 = vmul.f32 %v2363_v48, %v2754_v2 }
  0x99   : > { %v398_v56 = vadd.f32 %v397_v31, %v396_v41  ;;  %v1425_v33 = vrot.slane %v1350_v23, 1  ;;  %v1318_v30 = vadd.f32 %v1302_v53, %v1282_v62  ;;  %v1496_v39 = vmul.f32 %v2363_v48, %v2763_v63 }
  0x9a   : > { %v1423_v34 = vsel %vm725_vm2, %v1421_v20, %v1422_v52  ;;  %v1497_v32 = vmul.f32 %v2363_v48, %v2791_v49  ;;  %v1498_v61 = vmul.f32 %v2363_v48, %v2797_v54  ;;  %v1569_v55 = vrot.slane %v1495_v35, 2 }
  0x9b   : > { %v399_v44 = vrot.slane %v398_v56, 1  ;;  %v1465_v45 = vadd.f32 %v1423_v34, %v1317_v40  ;;  %v1570_v27 = vrot.slane %v1496_v39, 2  ;;  %v637_v51 = vmul.f32 %v2277_v38, %v2754_v2 }
  0x9c   : > { %v1572_v25 = vrot.slane %v1497_v32, 2  ;;  %v638_v50 = vmul.f32 %v2277_v38, %v2791_v49  ;;  %v685_v58 = vmul.f32 %v2257_v24, %v2754_v2  ;;  %v686_v57 = vmul.f32 %v2257_v24, %v2763_v63 }
  0x9d   : > { %v400_v41 = vadd.f32 %v399_v44, %v398_v56  ;;  %v1571_v53 = vsel %vm874_vm3, %v1569_v55, %v1570_v27  ;;  %v687_v46 = vmul.f32 %v2257_v24, %v2791_v49  ;;  %v688_v37 = vmul.f32 %v2257_v24, %v2797_v54 }
  0x9e   : > { %v1613_v60 = vadd.f32 %v1571_v53, %v1465_v45  ;;  %v762_v62 = vrot.slane %v685_v58, 1  ;;  %v763_v20 = vrot.slane %v686_v57, 1  ;;  %v834_v35 = vmul.f32 %v2272_v36, %v2754_v2 }
  0x9f   : > { %v402_v31 = vmul.f32 0.125, %v400_v41  ;;  %v1573_v41 = vrot.slane %v1498_v61, 2  ;;  %v765_v52 = vrot.slane %v687_v46, 1  ;;  %v835_v39 = vmul.f32 %v2272_v36, %v2763_v63  ;;  %v2862_v46 = vld [vmem:[#allocation2 + $0xe8] sm:$0x3] }
  0xa0   : > { %v1636_v40 = vadd.f32 %v2402_v22, %v1613_v60  ;;  %v764_v34 = vsel %vm725_vm2, %v762_v62, %v763_v20  ;;  %v836_v32 = vmul.f32 %v2272_v36, %v2791_v49  ;;  %v837_v61 = vmul.f32 %v2272_v36, %v2797_v54 }
  0xa1   : > { %v2810_v56 = vsub.f32 %v2751_v26, %v402_v31  ;;  %v1426_v26 = vsel %vm725_vm2, %v1424_v29, %v1425_v33  ;;  %v1574_v31 = vsel %vm874_vm3, %v1572_v25, %v1573_v41  ;;  %v766_v33 = vrot.slane %v688_v37, 1  ;;  %v2850_v25 = vld [vmem:[#allocation2 + $0xe0] sm:$0xff] }
  0xa2   : > { %v1466_v42 = vadd.f32 %v1426_v26, %v1318_v30  ;;  %v802_v45 = vadd.f32 %v764_v34, %v637_v51  ;;  %v911_v2 = vrot.slane %v834_v35, 2  ;;  %v912_v27 = vrot.slane %v835_v39, 2 }
  0xa3   : > { %v404_v44 = vmul.f32 %v2810_v56, %v2810_v56  ;;  %v767_v26 = vsel %vm725_vm2, %v765_v52, %v766_v33  ;;  %v915_v41 = vrot.slane %v837_v61, 2  ;;  %v971_v63 = vmul.f32 %v2309_v0, %v2791_v49 }
  0xa4   : > { %v1614_v23 = vadd.f32 %v1574_v31, %v1466_v42  ;;  %v803_v55 = vadd.f32 %v767_v26, %v638_v50  ;;  %v913_v53 = vsel %vm874_vm3, %v911_v2, %v912_v27  ;;  %v972_v51 = vmul.f32 %v2309_v0, %v2850_v25  ;;  %v2881_v2 = vld [vmem:[#allocation2 + $0xf0] sm:$0xff] }
  0xa5   : > { %v405_v43 = vrot.slane %v404_v44, 4  ;;  %v1019_v50 = vmul.f32 %v2312_v3, %v2791_v49  ;;  %v1020_v58 = vmul.f32 %v2312_v3, %v2797_v54  ;;  %v951_v31 = vadd.f32 %v913_v53, %v802_v45 }
  0xa6   : > { %v1637_v30 = vadd.f32 %v2402_v22, %v1614_v23  ;;  %v1021_v60 = vmul.f32 %v2312_v3, %v2850_v25  ;;  %v1022_v23 = vmul.f32 %v2312_v3, %v2862_v46  ;;  %v1167_v33 = vmul.f32 %v2316_v21, %v2791_v49 }
  0xa7   : > { %v406_v59 = vadd.f32 %v405_v43, %v404_v44  ;;  %v914_v43 = vrot.slane %v836_v32, 2  ;;  %v1095_v62 = vrot.slane %v1019_v50, 1  ;;  %v1096_v20 = vrot.slane %v1020_v58, 1 }
  0xa8   : > { %v1647_v42 = vpack.c.bf16 %v1637_v30, %v1636_v40  ;;  %v1098_v40 = vrot.slane %v1021_v60, 1  ;;  %v1099_v34 = vrot.slane %v1022_v23, 1  ;;  %v1168_v39 = vmul.f32 %v2316_v21, %v2797_v54 }
  0xa9   : > { %v407_v29 = vrot.slane %v406_v59, 2  ;;  %v1097_v30 = vsel %vm725_vm2, %v1095_v62, %v1096_v20  ;;  %v1169_v26 = vmul.f32 %v2316_v21, %v2850_v25  ;;  %v1170_v45 = vmul.f32 %v2316_v21, %v2862_v46 }
  0xaa   : > { %1970 = vmatmul.mubr.msk.bf16.gmra.mrb[8].mxu1 %vm451_vm0, %v1647_v42  ;;  %v1100_v61 = vsel %vm725_vm2, %v1098_v40, %v1099_v34  ;;  %v1243_v42 = vrot.slane %v1167_v33, 2  ;;  %v1303_v49 = vmul.f32 %v2349_v28, %v2850_v25  ;;  %v1351_v53 = vmul.f32 %v2360_v47, %v2850_v25 }
  0xab   : > { %v408_v44 = vadd.f32 %v407_v29, %v406_v59  ;;  %v916_v59 = vsel %vm874_vm3, %v914_v43, %v915_v41  ;;  %v987_v29 = vadd.f32 %v971_v63, %v951_v31  ;;  %v1246_v54 = vrot.slane %v1169_v26, 2  ;;  %v2883_v43 = vld [vmem:[#allocation2 + $0xf8] sm:$0x3] }
  0xac   : > { %v952_v37 = vadd.f32 %v916_v59, %v803_v55  ;;  %v1244_v55 = vrot.slane %v1168_v39, 2  ;;  %v1304_v63 = vmul.f32 %v2349_v28, %v2881_v2  ;;  %v1354_v59 = vmul.f32 %v2360_v47, %v2883_v43 }
  0xad   : > { %v409_v22 = vrot.slane %v408_v44, 1  ;;  %v1427_v60 = vrot.slane %v1351_v53, 1  ;;  %v1499_v23 = vmul.f32 %v2363_v48, %v2850_v25  ;;  %v691_v53 = vmul.f32 %v2257_v24, %v2881_v2 }
  0xae   : > { %v988_v35 = vadd.f32 %v972_v51, %v952_v37  ;;  %v1245_v41 = vsel %vm874_vm3, %v1243_v42, %v1244_v55  ;;  %v1352_v51 = vmul.f32 %v2360_v47, %v2862_v46  ;;  %v639_v42 = vmul.f32 %v2277_v38, %v2850_v25  ;;  %v419_v55 = vpop.permute.xlu1 %418 }
  0xaf   : > { %v410_v57 = vadd.f32 %v409_v22, %v408_v44  ;;  %v1135_v44 = vadd.f32 %v1097_v30, %v987_v29  ;;  %v1247_v22 = vrot.slane %v1170_v45, 2  ;;  %v1500_v29 = vmul.f32 %v2363_v48, %v2862_v46 }
  0xb0   : > { %v1136_v27 = vadd.f32 %v1100_v61, %v988_v35  ;;  %v1428_v37 = vrot.slane %v1352_v51, 1  ;;  %v1501_v35 = vmul.f32 %v2363_v48, %v2881_v2  ;;  %v1502_v30 = vmul.f32 %v2363_v48, %v2883_v43 }
  0xb1   : > { %v411_v52 = vmul.f32 0.125, %v410_v57  ;;  %v1248_v50 = vsel %vm874_vm3, %v1246_v54, %v1247_v22  ;;  %v1283_v58 = vadd.f32 %v1245_v41, %v1135_v44  ;;  %v1353_v57 = vmul.f32 %v2360_v47, %v2881_v2 }
  0xb2   : > { %v1284_v31 = vadd.f32 %v1248_v50, %v1136_v27  ;;  %v1429_v33 = vsel %vm725_vm2, %v1427_v60, %v1428_v37  ;;  %v1576_v44 = vrot.slane %v1500_v29, 2  ;;  %v1578_v45 = vrot.slane %v1501_v35, 2  ;;  %v2927_v60 = vld [vmem:[%s3083_s5] ss:$0 sm:$0xff] }
  0xb3   : > { %v412_v32 = vadd.f32 1e-05, %v411_v52  ;;  %v1319_v62 = vadd.f32 %v1303_v49, %v1283_v58  ;;  %v1430_v20 = vrot.slane %v1353_v57, 1  ;;  %v1431_v52 = vrot.slane %v1354_v59, 1  ;;  %v614_v29 = vld [vmem:[#allocation2 + $0x100] sm:$0xff] }
  0xb4   : > { %v1320_v40 = vadd.f32 %v1304_v63, %v1284_v31  ;;  %v1579_v61 = vrot.slane %v1502_v30, 2  ;;  %v640_v27 = vmul.f32 %v2277_v38, %v2881_v2  ;;  %v689_v54 = vmul.f32 %v2257_v24, %v2850_v25  ;;  %v426_v30 = vpop.permute.xlu1 %425 }
  0xb5   : > { %1995 = vrsqrt.f32 %v412_v32  ;;  %v1432_v34 = vsel %vm725_vm2, %v1430_v20, %v1431_v52  ;;  %v1467_v39 = vadd.f32 %v1429_v33, %v1319_v62  ;;  %v1575_v32 = vrot.slane %v1499_v23, 2 }
  0xb6   : > { %v1468_v26 = vadd.f32 %v1432_v34, %v1320_v40  ;;  %v690_v22 = vmul.f32 %v2257_v24, %v2862_v46  ;;  %v1580_v41 = vsel %vm874_vm3, %v1578_v45, %v1579_v61  ;;  %v692_v51 = vmul.f32 %v2257_v24, %v2883_v43  ;;  %v615_v45 = vld [vmem:[#allocation2 + $0x108] sm:$0x3] }
  0xb7   : > { %v1577_v49 = vsel %vm874_vm3, %v1575_v32, %v1576_v44  ;;  %v768_v57 = vrot.slane %v689_v54, 1  ;;  %v838_v38 = vmul.f32 %v2272_v36, %v2850_v25  ;;  %v771_v23 = vrot.slane %v691_v53, 1 }
  0xb8   : > { %v1615_v63 = vadd.f32 %v1577_v49, %v1467_v39  ;;  %v1616_v58 = vadd.f32 %v1580_v41, %v1468_v26  ;;  %v769_v59 = vrot.slane %v690_v22, 1  ;;  %v772_v62 = vrot.slane %v692_v51, 1 }
  0xb9   : > { %v839_v52 = vmul.f32 %v2272_v36, %v2862_v46  ;;  %v840_v25 = vmul.f32 %v2272_v36, %v2881_v2  ;;  %v841_v35 = vmul.f32 %v2272_v36, %v2883_v43  ;;  %v917_v32 = vrot.slane %v838_v38, 2 }
  0xba   : > { %v1638_v37 = vadd.f32 %v2927_v60, %v1615_v63  ;;  %v1639_v24 = vadd.f32 %v2927_v60, %v1616_v58  ;;  %v770_v20 = vsel %vm725_vm2, %v768_v57, %v769_v59  ;;  %v773_v40 = vsel %vm725_vm2, %v771_v23, %v772_v62  ;;  %v616_v59 = vld [vmem:[#allocation2 + $0x110] sm:$0xff] }
  0xbb   : > { %v804_v33 = vadd.f32 %v770_v20, %v639_v42  ;;  %v805_v39 = vadd.f32 %v773_v40, %v640_v27  ;;  %v918_v44 = vrot.slane %v839_v52, 2  ;;  %v920_v61 = vrot.slane %v840_v25, 2  ;;  %v617_v20 = vld [vmem:[#allocation2 + $0x118] sm:$0x3] }
  0xbc   : > { %v1648_v34 = vpack.c.bf16 %v1639_v24, %v1638_v37  ;;  %v921_v46 = vrot.slane %v841_v35, 2  ;;  %v973_v49 = vmul.f32 %v2309_v0, %v2881_v2  ;;  %v974_v42 = vmul.f32 %v2309_v0, %v614_v29  ;;  %v1992_v0 = vld [vmem:[%s3081_s3] sm:$0xff]  }
  0xbd   : > { %v1023_v36 = vmul.f32 %v2312_v3, %v2881_v2  ;;  %v1024_v27 = vmul.f32 %v2312_v3, %v2883_v43  ;;  %v1025_v63 = vmul.f32 %v2312_v3, %v614_v29  ;;  %v1026_v51 = vmul.f32 %v2312_v3, %v615_v45 }
  0xbe   : > { %1973 = vmatprep.mubr.msk.bf16.mxu1 %vm451_vm0, %v1648_v34  ;;  %v922_v22 = vsel %vm874_vm3, %v920_v61, %v921_v46  ;;  %v1171_v37 = vmul.f32 %v2316_v21, %v2881_v2  ;;  %v1172_v3 = vmul.f32 %v2316_v21, %v2883_v43  ;;  %v1173_v25 = vmul.f32 %v2316_v21, %v614_v29 }
  0xbf   : > { %v1996_v50 = vpop.eup %1995  ;;  %v954_v53 = vadd.f32 %v922_v22, %v805_v39  ;;  %v1102_v58 = vrot.slane %v1024_v27, 1  ;;  %v1105_v24 = vrot.slane %v1026_v51, 1  ;;  %v1305_v2 = vmul.f32 %v2349_v28, %v614_v29  ;;  %v1993_v22 = vld [vmem:[%s3081_s3 + $0x8] sm:$0xff]  }
  0xc0   : > { %v414_v31 = vmul.f32 %v1996_v50, %v2810_v56  ;;  %v1101_v50 = vrot.slane %v1023_v36, 1  ;;  %v1249_v40 = vrot.slane %v1171_v37, 2  ;;  %v1250_v35 = vrot.slane %v1172_v3, 2  ;;  %v1994_v3 = vld [vmem:[%s3081_s3 + $0x10] sm:$0xff]  }
  0xc1   : > { %v990_v23 = vadd.f32 %v974_v42, %v954_v53  ;;  %v1252_v39 = vrot.slane %v1173_v25, 2  ;;  %v1355_v43 = vmul.f32 %v2360_v47, %v614_v29  ;;  %v1358_v61 = vmul.f32 %v2360_v47, %v617_v20 }
  0xc2   : > { %v421_v56 = vmul.f32 %v419_v55, %v414_v31  ;;  %v919_v55 = vsel %vm874_vm3, %v917_v32, %v918_v44  ;;  %v1104_v31 = vrot.slane %v1025_v63, 1  ;;  %v1103_v62 = vsel %vm725_vm2, %v1101_v50, %v1102_v58 }
  0xc3   : > { %v953_v41 = vadd.f32 %v919_v55, %v804_v33  ;;  %v1356_v44 = vmul.f32 %v2360_v47, %v615_v45  ;;  %v1503_v55 = vmul.f32 %v2363_v48, %v614_v29  ;;  %v1504_v63 = vmul.f32 %v2363_v48, %v615_v45 }
  0xc4   : > { %v428_v26 = vadd.f32 %v426_v30, %v421_v56  ;;  %v1174_v56 = vmul.f32 %v2316_v21, %v615_v45  ;;  %v1106_v33 = vsel %vm725_vm2, %v1104_v31, %v1105_v24  ;;  %v1306_v30 = vmul.f32 %v2349_v28, %v616_v59 }
  0xc5   : > { %v989_v38 = vadd.f32 %v973_v49, %v953_v41  ;;  %v1138_v34 = vadd.f32 %v1106_v33, %v990_v23  ;;  %v1251_v21 = vsel %vm874_vm3, %v1249_v40, %v1250_v35  ;;  %v1433_v49 = vrot.slane %v1355_v43, 1 }
  0xc6   : > { %v435_v54 = vpack.c.bf16 %v428_v26, %v428_v26  ;;  %v1253_v32 = vrot.slane %v1174_v56, 2  ;;  %v1357_v26 = vmul.f32 %v2360_v47, %v616_v59  ;;  %v1434_v36 = vrot.slane %v1356_v44, 1 }
  0xc7   : > { %v1137_v52 = vadd.f32 %v1103_v62, %v989_v38  ;;  %v1505_v53 = vmul.f32 %v2363_v48, %v616_v59  ;;  %v1506_v47 = vmul.f32 %v2363_v48, %v617_v20  ;;  %v1581_v58 = vrot.slane %v1503_v55, 2 }
  0xc8   : > { %v463_v57 = vsel %vm461_vm4, %v435_v54, 0  ;;  %v1254_v28 = vsel %vm874_vm3, %v1252_v39, %v1253_v32  ;;  %v1436_v27 = vrot.slane %v1357_v26, 1  ;;  %v1437_v54 = vrot.slane %v1358_v61, 1 }
  0xc9   : > { %1946 = vmatpush3.bf16.msra.mxu0 %v463_v57  ;;  %v1285_v46 = vadd.f32 %v1251_v21, %v1137_v52  ;;  %v1286_v42 = vadd.f32 %v1254_v28, %v1138_v34  ;;  %v1435_v50 = vsel %vm725_vm2, %v1433_v49, %v1434_v36  ;;  %v1584_v38 = vrot.slane %v1505_v53, 2  ;;  %v2998_v52 = vld [vmem:[%s3085_s7] ss:$0 sm:$0xff] }
  0xca   : > { %v1438_v29 = vsel %vm725_vm2, %v1436_v27, %v1437_v54  ;;  %v1585_v31 = vrot.slane %v1506_v47, 2 }
  0xcb   : > { %v1321_v41 = vadd.f32 %v1305_v2, %v1285_v46  ;;  %v1322_v51 = vadd.f32 %v1306_v30, %v1286_v42 }
  0xcc   : > { %1948 = vmatmul.mubr.msk.bf16.vlgmr.msra.gmra.mrb[0].mxu0 %vm451_vm0, %v1992_v0  ;;  %v1582_v0 = vrot.slane %v1504_v63, 2  ;;  %v1586_v59 = vsel %vm874_vm3, %v1584_v38, %v1585_v31 }
  0xcd   : > { %1951 = vmatprep.mubr.msk.bf16.mxu0 %vm2008_vm5, %v2006_v1  ;;  %v1469_v57 = vadd.f32 %v1435_v50, %v1321_v41  ;;  %v1470_v37 = vadd.f32 %v1438_v29, %v1322_v51 }
  0xce   : > { %v1583_v45 = vsel %vm874_vm3, %v1581_v58, %v1582_v0 }
  0xcf   : > { %v1617_v23 = vadd.f32 %v1583_v45, %v1469_v57  ;;  %v1618_v48 = vadd.f32 %v1586_v59, %v1470_v37 }
  0xd1   : > { %v1640_v62 = vadd.f32 %v2927_v60, %v1617_v23  ;;  %v1641_v24 = vadd.f32 %v2927_v60, %v1618_v48 }
  0xd3   : > { %v1649_v20 = vpack.c.bf16 %v1641_v24, %v1640_v62 }
  0xd4   : > { %1952 = vmatmul.mubr.msk.bf16.gmra.mrb[4].mxu0 %vm451_vm0, %v1993_v22 }
  0xd5   : > { %1955 = vmatprep.mubr.msk.bf16.mxu0 %vm2008_vm5, %v2006_v1  ;;  %1974 = vmatmul.mubr.msk.bf16.gmra.mrb[12].mxu1 %vm451_vm0, %v1649_v20 }
  0xdc   : > { %1956 = vmatmul.mubr.msk.bf16.gmra.mrb[8].mxu0 %vm451_vm0, %v1994_v3 }
 0x122   : > { %v1963_v25 = vpop.f32.mrb[0].mxu1 }
 0x123   : > { %v1728_v1 = vadd.f32 %v1963_v25, %v2998_v52  ;;  %v1719_v56 = vpop.f32.mrb[1].mxu1 }
 0x124   : > { %v1720_v60 = vadd.f32 %v2998_v52, %v1719_v56  ;;  %v1964_v40 = vpop.f32.mrb[2].mxu1 }
 0x125   : > { %v1784_v33 = vadd.f32 %v1728_v1, %v2174_v6  ;;  %v1731_v35 = vadd.f32 %v1964_v40, %v2998_v52  ;;  %v1722_v2 = vpop.f32.mrb[3].mxu1 }
 0x126   : > { %v1782_v30 = vadd.f32 %v1720_v60, %v2168_v4  ;;  %v1723_v34 = vadd.f32 %v2998_v52, %v1722_v2 }
 0x127   : > { %1800 = vst.msk [vmem:[%s3006_s24 + $0x10] sm:$0xff] %vm451_vm0, %v1784_v33  ;;  %v1785_v39 = vadd.f32 %v1731_v35, %v2184_v7 }
 0x128   : > { %1798 = vst.msk [vmem:[%s3006_s24] sm:$0xff] %vm451_vm0, %v1782_v30  ;;  %v1783_v32 = vadd.f32 %v1723_v34, %v2171_v5 }
 0x129   : > { %1801 = vst.msk [vmem:[%s3006_s24 + $0x18] sm:$0xff] %vm451_vm0, %v1785_v39 }
 0x12a   : > { %1799 = vst.msk [vmem:[%s3006_s24 + $0x8] sm:$0xff] %vm451_vm0, %v1783_v32 }
 0x14c   : > { %v1967_v6 = vpop.f32.mrb[4].mxu1 }
 0x14d   : > { %v1744_v4 = vadd.f32 %v1967_v6, %v2998_v52  ;;  %v1735_v43 = vpop.f32.mrb[5].mxu1 }
 0x14e   : > { %v1736_v21 = vadd.f32 %v2998_v52, %v1735_v43  ;;  %v1968_v44 = vpop.f32.mrb[6].mxu1 }
 0x14f   : > { %v1788_v7 = vadd.f32 %v1744_v4, %v2199_v10  ;;  %v1747_v26 = vadd.f32 %v1968_v44, %v2998_v52  ;;  %v1738_v61 = vpop.f32.mrb[7].mxu1 }
 0x150   : > { %v1786_v5 = vadd.f32 %v1736_v21, %v2187_v8  ;;  %v1739_v28 = vadd.f32 %v2998_v52, %v1738_v61 }
 0x151   : > { %1804 = vst.msk [vmem:[%s3006_s24 + $0x30] sm:$0xff] %vm451_vm0, %v1788_v7  ;;  %v1789_v46 = vadd.f32 %v1747_v26, %v2202_v11 }
 0x152   : > { %1802 = vst.msk [vmem:[%s3006_s24 + $0x20] sm:$0xff] %vm451_vm0, %v1786_v5  ;;  %v1787_v49 = vadd.f32 %v1739_v28, %v2190_v9 }
 0x153   : > { %1805 = vst.msk [vmem:[%s3006_s24 + $0x38] sm:$0xff] %vm451_vm0, %v1789_v46 }
 0x154   : > { %1803 = vst.msk [vmem:[%s3006_s24 + $0x28] sm:$0xff] %vm451_vm0, %v1787_v49 }
 0x17d   : > { %v1971_v10 = vpop.f32.mrb[8].mxu1 }
 0x17e   : > { %v1760_v8 = vadd.f32 %v1971_v10, %v2998_v52  ;;  %v1751_v55 = vpop.f32.mrb[9].mxu1 }
 0x17f   : > { %v1752_v42 = vadd.f32 %v2998_v52, %v1751_v55  ;;  %v1972_v36 = vpop.f32.mrb[10].mxu1 }
 0x180   : > { %v1792_v11 = vadd.f32 %v1760_v8, %v2217_v14  ;;  %v1763_v27 = vadd.f32 %v1972_v36, %v2998_v52  ;;  %v1754_v54 = vpop.f32.mrb[11].mxu1 }
 0x181   : > { %v1790_v9 = vadd.f32 %v1752_v42, %v2205_v12  ;;  %v1755_v22 = vadd.f32 %v2998_v52, %v1754_v54 }
 0x182   : > { %1808 = vst.msk [vmem:[%s3006_s24 + $0x50] sm:$0xff] %vm451_vm0, %v1792_v11  ;;  %v1793_v41 = vadd.f32 %v1763_v27, %v2220_v15 }
 0x183   : > { %1806 = vst.msk [vmem:[%s3006_s24 + $0x40] sm:$0xff] %vm451_vm0, %v1790_v9  ;;  %v1791_v63 = vadd.f32 %v1755_v22, %v2214_v13 }
 0x184   : > { %1809 = vst.msk [vmem:[%s3006_s24 + $0x58] sm:$0xff] %vm451_vm0, %v1793_v41 }
 0x185   : > { %1807 = vst.msk [vmem:[%s3006_s24 + $0x48] sm:$0xff] %vm451_vm0, %v1791_v63 }
 0x19f   : > { %v499_v12 = vpop.f32.mrb[0].mxu0 }
 0x1a0   : > { %522 = vst [vmem:[%s340_s27] sm:$0xff] %v499_v12  ;;  %v1949_v14 = vpop.f32.mrb[1].mxu0 }
 0x1a1   : > { %v502_v53 = vpop.f32.mrb[2].mxu0 }
 0x1a2   : > { %523 = vst [vmem:[%s340_s27 + $0x8] sm:$0xff] %v502_v53  ;;  %v1950_v47 = vpop.f32.mrb[3].mxu0 }
 0x1a7   : > { %v507_v15 = vpop.f32.mrb[4].mxu0 }
 0x1a8   : > { %524 = vst [vmem:[%s340_s27 + $0x10] sm:$0xff] %v507_v15  ;;  %v1953_v51 = vpop.f32.mrb[5].mxu0  ;;  %v1975_v29 = vpop.f32.mrb[12].mxu1 }
 0x1a9   : > { %v510_v50 = vpop.f32.mrb[6].mxu0  ;;  %v1776_v58 = vadd.f32 %v1975_v29, %v2998_v52  ;;  %v1767_v57 = vpop.f32.mrb[13].mxu1 }
 0x1aa   : > { %525 = vst [vmem:[%s340_s27 + $0x18] sm:$0xff] %v510_v50  ;;  %v1954_v13 = vpop.f32.mrb[7].mxu0  ;;  %v1768_v38 = vadd.f32 %v2998_v52, %v1767_v57  ;;  %v1976_v31 = vpop.f32.mrb[14].mxu1 }
 0x1ab   : > { %v1796_v45 = vadd.f32 %v1776_v58, %v2235_v18  ;;  %v1779_v59 = vadd.f32 %v1976_v31, %v2998_v52  ;;  %v1770_v23 = vpop.f32.mrb[15].mxu1 }
 0x1ac   : > { %v1794_v62 = vadd.f32 %v1768_v38, %v2229_v16  ;;  %v1771_v24 = vadd.f32 %v2998_v52, %v1770_v23 }
 0x1ad   : > { %1812 = vst.msk [vmem:[%s3006_s24 + $0x70] sm:$0xff] %vm451_vm0, %v1796_v45  ;;  %v1797_v20 = vadd.f32 %v1779_v59, %v2245_v19 }
 0x1ae   : > { %1810 = vst.msk [vmem:[%s3006_s24 + $0x60] sm:$0xff] %vm451_vm0, %v1794_v62  ;;  %v1795_v25 = vadd.f32 %v1771_v24, %v2232_v17 }
 0x1af   : > { %v515_v0 = vpop.f32.mrb[8].mxu0  ;;  %1813 = vst.msk [vmem:[%s3006_s24 + $0x78] sm:$0xff] %vm451_vm0, %v1797_v20 }
 0x1b0   : > { %526 = vst [vmem:[%s340_s27 + $0x20] sm:$0xff] %v515_v0  ;;  %v1957_v37 = vpop.f32.mrb[9].mxu0  ;;  %1811 = vst.msk [vmem:[%s3006_s24 + $0x68] sm:$0xff] %vm451_vm0, %v1795_v25 }
 0x1b1   : > { %v518_v48 = vpop.f32.mrb[10].mxu0 }
 0x1b2   : > { %527 = vst [vmem:[%s340_s27 + $0x28] sm:$0xff] %v518_v48  ;;  %v1958_v3 = vpop.f32.mrb[11].mxu0 }
 0x1b3 PF: > { %s20_s30 = sadd.s32 1, %s2004_s30  }
 0x1b4   : > { %p17_p4 = scmp.ge.s32.totalorder %s20_s30, 4  }
 0x1b6   :  { %19 = sbr.rel (!%p17_p4) target bundleno = 1 (0x1), region = 95 }

// kernel: hpb_forward.4
= control target key start
LH: loop header
LB: loop body
LE: loop exit
PB: predicated region body
PF: predicated region fallthrough
CT: control target
= control target key end

     0   :  { %s2817_s18 = smov 0   ;;  %s3700_s0 = inlined_call_operand.vmem [shape: f32[2,6,128,8], index: 0, kind: input, shape index: {}]   ;;  %s3701_s1 = inlined_call_operand.vmem [shape: f32[2,128,8], index: 1, kind: input, shape index: {}]   ;;  %s3702_s2 = inlined_call_operand.vmem [shape: bf16[2,8,8], index: 2, kind: input, shape index: {}]   ;;  %s3703_s3 = inlined_call_operand.vmem [shape: f32[1,8], index: 3, kind: input, shape index: {}]   ;;  %s3704_s4 = inlined_call_operand.vmem [shape: bf16[8,8], index: 4, kind: input, shape index: {}]   ;;  %s3705_s5 = inlined_call_operand.vmem [shape: f32[2,128,8], index: 5, kind: output, shape index: {}]  }
   0x1 LB: > { %s2190_s19 = sadd.s32 4294967295, %s2785_s18   ;;  %p2194_p0 = scmp.ge.s32.totalorder %s2785_s18, 1  ;;  %s2785_s18 = sphi %s2817_s18, %s15_s18  }
   0x2   : > { %p197_p1 = scmp.lt.s32.totalorder %s2785_s18, 3 }
   0x4   : > { %p198_p2 = pnand %p2194_p0, %p197_p1 }
   0x6   : > { %201 = sbr.rel (%p198_p2) target bundleno = 2192 (0x890), region = 40 }
   0xd   : > { %p230_p3 = scmp.lt.s32.totalorder %s2190_s19, 1  ;;  %vm368_vm0 = vcmask 64512   ;;  %vm642_vm1 = vcmask 1043456  }
   0xf   : > { %s3734_s19 = smov (!%p230_p3, %s2190_s19), 1 }
  0x10   : > { %s2513_s20 = smul.u32 768, %s3734_s19  ;;  %s2243_s7 = sshll.u32 %s3734_s19, 7 }
  0x11   : > { %s3642_s10 = scalar_lea.vmem %s3701_s1, %s2243_s7  ;;  %s3649_s13 = scalar_lea.vmem %s3705_s5, %s2243_s7 }
  0x12   : > { %s2831_s23 = scalar_lea.vmem %s3700_s0, %s2513_s20 }
  0x13   : > { %v2834_v0 = vld [vmem:[%s2831_s23 + $0x100] sm:$0xff]  ;;  %v2837_v1 = vld [vmem:[%s2831_s23 + $0x108] sm:$0xff]  ;;  %v2840_v2 = vld [vmem:[%s2831_s23 + $0x110] sm:$0xff] }
  0x14   : > { %v465_v3 = vmul.f32 %v2834_v0, %v2834_v0  ;;  %v466_v4 = vmul.f32 %v2837_v1, %v2837_v1  ;;  %v467_v5 = vmul.f32 %v2840_v2, %v2840_v2  ;;  %v2849_v6 = vld [vmem:[%s2831_s23 + $0x118] sm:$0xff]  ;;  %v2854_v8 = vld [vmem:[%s2831_s23 + $0x120] sm:$0xff]  ;;  %v2857_v9 = vld [vmem:[%s2831_s23 + $0x128] sm:$0xff] }
  0x15   : > { %v468_v7 = vmul.f32 %v2849_v6, %v2849_v6  ;;  %v469_v14 = vmul.f32 %v2854_v8, %v2854_v8  ;;  %v470_v15 = vmul.f32 %v2857_v9, %v2857_v9  ;;  %v2868_v16 = vld [vmem:[%s2831_s23 + $0x130] sm:$0xff]  ;;  %v2871_v17 = vld [vmem:[%s2831_s23 + $0x138] sm:$0xff]  ;;  %v2880_v22 = vld [vmem:[%s2831_s23 + $0x140] sm:$0xff] }
  0x16   : > { %v481_v10 = vsel %vm368_vm0, %v465_v3, 0.0  ;;  %v487_v11 = vsel %vm368_vm0, %v467_v5, 0.0  ;;  %v484_v12 = vsel %vm368_vm0, %v466_v4, 0.0  ;;  %v471_v20 = vmul.f32 %v2868_v16, %v2868_v16  ;;  %v2883_v23 = vld [vmem:[%s2831_s23 + $0x148] sm:$0xff]  ;;  %v2892_v28 = vld [vmem:[%s2831_s23 + $0x150] sm:$0xff]  ;;  %v2895_v29 = vld [vmem:[%s2831_s23 + $0x158] sm:$0xff] }
  0x17   : > { %482 = vadd.xlane.f32.xlu0 %v481_v10  ;;  %488 = vadd.xlane.f32.xlu1 %v487_v11  ;;  %v490_v13 = vsel %vm368_vm0, %v468_v7, 0.0  ;;  %v493_v18 = vsel %vm368_vm0, %v469_v14, 0.0  ;;  %v496_v19 = vsel %vm368_vm0, %v470_v15, 0.0  ;;  %v472_v21 = vmul.f32 %v2871_v17, %v2871_v17  ;;  %v2904_v34 = vld [vmem:[%s2831_s23 + $0x160] sm:$0xff]  ;;  %v2907_v35 = vld [vmem:[%s2831_s23 + $0x168] sm:$0xff]  ;;  %v2916_v40 = vld [vmem:[%s2831_s23 + $0x170] sm:$0xff] }
  0x18   : > { %v499_v24 = vsel %vm368_vm0, %v471_v20, 0.0  ;;  %v473_v26 = vmul.f32 %v2880_v22, %v2880_v22  ;;  %v474_v27 = vmul.f32 %v2883_v23, %v2883_v23  ;;  %v475_v32 = vmul.f32 %v2892_v28, %v2892_v28  ;;  %v2919_v41 = vld [vmem:[%s2831_s23 + $0x178] sm:$0xff]  ;;  %v2928_v46 = vld [vmem:[%s2831_s23 + $0x8] sm:$0xff]  ;;  %v2931_v47 = vld [vmem:[%s2831_s23] sm:$0xff] }
  0x19   : > { %v502_v25 = vsel %vm368_vm0, %v472_v21, 0.0  ;;  %v476_v33 = vmul.f32 %v2895_v29, %v2895_v29  ;;  %v477_v38 = vmul.f32 %v2904_v34, %v2904_v34  ;;  %v478_v39 = vmul.f32 %v2907_v35, %v2907_v35  ;;  %v2940_v52 = vld [vmem:[%s2831_s23 + $0x18] sm:$0xff]  ;;  %v2943_v53 = vld [vmem:[%s2831_s23 + $0x10] sm:$0xff]  ;;  %v2952_v58 = vld [vmem:[%s2831_s23 + $0x28] sm:$0xff] }
  0x1a   : > { %v505_v30 = vsel %vm368_vm0, %v473_v26, 0.0  ;;  %v508_v31 = vsel %vm368_vm0, %v474_v27, 0.0  ;;  %v511_v36 = vsel %vm368_vm0, %v475_v32, 0.0  ;;  %v479_v44 = vmul.f32 %v2916_v40, %v2916_v40  ;;  %v2955_v59 = vld [vmem:[%s2831_s23 + $0x20] sm:$0xff]  ;;  %v2964_v3 = vld [vmem:[%s2831_s23 + $0x38] sm:$0xff]  ;;  %v2967_v4 = vld [vmem:[%s2831_s23 + $0x30] sm:$0xff] }
  0x1b   : > { %485 = vadd.xlane.f32.xlu0 %v484_v12  ;;  %491 = vadd.xlane.f32.xlu1 %v490_v13  ;;  %v514_v37 = vsel %vm368_vm0, %v476_v33, 0.0  ;;  %v517_v42 = vsel %vm368_vm0, %v477_v38, 0.0  ;;  %v520_v43 = vsel %vm368_vm0, %v478_v39, 0.0  ;;  %v480_v45 = vmul.f32 %v2919_v41, %v2919_v41  ;;  %v2976_v12 = vld [vmem:[%s2831_s23 + $0x48] sm:$0xff]  ;;  %v2979_v13 = vld [vmem:[%s2831_s23 + $0x40] sm:$0xff]  ;;  %v2988_v20 = vld [vmem:[%s2831_s23 + $0x58] sm:$0xff] }
  0x1c   : > { %v523_v48 = vsel %vm368_vm0, %v479_v44, 0.0  ;;  %v353_v50 = vmul.f32 %v2928_v46, %v2928_v46  ;;  %v352_v51 = vmul.f32 %v2931_v47, %v2931_v47  ;;  %v355_v56 = vmul.f32 %v2940_v52, %v2940_v52  ;;  %v2991_v21 = vld [vmem:[%s2831_s23 + $0x50] sm:$0xff]  ;;  %v3012_v38 = vld [vmem:[%s2831_s23 + $0x78] sm:$0xff] }
  0x1d   : > { %v526_v49 = vsel %vm368_vm0, %v480_v45, 0.0  ;;  %v354_v57 = vmul.f32 %v2943_v53, %v2943_v53  ;;  %v357_v62 = vmul.f32 %v2952_v58, %v2952_v58  ;;  %v356_v63 = vmul.f32 %v2955_v59, %v2955_v59  ;;  %v3015_v39 = vld [vmem:[%s2831_s23 + $0x70] sm:$0xff] }
  0x1e   : > { %v372_v54 = vsel %vm368_vm0, %v353_v50, 0.0  ;;  %v369_v55 = vsel %vm368_vm0, %v352_v51, 0.0  ;;  %v378_v60 = vsel %vm368_vm0, %v355_v56, 0.0  ;;  %v359_v10 = vmul.f32 %v2964_v3, %v2964_v3 }
  0x1f   : > { %494 = vadd.xlane.f32.xlu0 %v493_v18  ;;  %497 = vadd.xlane.f32.xlu1 %v496_v19  ;;  %v375_v61 = vsel %vm368_vm0, %v354_v57, 0.0  ;;  %v384_v5 = vsel %vm368_vm0, %v357_v62, 0.0  ;;  %v381_v7 = vsel %vm368_vm0, %v356_v63, 0.0  ;;  %v358_v11 = vmul.f32 %v2967_v4, %v2967_v4 }
  0x20   : > { %v390_v14 = vsel %vm368_vm0, %v359_v10, 0.0  ;;  %v361_v18 = vmul.f32 %v2976_v12, %v2976_v12  ;;  %v360_v19 = vmul.f32 %v2979_v13, %v2979_v13  ;;  %v363_v26 = vmul.f32 %v2988_v20, %v2988_v20 }
  0x21   : > { %v387_v15 = vsel %vm368_vm0, %v358_v11, 0.0  ;;  %v362_v27 = vmul.f32 %v2991_v21, %v2991_v21  ;;  %v367_v44 = vmul.f32 %v3012_v38, %v3012_v38  ;;  %v366_v45 = vmul.f32 %v3015_v39, %v3015_v39 }
  0x22   : > { %v402_v32 = vsel %vm368_vm0, %v363_v26, 0.0 }
  0x23   : > { %500 = vadd.xlane.f32.xlu0 %v499_v24  ;;  %503 = vadd.xlane.f32.xlu1 %v502_v25  ;;  %v396_v24 = vsel %vm368_vm0, %v361_v18, 0.0  ;;  %v393_v25 = vsel %vm368_vm0, %v360_v19, 0.0  ;;  %v399_v33 = vsel %vm368_vm0, %v362_v27, 0.0 }
  0x27   : > { %506 = vadd.xlane.f32.xlu0 %v505_v30  ;;  %509 = vadd.xlane.f32.xlu1 %v508_v31  ;;  %v3000_v30 = vld [vmem:[%s2831_s23 + $0x68] sm:$0xff]  ;;  %v3003_v31 = vld [vmem:[%s2831_s23 + $0x60] sm:$0xff] }
  0x2b   : > { %512 = vadd.xlane.f32.xlu0 %v511_v36  ;;  %515 = vadd.xlane.f32.xlu1 %v514_v37  ;;  %v365_v36 = vmul.f32 %v3000_v30, %v3000_v30  ;;  %v364_v37 = vmul.f32 %v3003_v31, %v3003_v31 }
  0x2f   : > { %518 = vadd.xlane.f32.xlu0 %v517_v42  ;;  %521 = vadd.xlane.f32.xlu1 %v520_v43  ;;  %v408_v42 = vsel %vm368_vm0, %v365_v36, 0.0  ;;  %v405_v43 = vsel %vm368_vm0, %v364_v37, 0.0 }
  0x33   : > { %524 = vadd.xlane.f32.xlu0 %v523_v48  ;;  %527 = vadd.xlane.f32.xlu1 %v526_v49  ;;  %v414_v48 = vsel %vm368_vm0, %v367_v44, 0.0  ;;  %v411_v49 = vsel %vm368_vm0, %v366_v45, 0.0 }
  0x37   : > { %373 = vadd.xlane.f32.xlu1 %v372_v54  ;;  %370 = vadd.xlane.f32.xlu0 %v369_v55 }
  0x3b   : > { %379 = vadd.xlane.f32.xlu1 %v378_v60  ;;  %376 = vadd.xlane.f32.xlu0 %v375_v61 }
  0x3f   : > { %385 = vadd.xlane.f32.xlu1 %v384_v5  ;;  %382 = vadd.xlane.f32.xlu0 %v381_v7 }
  0x43   : > { %391 = vadd.xlane.f32.xlu1 %v390_v14  ;;  %388 = vadd.xlane.f32.xlu0 %v387_v15 }
  0x47   : > { %397 = vadd.xlane.f32.xlu1 %v396_v24  ;;  %394 = vadd.xlane.f32.xlu0 %v393_v25 }
  0x4b   : > { %403 = vadd.xlane.f32.xlu1 %v402_v32  ;;  %400 = vadd.xlane.f32.xlu0 %v399_v33 }
  0x4f   : > { %409 = vadd.xlane.f32.xlu1 %v408_v42  ;;  %406 = vadd.xlane.f32.xlu0 %v405_v43 }
  0x53   : > { %415 = vadd.xlane.f32.xlu1 %v414_v48  ;;  %412 = vadd.xlane.f32.xlu0 %v411_v49 }
  0xa4   : > { %v483_v50 = vpop.xlane.xlu0 %482  ;;  %v489_v51 = vpop.xlane.xlu1 %488 }
  0xa5   : > { %v529_v54 = vmax.f32 %v483_v50, 1e-24  ;;  %v531_v55 = vmax.f32 %v489_v51, 1e-24 }
  0xa7   : > { %2522 = vrsqrt.f32 %v529_v54 }
  0xa8   : > { %v486_v56 = vpop.xlane.xlu0 %485  ;;  %v492_v57 = vpop.xlane.xlu1 %491  ;;  %2524 = vrsqrt.f32 %v531_v55 }
  0xa9   : > { %v530_v60 = vmax.f32 %v486_v56, 1e-24  ;;  %v532_v61 = vmax.f32 %v492_v57, 1e-24 }
  0xab   : > { %2526 = vrsqrt.f32 %v530_v60 }
  0xac   : > { %v495_v62 = vpop.xlane.xlu0 %494  ;;  %v498_v63 = vpop.xlane.xlu1 %497  ;;  %2528 = vrsqrt.f32 %v532_v61 }
  0xad   : > { %v533_v5 = vmax.f32 %v495_v62, 1e-24  ;;  %v534_v15 = vmax.f32 %v498_v63, 1e-24 }
  0xaf   : > { %2530 = vrsqrt.f32 %v533_v5 }
  0xb0   : > { %v501_v7 = vpop.xlane.xlu0 %500  ;;  %v504_v10 = vpop.xlane.xlu1 %503  ;;  %2532 = vrsqrt.f32 %v534_v15 }
  0xb1   : > { %v2523_v11 = vpop.eup %2522  ;;  %v535_v27 = vmax.f32 %v501_v7, 1e-24  ;;  %v536_v42 = vmax.f32 %v504_v10, 1e-24 }
  0xb2   : > { %v561_v14 = vmul.f32 %v2523_v11, %v2834_v0  ;;  %v2525_v18 = vpop.eup %2524 }
  0xb3   : > { %v563_v32 = vmul.f32 %v2525_v18, %v2840_v2  ;;  %2534 = vrsqrt.f32 %v535_v27 }
  0xb4   : > { %585 = vxpose.xlu0.b32.start [1/16] (narrow) %v561_v14, 8  ;;  %v507_v19 = vpop.xlane.xlu0 %506  ;;  %v510_v24 = vpop.xlane.xlu1 %509  ;;  %2536 = vrsqrt.f32 %v536_v42 }
  0xb5   : > { %v2527_v25 = vpop.eup %2526  ;;  %v537_v48 = vmax.f32 %v507_v19, 1e-24  ;;  %v538_v51 = vmax.f32 %v510_v24, 1e-24  ;;  %v3039_v24 = vld [vmem:[%s2831_s23 + $0x180] sm:$0xff] }
  0xb6   : > { %v562_v26 = vmul.f32 %v2527_v25, %v2837_v1  ;;  %v2529_v37 = vpop.eup %2528  ;;  %v3042_v25 = vld [vmem:[%s2831_s23 + $0x188] sm:$0xff] }
  0xb7   : > { %v564_v0 = vmul.f32 %v2529_v37, %v2849_v6  ;;  %2538 = vrsqrt.f32 %v537_v48 }
  0xb8   : > { %586 = vxpose.xlu0.b32.cont [2/16] (narrow) %v562_v26, 8  ;;  %v513_v33 = vpop.xlane.xlu0 %512  ;;  %v516_v36 = vpop.xlane.xlu1 %515  ;;  %2540 = vrsqrt.f32 %v538_v51  ;;  %v1260_v26 = vmul.f32 %v3039_v24, %v3039_v24  ;;  %v3074_v51 = vld [vmem:[%s2831_s23 + $0x1a8] sm:$0xff] }
  0xb9   : > { %v2531_v45 = vpop.eup %2530  ;;  %v539_v61 = vmax.f32 %v513_v33, 1e-24  ;;  %v540_v63 = vmax.f32 %v516_v36, 1e-24 }
  0xba   : > { %v565_v1 = vmul.f32 %v2531_v45, %v2854_v8  ;;  %v2533_v2 = vpop.eup %2532 }
  0xbb   : > { %v566_v54 = vmul.f32 %v2533_v2, %v2857_v9 }
  0xbc   : > { %587 = vxpose.xlu0.b32.cont [3/16] (narrow) %v563_v32, 8  ;;  %v519_v43 = vpop.xlane.xlu0 %518  ;;  %v522_v44 = vpop.xlane.xlu1 %521  ;;  %v3050_v32 = vld [vmem:[%s2831_s23 + $0x190] sm:$0xff] }
  0xbd   : > { %v2535_v6 = vpop.eup %2534  ;;  %v541_v7 = vmax.f32 %v519_v43, 1e-24  ;;  %v542_v18 = vmax.f32 %v522_v44, 1e-24  ;;  %v1262_v37 = vmul.f32 %v3050_v32, %v3050_v32 }
  0xbe   : > { %v567_v8 = vmul.f32 %v2535_v6, %v2868_v16  ;;  %v2537_v62 = vpop.eup %2536  ;;  %v3081_v6 = vld [vmem:[%s2831_s23 + $0x1b0] sm:$0xff] }
  0xbf   : > { %v568_v9 = vmul.f32 %v2537_v62, %v2871_v17  ;;  %v1282_v45 = vsel %vm368_vm0, %v1262_v37, 0.0 }
  0xc0   : > { %588 = vxpose.xlu0.b32.cont [4/16] (narrow) %v564_v0, 8  ;;  %v525_v49 = vpop.xlane.xlu0 %524  ;;  %v3030_v50 = vpop.xlane.xlu1 %527  ;;  %v3059_v0 = vld [vmem:[%s2831_s23 + $0x198] sm:$0xff] }
  0xc1   : > { %v2539_v5 = vpop.eup %2538  ;;  %v543_v33 = vmax.f32 %v525_v49, 1e-24  ;;  %v544_v43 = vmax.f32 %v3030_v50, 1e-24 }
  0xc2   : > { %v2541_v10 = vpop.eup %2540  ;;  %v569_v11 = vmul.f32 %v2539_v5, %v2880_v22  ;;  %v1261_v22 = vmul.f32 %v3042_v25, %v3042_v25 }
  0xc3   : > { %v570_v17 = vmul.f32 %v2541_v10, %v2883_v23  ;;  %v3101_v10 = vld [vmem:[%s2831_s23 + $0x1c8] sm:$0xff] }
  0xc4   : > { %589 = vxpose.xlu0.b32.cont [5/16] (narrow) %v565_v1, 8  ;;  %v374_v55 = vpop.xlane.xlu1 %373  ;;  %v371_v56 = vpop.xlane.xlu0 %370  ;;  %v1279_v36 = vsel %vm368_vm0, %v1261_v22, 0.0  ;;  %v3067_v1 = vld [vmem:[%s2831_s23 + $0x1a0] sm:$0xff] }
  0xc5   : > { %v418_v57 = vmax.f32 %v374_v55, 1e-24  ;;  %v417_v60 = vmax.f32 %v371_v56, 1e-24  ;;  %v1264_v2 = vmul.f32 %v3067_v1, %v3067_v1  ;;  %v1265_v56 = vmul.f32 %v3074_v51, %v3074_v51 }
  0xc7   : > { %2542 = vrsqrt.f32 %v418_v57  ;;  %v1288_v55 = vsel %vm368_vm0, %v1264_v2, 0.0 }
  0xc8   : > { %590 = vxpose.xlu0.b32.cont [6/16] (narrow) %v566_v54, 8  ;;  %2544 = vrsqrt.f32 %v417_v60  ;;  %v1291_v60 = vsel %vm368_vm0, %v1265_v56, 0.0 }
  0xc9   : > { %2546 = vrsqrt.f32 %v539_v61  ;;  %v1266_v61 = vmul.f32 %v3081_v6, %v3081_v6 }
  0xca   : > { %2548 = vrsqrt.f32 %v540_v63 }
  0xcb   : > { %2550 = vrsqrt.f32 %v541_v7  ;;  %v1294_v63 = vsel %vm368_vm0, %v1266_v61, 0.0 }
  0xcc   : > { %591 = vxpose.xlu0.b32.cont [7/16] (narrow) %v567_v8, 8  ;;  %2552 = vrsqrt.f32 %v542_v18  ;;  %v3088_v8 = vld [vmem:[%s2831_s23 + $0x1b8] sm:$0xff]  ;;  %v3113_v18 = vld [vmem:[%s2831_s23 + $0x1e0] sm:$0xff] }
  0xcd   : > { %2554 = vrsqrt.f32 %v543_v33 }
  0xce   : > { %2556 = vrsqrt.f32 %v544_v43  ;;  %v377_v43 = vpop.xlane.xlu0 %376 }
  0xcf   : > { %v419_v56 = vmax.f32 %v377_v43, 1e-24 }
  0xd0   : > { %592 = vxpose.xlu0.b32.cont [8/16] (narrow) %v568_v9, 8  ;;  %v1267_v9 = vmul.f32 %v3088_v8, %v3088_v8 }
  0xd1   : > { %v2543_v14 = vpop.eup %2542 }
  0xd2   : > { %v2545_v15 = vpop.eup %2544  ;;  %v450_v16 = vmul.f32 %v2543_v14, %v2928_v46  ;;  %v1297_v5 = vsel %vm368_vm0, %v1267_v9, 0.0  ;;  %v3107_v14 = vld [vmem:[%s2831_s23 + $0x1d0] sm:$0xff] }
  0xd3   : > { %v449_v19 = vmul.f32 %v2545_v15, %v2931_v47  ;;  %v2547_v27 = vpop.eup %2546  ;;  %v1276_v47 = vsel %vm368_vm0, %v1260_v26, 0.0  ;;  %v3119_v26 = vld [vmem:[%s2831_s23 + $0x1e8] sm:$0xff] }
  0xd4   : > { %593 = vxpose.xlu0.b32.cont [9/16] (narrow) %v569_v11, 8  ;;  %1277 = vadd.xlane.f32.xlu1 %v1276_v47  ;;  %v571_v23 = vmul.f32 %v2547_v27, %v2892_v28  ;;  %v2549_v42 = vpop.eup %2548  ;;  %v1263_v28 = vmul.f32 %v3059_v0, %v3059_v0  ;;  %v1269_v11 = vmul.f32 %v3101_v10, %v3101_v10 }
  0xd5   : > { %v577_v46 = vpack.c.bf16 %v450_v16, %v449_v19  ;;  %v572_v44 = vmul.f32 %v2549_v42, %v2895_v29  ;;  %v2551_v48 = vpop.eup %2550  ;;  %v1270_v16 = vmul.f32 %v3107_v14, %v3107_v14  ;;  %v1273_v27 = vmul.f32 %v3119_v26, %v3119_v26  ;;  %v262_v42 = vld [vmem:[%s2831_s23 + $0x80] sm:$0xff] }
  0xd6   : > { %v573_v49 = vmul.f32 %v2551_v48, %v2904_v34  ;;  %v1285_v50 = vsel %vm368_vm0, %v1263_v28, 0.0  ;;  %v2553_v29 = vpop.eup %2552  ;;  %v1303_v15 = vsel %vm368_vm0, %v1269_v11, 0.0  ;;  %v383_v48 = vpop.xlane.xlu0 %382 }
  0xd7   : > { %2324 = vmatprep.mubr.msk.bf16.mxu0 %vm368_vm0, %v577_v46  ;;  %v574_v54 = vmul.f32 %v2553_v29, %v2907_v35  ;;  %v2555_v34 = vpop.eup %2554  ;;  %v1306_v19 = vsel %vm368_vm0, %v1270_v16, 0.0  ;;  %v3125_v46 = vld [vmem:[%s2831_s23 + $0x1f0] sm:$0xff]  ;;  %v1315_v47 = vsel %vm368_vm0, %v1273_v27, 0.0 }
  0xd8   : > { %594 = vxpose.xlu0.b32.cont [10/16] (narrow) %v570_v17, 8  ;;  %1280 = vadd.xlane.f32.xlu1 %v1279_v36  ;;  %v575_v57 = vmul.f32 %v2555_v34, %v2916_v40  ;;  %v2557_v35 = vpop.eup %2556  ;;  %v3095_v40 = vld [vmem:[%s2831_s23 + $0x1c0] sm:$0xff]  ;;  %v1272_v17 = vmul.f32 %v3113_v18, %v3113_v18  ;;  %v1274_v33 = vmul.f32 %v3125_v46, %v3125_v46 }
  0xd9   : > { %v576_v62 = vmul.f32 %v2557_v35, %v2919_v41  ;;  %v1268_v7 = vmul.f32 %v3095_v40, %v3095_v40 }
  0xda   : > { %v1312_v22 = vsel %vm368_vm0, %v1272_v17, 0.0  ;;  %v1318_v36 = vsel %vm368_vm0, %v1274_v33, 0.0 }
  0xdb   : > { %v1300_v41 = vsel %vm368_vm0, %v1268_v7, 0.0 }
  0xdc   : > { %595 = vxpose.xlu0.b32.cont [11/16] (narrow) %v571_v23, 8  ;;  %1283 = vadd.xlane.f32.xlu1 %v1282_v45  ;;  %v3131_v23 = vld [vmem:[%s2831_s23 + $0x1f8] sm:$0xff]  ;;  %v1148_v45 = vmul.f32 %v262_v42, %v262_v42 }
  0xdd   : > { %v1275_v37 = vmul.f32 %v3131_v23, %v3131_v23 }
  0xde   : > { %v1164_v28 = vsel %vm368_vm0, %v1148_v45, 0.0 }
  0xe0   : > { %596 = vxpose.xlu0.b32.cont [12/16] (narrow) %v572_v44, 8  ;;  %1286 = vadd.xlane.f32.xlu1 %v1285_v50  ;;  %v1321_v44 = vsel %vm368_vm0, %v1275_v37, 0.0  ;;  %v389_v50 = vpop.xlane.xlu0 %388 }
  0xe4   : > { %597 = vxpose.xlu0.b32.cont [13/16] (narrow) %v573_v49, 8  ;;  %1289 = vadd.xlane.f32.xlu1 %v1288_v55  ;;  %v380_v49 = vpop.xlane.xlu1 %379  ;;  %v395_v29 = vpop.xlane.xlu0 %394 }
  0xe5   : > { %v420_v55 = vmax.f32 %v380_v49, 1e-24  ;;  %v425_v7 = vmax.f32 %v395_v29, 1e-24 }
  0xe7   : > { %2558 = vrsqrt.f32 %v420_v55 }
  0xe8   : > { %598 = vxpose.xlu0.b32.cont [14/16] (narrow) %v574_v54, 8  ;;  %1292 = vadd.xlane.f32.xlu1 %v1291_v60  ;;  %v386_v2 = vpop.xlane.xlu1 %385  ;;  %v421_v60 = vmax.f32 %v383_v48, 1e-24  ;;  %2560 = vrsqrt.f32 %v419_v56 }
  0xe9   : > { %v422_v34 = vmax.f32 %v386_v2, 1e-24 }
  0xeb   : > { %2562 = vrsqrt.f32 %v422_v34 }
  0xec   : > { %599 = vxpose.xlu0.b32.cont [15/16] (narrow) %v575_v57, 8  ;;  %1295 = vadd.xlane.f32.xlu1 %v1294_v63  ;;  %v392_v54 = vpop.xlane.xlu1 %391  ;;  %v401_v57 = vpop.xlane.xlu0 %400  ;;  %2564 = vrsqrt.f32 %v421_v60  ;;  %v423_v63 = vmax.f32 %v389_v50, 1e-24 }
  0xed   : > { %v424_v35 = vmax.f32 %v392_v54, 1e-24  ;;  %v427_v27 = vmax.f32 %v401_v57, 1e-24 }
  0xef   : > { %2566 = vrsqrt.f32 %v424_v35 }
  0xf0   : > { %600 = vxpose.xlu0.b32.end [16/16] (narrow) %v576_v62, 8  ;;  %1298 = vadd.xlane.f32.xlu1 %v1297_v5  ;;  %v398_v61 = vpop.xlane.xlu1 %397  ;;  %v407_v62 = vpop.xlane.xlu0 %406  ;;  %2568 = vrsqrt.f32 %v423_v63 }
  0xf1   : > { %v426_v5 = vmax.f32 %v398_v61, 1e-24 }
  0xf3   : > { %2570 = vrsqrt.f32 %v426_v5 }
  0xf4   : > { %1301 = vadd.xlane.f32.xlu1 %v1300_v41  ;;  %v404_v9 = vpop.xlane.xlu1 %403  ;;  %v2559_v41 = vpop.eup %2558  ;;  %2572 = vrsqrt.f32 %v425_v7 }
  0xf5   : > { %v413_v11 = vpop.xlane.xlu0 %412  ;;  %v428_v17 = vmax.f32 %v404_v9, 1e-24  ;;  %v452_v43 = vmul.f32 %v2559_v41, %v2940_v52 }
  0xf7   : > { %2574 = vrsqrt.f32 %v428_v17 }
  0xf8   : > { %1304 = vadd.xlane.f32.xlu1 %v1303_v15  ;;  %v2561_v15 = vpop.eup %2560  ;;  %v410_v16 = vpop.xlane.xlu1 %409  ;;  %2576 = vrsqrt.f32 %v427_v27 }
  0xf9   : > { %v451_v42 = vmul.f32 %v2561_v15, %v2943_v53 }
  0xfb   : > { %v578_v2 = vpack.c.bf16 %v452_v43, %v451_v42 }
  0xfc   : > { %1307 = vadd.xlane.f32.xlu1 %v1306_v19  ;;  %v2563_v19 = vpop.eup %2562  ;;  %v416_v49 = vpop.xlane.xlu1 %415 }
  0xfd   : > { %v454_v45 = vmul.f32 %v2563_v19, %v2952_v58  ;;  %v432_v54 = vmax.f32 %v416_v49, 1e-24 }
 0x100   : > { %1313 = vadd.xlane.f32.xlu1 %v1312_v22  ;;  %v2565_v22 = vpop.eup %2564 }
 0x101   : > { %v2567_v48 = vpop.eup %2566 }
 0x102   : > { %v2569_v50 = vpop.eup %2568  ;;  %v456_v55 = vmul.f32 %v2567_v48, %v2964_v3 }
 0x103   : > { %v2571_v53 = vpop.eup %2570  ;;  %v455_v58 = vmul.f32 %v2569_v50, %v2967_v4 }
 0x104   : > { %1316 = vadd.xlane.f32.xlu1 %v1315_v47  ;;  %v430_v47 = vmax.f32 %v410_v16, 1e-24  ;;  %v2573_v52 = vpop.eup %2572  ;;  %v458_v34 = vmul.f32 %v2571_v53, %v2976_v12 }
 0x105   : > { %v457_v56 = vmul.f32 %v2573_v52, %v2979_v13  ;;  %v2575_v57 = vpop.eup %2574  ;;  %v580_v61 = vpack.c.bf16 %v456_v55, %v455_v58 }
 0x106   : > { %2578 = vrsqrt.f32 %v430_v47  ;;  %v2577_v60 = vpop.eup %2576  ;;  %v460_v3 = vmul.f32 %v2575_v57, %v2988_v20 }
 0x107   : > { %v459_v4 = vmul.f32 %v2577_v60, %v2991_v21 }
 0x108   : > { %1319 = vadd.xlane.f32.xlu1 %v1318_v36  ;;  %v429_v36 = vmax.f32 %v407_v62, 1e-24  ;;  %v581_v62 = vpack.c.bf16 %v458_v34, %v457_v56 }
 0x109   : > { %v582_v5 = vpack.c.bf16 %v460_v3, %v459_v4 }
 0x10a   : > { %2580 = vrsqrt.f32 %v429_v36 }
 0x10b   : > { %2582 = vrsqrt.f32 %v432_v54 }
 0x10c   : > { %1322 = vadd.xlane.f32.xlu1 %v1321_v44  ;;  %v453_v44 = vmul.f32 %v2565_v22, %v2955_v59  ;;  %v431_v59 = vmax.f32 %v413_v11, 1e-24 }
 0x10e   : > { %v579_v29 = vpack.c.bf16 %v454_v45, %v453_v44  ;;  %2584 = vrsqrt.f32 %v431_v59  ;;  %v3197_v44 = vld [vmem:[%s2831_s23 + $0x1d8] sm:$0xff] }
 0x10f   : > { %v1271_v45 = vmul.f32 %v3197_v44, %v3197_v44 }
 0x110   : > { %1165 = vadd.xlane.f32.xlu1 %v1164_v28  ;;  %v2579_v35 = vpop.eup %2578 }
 0x111   : > { %v462_v12 = vmul.f32 %v2579_v35, %v3000_v30  ;;  %v1309_v48 = vsel %vm368_vm0, %v1271_v45, 0.0 }
 0x114   : > { %v2581_v63 = vpop.eup %2580 }
 0x115   : > { %v461_v13 = vmul.f32 %v2581_v63, %v3003_v31  ;;  %v2583_v9 = vpop.eup %2582 }
 0x116   : > { %v464_v15 = vmul.f32 %v2583_v9, %v3012_v38 }
 0x117   : > { %v583_v41 = vpack.c.bf16 %v462_v12, %v461_v13 }
 0x118   : > { %v2585_v7 = vpop.eup %2584 }
 0x119   : > { %v463_v11 = vmul.f32 %v2585_v7, %v3015_v39 }
 0x11b   : > { %v584_v16 = vpack.c.bf16 %v464_v15, %v463_v11 }
 0x11d   : > { %1310 = vadd.xlane.f32.xlu0 %v1309_v48 }
 0x134   : > { %v601_v33 = vpop.trf.xlu0 }
 0x135   : > { %v617_v37 = vpack.c.bf16 %v601_v33, %v601_v33 }
 0x137   : > { %2508 = vmatprep.subr.msk.bf16.mxu0 %vm642_vm1, %v617_v37  ;;  %v644_v28 = vsel %vm642_vm1, %v617_v37, 0 }
 0x138   : > { %2323 = vmatpush3.bf16.msra.mxu0 %v644_v28 }
 0x13b   : > { %2325 = vmatmul.mubr.msk.bf16.vlgmr.msra.gmra.mrb[0].mxu0 %vm368_vm0, %v578_v2 }
 0x13c   : > { %2328 = vmatprep.mubr.msk.bf16.mxu0 %vm368_vm0, %v579_v29 }
 0x143   : > { %2329 = vmatmul.mubr.msk.bf16.gmra.mrb[4].mxu0 %vm368_vm0, %v580_v61 }
 0x144   : > { %2332 = vmatprep.mubr.msk.bf16.mxu0 %vm368_vm0, %v581_v62 }
 0x14b   : > { %2333 = vmatmul.mubr.msk.bf16.gmra.mrb[8].mxu0 %vm368_vm0, %v582_v5 }
 0x14c   : > { %2336 = vmatprep.mubr.msk.bf16.mxu0 %vm368_vm0, %v583_v41 }
 0x153   : > { %2337 = vmatmul.mubr.msk.bf16.gmra.mrb[12].mxu0 %vm368_vm0, %v584_v16 }
 0x161   : > { %v3202_v28 = vpop.xlane.xlu1 %1277 }
 0x165   : > { %v3206_v49 = vpop.xlane.xlu1 %1280 }
 0x169   : > { %v3210_v50 = vpop.xlane.xlu1 %1283 }
 0x16d   : > { %v3213_v2 = vpop.xlane.xlu1 %1286 }
 0x171   : > { %v3215_v53 = vpop.xlane.xlu1 %1289 }
 0x175   : > { %v3217_v29 = vpop.xlane.xlu1 %1292 }
 0x179   : > { %v3219_v52 = vpop.xlane.xlu1 %1295 }
 0x17d   : > { %v3221_v54 = vpop.xlane.xlu1 %1298 }
 0x181   : > { %v3223_v59 = vpop.xlane.xlu1 %1301 }
 0x185   : > { %v3225_v58 = vpop.xlane.xlu1 %1304 }
 0x189   : > { %v3227_v55 = vpop.xlane.xlu1 %1307 }
 0x18d   : > { %v3229_v56 = vpop.xlane.xlu1 %1313 }
 0x191   : > { %v3231_v34 = vpop.xlane.xlu1 %1316 }
 0x195   : > { %v3233_v57 = vpop.xlane.xlu1 %1319 }
 0x199   : > { %v3235_v60 = vpop.xlane.xlu1 %1322 }
 0x19d   : > { %v3237_v61 = vpop.xlane.xlu1 %1165 }
 0x20e   : > { %v2326_v20 = vpop.f32.mrb[0].mxu0 }
 0x20f   : > { %747 = vmax.xlane.f32.xlu1 %v2326_v20  ;;  %v680_v21 = vpop.f32.mrb[1].mxu0 }
 0x210   : > { %v2327_v31 = vpop.f32.mrb[2].mxu0 }
 0x211   : > { %v3162_v30 = vpop.f32.mrb[3].mxu0 }
 0x213   : > { %743 = vmax.xlane.f32.xlu1 %v680_v21 }
 0x216   : > { %v3164_v19 = vpop.f32.mrb[4].mxu0 }
 0x217   : > { %749 = vmax.xlane.f32.xlu1 %v2327_v31  ;;  %v3166_v17 = vpop.f32.mrb[5].mxu0 }
 0x218   : > { %v3168_v22 = vpop.f32.mrb[6].mxu0 }
 0x219   : > { %v3170_v39 = vpop.f32.mrb[7].mxu0 }
 0x21b   : > { %745 = vmax.xlane.f32.xlu1 %v3162_v30 }
 0x21e   : > { %v3173_v38 = vpop.f32.mrb[8].mxu0 }
 0x21f   : > { %755 = vmax.xlane.f32.xlu1 %v3164_v19  ;;  %v3176_v27 = vpop.f32.mrb[9].mxu0 }
 0x220   : > { %v3178_v47 = vpop.f32.mrb[10].mxu0 }
 0x221   : > { %v3180_v33 = vpop.f32.mrb[11].mxu0 }
 0x223   : > { %751 = vmax.xlane.f32.xlu1 %v3166_v17 }
 0x226   : > { %v3183_v36 = vpop.f32.mrb[12].mxu0 }
 0x227   : > { %757 = vmax.xlane.f32.xlu1 %v3168_v22  ;;  %v3186_v37 = vpop.f32.mrb[13].mxu0 }
 0x228   : > { %v3188_v42 = vpop.f32.mrb[14].mxu0 }
 0x229   : > { %v3190_v43 = vpop.f32.mrb[15].mxu0 }
 0x22b   : > { %753 = vmax.xlane.f32.xlu1 %v3170_v39 }
 0x22f   : > { %763 = vmax.xlane.f32.xlu1 %v3173_v38 }
 0x233   : > { %759 = vmax.xlane.f32.xlu1 %v3176_v27 }
 0x237   : > { %765 = vmax.xlane.f32.xlu1 %v3178_v47 }
 0x23b   : > { %761 = vmax.xlane.f32.xlu1 %v3180_v33 }
 0x23f   : > { %771 = vmax.xlane.f32.xlu1 %v3183_v36 }
 0x243   : > { %767 = vmax.xlane.f32.xlu1 %v3186_v37 }
 0x247   : > { %773 = vmax.xlane.f32.xlu1 %v3188_v42 }
 0x24b   : > { %769 = vmax.xlane.f32.xlu1 %v3190_v43 }
 0x29c   : > { %v748_v35 = vpop.xlane.xlu1 %747 }
 0x29d   : > { %v777_v62 = vsub.f32 %v2326_v20, %v748_v35 }
 0x29f   : > { %v795_v63 = vmul.f32 1.442695, %v777_v62  ;;  %v310_v62 = vld [vmem:[%s2831_s23 + $0x200] sm:$0xff] }
 0x2a0   : > { %v744_v4 = vpop.xlane.xlu1 %743 }
 0x2a1   : > { %2586 = vpow2.f32 %v795_v63  ;;  %v775_v3 = vsub.f32 %v680_v21, %v744_v4  ;;  %v311_v63 = vld [vmem:[%s2831_s23 + $0x208] sm:$0xff] }
 0x2a3   : > { %v791_v13 = vmul.f32 1.442695, %v775_v3 }
 0x2a4   : > { %v750_v12 = vpop.xlane.xlu1 %749 }
 0x2a5   : > { %2588 = vpow2.f32 %v791_v13  ;;  %v778_v9 = vsub.f32 %v2327_v31, %v750_v12 }
 0x2a7   : > { %v797_v5 = vmul.f32 1.442695, %v778_v9  ;;  %v313_v9 = vld [vmem:[%s2831_s23 + $0x218] sm:$0xff] }
 0x2a8   : > { %v746_v7 = vpop.xlane.xlu1 %745 }
 0x2a9   : > { %2590 = vpow2.f32 %v797_v5  ;;  %v776_v41 = vsub.f32 %v3162_v30, %v746_v7 }
 0x2ab   : > { %v3240_v11 = vpop.eup %2586  ;;  %v793_v15 = vmul.f32 1.442695, %v776_v41 }
 0x2ac   : > { %v756_v16 = vpop.xlane.xlu1 %755  ;;  %827 = vadd.xlane.f32.xlu1 %v3240_v11 }
 0x2ad   : > { %2592 = vpow2.f32 %v793_v15  ;;  %v781_v20 = vsub.f32 %v3164_v19, %v756_v16  ;;  %v895_v19 = vpack.c.bf16 %v311_v63, %v310_v62  ;;  %v314_v16 = vld [vmem:[%s2831_s23 + $0x220] sm:$0xff]  ;;  %v316_v62 = vld [vmem:[%s2831_s23 + $0x230] sm:$0xff]  ;;  %v317_v63 = vld [vmem:[%s2831_s23 + $0x238] sm:$0xff] }
 0x2af   : > { %v3244_v21 = vpop.eup %2588  ;;  %v803_v45 = vmul.f32 1.442695, %v781_v20  ;;  %2340 = vmatprep.subr.bf16.mxu1 %v895_v19  ;;  %v315_v20 = vld [vmem:[%s2831_s23 + $0x228] sm:$0xff] }
 0x2b0   : > { %v752_v31 = vpop.xlane.xlu1 %751  ;;  %823 = vadd.xlane.f32.xlu1 %v3244_v21  ;;  %2341 = vmatpush3.bf16.msra.mxu1 %v895_v19  ;;  %v898_v19 = vpack.c.bf16 %v317_v63, %v316_v62  ;;  %v322_v62 = vld [vmem:[%s2831_s23 + $0x260] sm:$0xff]  ;;  %v323_v63 = vld [vmem:[%s2831_s23 + $0x268] sm:$0xff] }
 0x2b1   : > { %2594 = vpow2.f32 %v803_v45  ;;  %v779_v30 = vsub.f32 %v3166_v17, %v752_v31  ;;  %v312_v17 = vld [vmem:[%s2831_s23 + $0x210] sm:$0xff]  ;;  %v897_v31 = vpack.c.bf16 %v315_v20, %v314_v16  ;;  %v321_v20 = vld [vmem:[%s2831_s23 + $0x258] sm:$0xff] }
 0x2b2   : > { %v896_v7 = vpack.c.bf16 %v313_v9, %v312_v17  ;;  %v318_v17 = vld [vmem:[%s2831_s23 + $0x240] sm:$0xff]  ;;  %v319_v9 = vld [vmem:[%s2831_s23 + $0x248] sm:$0xff]  ;;  %v320_v16 = vld [vmem:[%s2831_s23 + $0x250] sm:$0xff] }
 0x2b3   : > { %v3248_v48 = vpop.eup %2590  ;;  %v799_v35 = vmul.f32 1.442695, %v779_v30 }
 0x2b4   : > { %v758_v4 = vpop.xlane.xlu1 %757  ;;  %829 = vadd.xlane.f32.xlu1 %v3248_v48  ;;  %2342 = vmatprep.subr.bf16.mxu1 %v896_v7 }
 0x2b5   : > { %2596 = vpow2.f32 %v799_v35  ;;  %v782_v3 = vsub.f32 %v3168_v22, %v758_v4  ;;  %2343 = vmatpush3.bf16.msra.mxu1 %v896_v7  ;;  %v899_v7 = vpack.c.bf16 %v319_v9, %v318_v17  ;;  %v324_v17 = vld [vmem:[%s2831_s23 + $0x270] sm:$0xff]  ;;  %v325_v9 = vld [vmem:[%s2831_s23 + $0x278] sm:$0xff] }
 0x2b6   : > { %2344 = vmatprep.subr.bf16.mxu1 %v897_v31 }
 0x2b7   : > { %v3254_v13 = vpop.eup %2592  ;;  %v805_v12 = vmul.f32 1.442695, %v782_v3 }
 0x2b8   : > { %v754_v5 = vpop.xlane.xlu1 %753  ;;  %825 = vadd.xlane.f32.xlu1 %v3254_v13 }
 0x2b9   : > { %2598 = vpow2.f32 %v805_v12  ;;  %v780_v41 = vsub.f32 %v3170_v39, %v754_v5  ;;  %2345 = vmatpush3.bf16.msra.mxu1 %v897_v31  ;;  %v900_v31 = vpack.c.bf16 %v321_v20, %v320_v16 }
 0x2ba   : > { %2346 = vmatprep.subr.bf16.mxu1 %v898_v19 }
 0x2bb   : > { %v3260_v22 = vpop.eup %2594  ;;  %v801_v15 = vmul.f32 1.442695, %v780_v41 }
 0x2bc   : > { %v764_v45 = vpop.xlane.xlu1 %763  ;;  %835 = vadd.xlane.f32.xlu1 %v3260_v22 }
 0x2bd   : > { %2600 = vpow2.f32 %v801_v15  ;;  %v785_v30 = vsub.f32 %v3173_v38, %v764_v45  ;;  %2347 = vmatpush3.bf16.msra.mxu1 %v898_v19  ;;  %v901_v19 = vpack.c.bf16 %v323_v63, %v322_v62 }
 0x2be   : > { %2348 = vmatprep.subr.bf16.mxu1 %v899_v7 }
 0x2bf   : > { %v3266_v39 = vpop.eup %2596  ;;  %v811_v35 = vmul.f32 1.442695, %v785_v30 }
 0x2c0   : > { %v760_v4 = vpop.xlane.xlu1 %759  ;;  %831 = vadd.xlane.f32.xlu1 %v3266_v39 }
 0x2c1   : > { %2602 = vpow2.f32 %v811_v35  ;;  %v783_v3 = vsub.f32 %v3176_v27, %v760_v4  ;;  %2349 = vmatpush3.bf16.msra.mxu1 %v899_v7  ;;  %v902_v7 = vpack.c.bf16 %v325_v9, %v324_v17  ;;  %v3325_v17 = vld [vmem:[%s2831_s23 + $0x88] sm:$0xff] }
 0x2c2   : > { %2350 = vmatprep.subr.bf16.mxu1 %v900_v31 }
 0x2c3   : > { %v3272_v38 = vpop.eup %2598  ;;  %v807_v12 = vmul.f32 1.442695, %v783_v3 }
 0x2c4   : > { %837 = vadd.xlane.f32.xlu0 %v3272_v38  ;;  %v766_v5 = vpop.xlane.xlu1 %765 }
 0x2c5   : > { %2604 = vpow2.f32 %v807_v12  ;;  %v786_v41 = vsub.f32 %v3178_v47, %v766_v5  ;;  %2351 = vmatpush3.bf16.msra.mxu1 %v900_v31 }
 0x2c6   : > { %2352 = vmatprep.subr.bf16.mxu1 %v901_v19 }
 0x2c7   : > { %v3278_v27 = vpop.eup %2600  ;;  %v813_v15 = vmul.f32 1.442695, %v786_v41 }
 0x2c8   : > { %v762_v45 = vpop.xlane.xlu1 %761  ;;  %833 = vadd.xlane.f32.xlu1 %v3278_v27 }
 0x2c9   : > { %2606 = vpow2.f32 %v813_v15  ;;  %v784_v30 = vsub.f32 %v3180_v33, %v762_v45  ;;  %2353 = vmatpush3.bf16.msra.mxu1 %v901_v19 }
 0x2ca   : > { %2354 = vmatprep.subr.bf16.mxu1 %v902_v7 }
 0x2cb   : > { %v3284_v47 = vpop.eup %2602  ;;  %v809_v35 = vmul.f32 1.442695, %v784_v30 }
 0x2cc   : > { %v772_v4 = vpop.xlane.xlu1 %771  ;;  %843 = vadd.xlane.f32.xlu1 %v3284_v47 }
 0x2cd   : > { %2608 = vpow2.f32 %v809_v35  ;;  %v789_v3 = vsub.f32 %v3183_v36, %v772_v4  ;;  %2355 = vmatpush3.bf16.msra.mxu1 %v902_v7  ;;  %v3305_v35 = vld [vmem:[%s2831_s23 + $0x90] sm:$0xff]  ;;  %v3313_v4 = vld [vmem:[%s2831_s23 + $0xa0] sm:$0xff] }
 0x2ce   : > { %3715 = vst [vmem:[#allocation2_spill] sm:$0xff] %v3313_v4 }
 0x2cf   : > { %v3290_v12 = vpop.eup %2604  ;;  %v819_v33 = vmul.f32 1.442695, %v789_v3  ;;  %v1152_v3 = vmul.f32 %v3313_v4, %v3313_v4  ;;  %v3378_v4 = vld [vmem:[%s2831_s23 + $0xc8] sm:$0xff] }
 0x2d0   : > { %v768_v5 = vpop.xlane.xlu1 %767  ;;  %839 = vadd.xlane.f32.xlu1 %v3290_v12  ;;  %3722 = vst [vmem:[#allocation9_spill] sm:$0xff] %v3378_v4 }
 0x2d1   : > { %2610 = vpow2.f32 %v819_v33  ;;  %v787_v41 = vsub.f32 %v3186_v37, %v768_v5  ;;  %v3322_v33 = vld [vmem:[%s2831_s23 + $0xb0] sm:$0xff]  ;;  %v1176_v5 = vsel %vm368_vm0, %v1152_v3, 0.0 }
 0x2d2   : > { %3716 = vst [vmem:[#allocation3_spill] sm:$0xff] %v3322_v33  ;;  %v1154_v7 = vmul.f32 %v3322_v33, %v3322_v33  ;;  %v3366_v33 = vld [vmem:[%s2831_s23 + $0xb8] sm:$0xff] }
 0x2d3   : > { %v3296_v15 = vpop.eup %2606  ;;  %v815_v16 = vmul.f32 1.442695, %v787_v41  ;;  %v1149_v41 = vmul.f32 %v3325_v17, %v3325_v17  ;;  %3720 = vst [vmem:[#allocation7_spill] sm:$0xff] %v3366_v33 }
 0x2d4   : > { %845 = vadd.xlane.f32.xlu0 %v3296_v15  ;;  %v774_v36 = vpop.xlane.xlu1 %773 }
 0x2d5   : > { %2612 = vpow2.f32 %v815_v16  ;;  %v790_v20 = vsub.f32 %v3188_v42, %v774_v36  ;;  %v1150_v42 = vmul.f32 %v3305_v35, %v3305_v35  ;;  %v3336_v16 = vld [vmem:[%s2831_s23 + $0xc0] sm:$0xff]  ;;  %v3339_v36 = vld [vmem:[%s2831_s23 + $0x98] sm:$0xff] }
 0x2d6   : > { %3717 = vst [vmem:[#allocation4_spill] sm:$0xff] %v3336_v16 }
 0x2d7   : > { %v3300_v45 = vpop.eup %2608  ;;  %v821_v31 = vmul.f32 1.442695, %v790_v20 }
 0x2d8   : > { %841 = vadd.xlane.f32.xlu0 %v3300_v45  ;;  %v770_v37 = vpop.xlane.xlu1 %769 }
 0x2d9   : > { %2614 = vpow2.f32 %v821_v31  ;;  %v788_v30 = vsub.f32 %v3190_v43, %v770_v37  ;;  %v1170_v43 = vsel %vm368_vm0, %v1150_v42, 0.0  ;;  %v1182_v31 = vsel %vm368_vm0, %v1154_v7, 0.0  ;;  %v3351_v42 = vld [vmem:[%s2831_s23 + $0xd0] sm:$0xff] }
 0x2da   : > { %v1167_v37 = vsel %vm368_vm0, %v1149_v41, 0.0  ;;  %3718 = vst [vmem:[#allocation5_spill] sm:$0xff] %v3351_v42  ;;  %v1158_v7 = vmul.f32 %v3351_v42, %v3351_v42  ;;  %v3375_v42 = vld [vmem:[%s2831_s23 + $0xf0] sm:$0xff] }
 0x2db   : > { %v3307_v62 = vpop.eup %2610  ;;  %v817_v63 = vmul.f32 1.442695, %v788_v30  ;;  %v1156_v30 = vmul.f32 %v3336_v16, %v3336_v16  ;;  %v3363_v16 = vld [vmem:[%s2831_s23 + $0xe0] sm:$0xff]  ;;  %3721 = vst [vmem:[#allocation8_spill] sm:$0xff] %v3375_v42 }
 0x2dc   : > { %851 = vadd.xlane.f32.xlu1 %v3307_v62  ;;  %3719 = vst [vmem:[#allocation6_spill] sm:$0xff] %v3363_v16 }
 0x2dd   : > { %2616 = vpow2.f32 %v817_v63  ;;  %v1151_v63 = vmul.f32 %v3339_v36, %v3339_v36  ;;  %v1188_v3 = vsel %vm368_vm0, %v1156_v30, 0.0  ;;  %v1160_v30 = vmul.f32 %v3363_v16, %v3363_v16  ;;  %v3387_v16 = vld [vmem:[%s2831_s23 + $0xd8] sm:$0xff] }
 0x2df   : > { %v3315_v19 = vpop.eup %2612 }
 0x2e0   : > { %847 = vadd.xlane.f32.xlu1 %v3315_v19 }
 0x2e3   : > { %v3327_v9 = vpop.eup %2614 }
 0x2e4   : > { %853 = vadd.xlane.f32.xlu0 %v3327_v9  ;;  %1171 = vadd.xlane.f32.xlu1 %v1170_v43  ;;  %v3354_v43 = vld [vmem:[%s2831_s23 + $0xa8] sm:$0xff] }
 0x2e5   : > { %v1153_v41 = vmul.f32 %v3354_v43, %v3354_v43 }
 0x2e7   : > { %v3341_v20 = vpop.eup %2616 }
 0x2e8   : > { %1177 = vadd.xlane.f32.xlu1 %v1176_v5  ;;  %849 = vadd.xlane.f32.xlu0 %v3341_v20  ;;  %v1173_v5 = vsel %vm368_vm0, %v1151_v63, 0.0  ;;  %v1155_v63 = vmul.f32 %v3366_v33, %v3366_v33 }
 0x2ec   : > { %1183 = vadd.xlane.f32.xlu1 %v1182_v31  ;;  %1168 = vadd.xlane.f32.xlu0 %v1167_v37  ;;  %v1194_v31 = vsel %vm368_vm0, %v1158_v7, 0.0  ;;  %v1179_v37 = vsel %vm368_vm0, %v1153_v41, 0.0  ;;  %v1162_v7 = vmul.f32 %v3375_v42, %v3375_v42  ;;  %v1157_v41 = vmul.f32 %v3378_v4, %v3378_v4  ;;  %v3400_v4 = vld [vmem:[%s2831_s23 + $0xf8] sm:$0xff] }
 0x2ed   : > { %3723 = vst [vmem:[#allocation10_spill] sm:$0xff] %v3400_v4 }
 0x2ee   : > { %v1206_v33 = vsel %vm368_vm0, %v1162_v7, 0.0 }
 0x2f0   : > { %1189 = vadd.xlane.f32.xlu1 %v1188_v3  ;;  %1174 = vadd.xlane.f32.xlu0 %v1173_v5  ;;  %v1200_v3 = vsel %vm368_vm0, %v1160_v30, 0.0  ;;  %v1185_v5 = vsel %vm368_vm0, %v1155_v63, 0.0  ;;  %v3394_v30 = vld [vmem:[%s2831_s23 + $0xe8] sm:$0xff] }
 0x2f1   : > { %v1161_v42 = vmul.f32 %v3394_v30, %v3394_v30 }
 0x2f4   : > { %1195 = vadd.xlane.f32.xlu1 %v1194_v31  ;;  %1180 = vadd.xlane.f32.xlu0 %v1179_v37  ;;  %v1191_v31 = vsel %vm368_vm0, %v1157_v41, 0.0  ;;  %v1159_v37 = vmul.f32 %v3387_v16, %v3387_v16  ;;  %v1325_v41 = vmax.f32 %v3206_v49, 1e-24 }
 0x2f6   : > { %v1197_v63 = vsel %vm368_vm0, %v1159_v37, 0.0  ;;  %v1327_v37 = vmax.f32 %v3213_v2, 1e-24 }
 0x2f8   : > { %1201 = vadd.xlane.f32.xlu1 %v1200_v3  ;;  %1186 = vadd.xlane.f32.xlu0 %v1185_v5  ;;  %v1203_v3 = vsel %vm368_vm0, %v1161_v42, 0.0  ;;  %v1163_v5 = vmul.f32 %v3400_v4, %v3400_v4  ;;  %v1328_v42 = vmax.f32 %v3215_v53, 1e-24  ;;  %v1331_v53 = vmax.f32 %v3221_v54, 1e-24 }
 0x2fa   : > { %v1209_v7 = vsel %vm368_vm0, %v1163_v5, 0.0 }
 0x2fc   : > { %1207 = vadd.xlane.f32.xlu1 %v1206_v33  ;;  %1192 = vadd.xlane.f32.xlu0 %v1191_v31  ;;  %v1324_v33 = vmax.f32 %v3202_v28, 1e-24  ;;  %v1326_v31 = vmax.f32 %v3210_v50, 1e-24  ;;  %v1329_v28 = vmax.f32 %v3217_v29, 1e-24 }
 0x2fd   : > { %v1330_v50 = vmax.f32 %v3219_v52, 1e-24  ;;  %v1333_v52 = vmax.f32 %v3225_v58, 1e-24 }
 0x2fe   : > { %2618 = vrsqrt.f32 %v1324_v33 }
 0x2ff   : > { %2620 = vrsqrt.f32 %v1325_v41 }
 0x300   : > { %1198 = vadd.xlane.f32.xlu0 %v1197_v63  ;;  %2622 = vrsqrt.f32 %v1326_v31 }
 0x301   : > { %2624 = vrsqrt.f32 %v1327_v37 }
 0x302   : > { %2626 = vrsqrt.f32 %v1328_v42 }
 0x303   : > { %2628 = vrsqrt.f32 %v1329_v28 }
 0x304   : > { %1204 = vadd.xlane.f32.xlu0 %v1203_v3  ;;  %2630 = vrsqrt.f32 %v1330_v50 }
 0x305   : > { %2632 = vrsqrt.f32 %v1331_v53 }
 0x308   : > { %1210 = vadd.xlane.f32.xlu0 %v1209_v7  ;;  %v2619_v63 = vpop.eup %2618 }
 0x309   : > { %v1356_v3 = vmul.f32 %v2619_v63, %v3039_v24  ;;  %v2621_v4 = vpop.eup %2620  ;;  %v1334_v63 = vmax.f32 %v3227_v55, 1e-24 }
 0x30a   : > { %v1357_v5 = vmul.f32 %v2621_v4, %v3042_v25  ;;  %v2623_v49 = vpop.eup %2622  ;;  %v1332_v25 = vmax.f32 %v3223_v59, 1e-24 }
 0x30b   : > { %v1358_v2 = vmul.f32 %v2623_v49, %v3050_v32  ;;  %v2625_v7 = vpop.eup %2624  ;;  %v1336_v49 = vmax.f32 %v3229_v56, 1e-24 }
 0x30c   : > { %v1359_v33 = vmul.f32 %v2625_v7, %v3059_v0  ;;  %v2627_v41 = vpop.eup %2626  ;;  %2634 = vrsqrt.f32 %v1332_v25  ;;  %v1311_v0 = vpop.xlane.xlu0 %1310 }
 0x30d   : > { %v1360_v4 = vmul.f32 %v2627_v41, %v3067_v1  ;;  %v2629_v31 = vpop.eup %2628  ;;  %2636 = vrsqrt.f32 %v1333_v52  ;;  %v1335_v58 = vmax.f32 %v1311_v0, 1e-24 }
 0x30e   : > { %v1361_v37 = vmul.f32 %v2629_v31, %v3074_v51  ;;  %v2631_v54 = vpop.eup %2630  ;;  %v1338_v31 = vmax.f32 %v3233_v57, 1e-24 }
 0x30f   : > { %v1362_v1 = vmul.f32 %v2631_v54, %v3081_v6  ;;  %v2633_v42 = vpop.eup %2632  ;;  %v1337_v6 = vmax.f32 %v3231_v34, 1e-24 }
 0x316   : > { %v2635_v51 = vpop.eup %2634 }
 0x317   : > { %v1364_v50 = vmul.f32 %v2635_v51, %v3095_v40 }
 0x32f   : > { %1380 = vxpose.xlu1.b32.start [1/16] (narrow) %v1356_v3, 8  ;;  %v1363_v3 = vmul.f32 %v2633_v42, %v3088_v8 }
 0x333   : > { %1381 = vxpose.xlu1.b32.cont [2/16] (narrow) %v1357_v5, 8  ;;  %v2637_v5 = vpop.eup %2636 }
 0x334   : > { %v1365_v41 = vmul.f32 %v2637_v5, %v3101_v10 }
 0x337   : > { %1382 = vxpose.xlu1.b32.cont [3/16] (narrow) %v1358_v2, 8 }
 0x339   : > { %v828_v24 = vpop.xlane.xlu1 %827 }
 0x33b   : > { %1383 = vxpose.xlu1.b32.cont [4/16] (narrow) %v1359_v33, 8 }
 0x33d   : > { %v824_v29 = vpop.xlane.xlu1 %823 }
 0x33f   : > { %1384 = vxpose.xlu1.b32.cont [5/16] (narrow) %v1360_v4, 8 }
 0x341   : > { %v830_v32 = vpop.xlane.xlu1 %829 }
 0x342   : > { %2638 = vrcp.f32 %v830_v32 }
 0x343   : > { %1385 = vxpose.xlu1.b32.cont [6/16] (narrow) %v1361_v37, 8  ;;  %2640 = vrcp.f32 %v824_v29 }
 0x344   : > { %2642 = vrcp.f32 %v828_v24 }
 0x345   : > { %v826_v59 = vpop.xlane.xlu1 %825 }
 0x346   : > { %2644 = vrcp.f32 %v826_v59 }
 0x347   : > { %1386 = vxpose.xlu1.b32.cont [7/16] (narrow) %v1362_v1, 8  ;;  %2646 = vrsqrt.f32 %v1334_v63 }
 0x348   : > { %2648 = vrsqrt.f32 %v1335_v58 }
 0x349   : > { %v836_v28 = vpop.xlane.xlu1 %835  ;;  %2650 = vrsqrt.f32 %v1336_v49 }
 0x34a   : > { %2652 = vrsqrt.f32 %v1337_v6 }
 0x34b   : > { %1387 = vxpose.xlu1.b32.cont [8/16] (narrow) %v1363_v3, 8 }
 0x34c   : > { %v2639_v55 = vpop.eup %2638 }
 0x34d   : > { %v2641_v2 = vpop.eup %2640  ;;  %v874_v24 = vmul.f32 %v2639_v55, %v3248_v48  ;;  %v832_v8 = vpop.xlane.xlu1 %831 }
 0x34e   : > { %v2643_v7 = vpop.eup %2642  ;;  %v871_v25 = vmul.f32 %v2641_v2, %v3244_v21 }
 0x34f   : > { %1388 = vxpose.xlu1.b32.cont [9/16] (narrow) %v1364_v50, 8  ;;  %v873_v40 = vmul.f32 %v2643_v7, %v3240_v11  ;;  %v1339_v11 = vmax.f32 %v3235_v60, 1e-24 }
 0x350   : > { %v2645_v53 = vpop.eup %2644 }
 0x351   : > { %v838_v33 = vpop.xlane.xlu0 %837  ;;  %v872_v56 = vmul.f32 %v2645_v53, %v3254_v13  ;;  %v2647_v29 = vpop.eup %2646  ;;  %v888_v48 = vpack.c.bf16 %v874_v24, %v873_v40 }
 0x352   : > { %2654 = vrcp.f32 %v838_v33  ;;  %v2649_v4 = vpop.eup %2648  ;;  %v1366_v10 = vmul.f32 %v2647_v29, %v3107_v14 }
 0x353   : > { %1389 = vxpose.xlu1.b32.cont [10/16] (narrow) %v1365_v41, 8  ;;  %v887_v34 = vpack.c.bf16 %v872_v56, %v871_v25  ;;  %2656 = vrcp.f32 %v832_v8  ;;  %v1367_v21 = vmul.f32 %v2649_v4, %v3197_v44  ;;  %v2651_v13 = vpop.eup %2650  ;;  %v1212_v41 = vmax.f32 %v3237_v61, 1e-24 }
 0x354   : > { %2658 = vrcp.f32 %v836_v28  ;;  %v2653_v37 = vpop.eup %2652  ;;  %v1368_v54 = vmul.f32 %v2651_v13, %v3113_v18 }
 0x355   : > { %2356 = vmatprep.mubr.bf16.mxu1 %v887_v34  ;;  %v834_v52 = vpop.xlane.xlu1 %833  ;;  %v1369_v44 = vmul.f32 %v2653_v37, %v3119_v26 }
 0x356   : > { %2660 = vrcp.f32 %v834_v52  ;;  %2357 = vmatmul.mubr.bf16.vlgmr.msra.gmra.mrb[0].mxu1 %v888_v48 }
 0x357   : > { %1390 = vxpose.xlu1.b32.cont [11/16] (narrow) %v1366_v10, 8  ;;  %2662 = vrsqrt.f32 %v1338_v31 }
 0x358   : > { %2664 = vrsqrt.f32 %v1339_v11 }
 0x359   : > { %v844_v32 = vpop.xlane.xlu1 %843 }
 0x35b   : > { %1391 = vxpose.xlu1.b32.cont [12/16] (narrow) %v1367_v21, 8  ;;  %v2778_v21 = vld [vmem:[%s2831_s23 + $0x80] sm:$0xff] }
 0x35c   : > { %v2655_v57 = vpop.eup %2654 }
 0x35d   : > { %v2657_v0 = vpop.eup %2656  ;;  %v878_v59 = vmul.f32 %v2655_v57, %v3272_v38  ;;  %v840_v1 = vpop.xlane.xlu1 %839 }
 0x35e   : > { %v2659_v63 = vpop.eup %2658  ;;  %v875_v60 = vmul.f32 %v2657_v0, %v3266_v39 }
 0x35f   : > { %1392 = vxpose.xlu1.b32.cont [13/16] (narrow) %v1368_v54, 8  ;;  %v877_v51 = vmul.f32 %v2659_v63, %v3260_v22 }
 0x360   : > { %v2661_v14 = vpop.eup %2660 }
 0x361   : > { %v846_v42 = vpop.xlane.xlu0 %845  ;;  %v876_v58 = vmul.f32 %v2661_v14, %v3278_v27  ;;  %v2663_v3 = vpop.eup %2662  ;;  %v890_v28 = vpack.c.bf16 %v878_v59, %v877_v51 }
 0x362   : > { %2666 = vrcp.f32 %v846_v42  ;;  %v1370_v38 = vmul.f32 %v2663_v3, %v3125_v46  ;;  %v2665_v49 = vpop.eup %2664 }
 0x363   : > { %1393 = vxpose.xlu1.b32.cont [14/16] (narrow) %v1369_v44, 8  ;;  %v889_v18 = vpack.c.bf16 %v876_v58, %v875_v60  ;;  %2668 = vrcp.f32 %v840_v1  ;;  %v1371_v26 = vmul.f32 %v2665_v49, %v3131_v23 }
 0x364   : > { %2670 = vrcp.f32 %v844_v32 }
 0x365   : > { %2360 = vmatprep.mubr.bf16.mxu1 %v889_v18  ;;  %v842_v5 = vpop.xlane.xlu0 %841  ;;  %v342_v18 = vld [vmem:[%s3702_s2] sm:$0xf] }
 0x366   : > { %2672 = vrcp.f32 %v842_v5  ;;  %2361 = vmatmul.mubr.bf16.gmra.mrb[4].mxu1 %v890_v28  ;;  %2509 = vmatprep.subr.msk.bf16.mxu0 %vm642_vm1, %v342_v18 }
 0x367   : > { %1394 = vxpose.xlu1.b32.cont [15/16] (narrow) %v1370_v38, 8  ;;  %v1033_v38 = vsel %vm642_vm1, %v342_v18, 0 }
 0x368   : > { %2373 = vmatpush3.bf16.msra.mxu0 %v1033_v38 }
 0x369   : > { %v852_v39 = vpop.xlane.xlu1 %851 }
 0x36b   : > { %1395 = vxpose.xlu1.b32.end [16/16] (narrow) %v1371_v26, 8 }
 0x36c   : > { %v2667_v27 = vpop.eup %2666 }
 0x36d   : > { %v2669_v22 = vpop.eup %2668  ;;  %v882_v2 = vmul.f32 %v2667_v27, %v3296_v15  ;;  %v848_v6 = vpop.xlane.xlu1 %847 }
 0x36e   : > { %v2671_v55 = vpop.eup %2670  ;;  %v879_v53 = vmul.f32 %v2669_v22, %v3290_v12 }
 0x36f   : > { %v881_v24 = vmul.f32 %v2671_v55, %v3284_v47 }
 0x370   : > { %v2673_v50 = vpop.eup %2672 }
 0x371   : > { %v854_v7 = vpop.xlane.xlu0 %853  ;;  %v880_v46 = vmul.f32 %v2673_v50, %v3300_v45  ;;  %v892_v23 = vpack.c.bf16 %v882_v2, %v881_v24  ;;  %v1172_v10 = vpop.xlane.xlu1 %1171 }
 0x372   : > { %2674 = vrcp.f32 %v854_v7  ;;  %v1214_v14 = vmax.f32 %v1172_v10, 1e-24 }
 0x373   : > { %v891_v8 = vpack.c.bf16 %v880_v46, %v879_v53  ;;  %2676 = vrcp.f32 %v848_v6 }
 0x374   : > { %2678 = vrcp.f32 %v852_v39 }
 0x375   : > { %2364 = vmatprep.mubr.bf16.mxu1 %v891_v8  ;;  %v850_v33 = vpop.xlane.xlu0 %849  ;;  %v3724_v8 = vld [vmem:[#allocation2_spill] sm:$0xff] }
 0x376   : > { %2680 = vrcp.f32 %v850_v33  ;;  %2365 = vmatmul.mubr.bf16.gmra.mrb[8].mxu1 %v892_v23 }
 0x377   : > { %2682 = vrsqrt.f32 %v1212_v41 }
 0x379   : > { %v1169_v15 = vpop.xlane.xlu0 %1168 }
 0x37a   : > { %v1213_v25 = vmax.f32 %v1169_v15, 1e-24 }
 0x37c   : > { %v2675_v56 = vpop.eup %2674  ;;  %2684 = vrsqrt.f32 %v1213_v25 }
 0x37d   : > { %v2677_v12 = vpop.eup %2676  ;;  %v886_v29 = vmul.f32 %v2675_v56, %v3327_v9  ;;  %v1178_v9 = vpop.xlane.xlu1 %1177 }
 0x37e   : > { %v2679_v45 = vpop.eup %2678  ;;  %v883_v40 = vmul.f32 %v2677_v12, %v3315_v19  ;;  %v1175_v19 = vpop.xlane.xlu0 %1174  ;;  %v1216_v1 = vmax.f32 %v1178_v9, 1e-24  ;;  %v3725_v12 = vld [vmem:[#allocation7_spill] sm:$0xff] }
 0x37f   : > { %v885_v4 = vmul.f32 %v2679_v45, %v3307_v62  ;;  %v1215_v54 = vmax.f32 %v1175_v19, 1e-24  ;;  %v3729_v19 = vld [vmem:[#allocation5_spill] sm:$0xff] }
 0x380   : > { %v2681_v47 = vpop.eup %2680 }
 0x381   : > { %v884_v34 = vmul.f32 %v2681_v47, %v3341_v20  ;;  %v894_v48 = vpack.c.bf16 %v886_v29, %v885_v4  ;;  %v2683_v61 = vpop.eup %2682  ;;  %v1184_v37 = vpop.xlane.xlu1 %1183  ;;  %2686 = vrsqrt.f32 %v1215_v54  ;;  %v3726_v29 = vld [vmem:[#allocation9_spill] sm:$0xff] }
 0x382   : > { %v1244_v11 = vmul.f32 %v2778_v21, %v2683_v61  ;;  %v1181_v20 = vpop.xlane.xlu0 %1180  ;;  %v1218_v58 = vmax.f32 %v1184_v37, 1e-24 }
 0x383   : > { %v893_v31 = vpack.c.bf16 %v884_v34, %v883_v40  ;;  %v1217_v63 = vmax.f32 %v1181_v20, 1e-24  ;;  %v3727_v34 = vld [vmem:[#allocation3_spill] sm:$0xff]  ;;  %v3730_v20 = vld [vmem:[#allocation6_spill] sm:$0xff] }
 0x385   : > { %2368 = vmatprep.mubr.bf16.mxu1 %v893_v31  ;;  %v1190_v57 = vpop.xlane.xlu1 %1189  ;;  %2688 = vrsqrt.f32 %v1217_v63  ;;  %v3728_v31 = vld [vmem:[#allocation4_spill] sm:$0xff] }
 0x386   : > { %2369 = vmatmul.mubr.bf16.gmra.mrb[12].mxu1 %v894_v48  ;;  %v2685_v52 = vpop.eup %2684  ;;  %v1187_v62 = vpop.xlane.xlu0 %1186  ;;  %2690 = vrsqrt.f32 %v1214_v14  ;;  %v1220_v3 = vmax.f32 %v1190_v57, 1e-24  ;;  %v3731_v14 = vld [vmem:[#allocation10_spill] sm:$0xff] }
 0x387   : > { %v1245_v13 = vmul.f32 %v2685_v52, %v3325_v17  ;;  %2692 = vrsqrt.f32 %v1216_v1  ;;  %v1219_v17 = vmax.f32 %v1187_v62, 1e-24  ;;  %v3732_v1 = vld [vmem:[#allocation8_spill] sm:$0xff] }
 0x389   : > { %v1372_v32 = vpack.c.bf16 %v1245_v13, %v1244_v11  ;;  %v1196_v0 = vpop.xlane.xlu1 %1195  ;;  %2694 = vrsqrt.f32 %v1219_v17 }
 0x38a   : > { %v1193_v59 = vpop.xlane.xlu0 %1192  ;;  %v1222_v6 = vmax.f32 %v1196_v0, 1e-24 }
 0x38b   : > { %2392 = vmatprep.mubr.msk.bf16.mxu1 %vm368_vm0, %v1372_v32  ;;  %v1221_v60 = vmax.f32 %v1193_v59, 1e-24  ;;  %v2687_v28 = vpop.eup %2686 }
 0x38c   : > { %v1247_v55 = vmul.f32 %v2687_v28, %v3339_v36 }
 0x38d   : > { %v1202_v42 = vpop.xlane.xlu1 %1201  ;;  %2696 = vrsqrt.f32 %v1221_v60 }
 0x38e   : > { %v1199_v44 = vpop.xlane.xlu0 %1198  ;;  %2698 = vrsqrt.f32 %v1218_v58  ;;  %v1224_v46 = vmax.f32 %v1202_v42, 1e-24 }
 0x38f   : > { %v2689_v49 = vpop.eup %2688  ;;  %2700 = vrsqrt.f32 %v1220_v3  ;;  %v1223_v39 = vmax.f32 %v1199_v44, 1e-24 }
 0x390   : > { %v2691_v26 = vpop.eup %2690  ;;  %v1249_v7 = vmul.f32 %v2689_v49, %v3354_v43 }
 0x391   : > { %v1208_v51 = vpop.xlane.xlu1 %1207  ;;  %v2693_v22 = vpop.eup %2692  ;;  %v1246_v53 = vmul.f32 %v2691_v26, %v3305_v35  ;;  %2702 = vrsqrt.f32 %v1223_v39 }
 0x392   : > { %v1205_v5 = vpop.xlane.xlu0 %1204  ;;  %v1248_v23 = vmul.f32 %v2693_v22, %v3724_v8  ;;  %v1226_v47 = vmax.f32 %v1208_v51, 1e-24 }
 0x393   : > { %v1225_v50 = vmax.f32 %v1205_v5, 1e-24  ;;  %v1373_v33 = vpack.c.bf16 %v1247_v55, %v1246_v53  ;;  %v2695_v36 = vpop.eup %2694 }
 0x394   : > { %v1374_v15 = vpack.c.bf16 %v1249_v7, %v1248_v23  ;;  %v1251_v45 = vmul.f32 %v2695_v36, %v3725_v12 }
 0x395   : > { %2704 = vrsqrt.f32 %v1225_v50 }
 0x396   : > { %v1211_v41 = vpop.xlane.xlu0 %1210  ;;  %2706 = vrsqrt.f32 %v1222_v6 }
 0x397   : > { %v2697_v25 = vpop.eup %2696  ;;  %2708 = vrsqrt.f32 %v1224_v46  ;;  %v1227_v43 = vmax.f32 %v1211_v41, 1e-24 }
 0x398   : > { %v2699_v35 = vpop.eup %2698  ;;  %v1253_v40 = vmul.f32 %v2697_v25, %v3726_v29 }
 0x399   : > { %v2701_v56 = vpop.eup %2700  ;;  %v1250_v4 = vmul.f32 %v2699_v35, %v3727_v34  ;;  %2710 = vrsqrt.f32 %v1227_v43 }
 0x39a   : > { %v1252_v48 = vmul.f32 %v2701_v56, %v3728_v31  ;;  %2712 = vrsqrt.f32 %v1226_v47  ;;  %v327_v31 = vld [vmem:[%s2831_s23 + $0x288] sm:$0xff] }
 0x39b   : > { %v1375_v61 = vpack.c.bf16 %v1251_v45, %v1250_v4  ;;  %v2703_v52 = vpop.eup %2702  ;;  %v326_v4 = vld [vmem:[%s2831_s23 + $0x280] sm:$0xff] }
 0x39c   : > { %v1376_v10 = vpack.c.bf16 %v1253_v40, %v1252_v48  ;;  %v1255_v32 = vmul.f32 %v2703_v52, %v3387_v16  ;;  %v1689_v48 = vpack.c.bf16 %v327_v31, %v326_v4  ;;  %v337_v4 = vld [vmem:[%s2831_s23 + $0x2d8] sm:$0xff] }
 0x39e   : > { %2408 = vmatprep.subr.bf16.mxu0 %v1689_v48 }
 0x39f   : > { %v2705_v21 = vpop.eup %2704 }
 0x3a0   : > { %v2707_v11 = vpop.eup %2706  ;;  %v1257_v9 = vmul.f32 %v2705_v21, %v3394_v30 }
 0x3a1   : > { %v2709_v13 = vpop.eup %2708  ;;  %v1254_v37 = vmul.f32 %v2707_v11, %v3729_v19 }
 0x3a2   : > { %v1256_v57 = vmul.f32 %v2709_v13, %v3730_v20 }
 0x3a3   : > { %v1377_v62 = vpack.c.bf16 %v1255_v32, %v1254_v37  ;;  %v2711_v54 = vpop.eup %2710 }
 0x3a4   : > { %v1378_v0 = vpack.c.bf16 %v1257_v9, %v1256_v57  ;;  %v2713_v63 = vpop.eup %2712  ;;  %v1259_v59 = vmul.f32 %v2711_v54, %v3731_v14 }
 0x3a5   : > { %v1258_v42 = vmul.f32 %v2713_v63, %v3732_v1 }
 0x3a7   : > { %v1379_v17 = vpack.c.bf16 %v1259_v59, %v1258_v42 }
 0x3af   : > { %v1396_v27 = vpop.trf.xlu1 }
 0x3b0   : > { %v1412_v2 = vpack.c.bf16 %v1396_v27, %v1396_v27 }
 0x3b2   : > { %v1438_v24 = vsel %vm642_vm1, %v1412_v2, 0  ;;  %2510 = vmatprep.subr.msk.bf16.mxu1 %vm642_vm1, %v1412_v2 }
 0x3b3   : > { %2391 = vmatpush3.bf16.msra.mxu1 %v1438_v24 }
 0x3b6   : > { %2393 = vmatmul.mubr.msk.bf16.vlgmr.msra.gmra.mrb[16].mxu1 %vm368_vm0, %v1373_v33 }
 0x3b7   : > { %2396 = vmatprep.mubr.msk.bf16.mxu1 %vm368_vm0, %v1374_v15 }
 0x3be   : > { %2397 = vmatmul.mubr.msk.bf16.gmra.mrb[20].mxu1 %vm368_vm0, %v1375_v61 }
 0x3bf   : > { %2400 = vmatprep.mubr.msk.bf16.mxu1 %vm368_vm0, %v1376_v10 }
 0x3c6   : > { %2401 = vmatmul.mubr.msk.bf16.gmra.mrb[24].mxu1 %vm368_vm0, %v1377_v62 }
 0x3c7   : > { %2404 = vmatprep.mubr.msk.bf16.mxu1 %vm368_vm0, %v1378_v0 }
 0x3ce   : > { %2405 = vmatmul.mubr.msk.bf16.gmra.mrb[28].mxu1 %vm368_vm0, %v1379_v17 }
 0x429   : > { %v2358_v16 = vpop.f32.mrb[0].mxu1 }
 0x42a   : > { %v937_v30 = vpop.f32.mrb[1].mxu1 }
 0x42b   : > { %v2359_v44 = vpop.f32.mrb[2].mxu1 }
 0x42c   : > { %v1001_v60 = vpack.c.bf16 %v2359_v44, %v2358_v16  ;;  %v940_v58 = vpop.f32.mrb[3].mxu1 }
 0x42d   : > { %v1000_v3 = vpack.c.bf16 %v940_v58, %v937_v30 }
 0x42f   : > { %2374 = vmatprep.mubr.msk.bf16.mxu0 %vm368_vm0, %v1000_v3  ;;  %v328_v3 = vld [vmem:[%s2831_s23 + $0x290] sm:$0xff] }
 0x430   : > { %2375 = vmatmul.mubr.msk.bf16.vlgmr.msra.gmra.mrb[16].mxu0 %vm368_vm0, %v1001_v60 }
 0x431   : > { %2409 = vmatpush3.bf16.msra.mxu0 %v1689_v48 }
 0x439   : > { %v2362_v51 = vpop.f32.mrb[4].mxu1 }
 0x43a   : > { %v953_v18 = vpop.f32.mrb[5].mxu1 }
 0x43b   : > { %v2363_v28 = vpop.f32.mrb[6].mxu1 }
 0x43c   : > { %v1003_v5 = vpack.c.bf16 %v2363_v28, %v2362_v51  ;;  %v956_v38 = vpop.f32.mrb[7].mxu1  ;;  %v329_v51 = vld [vmem:[%s2831_s23 + $0x298] sm:$0xff] }
 0x43d   : > { %v1002_v49 = vpack.c.bf16 %v956_v38, %v953_v18  ;;  %v1690_v28 = vpack.c.bf16 %v329_v51, %v328_v3 }
 0x43f   : > { %2378 = vmatprep.mubr.msk.bf16.mxu0 %vm368_vm0, %v1002_v49  ;;  %2410 = vmatprep.subr.bf16.mxu0 %v1690_v28 }
 0x440   : > { %2379 = vmatmul.mubr.msk.bf16.gmra.mrb[20].mxu0 %vm368_vm0, %v1003_v5 }
 0x441   : > { %2411 = vmatpush3.bf16.msra.mxu0 %v1690_v28 }
 0x449   : > { %v2366_v26 = vpop.f32.mrb[8].mxu1 }
 0x44a   : > { %v969_v39 = vpop.f32.mrb[9].mxu1 }
 0x44b   : > { %v2367_v27 = vpop.f32.mrb[10].mxu1 }
 0x44c   : > { %v1005_v22 = vpack.c.bf16 %v2367_v27, %v2366_v26  ;;  %v972_v55 = vpop.f32.mrb[11].mxu1  ;;  %v330_v26 = vld [vmem:[%s2831_s23 + $0x2a0] sm:$0xff] }
 0x44d   : > { %v1004_v50 = vpack.c.bf16 %v972_v55, %v969_v39  ;;  %v331_v39 = vld [vmem:[%s2831_s23 + $0x2a8] sm:$0xff] }
 0x44f   : > { %2382 = vmatprep.mubr.msk.bf16.mxu0 %vm368_vm0, %v1004_v50 }
 0x450   : > { %2383 = vmatmul.mubr.msk.bf16.gmra.mrb[24].mxu0 %vm368_vm0, %v1005_v22  ;;  %v1691_v22 = vpack.c.bf16 %v331_v39, %v330_v26 }
 0x452   : > { %2412 = vmatprep.subr.bf16.mxu0 %v1691_v22 }
 0x453   : > { %2413 = vmatpush3.bf16.msra.mxu0 %v1691_v22 }
 0x459   : > { %v2370_v2 = vpop.f32.mrb[12].mxu1 }
 0x45a   : > { %v985_v6 = vpop.f32.mrb[13].mxu1 }
 0x45b   : > { %v2371_v7 = vpop.f32.mrb[14].mxu1 }
 0x45c   : > { %v1007_v53 = vpack.c.bf16 %v2371_v7, %v2370_v2  ;;  %v988_v46 = vpop.f32.mrb[15].mxu1  ;;  %v333_v7 = vld [vmem:[%s2831_s23 + $0x2b8] sm:$0xff] }
 0x45d   : > { %v1006_v24 = vpack.c.bf16 %v988_v46, %v985_v6  ;;  %v332_v6 = vld [vmem:[%s2831_s23 + $0x2b0] sm:$0xff] }
 0x45e   : > { %v1692_v46 = vpack.c.bf16 %v333_v7, %v332_v6 }
 0x45f   : > { %2386 = vmatprep.mubr.msk.bf16.mxu0 %vm368_vm0, %v1006_v24 }
 0x460   : > { %2387 = vmatmul.mubr.msk.bf16.gmra.mrb[28].mxu0 %vm368_vm0, %v1007_v53  ;;  %2414 = vmatprep.subr.bf16.mxu0 %v1692_v46 }
 0x461   : > { %2415 = vmatpush3.bf16.msra.mxu0 %v1692_v46 }
 0x489   : > { %v2394_v8 = vpop.f32.mrb[16].mxu1 }
 0x48a   : > { %1541 = vmax.xlane.f32.xlu0 %v2394_v8  ;;  %v1474_v23 = vpop.f32.mrb[17].mxu1 }
 0x48b   : > { %v2395_v33 = vpop.f32.mrb[18].mxu1 }
 0x48c   : > { %v1477_v41 = vpop.f32.mrb[19].mxu1 }
 0x48e   : > { %1537 = vmax.xlane.f32.xlu0 %v1474_v23 }
 0x491   : > { %v2398_v36 = vpop.f32.mrb[20].mxu1 }
 0x492   : > { %1543 = vmax.xlane.f32.xlu0 %v2395_v33  ;;  %v1490_v15 = vpop.f32.mrb[21].mxu1 }
 0x493   : > { %v2399_v25 = vpop.f32.mrb[22].mxu1 }
 0x494   : > { %v3493_v35 = vpop.f32.mrb[23].mxu1 }
 0x496   : > { %1539 = vmax.xlane.f32.xlu0 %v1477_v41 }
 0x499   : > { %v3495_v43 = vpop.f32.mrb[24].mxu1 }
 0x49a   : > { %1549 = vmax.xlane.f32.xlu0 %v2398_v36  ;;  %v3497_v56 = vpop.f32.mrb[25].mxu1 }
 0x49b   : > { %v3499_v12 = vpop.f32.mrb[26].mxu1 }
 0x49c   : > { %v3501_v45 = vpop.f32.mrb[27].mxu1 }
 0x49e   : > { %1545 = vmax.xlane.f32.xlu0 %v1490_v15 }
 0x4a1   : > { %v3503_v47 = vpop.f32.mrb[28].mxu1 }
 0x4a2   : > { %1551 = vmax.xlane.f32.xlu0 %v2399_v25  ;;  %v3505_v29 = vpop.f32.mrb[29].mxu1 }
 0x4a3   : > { %v3507_v40 = vpop.f32.mrb[30].mxu1 }
 0x4a4   : > { %v3509_v34 = vpop.f32.mrb[31].mxu1 }
 0x4a6   : > { %1547 = vmax.xlane.f32.xlu0 %v3493_v35 }
 0x4aa   : > { %1557 = vmax.xlane.f32.xlu0 %v3495_v43 }
 0x4ae   : > { %1553 = vmax.xlane.f32.xlu0 %v3497_v56 }
 0x4b2   : > { %1559 = vmax.xlane.f32.xlu0 %v3499_v12 }
 0x4b6   : > { %1555 = vmax.xlane.f32.xlu0 %v3501_v45 }
 0x4ba   : > { %1565 = vmax.xlane.f32.xlu0 %v3503_v47 }
 0x4be   : > { %1561 = vmax.xlane.f32.xlu0 %v3505_v29 }
 0x4c2   : > { %1563 = vmax.xlane.f32.xlu0 %v3509_v34 }
 0x4c6   : > { %1567 = vmax.xlane.f32.xlu0 %v3507_v40 }
 0x517   : > { %v1542_v61 = vpop.xlane.xlu0 %1541 }
 0x518   : > { %v1571_v52 = vsub.f32 %v2394_v8, %v1542_v61 }
 0x51a   : > { %v1589_v10 = vmul.f32 1.442695, %v1571_v52 }
 0x51b   : > { %v1538_v21 = vpop.xlane.xlu0 %1537 }
 0x51c   : > { %2714 = vpow2.f32 %v1589_v10  ;;  %v1569_v11 = vsub.f32 %v1474_v23, %v1538_v21  ;;  %v338_v10 = vld [vmem:[%s2831_s23 + $0x2e0] sm:$0xff]  ;;  %v339_v21 = vld [vmem:[%s2831_s23 + $0x2e8] sm:$0xff] }
 0x51e   : > { %v1585_v13 = vmul.f32 1.442695, %v1569_v11 }
 0x51f   : > { %v1544_v32 = vpop.xlane.xlu0 %1543 }
 0x520   : > { %2716 = vpow2.f32 %v1585_v13  ;;  %v1572_v9 = vsub.f32 %v2395_v33, %v1544_v32  ;;  %v334_v33 = vld [vmem:[%s2831_s23 + $0x2c0] sm:$0xff]  ;;  %v1695_v13 = vpack.c.bf16 %v339_v21, %v338_v10 }
 0x522   : > { %v1591_v19 = vmul.f32 1.442695, %v1572_v9 }
 0x523   : > { %v1540_v37 = vpop.xlane.xlu0 %1539 }
 0x524   : > { %2718 = vpow2.f32 %v1591_v19  ;;  %v1570_v20 = vsub.f32 %v1477_v41, %v1540_v37  ;;  %v335_v41 = vld [vmem:[%s2831_s23 + $0x2c8] sm:$0xff]  ;;  %v340_v19 = vld [vmem:[%s2831_s23 + $0x2f0] sm:$0xff]  ;;  %v341_v37 = vld [vmem:[%s2831_s23 + $0x2f8] sm:$0xff] }
 0x526   : > { %v3522_v57 = vpop.eup %2714  ;;  %v1587_v62 = vmul.f32 1.442695, %v1570_v20 }
 0x527   : > { %1621 = vadd.xlane.f32.xlu0 %v3522_v57  ;;  %v1550_v54 = vpop.xlane.xlu0 %1549 }
 0x528   : > { %2720 = vpow2.f32 %v1587_v62  ;;  %v1575_v0 = vsub.f32 %v2398_v36, %v1550_v54  ;;  %v1696_v62 = vpack.c.bf16 %v341_v37, %v340_v19 }
 0x52a   : > { %v3525_v63 = vpop.eup %2716  ;;  %v1597_v14 = vmul.f32 1.442695, %v1575_v0 }
 0x52b   : > { %1617 = vadd.xlane.f32.xlu0 %v3525_v63  ;;  %v1546_v59 = vpop.xlane.xlu0 %1545 }
 0x52c   : > { %2722 = vpow2.f32 %v1597_v14  ;;  %v1573_v1 = vsub.f32 %v1490_v15, %v1546_v59  ;;  %v1693_v15 = vpack.c.bf16 %v335_v41, %v334_v33 }
 0x52e   : > { %v3528_v42 = vpop.eup %2718  ;;  %v1593_v17 = vmul.f32 1.442695, %v1573_v1  ;;  %2416 = vmatprep.subr.bf16.mxu0 %v1693_v15 }
 0x52f   : > { %1623 = vadd.xlane.f32.xlu0 %v3528_v42  ;;  %v1552_v16 = vpop.xlane.xlu0 %1551  ;;  %2417 = vmatpush3.bf16.msra.mxu0 %v1693_v15 }
 0x530   : > { %2724 = vpow2.f32 %v1593_v17  ;;  %v1576_v30 = vsub.f32 %v2399_v25, %v1552_v16 }
 0x532   : > { %v3531_v44 = vpop.eup %2720  ;;  %v1599_v60 = vmul.f32 1.442695, %v1576_v30 }
 0x533   : > { %1619 = vadd.xlane.f32.xlu0 %v3531_v44  ;;  %v1548_v58 = vpop.xlane.xlu0 %1547 }
 0x534   : > { %2726 = vpow2.f32 %v1599_v60  ;;  %v1574_v18 = vsub.f32 %v3493_v35, %v1548_v58 }
 0x536   : > { %v3537_v5 = vpop.eup %2722  ;;  %v1595_v38 = vmul.f32 1.442695, %v1574_v18 }
 0x537   : > { %1629 = vadd.xlane.f32.xlu0 %v3537_v5  ;;  %v1558_v49 = vpop.xlane.xlu0 %1557 }
 0x538   : > { %2728 = vpow2.f32 %v1595_v38  ;;  %v1579_v27 = vsub.f32 %v3495_v43, %v1558_v49 }
 0x53a   : > { %v3543_v55 = vpop.eup %2724  ;;  %v1605_v50 = vmul.f32 1.442695, %v1579_v27 }
 0x53b   : > { %1625 = vadd.xlane.f32.xlu0 %v3543_v55  ;;  %v1554_v2 = vpop.xlane.xlu0 %1553 }
 0x53c   : > { %2730 = vpow2.f32 %v1605_v50  ;;  %v1577_v53 = vsub.f32 %v3497_v56, %v1554_v2  ;;  %v336_v56 = vld [vmem:[%s2831_s23 + $0x2d0] sm:$0xff] }
 0x53d   : > { %v1694_v48 = vpack.c.bf16 %v337_v4, %v336_v56 }
 0x53e   : > { %v3549_v24 = vpop.eup %2726  ;;  %v1601_v8 = vmul.f32 1.442695, %v1577_v53 }
 0x53f   : > { %1631 = vadd.xlane.f32.xlu0 %v3549_v24  ;;  %v1560_v23 = vpop.xlane.xlu0 %1559  ;;  %2418 = vmatprep.subr.bf16.mxu0 %v1694_v48 }
 0x540   : > { %2732 = vpow2.f32 %v1601_v8  ;;  %v1580_v36 = vsub.f32 %v3499_v12, %v1560_v23  ;;  %2419 = vmatpush3.bf16.msra.mxu0 %v1694_v48 }
 0x541   : > { %2420 = vmatprep.subr.bf16.mxu0 %v1695_v13 }
 0x542   : > { %v3555_v25 = vpop.eup %2728  ;;  %v1607_v35 = vmul.f32 1.442695, %v1580_v36 }
 0x543   : > { %1627 = vadd.xlane.f32.xlu0 %v3555_v25  ;;  %v1556_v43 = vpop.xlane.xlu0 %1555 }
 0x544   : > { %2734 = vpow2.f32 %v1607_v35  ;;  %v1578_v31 = vsub.f32 %v3501_v45, %v1556_v43  ;;  %2421 = vmatpush3.bf16.msra.mxu0 %v1695_v13 }
 0x545   : > { %2422 = vmatprep.subr.bf16.mxu0 %v1696_v62 }
 0x546   : > { %v3561_v61 = vpop.eup %2730  ;;  %v1603_v12 = vmul.f32 1.442695, %v1578_v31 }
 0x547   : > { %1637 = vadd.xlane.f32.xlu0 %v3561_v61  ;;  %v1566_v52 = vpop.xlane.xlu0 %1565 }
 0x548   : > { %2736 = vpow2.f32 %v1603_v12  ;;  %v1583_v11 = vsub.f32 %v3503_v47, %v1566_v52  ;;  %2423 = vmatpush3.bf16.msra.mxu0 %v1696_v62 }
 0x54a   : > { %v3567_v32 = vpop.eup %2732  ;;  %v1613_v45 = vmul.f32 1.442695, %v1583_v11 }
 0x54b   : > { %1633 = vadd.xlane.f32.xlu0 %v3567_v32  ;;  %v1562_v9 = vpop.xlane.xlu0 %1561 }
 0x54c   : > { %2738 = vpow2.f32 %v1613_v45  ;;  %v1581_v20 = vsub.f32 %v3505_v29, %v1562_v9 }
 0x54e   : > { %v3573_v54 = vpop.eup %2734  ;;  %v1609_v0 = vmul.f32 1.442695, %v1581_v20 }
 0x54f   : > { %1639 = vadd.xlane.f32.xlu0 %v3573_v54  ;;  %v1564_v47 = vpop.xlane.xlu0 %1563 }
 0x550   : > { %2740 = vpow2.f32 %v1609_v0  ;;  %v1582_v14 = vsub.f32 %v3509_v34, %v1564_v47 }
 0x552   : > { %v3577_v59 = vpop.eup %2736  ;;  %v1611_v1 = vmul.f32 1.442695, %v1582_v14 }
 0x553   : > { %1635 = vadd.xlane.f32.xlu0 %v3577_v59  ;;  %v1568_v17 = vpop.xlane.xlu0 %1567 }
 0x554   : > { %2742 = vpow2.f32 %v1611_v1  ;;  %v1584_v29 = vsub.f32 %v3507_v40, %v1568_v17  ;;  %v343_v1 = vld [vmem:[%s3702_s2 + $0x4] sm:$0xf] }
 0x555   : > { %2511 = vmatprep.subr.msk.bf16.mxu0 %vm642_vm1, %v343_v1  ;;  %v1827_v17 = vsel %vm642_vm1, %v343_v1, 0 }
 0x556   : > { %v3581_v16 = vpop.eup %2738  ;;  %v1615_v30 = vmul.f32 1.442695, %v1584_v29 }
 0x557   : > { %1645 = vadd.xlane.f32.xlu0 %v3581_v16 }
 0x558   : > { %2744 = vpow2.f32 %v1615_v30 }
 0x55a   : > { %v3584_v60 = vpop.eup %2740 }
 0x55b   : > { %1641 = vadd.xlane.f32.xlu1 %v3584_v60 }
 0x55e   : > { %v3587_v34 = vpop.eup %2742 }
 0x55f   : > { %1643 = vadd.xlane.f32.xlu0 %v3587_v34 }
 0x562   : > { %v3590_v58 = vpop.eup %2744 }
 0x563   : > { %1647 = vadd.xlane.f32.xlu0 %v3590_v58 }
 0x5b4   : > { %v1622_v3 = vpop.xlane.xlu0 %1621 }
 0x5b8   : > { %v1618_v40 = vpop.xlane.xlu0 %1617 }
 0x5bc   : > { %v1624_v51 = vpop.xlane.xlu0 %1623 }
 0x5bd   : > { %2746 = vrcp.f32 %v1624_v51 }
 0x5be   : > { %2748 = vrcp.f32 %v1618_v40 }
 0x5bf   : > { %2750 = vrcp.f32 %v1622_v3 }
 0x5c0   : > { %v1620_v18 = vpop.xlane.xlu0 %1619 }
 0x5c1   : > { %2752 = vrcp.f32 %v1620_v18 }
 0x5c4   : > { %v1630_v28 = vpop.xlane.xlu0 %1629 }
 0x5c7   : > { %v2747_v38 = vpop.eup %2746 }
 0x5c8   : > { %v1626_v49 = vpop.xlane.xlu0 %1625  ;;  %v2749_v26 = vpop.eup %2748  ;;  %v1668_v22 = vmul.f32 %v2747_v38, %v3528_v42 }
 0x5c9   : > { %v2751_v39 = vpop.eup %2750  ;;  %v1665_v2 = vmul.f32 %v2749_v26, %v3525_v63 }
 0x5ca   : > { %v1667_v7 = vmul.f32 %v2751_v39, %v3522_v57 }
 0x5cb   : > { %v2753_v27 = vpop.eup %2752 }
 0x5cc   : > { %v1632_v50 = vpop.xlane.xlu0 %1631  ;;  %v1666_v6 = vmul.f32 %v2753_v27, %v3531_v44  ;;  %v1682_v46 = vpack.c.bf16 %v1668_v22, %v1667_v7 }
 0x5cd   : > { %2754 = vrcp.f32 %v1632_v50 }
 0x5ce   : > { %v1681_v53 = vpack.c.bf16 %v1666_v6, %v1665_v2  ;;  %2756 = vrcp.f32 %v1626_v49 }
 0x5cf   : > { %2758 = vrcp.f32 %v1630_v28 }
 0x5d0   : > { %2424 = vmatprep.mubr.bf16.mxu0 %v1681_v53  ;;  %v1628_v8 = vpop.xlane.xlu0 %1627 }
 0x5d1   : > { %2760 = vrcp.f32 %v1628_v8  ;;  %2425 = vmatmul.mubr.bf16.vlgmr.msra.gmra.mrb[32].mxu0 %v1682_v46 }
 0x5d2   : > { %2441 = vmatpush3.bf16.msra.mxu0 %v1827_v17 }
 0x5d4   : > { %v1638_v23 = vpop.xlane.xlu0 %1637 }
 0x5d7   : > { %v2755_v33 = vpop.eup %2754 }
 0x5d8   : > { %v1634_v41 = vpop.xlane.xlu0 %1633  ;;  %v2757_v42 = vpop.eup %2756  ;;  %v1672_v63 = vmul.f32 %v2755_v33, %v3549_v24 }
 0x5d9   : > { %v2759_v36 = vpop.eup %2758  ;;  %v1669_v57 = vmul.f32 %v2757_v42, %v3543_v55 }
 0x5da   : > { %v1671_v43 = vmul.f32 %v2759_v36, %v3537_v5 }
 0x5db   : > { %v2761_v15 = vpop.eup %2760 }
 0x5dc   : > { %v1640_v44 = vpop.xlane.xlu0 %1639  ;;  %v1670_v35 = vmul.f32 %v2761_v15, %v3555_v25  ;;  %v1684_v4 = vpack.c.bf16 %v1672_v63, %v1671_v43 }
 0x5dd   : > { %2762 = vrcp.f32 %v1640_v44 }
 0x5de   : > { %v1683_v56 = vpack.c.bf16 %v1670_v35, %v1669_v57  ;;  %2764 = vrcp.f32 %v1634_v41  ;;  %v2200_v41 = vld [vmem:[%s3703_s3] ss:$0 sm:$0xff] }
 0x5df   : > { %2766 = vrcp.f32 %v1638_v23  ;;  %v1966_v23 = vld [vmem:[%s3704_s4] sm:$0xf] }
 0x5e0   : > { %2428 = vmatprep.mubr.bf16.mxu0 %v1683_v56  ;;  %v1636_v31 = vpop.xlane.xlu0 %1635  ;;  %2512 = vmatprep.subr.msk.bf16.mxu1 %vm642_vm1, %v1966_v23  ;;  %v1992_v33 = vsel %vm642_vm1, %v1966_v23, 0 }
 0x5e1   : > { %2768 = vrcp.f32 %v1636_v31  ;;  %2429 = vmatmul.mubr.bf16.gmra.mrb[36].mxu0 %v1684_v4  ;;  %2459 = vmatpush3.bf16.msra.mxu1 %v1992_v33 }
 0x5e4   : > { %v1646_v12 = vpop.xlane.xlu0 %1645 }
 0x5e7   : > { %v2763_v48 = vpop.eup %2762 }
 0x5e8   : > { %v1642_v52 = vpop.xlane.xlu1 %1641  ;;  %v2765_v24 = vpop.eup %2764  ;;  %v1676_v55 = vmul.f32 %v2763_v48, %v3573_v54 }
 0x5e9   : > { %v2767_v10 = vpop.eup %2766  ;;  %2770 = vrcp.f32 %v1642_v52  ;;  %v1673_v5 = vmul.f32 %v2765_v24, %v3567_v32 }
 0x5ea   : > { %v1675_v13 = vmul.f32 %v2767_v10, %v3561_v61 }
 0x5eb   : > { %v2769_v21 = vpop.eup %2768 }
 0x5ec   : > { %v1644_v25 = vpop.xlane.xlu0 %1643  ;;  %v1674_v11 = vmul.f32 %v2769_v21, %v3577_v59  ;;  %v1686_v9 = vpack.c.bf16 %v1676_v55, %v1675_v13 }
 0x5ed   : > { %2772 = vrcp.f32 %v1644_v25 }
 0x5ee   : > { %v1685_v45 = vpack.c.bf16 %v1674_v11, %v1673_v5  ;;  %2774 = vrcp.f32 %v1646_v12 }
 0x5f0   : > { %2432 = vmatprep.mubr.bf16.mxu0 %v1685_v45  ;;  %v1648_v19 = vpop.xlane.xlu0 %1647 }
 0x5f1   : > { %2776 = vrcp.f32 %v1648_v19  ;;  %2433 = vmatmul.mubr.bf16.gmra.mrb[40].mxu0 %v1686_v9 }
 0x5f3   : > { %v2771_v37 = vpop.eup %2770 }
 0x5f4   : > { %v1677_v62 = vmul.f32 %v2771_v37, %v3584_v60 }
 0x5f7   : > { %v2773_v20 = vpop.eup %2772 }
 0x5f8   : > { %v1678_v54 = vmul.f32 %v2773_v20, %v3587_v34  ;;  %v2775_v0 = vpop.eup %2774 }
 0x5f9   : > { %v1679_v14 = vmul.f32 %v2775_v0, %v3581_v16 }
 0x5fa   : > { %v1687_v32 = vpack.c.bf16 %v1678_v54, %v1677_v62 }
 0x5fb   : > { %v2777_v47 = vpop.eup %2776 }
 0x5fc   : > { %2436 = vmatprep.mubr.bf16.mxu0 %v1687_v32  ;;  %v1680_v61 = vmul.f32 %v2777_v47, %v3590_v58 }
 0x5fe   : > { %v1688_v59 = vpack.c.bf16 %v1680_v61, %v1679_v14 }
 0x600   : > { %2437 = vmatmul.mubr.bf16.gmra.mrb[44].mxu0 %v1688_v59 }
 0x6a4   : > { %v2426_v29 = vpop.f32.mrb[32].mxu0 }
 0x6a5   : > { %v1731_v30 = vpop.f32.mrb[33].mxu0 }
 0x6a6   : > { %v2427_v60 = vpop.f32.mrb[34].mxu0 }
 0x6a7   : > { %v1795_v34 = vpack.c.bf16 %v2427_v60, %v2426_v29  ;;  %v1734_v3 = vpop.f32.mrb[35].mxu0 }
 0x6a8   : > { %v1794_v40 = vpack.c.bf16 %v1734_v3, %v1731_v30  ;;  %v1942_v3 = vld [vmem:[%s3642_s10] sm:$0xff] }
 0x6aa   : > { %2442 = vmatprep.mubr.msk.bf16.mxu0 %vm368_vm0, %v1794_v40 }
 0x6ab   : > { %2443 = vmatmul.mubr.msk.bf16.vlgmr.msra.gmra.mrb[16].mxu0 %vm368_vm0, %v1795_v34  ;;  %v1944_v34 = vld [vmem:[%s3642_s10 + $0x10] sm:$0xff] }
 0x6b4   : > { %v2430_v16 = vpop.f32.mrb[36].mxu0 }
 0x6b5   : > { %v1747_v58 = vpop.f32.mrb[37].mxu0 }
 0x6b6   : > { %v2431_v51 = vpop.f32.mrb[38].mxu0 }
 0x6b7   : > { %v1797_v18 = vpack.c.bf16 %v2431_v51, %v2430_v16  ;;  %v1750_v28 = vpop.f32.mrb[39].mxu0  ;;  %v1945_v16 = vld [vmem:[%s3642_s10 + $0x18] sm:$0xff] }
 0x6b8   : > { %v1796_v38 = vpack.c.bf16 %v1750_v28, %v1747_v58 }
 0x6ba   : > { %2446 = vmatprep.mubr.msk.bf16.mxu0 %vm368_vm0, %v1796_v38 }
 0x6bb   : > { %2447 = vmatmul.mubr.msk.bf16.gmra.mrb[20].mxu0 %vm368_vm0, %v1797_v18  ;;  %v1943_v18 = vld [vmem:[%s3642_s10 + $0x8] sm:$0xff] }
 0x6c4   : > { %v2434_v49 = vpop.f32.mrb[40].mxu0 }
 0x6c5   : > { %v1763_v26 = vpop.f32.mrb[41].mxu0 }
 0x6c6   : > { %v2435_v39 = vpop.f32.mrb[42].mxu0 }
 0x6c7   : > { %v1799_v27 = vpack.c.bf16 %v2435_v39, %v2434_v49  ;;  %v1766_v22 = vpop.f32.mrb[43].mxu0 }
 0x6c8   : > { %v1798_v50 = vpack.c.bf16 %v1766_v22, %v1763_v26  ;;  %v1946_v22 = vld [vmem:[%s3642_s10 + $0x20] sm:$0xff] }
 0x6ca   : > { %2450 = vmatprep.mubr.msk.bf16.mxu0 %vm368_vm0, %v1798_v50 }
 0x6cb   : > { %2451 = vmatmul.mubr.msk.bf16.gmra.mrb[24].mxu0 %vm368_vm0, %v1799_v27  ;;  %v1948_v27 = vld [vmem:[%s3642_s10 + $0x30] sm:$0xff] }
 0x6d3   : > { %v2438_v2 = vpop.f32.mrb[44].mxu0 }
 0x6d4   : > { %v1779_v6 = vpop.f32.mrb[45].mxu0 }
 0x6d5   : > { %v2439_v7 = vpop.f32.mrb[46].mxu0 }
 0x6d6   : > { %v1801_v53 = vpack.c.bf16 %v2439_v7, %v2438_v2  ;;  %v1782_v46 = vpop.f32.mrb[47].mxu0  ;;  %v1949_v2 = vld [vmem:[%s3642_s10 + $0x38] sm:$0xff] }
 0x6d7   : > { %v1800_v8 = vpack.c.bf16 %v1782_v46, %v1779_v6 }
 0x6d9   : > { %2454 = vmatprep.mubr.msk.bf16.mxu0 %vm368_vm0, %v1800_v8 }
 0x6da   : > { %2455 = vmatmul.mubr.msk.bf16.gmra.mrb[28].mxu0 %vm368_vm0, %v1801_v53  ;;  %v1947_v53 = vld [vmem:[%s3642_s10 + $0x28] sm:$0xff] }
 0x77e   : > { %v2444_v42 = vpop.f32.mrb[16].mxu0 }
 0x77f   : > { %v1863_v36 = vpop.f32.mrb[17].mxu0  ;;  %v2476_v63 = vadd.f32 %v2444_v42, %v2200_v41  ;;  %v1952_v42 = vld [vmem:[%s3642_s10 + $0x50] sm:$0xff] }
 0x780   : > { %v2445_v15 = vpop.f32.mrb[18].mxu0  ;;  %v2477_v35 = vadd.f32 %v2200_v41, %v1863_v36  ;;  %v1950_v36 = vld [vmem:[%s3642_s10 + $0x40] sm:$0xff] }
 0x781   : > { %v2478_v44 = vadd.f32 %v2445_v15, %v2200_v41  ;;  %v1866_v57 = vpop.f32.mrb[19].mxu0 }
 0x782   : > { %v2479_v43 = vadd.f32 %v2200_v41, %v1866_v57 }
 0x783   : > { %v1959_v56 = vpack.c.bf16 %v2478_v44, %v2476_v63  ;;  %v1953_v63 = vld [vmem:[%s3642_s10 + $0x58] sm:$0xff] }
 0x784   : > { %v1958_v4 = vpack.c.bf16 %v2479_v43, %v2477_v35  ;;  %v1951_v35 = vld [vmem:[%s3642_s10 + $0x48] sm:$0xff] }
 0x786   : > { %2460 = vmatprep.mubr.msk.bf16.mxu1 %vm368_vm0, %v1958_v4 }
 0x787   : > { %2461 = vmatmul.mubr.msk.bf16.vlgmr.msra.gmra.mrb[32].mxu1 %vm368_vm0, %v1959_v56 }
 0x78e   : > { %v2448_v31 = vpop.f32.mrb[20].mxu0 }
 0x78f   : > { %v1879_v48 = vpop.f32.mrb[21].mxu0  ;;  %v2480_v52 = vadd.f32 %v2448_v31, %v2200_v41 }
 0x790   : > { %v2449_v12 = vpop.f32.mrb[22].mxu0  ;;  %v2481_v21 = vadd.f32 %v2200_v41, %v1879_v48 }
 0x791   : > { %v2482_v24 = vadd.f32 %v2449_v12, %v2200_v41  ;;  %v1882_v10 = vpop.f32.mrb[23].mxu0  ;;  %v1956_v12 = vld [vmem:[%s3642_s10 + $0x70] sm:$0xff] }
 0x792   : > { %v2483_v55 = vadd.f32 %v2200_v41, %v1882_v10  ;;  %v1957_v10 = vld [vmem:[%s3642_s10 + $0x78] sm:$0xff] }
 0x793   : > { %v1961_v25 = vpack.c.bf16 %v2482_v24, %v2480_v52  ;;  %v1954_v52 = vld [vmem:[%s3642_s10 + $0x60] sm:$0xff] }
 0x794   : > { %v1960_v5 = vpack.c.bf16 %v2483_v55, %v2481_v21 }
 0x796   : > { %2464 = vmatprep.mubr.msk.bf16.mxu1 %vm368_vm0, %v1960_v5 }
 0x797   : > { %2465 = vmatmul.mubr.msk.bf16.gmra.mrb[36].mxu1 %vm368_vm0, %v1961_v25  ;;  %v1955_v25 = vld [vmem:[%s3642_s10 + $0x68] sm:$0xff] }
 0x79e   : > { %v2452_v11 = vpop.f32.mrb[24].mxu0 }
 0x79f   : > { %v1895_v13 = vpop.f32.mrb[25].mxu0  ;;  %v2484_v9 = vadd.f32 %v2452_v11, %v2200_v41 }
 0x7a0   : > { %v2453_v45 = vpop.f32.mrb[26].mxu0  ;;  %v2485_v20 = vadd.f32 %v2200_v41, %v1895_v13 }
 0x7a1   : > { %v2486_v19 = vadd.f32 %v2453_v45, %v2200_v41  ;;  %v1898_v37 = vpop.f32.mrb[27].mxu0 }
 0x7a2   : > { %v2487_v62 = vadd.f32 %v2200_v41, %v1898_v37 }
 0x7a3   : > { %v1963_v54 = vpack.c.bf16 %v2486_v19, %v2484_v9 }
 0x7a4   : > { %v1962_v0 = vpack.c.bf16 %v2487_v62, %v2485_v20 }
 0x7a6   : > { %2468 = vmatprep.mubr.msk.bf16.mxu1 %vm368_vm0, %v1962_v0 }
 0x7a7   : > { %2469 = vmatmul.mubr.msk.bf16.gmra.mrb[40].mxu1 %vm368_vm0, %v1963_v54 }
 0x7ad   : > { %v2456_v32 = vpop.f32.mrb[28].mxu0 }
 0x7ae   : > { %v1911_v47 = vpop.f32.mrb[29].mxu0  ;;  %v2488_v61 = vadd.f32 %v2456_v32, %v2200_v41 }
 0x7af   : > { %v2457_v14 = vpop.f32.mrb[30].mxu0  ;;  %v2489_v17 = vadd.f32 %v2200_v41, %v1911_v47 }
 0x7b0   : > { %v2490_v59 = vadd.f32 %v2457_v14, %v2200_v41  ;;  %v1914_v1 = vpop.f32.mrb[31].mxu0 }
 0x7b1   : > { %v2491_v29 = vadd.f32 %v2200_v41, %v1914_v1 }
 0x7b2   : > { %v1965_v30 = vpack.c.bf16 %v2490_v59, %v2488_v61 }
 0x7b3   : > { %v1964_v60 = vpack.c.bf16 %v2491_v29, %v2489_v17 }
 0x7b5   : > { %2472 = vmatprep.mubr.msk.bf16.mxu1 %vm368_vm0, %v1964_v60 }
 0x7b6   : > { %2473 = vmatmul.mubr.msk.bf16.gmra.mrb[44].mxu1 %vm368_vm0, %v1965_v30 }
 0x85a   : > { %v2462_v40 = vpop.f32.mrb[32].mxu1 }
 0x85b   : > { %v2093_v58 = vadd.f32 %v2462_v40, %v1944_v34  ;;  %v2028_v51 = vpop.f32.mrb[33].mxu1 }
 0x85c   : > { %v2091_v28 = vadd.f32 %v2028_v51, %v1942_v3  ;;  %v2463_v38 = vpop.f32.mrb[34].mxu1 }
 0x85d   : > { %2109 = vst.msk [vmem:[%s3649_s13 + $0x10] sm:$0xff] %vm368_vm0, %v2093_v58  ;;  %v2094_v49 = vadd.f32 %v2463_v38, %v1945_v16  ;;  %v2031_v26 = vpop.f32.mrb[35].mxu1 }
 0x85e   : > { %2107 = vst.msk [vmem:[%s3649_s13] sm:$0xff] %vm368_vm0, %v2091_v28  ;;  %v2092_v39 = vadd.f32 %v2031_v26, %v1943_v18 }
 0x85f   : > { %2110 = vst.msk [vmem:[%s3649_s13 + $0x18] sm:$0xff] %vm368_vm0, %v2094_v49 }
 0x860   : > { %2108 = vst.msk [vmem:[%s3649_s13 + $0x8] sm:$0xff] %vm368_vm0, %v2092_v39 }
 0x86a   : > { %v2466_v50 = vpop.f32.mrb[36].mxu1 }
 0x86b   : > { %v2097_v6 = vadd.f32 %v2466_v50, %v1948_v27  ;;  %v2044_v7 = vpop.f32.mrb[37].mxu1 }
 0x86c   : > { %v2095_v46 = vadd.f32 %v2044_v7, %v1946_v22  ;;  %v2467_v8 = vpop.f32.mrb[38].mxu1 }
 0x86d   : > { %2113 = vst.msk [vmem:[%s3649_s13 + $0x30] sm:$0xff] %vm368_vm0, %v2097_v6  ;;  %v2098_v23 = vadd.f32 %v2467_v8, %v1949_v2  ;;  %v2047_v33 = vpop.f32.mrb[39].mxu1 }
 0x86e   : > { %2111 = vst.msk [vmem:[%s3649_s13 + $0x20] sm:$0xff] %vm368_vm0, %v2095_v46  ;;  %v2096_v41 = vadd.f32 %v2047_v33, %v1947_v53 }
 0x86f   : > { %2114 = vst.msk [vmem:[%s3649_s13 + $0x38] sm:$0xff] %vm368_vm0, %v2098_v23 }
 0x870   : > { %2112 = vst.msk [vmem:[%s3649_s13 + $0x28] sm:$0xff] %vm368_vm0, %v2096_v41 }
 0x87a   : > { %v2470_v15 = vpop.f32.mrb[40].mxu1 }
 0x87b   : > { %v2101_v44 = vadd.f32 %v2470_v15, %v1952_v42  ;;  %v2060_v57 = vpop.f32.mrb[41].mxu1 }
 0x87c   : > { %v2099_v43 = vadd.f32 %v2060_v57, %v1950_v36  ;;  %v2471_v56 = vpop.f32.mrb[42].mxu1 }
 0x87d   : > { %2117 = vst.msk [vmem:[%s3649_s13 + $0x50] sm:$0xff] %vm368_vm0, %v2101_v44  ;;  %v2102_v4 = vadd.f32 %v2471_v56, %v1953_v63  ;;  %v2063_v31 = vpop.f32.mrb[43].mxu1 }
 0x87e   : > { %2115 = vst.msk [vmem:[%s3649_s13 + $0x40] sm:$0xff] %vm368_vm0, %v2099_v43  ;;  %v2100_v48 = vadd.f32 %v2063_v31, %v1951_v35 }
 0x87f   : > { %2118 = vst.msk [vmem:[%s3649_s13 + $0x58] sm:$0xff] %vm368_vm0, %v2102_v4 }
 0x880   : > { %2116 = vst.msk [vmem:[%s3649_s13 + $0x48] sm:$0xff] %vm368_vm0, %v2100_v48 }
 0x889   : > { %v2474_v24 = vpop.f32.mrb[44].mxu1 }
 0x88a   : > { %v2105_v21 = vadd.f32 %v2474_v24, %v1956_v12  ;;  %v2076_v55 = vpop.f32.mrb[45].mxu1 }
 0x88b   : > { %v2103_v5 = vadd.f32 %v2076_v55, %v1954_v52  ;;  %v2475_v11 = vpop.f32.mrb[46].mxu1 }
 0x88c   : > { %2121 = vst.msk [vmem:[%s3649_s13 + $0x70] sm:$0xff] %vm368_vm0, %v2105_v21  ;;  %v2106_v13 = vadd.f32 %v2475_v11, %v1957_v10  ;;  %v2079_v45 = vpop.f32.mrb[47].mxu1 }
 0x88d   : > { %2119 = vst.msk [vmem:[%s3649_s13 + $0x60] sm:$0xff] %vm368_vm0, %v2103_v5  ;;  %v2104_v9 = vadd.f32 %v2079_v45, %v1955_v25 }
 0x88e   : > { %2122 = vst.msk [vmem:[%s3649_s13 + $0x78] sm:$0xff] %vm368_vm0, %v2106_v13 }
 0x88f   : > { %2120 = vst.msk [vmem:[%s3649_s13 + $0x68] sm:$0xff] %vm368_vm0, %v2104_v9 }
 0x890 PF: > { %s15_s18 = sadd.s32 1, %s2785_s18  }
 0x891   : > { %p12_p4 = scmp.ge.s32.totalorder %s15_s18, 4  }
 0x893   :  { %14 = sbr.rel (!%p12_p4) target bundleno = 1 (0x1), region = 73 }

// kernel: hpb_forward.5
= control target key start
LH: loop header
LB: loop body
LE: loop exit
PB: predicated region body
PF: predicated region fallthrough
CT: control target
= control target key end

     0   :  { %s2593_s24 = smov 0   ;;  %s4361_s0 = inlined_call_operand.vmem [shape: f32[2,128,8], index: 0, kind: input, shape index: {}]   ;;  %s4362_s1 = inlined_call_operand.vmem [shape: bf16[8,32], index: 1, kind: input, shape index: {}]   ;;  %s4363_s2 = inlined_call_operand.vmem [shape: f32[1,32], index: 2, kind: input, shape index: {}]   ;;  %s4364_s3 = inlined_call_operand.vmem [shape: f32[3,3,32], index: 3, kind: input, shape index: {}]   ;;  %s4365_s4 = inlined_call_operand.vmem [shape: f32[1,32], index: 4, kind: input, shape index: {}]   ;;  %s4366_s5 = inlined_call_operand.vmem [shape: bf16[32,8], index: 5, kind: input, shape index: {}]   ;;  %s4367_s6 = inlined_call_operand.vmem [shape: f32[1,8], index: 6, kind: input, shape index: {}]   ;;  %s4368_s7 = inlined_call_operand.vmem [shape: f32[2,8,128], index: 7, kind: output, shape index: {}]  }
   0x1 LB: > { %s2344_s25 = sadd.s32 4294967295, %s2550_s24   ;;  %p2348_p0 = scmp.ge.s32.totalorder %s2550_s24, 1  ;;  %s2550_s24 = sphi %s2593_s24, %s17_s24  }
   0x2   : > { %p237_p1 = scmp.lt.s32.totalorder %s2550_s24, 3 }
   0x4   : > { %p238_p2 = pnand %p2348_p0, %p237_p1 }
   0x6   : > { %241 = sbr.rel (%p238_p2) target bundleno = 1127 (0x467), region = 48 }
   0xd   : > { %v302_v0 = vld [vmem:[%s4362_s1] sm:$0xf]  ;;  %vm335_vm0 = vcmask 1043456   ;;  %p268_p3 = scmp.lt.s32.totalorder %s2344_s25, 1  ;;  %vm310_vm1 = vcmask 64512   ;;  %vm436_vm2 = vcmask 261120  }
   0xe   : > { %2433 = vmatprep.subr.msk.bf16.mxu0 %vm335_vm0, %v302_v0  ;;  %v337_v1 = vsel %vm335_vm0, %v302_v0, 0  ;;  %v2639_v26 = vld [vmem:[%s4363_s2] ss:$0 sm:$0xff]  ;;  %vm645_vm3 = vcmask 254976   ;;  %v2552_v63 = vmov 0.0   ;;  %vm841_vm4 = vcmask 1046528  }
   0xf   : > { %2396 = vmatpush3.bf16.msra.mxu0 %v337_v1  ;;  %s4697_s25 = smov (!%p268_p3, %s2344_s25), 1  ;;  %651 = vst.msk [vmem:[#allocation2 + $0x30] sm:$0xff] %vm436_vm2, %v2552_v63  ;;  %653 = vst.msk [vmem:[#allocation2 + $0x40] sm:$0xff] %vm436_vm2, %v2552_v63  ;;  %vm990_vm5 = vcmask 1045504  }
  0x10   : > { %s2375_s28 = sshll.u32 %s4697_s25, 7  ;;  %652 = vst.msk [vmem:[#allocation2 + $0x38] sm:$0x3] %vm645_vm3, %v2552_v63  ;;  %654 = vst.msk [vmem:[#allocation2 + $0x48] sm:$0x3] %vm645_vm3, %v2552_v63  ;;  %s2351_s29 = sshll.u32 %s4697_s25, 3 }
  0x11   : > { %s2610_s8 = scalar_lea.vmem %s4361_s0, %s2375_s28  ;;  %655 = vst.msk [vmem:[#allocation2 + $0x50] sm:$0xff] %vm436_vm2, %v2552_v63  ;;  %657 = vst.msk [vmem:[#allocation2 + $0x60] sm:$0xff] %vm436_vm2, %v2552_v63  ;;  %s276_s9 = scalar_lea.vmem %s4368_s7, %s2351_s29 }
  0x12   : > { %v278_v2 = vld [vmem:[%s2610_s8] sm:$0xff]  ;;  %v279_v3 = vld [vmem:[%s2610_s8 + $0x8] sm:$0xff]  ;;  %v280_v4 = vld [vmem:[%s2610_s8 + $0x10] sm:$0xff]  ;;  %656 = vst.msk [vmem:[#allocation2 + $0x58] sm:$0x3] %vm645_vm3, %v2552_v63 }
  0x13   : > { %v294_v5 = vpack.c.bf16 %v279_v3, %v278_v2  ;;  %v281_v6 = vld [vmem:[%s2610_s8 + $0x18] sm:$0xff]  ;;  %v282_v7 = vld [vmem:[%s2610_s8 + $0x20] sm:$0xff]  ;;  %v283_v8 = vld [vmem:[%s2610_s8 + $0x28] sm:$0xff]  ;;  %658 = vst.msk [vmem:[#allocation2 + $0x68] sm:$0x3] %vm645_vm3, %v2552_v63 }
  0x14   : > { %v295_v9 = vpack.c.bf16 %v281_v6, %v280_v4  ;;  %v296_v10 = vpack.c.bf16 %v283_v8, %v282_v7  ;;  %v284_v11 = vld [vmem:[%s2610_s8 + $0x30] sm:$0xff]  ;;  %v285_v12 = vld [vmem:[%s2610_s8 + $0x38] sm:$0xff]  ;;  %v286_v13 = vld [vmem:[%s2610_s8 + $0x40] sm:$0xff]  ;;  %659 = vst.msk [vmem:[#allocation2 + $0x70] sm:$0xff] %vm436_vm2, %v2552_v63 }
  0x15   : > { %2397 = vmatprep.mubr.msk.bf16.mxu0 %vm310_vm1, %v294_v5  ;;  %v287_v14 = vld [vmem:[%s2610_s8 + $0x48] sm:$0xff]  ;;  %v297_v15 = vpack.c.bf16 %v285_v12, %v284_v11  ;;  %v288_v17 = vld [vmem:[%s2610_s8 + $0x50] sm:$0xff]  ;;  %v289_v18 = vld [vmem:[%s2610_s8 + $0x58] sm:$0xff]  ;;  %660 = vst.msk [vmem:[#allocation2 + $0x78] sm:$0x3] %vm645_vm3, %v2552_v63 }
  0x16   : > { %2398 = vmatmul.mubr.msk.bf16.vlgmr.msra.gmra.mrb[0].mxu0 %vm310_vm1, %v295_v9  ;;  %v298_v16 = vpack.c.bf16 %v287_v14, %v286_v13  ;;  %v290_v19 = vld [vmem:[%s2610_s8 + $0x60] sm:$0xff]  ;;  %v291_v20 = vld [vmem:[%s2610_s8 + $0x68] sm:$0xff]  ;;  %v299_v21 = vpack.c.bf16 %v289_v18, %v288_v17  ;;  %v292_v23 = vld [vmem:[%s2610_s8 + $0x70] sm:$0xff]  ;;  %661 = vst.msk [vmem:[#allocation2 + $0x80] sm:$0xff] %vm436_vm2, %v2552_v63 }
  0x17   : > { %2401 = vmatprep.mubr.msk.bf16.mxu0 %vm310_vm1, %v296_v10  ;;  %v300_v22 = vpack.c.bf16 %v291_v20, %v290_v19  ;;  %v293_v24 = vld [vmem:[%s2610_s8 + $0x78] sm:$0xff]  ;;  %662 = vst.msk [vmem:[#allocation2 + $0x88] sm:$0x3] %vm645_vm3, %v2552_v63  ;;  %664 = vst.msk [vmem:[#allocation2 + $0x98] sm:$0x3] %vm645_vm3, %v2552_v63 }
  0x18   : > { %v301_v25 = vpack.c.bf16 %v293_v24, %v292_v23  ;;  %663 = vst.msk [vmem:[#allocation2 + $0x90] sm:$0xff] %vm436_vm2, %v2552_v63  ;;  %665 = vst.msk [vmem:[#allocation2 + $0xa0] sm:$0xff] %vm436_vm2, %v2552_v63 }
  0x19   : > { %666 = vst.msk [vmem:[#allocation2 + $0xa8] sm:$0x3] %vm645_vm3, %v2552_v63  ;;  %668 = vst.msk [vmem:[#allocation2 + $0xb8] sm:$0x3] %vm645_vm3, %v2552_v63 }
  0x1a   : > { %667 = vst.msk [vmem:[#allocation2 + $0xb0] sm:$0xff] %vm436_vm2, %v2552_v63  ;;  %669 = vst.msk [vmem:[#allocation2 + $0xc0] sm:$0xff] %vm436_vm2, %v2552_v63 }
  0x1b   : > { %670 = vst.msk [vmem:[#allocation2 + $0xc8] sm:$0x3] %vm645_vm3, %v2552_v63  ;;  %672 = vst.msk [vmem:[#allocation2 + $0xd8] sm:$0x3] %vm645_vm3, %v2552_v63 }
  0x1c   : > { %671 = vst.msk [vmem:[#allocation2 + $0xd0] sm:$0xff] %vm436_vm2, %v2552_v63  ;;  %673 = vst.msk [vmem:[#allocation2 + $0xe0] sm:$0xff] %vm436_vm2, %v2552_v63 }
  0x1d   : > { %674 = vst.msk [vmem:[#allocation2 + $0xe8] sm:$0x3] %vm645_vm3, %v2552_v63  ;;  %676 = vst.msk [vmem:[#allocation2 + $0xf8] sm:$0x3] %vm645_vm3, %v2552_v63 }
  0x1e   : > { %2402 = vmatmul.mubr.msk.bf16.gmra.mrb[4].mxu0 %vm310_vm1, %v297_v15  ;;  %675 = vst.msk [vmem:[#allocation2 + $0xf0] sm:$0xff] %vm436_vm2, %v2552_v63  ;;  %677 = vst.msk [vmem:[#allocation2 + $0x100] sm:$0xff] %vm436_vm2, %v2552_v63 }
  0x1f   : > { %2405 = vmatprep.mubr.msk.bf16.mxu0 %vm310_vm1, %v298_v16  ;;  %678 = vst.msk [vmem:[#allocation2 + $0x108] sm:$0x3] %vm645_vm3, %v2552_v63  ;;  %646 = vst.msk [vmem:[#allocation2 + $0x8] sm:$0x3] %vm645_vm3, %v2552_v63 }
  0x20   : > { %644 = vst.msk [vmem:[#allocation2] sm:$0xff] %vm436_vm2, %v2552_v63  ;;  %647 = vst.msk [vmem:[#allocation2 + $0x10] sm:$0xff] %vm436_vm2, %v2552_v63 }
  0x21   : > { %648 = vst.msk [vmem:[#allocation2 + $0x18] sm:$0x3] %vm645_vm3, %v2552_v63  ;;  %650 = vst.msk [vmem:[#allocation2 + $0x28] sm:$0x3] %vm645_vm3, %v2552_v63 }
  0x22   : > { %649 = vst.msk [vmem:[#allocation2 + $0x20] sm:$0xff] %vm436_vm2, %v2552_v63  ;;  %679 = vst.msk [vmem:[#allocation2 + $0x110] sm:$0xff] %vm436_vm2, %v2552_v63 }
  0x23   : > { %680 = vst.msk [vmem:[#allocation2 + $0x118] sm:$0x3] %vm645_vm3, %v2552_v63 }
  0x26   : > { %2406 = vmatmul.mubr.msk.bf16.gmra.mrb[8].mxu0 %vm310_vm1, %v299_v21 }
  0x27   : > { %2409 = vmatprep.mubr.msk.bf16.mxu0 %vm310_vm1, %v300_v22 }
  0x2e   : > { %2410 = vmatmul.mubr.msk.bf16.gmra.mrb[12].mxu0 %vm310_vm1, %v301_v25 }
  0xe9   : > { %v2399_v27 = vpop.f32.mrb[0].mxu0 }
  0xea   : > { %v373_v28 = vpop.f32.mrb[1].mxu0  ;;  %v2645_v32 = vadd.f32 %v2399_v27, %v2639_v26  ;;  %v2443_v27 = vld [vmem:[%s4366_s5] sm:$0xff]  }
  0xeb   : > { %v2642_v29 = vadd.f32 %v2639_v26, %v373_v28  ;;  %v2400_v30 = vpop.f32.mrb[2].mxu0  ;;  %v2444_v28 = vld [vmem:[%s4366_s5 + $0x8] sm:$0xff]   ;;  %2413 = vmatprep.subr.bf16.mxu1 %v2443_v27 }
  0xec   : > { %v376_v31 = vpop.f32.mrb[3].mxu0  ;;  %v2653_v35 = vadd.f32 %v2400_v30, %v2639_v26  ;;  %v440_v38 = vsel %vm436_vm2, %v2645_v32, 0.0  ;;  %2414 = vmatpush3.bf16.msra.mxu1 %v2443_v27 }
  0xed   : > { %v2648_v33 = vadd.f32 %v2639_v26, %v376_v31  ;;  %v437_v34 = vsel %vm436_vm2, %v2642_v29, 0.0  ;;  %2415 = vmatprep.subr.bf16.mxu1 %v2444_v28 }
  0xee   : > { %v442_v42 = vsel %vm436_vm2, %v2653_v35, 0.0 }
  0xef   : > { %v438_v36 = vsel %vm436_vm2, %v2648_v33, 0.0 }
  0xf0   : > { %v439_v37 = vadd.f32 %v438_v36, %v437_v34  ;;  %2416 = vmatpush3.bf16.msra.mxu1 %v2444_v28 }
  0xf1   : > { %v2403_v39 = vpop.f32.mrb[4].mxu0 }
  0xf2   : > { %v441_v40 = vadd.f32 %v440_v38, %v439_v37  ;;  %v389_v41 = vpop.f32.mrb[5].mxu0  ;;  %v2665_v47 = vadd.f32 %v2403_v39, %v2639_v26 }
  0xf3   : > { %v2662_v43 = vadd.f32 %v2639_v26, %v389_v41  ;;  %v2404_v44 = vpop.f32.mrb[6].mxu0 }
  0xf4   : > { %v443_v45 = vadd.f32 %v442_v42, %v441_v40  ;;  %v392_v46 = vpop.f32.mrb[7].mxu0  ;;  %v2673_v51 = vadd.f32 %v2404_v44, %v2639_v26  ;;  %v448_v54 = vsel %vm436_vm2, %v2665_v47, 0.0 }
  0xf5   : > { %v444_v48 = vsel %vm436_vm2, %v2662_v43, 0.0  ;;  %v2670_v49 = vadd.f32 %v2639_v26, %v392_v46 }
  0xf6   : > { %v445_v50 = vadd.f32 %v444_v48, %v443_v45  ;;  %v450_v58 = vsel %vm436_vm2, %v2673_v51, 0.0 }
  0xf7   : > { %v446_v52 = vsel %vm436_vm2, %v2670_v49, 0.0 }
  0xf8   : > { %v447_v53 = vadd.f32 %v446_v52, %v445_v50 }
  0xf9   : > { %v2407_v55 = vpop.f32.mrb[8].mxu0 }
  0xfa   : > { %v449_v56 = vadd.f32 %v448_v54, %v447_v53  ;;  %v405_v57 = vpop.f32.mrb[9].mxu0  ;;  %v414_v0 = vadd.f32 %v2407_v55, %v2639_v26 }
  0xfb   : > { %v2682_v59 = vadd.f32 %v2639_v26, %v405_v57  ;;  %v2408_v60 = vpop.f32.mrb[10].mxu0 }
  0xfc   : > { %v451_v61 = vadd.f32 %v450_v58, %v449_v56  ;;  %v408_v62 = vpop.f32.mrb[11].mxu0  ;;  %v417_v4 = vadd.f32 %v2408_v60, %v2639_v26  ;;  %v456_v7 = vsel %vm436_vm2, %v414_v0, 0.0 }
  0xfd   : > { %v452_v1 = vsel %vm436_vm2, %v2682_v59, 0.0  ;;  %v409_v2 = vadd.f32 %v2639_v26, %v408_v62 }
  0xfe   : > { %v453_v3 = vadd.f32 %v452_v1, %v451_v61  ;;  %v458_v11 = vsel %vm436_vm2, %v417_v4, 0.0 }
  0xff   : > { %v454_v5 = vsel %vm436_vm2, %v409_v2, 0.0 }
 0x100   : > { %v455_v6 = vadd.f32 %v454_v5, %v453_v3 }
 0x101   : > { %v2411_v8 = vpop.f32.mrb[12].mxu0 }
 0x102   : > { %v457_v9 = vadd.f32 %v456_v7, %v455_v6  ;;  %v421_v10 = vpop.f32.mrb[13].mxu0  ;;  %v430_v16 = vadd.f32 %v2411_v8, %v2639_v26 }
 0x103   : > { %v422_v12 = vadd.f32 %v2639_v26, %v421_v10  ;;  %v2412_v13 = vpop.f32.mrb[14].mxu0 }
 0x104   : > { %v459_v14 = vadd.f32 %v458_v11, %v457_v9  ;;  %v424_v15 = vpop.f32.mrb[15].mxu0  ;;  %v433_v20 = vadd.f32 %v2412_v13, %v2639_v26  ;;  %v464_v23 = vsel %vm436_vm2, %v430_v16, 0.0 }
 0x105   : > { %v460_v17 = vsel %vm436_vm2, %v422_v12, 0.0  ;;  %v425_v18 = vadd.f32 %v2639_v26, %v424_v15 }
 0x106   : > { %v461_v19 = vadd.f32 %v460_v17, %v459_v14  ;;  %v466_v25 = vsel %vm436_vm2, %v433_v20, 0.0 }
 0x107   : > { %v462_v21 = vsel %vm436_vm2, %v425_v18, 0.0 }
 0x108   : > { %v463_v22 = vadd.f32 %v462_v21, %v461_v19 }
 0x10a   : > { %v465_v24 = vadd.f32 %v464_v23, %v463_v22 }
 0x10c   : > { %v467_v30 = vadd.f32 %v466_v25, %v465_v24 }
 0x10e   : > { %v468_v31 = vrot.slane %v467_v30, 4 }
 0x110   : > { %v469_v26 = vadd.f32 %v468_v31, %v467_v30 }
 0x112   : > { %v470_v34 = vrot.slane %v469_v26, 2 }
 0x114   : > { %v471_v36 = vadd.f32 %v470_v34, %v469_v26 }
 0x116   : > { %v472_v37 = vrot.slane %v471_v36, 1 }
 0x118   : > { %v473_v38 = vadd.f32 %v472_v37, %v471_v36 }
 0x11a   : > { %v475_v39 = vmul.f32 0.0078125, %v473_v38 }
 0x11c   : > { %v2743_v40 = vsub.f32 %v2642_v29, %v475_v39  ;;  %v2746_v41 = vsub.f32 %v2648_v33, %v475_v39  ;;  %v2749_v42 = vsub.f32 %v2645_v32, %v475_v39  ;;  %v2752_v44 = vsub.f32 %v2653_v35, %v475_v39 }
 0x11d   : > { %v2755_v45 = vsub.f32 %v2662_v43, %v475_v39  ;;  %v2758_v46 = vsub.f32 %v2670_v49, %v475_v39  ;;  %v2761_v48 = vsub.f32 %v2665_v47, %v475_v39  ;;  %v2764_v29 = vsub.f32 %v2673_v51, %v475_v39 }
 0x11e   : > { %v2767_v33 = vsub.f32 %v2682_v59, %v475_v39  ;;  %v2769_v32 = vsub.f32 %v409_v2, %v475_v39  ;;  %v2771_v50 = vsub.f32 %v414_v0, %v475_v39  ;;  %v2773_v35 = vsub.f32 %v417_v4, %v475_v39 }
 0x11f   : > { %v2775_v43 = vsub.f32 %v422_v12, %v475_v39  ;;  %v2777_v52 = vsub.f32 %v425_v18, %v475_v39  ;;  %v2779_v49 = vsub.f32 %v430_v16, %v475_v39  ;;  %v2781_v47 = vsub.f32 %v433_v20, %v475_v39 }
 0x120   : > { %v492_v51 = vmul.f32 %v2743_v40, %v2743_v40  ;;  %v493_v53 = vmul.f32 %v2746_v41, %v2746_v41  ;;  %v494_v54 = vmul.f32 %v2749_v42, %v2749_v42  ;;  %v495_v55 = vmul.f32 %v2752_v44, %v2752_v44 }
 0x121   : > { %v496_v59 = vmul.f32 %v2755_v45, %v2755_v45  ;;  %v497_v62 = vmul.f32 %v2758_v46, %v2758_v46  ;;  %v498_v1 = vmul.f32 %v2761_v48, %v2761_v48  ;;  %v499_v4 = vmul.f32 %v2764_v29, %v2764_v29 }
 0x122   : > { %v508_v56 = vsel %vm436_vm2, %v492_v51, 0.0  ;;  %v509_v57 = vsel %vm436_vm2, %v493_v53, 0.0  ;;  %v511_v60 = vsel %vm436_vm2, %v494_v54, 0.0  ;;  %v513_v63 = vsel %vm436_vm2, %v495_v55, 0.0 }
 0x123   : > { %v510_v58 = vadd.f32 %v509_v57, %v508_v56  ;;  %v515_v2 = vsel %vm436_vm2, %v496_v59, 0.0  ;;  %v517_v5 = vsel %vm436_vm2, %v497_v62, 0.0  ;;  %v500_v7 = vmul.f32 %v2767_v33, %v2767_v33 }
 0x124   : > { %v519_v8 = vsel %vm436_vm2, %v498_v1, 0.0  ;;  %v501_v10 = vmul.f32 %v2769_v32, %v2769_v32  ;;  %v521_v11 = vsel %vm436_vm2, %v499_v4, 0.0  ;;  %v502_v13 = vmul.f32 %v2771_v50, %v2771_v50 }
 0x125   : > { %v512_v61 = vadd.f32 %v511_v60, %v510_v58  ;;  %v523_v14 = vsel %vm436_vm2, %v500_v7, 0.0  ;;  %v503_v16 = vmul.f32 %v2773_v35, %v2773_v35  ;;  %v504_v19 = vmul.f32 %v2775_v43, %v2775_v43 }
 0x126   : > { %v525_v17 = vsel %vm436_vm2, %v501_v10, 0.0  ;;  %v527_v20 = vsel %vm436_vm2, %v502_v13, 0.0  ;;  %v505_v22 = vmul.f32 %v2777_v52, %v2777_v52  ;;  %v506_v25 = vmul.f32 %v2779_v49, %v2779_v49 }
 0x127   : > { %v514_v0 = vadd.f32 %v513_v63, %v512_v61  ;;  %v529_v23 = vsel %vm436_vm2, %v503_v16, 0.0  ;;  %v531_v27 = vsel %vm436_vm2, %v504_v19, 0.0  ;;  %v507_v30 = vmul.f32 %v2781_v47, %v2781_v47 }
 0x128   : > { %v533_v31 = vsel %vm436_vm2, %v505_v22, 0.0  ;;  %v535_v34 = vsel %vm436_vm2, %v506_v25, 0.0 }
 0x129   : > { %v516_v3 = vadd.f32 %v515_v2, %v514_v0  ;;  %v537_v37 = vsel %vm436_vm2, %v507_v30, 0.0 }
 0x12b   : > { %v518_v6 = vadd.f32 %v517_v5, %v516_v3 }
 0x12d   : > { %v520_v9 = vadd.f32 %v519_v8, %v518_v6 }
 0x12f   : > { %v522_v12 = vadd.f32 %v521_v11, %v520_v9 }
 0x131   : > { %v524_v15 = vadd.f32 %v523_v14, %v522_v12 }
 0x133   : > { %v526_v18 = vadd.f32 %v525_v17, %v524_v15 }
 0x135   : > { %v528_v21 = vadd.f32 %v527_v20, %v526_v18 }
 0x137   : > { %v530_v24 = vadd.f32 %v529_v23, %v528_v21 }
 0x139   : > { %v532_v28 = vadd.f32 %v531_v27, %v530_v24 }
 0x13b   : > { %v534_v26 = vadd.f32 %v533_v31, %v532_v28 }
 0x13d   : > { %v536_v36 = vadd.f32 %v535_v34, %v534_v26 }
 0x13f   : > { %v538_v38 = vadd.f32 %v537_v37, %v536_v36 }
 0x141   : > { %v539_v39 = vrot.slane %v538_v38, 4 }
 0x143   : > { %v540_v51 = vadd.f32 %v539_v39, %v538_v38 }
 0x145   : > { %v541_v53 = vrot.slane %v540_v51, 2 }
 0x147   : > { %v542_v54 = vadd.f32 %v541_v53, %v540_v51 }
 0x149   : > { %v543_v55 = vrot.slane %v542_v54, 1 }
 0x14b   : > { %v544_v56 = vadd.f32 %v543_v55, %v542_v54  ;;  %v734_v54 = vld [vmem:[%s4364_s3] sm:$0x7] }
 0x14d   : > { %v545_v57 = vmul.f32 0.0078125, %v544_v56 }
 0x14f   : > { %v546_v58 = vadd.f32 1e-05, %v545_v57 }
 0x151   : > { %2445 = vrsqrt.f32 %v546_v58 }
 0x15b   : > { %v2446_v59 = vpop.eup %2445 }
 0x15c   : > { %v550_v60 = vmul.f32 %v2446_v59, %v2749_v42  ;;  %v551_v61 = vmul.f32 %v2446_v59, %v2752_v44  ;;  %v552_v62 = vmul.f32 %v2446_v59, %v2755_v45  ;;  %v553_v63 = vmul.f32 %v2446_v59, %v2758_v46 }
 0x15d   : > { %v554_v0 = vmul.f32 %v2446_v59, %v2761_v48  ;;  %v2837_v1 = vmul.f32 %v2446_v59, %v2764_v29  ;;  %v2840_v2 = vmul.f32 %v2446_v59, %v2767_v33  ;;  %v2843_v3 = vmul.f32 %v2446_v59, %v2769_v32 }
 0x15e   : > { %v2846_v4 = vmul.f32 %v2446_v59, %v2771_v50  ;;  %v2849_v42 = vmul.f32 %v2446_v59, %v2773_v35  ;;  %v2852_v44 = vmul.f32 %v2446_v59, %v2775_v43  ;;  %v2855_v45 = vmul.f32 %v2446_v59, %v2777_v52 }
 0x15f   : > { %v2858_v46 = vmul.f32 %v2446_v59, %v2779_v49  ;;  %v2861_v48 = vmul.f32 %v2446_v59, %v2781_v47  ;;  %v582_v29 = vmul.f32 0.70710677, %v550_v60  ;;  %v583_v33 = vmul.f32 0.70710677, %v551_v61 }
 0x160   : > { %v584_v32 = vmul.f32 0.70710677, %v552_v62  ;;  %v585_v50 = vmul.f32 0.70710677, %v553_v63  ;;  %v586_v5 = vmul.f32 0.70710677, %v554_v0  ;;  %v737_v47 = vlaneseq }
 0x161   : > { %2447 = verf.f32 %v582_v29  ;;  %v587_v35 = vmul.f32 0.70710677, %v2837_v1  ;;  %v588_v43 = vmul.f32 0.70710677, %v2840_v2  ;;  %v589_v52 = vmul.f32 0.70710677, %v2843_v3 }
 0x162   : > { %2449 = verf.f32 %v583_v33  ;;  %v590_v49 = vmul.f32 0.70710677, %v2846_v4  ;;  %v591_v6 = vmul.f32 0.70710677, %v2849_v42  ;;  %v592_v7 = vmul.f32 0.70710677, %v2852_v44 }
 0x163   : > { %2451 = verf.f32 %v584_v32  ;;  %v2870_v8 = vmul.f32 %v2446_v59, %v2743_v40  ;;  %v593_v9 = vmul.f32 0.70710677, %v2855_v45  ;;  %v2874_v10 = vmul.f32 %v2446_v59, %v2746_v41 }
 0x164   : > { %2453 = verf.f32 %v585_v50  ;;  %v594_v11 = vmul.f32 0.70710677, %v2858_v46  ;;  %v2877_v12 = vshrl.u32 %v737_v47, 7  ;;  %v595_v13 = vmul.f32 0.70710677, %v2861_v48 }
 0x165   : > { %2455 = verf.f32 %v586_v5  ;;  %v580_v15 = vmul.f32 0.70710677, %v2870_v8  ;;  %v566_v16 = vmul.f32 0.5, %v550_v60  ;;  %v581_v18 = vmul.f32 0.70710677, %v2874_v10 }
 0x166   : > { %2457 = verf.f32 %v587_v35  ;;  %v567_v19 = vmul.f32 0.5, %v551_v61  ;;  %v2883_v21 = vsub.s32 1, %v2877_v12  ;;  %v568_v23 = vmul.f32 0.5, %v552_v62  ;;  %v698_v35 = vld [vmem:[#allocation2] sm:$0xff] }
 0x167   : > { %2459 = verf.f32 %v588_v43  ;;  %v569_v28 = vmul.f32 0.5, %v553_v63  ;;  %v570_v34 = vmul.f32 0.5, %v554_v0  ;;  %v571_v39 = vmul.f32 0.5, %v2837_v1 }
 0x168   : > { %2461 = verf.f32 %v589_v52  ;;  %v572_v56 = vmul.f32 0.5, %v2840_v2  ;;  %v2907_v59 = vsub.s32 2, %v2877_v12  ;;  %v573_v61 = vmul.f32 0.5, %v2843_v3 }
 0x169   : > { %2463 = verf.f32 %v590_v49  ;;  %v574_v1 = vmul.f32 0.5, %v2846_v4  ;;  %v2920_v33 = vrot.slane %v734_v54, %v2883_v21  ;;  %v575_v3 = vmul.f32 0.5, %v2849_v42  ;;  %v699_v42 = vld [vmem:[#allocation2 + $0x8] sm:$0x3] }
 0x16a   : > { %2465 = verf.f32 %v591_v6  ;;  %4481 = vst [vmem:[#allocation8_spill] sm:$0xff] %v2907_v59  ;;  %v576_v43 = vmul.f32 0.5, %v2852_v44  ;;  %v2933_v47 = vrot.slane %v734_v54, %v2907_v59  ;;  %v739_v44 = vsub.s32 0, %v2877_v12 }
 0x16b   : > { %v2448_v14 = vpop.eup %2447  ;;  %2467 = verf.f32 %v592_v7  ;;  %v577_v7 = vmul.f32 0.5, %v2855_v45  ;;  %v778_v12 = vmul.f32 %v2920_v33, %v699_v42 }
 0x16c   : > { %v2450_v40 = vpop.eup %2449  ;;  %2469 = verf.f32 %v593_v9  ;;  %v614_v17 = vadd.f32 1.0, %v2448_v14  ;;  %v578_v14 = vmul.f32 0.5, %v2858_v46 }
 0x16d   : > { %v2452_v41 = vpop.eup %2451  ;;  %2471 = verf.f32 %v594_v11  ;;  %v615_v20 = vadd.f32 1.0, %v2450_v40 }
 0x16e   : > { %v2454_v22 = vpop.eup %2453  ;;  %2473 = verf.f32 %v595_v13  ;;  %v616_v24 = vadd.f32 1.0, %v2452_v41  ;;  %v2885_v25 = vmul.f32 %v614_v17, %v566_v16  ;;  %v777_v16 = vmul.f32 %v2920_v33, %v698_v35 }
 0x16f   : > { %v2456_v27 = vpop.eup %2455  ;;  %v617_v30 = vadd.f32 1.0, %v2454_v22  ;;  %v2887_v31 = vmul.f32 %v615_v20, %v567_v19  ;;  %2475 = verf.f32 %v580_v15  ;;  %v579_v17 = vmul.f32 0.5, %v2861_v48 }
 0x170   : > { %4476 = vst [vmem:[#allocation3_spill] sm:$0xff] %v2885_v25  ;;  %v2458_v26 = vpop.eup %2457  ;;  %v618_v36 = vadd.f32 1.0, %v2456_v27  ;;  %v2889_v37 = vmul.f32 %v616_v24, %v568_v23  ;;  %684 = vst.msk [vmem:[#allocation2 + $0x31] sm:$0xff] %vm436_vm2, %v2885_v25  ;;  %2477 = verf.f32 %v581_v18  ;;  %v564_v20 = vmul.f32 0.5, %v2870_v8 }
 0x171   : > { %4477 = vst [vmem:[#allocation4_spill] sm:$0xff] %v2887_v31  ;;  %v2460_v38 = vpop.eup %2459  ;;  %v619_v51 = vadd.f32 1.0, %v2458_v26  ;;  %v2894_v53 = vmul.f32 %v617_v30, %v569_v28  ;;  %685 = vst.msk [vmem:[#allocation2 + $0x41] sm:$0xff] %vm436_vm2, %v2887_v31  ;;  %v565_v48 = vmul.f32 0.5, %v2874_v10  ;;  %v2967_v28 = vrot.slane %v734_v54, %v739_v44  ;;  %v736_v54 = vld [vmem:[%s4364_s3 + $0x8] sm:$0x7] }
 0x172   : > { %4478 = vst [vmem:[#allocation5_spill] sm:$0xff] %v2889_v37  ;;  %v2462_v55 = vpop.eup %2461  ;;  %v620_v57 = vadd.f32 1.0, %v2460_v38  ;;  %v2902_v58 = vmul.f32 %v618_v36, %v570_v34  ;;  %686 = vst.msk [vmem:[#allocation2 + $0x51] sm:$0xff] %vm436_vm2, %v2889_v37  ;;  %v842_v30 = vrot.slane %v777_v16, 1  ;;  %v843_v26 = vrot.slane %v778_v12, 1 }
 0x173   : > { %4479 = vst [vmem:[#allocation6_spill] sm:$0xff] %v2894_v53  ;;  %v2464_v60 = vpop.eup %2463  ;;  %v621_v62 = vadd.f32 1.0, %v2462_v55  ;;  %v2910_v63 = vmul.f32 %v619_v51, %v571_v39  ;;  %687 = vst.msk [vmem:[#allocation2 + $0x61] sm:$0xff] %vm436_vm2, %v2894_v53  ;;  %v926_v34 = vmul.f32 %v2933_v47, %v698_v35  ;;  %v927_v36 = vmul.f32 %v2933_v47, %v699_v42 }
 0x174   : > { %4480 = vst [vmem:[#allocation7_spill] sm:$0xff] %v2902_v58  ;;  %v2466_v0 = vpop.eup %2465  ;;  %v622_v2 = vadd.f32 1.0, %v2464_v60  ;;  %v2915_v29 = vmul.f32 %v620_v57, %v572_v56  ;;  %688 = vst.msk [vmem:[#allocation2 + $0x71] sm:$0xff] %vm436_vm2, %v2902_v58  ;;  %v741_v10 = vmul.f32 %v2967_v28, %v698_v35  ;;  %v844_v38 = vsel %vm841_vm4, %v842_v30, %v843_v26  ;;  %v735_v56 = vld [vmem:[%s4364_s3 + $0x4] sm:$0x7] }
 0x175   : > { %4482 = vst [vmem:[#allocation9_spill] sm:$0xff] %v2910_v63  ;;  %v2468_v32 = vpop.eup %2467  ;;  %v623_v50 = vadd.f32 1.0, %v2466_v0  ;;  %v2923_v5 = vmul.f32 %v621_v62, %v573_v61  ;;  %689 = vst.msk [vmem:[#allocation2 + $0x81] sm:$0xff] %vm436_vm2, %v2910_v63  ;;  %v991_v39 = vrot.slane %v926_v34, 2  ;;  %v992_v51 = vrot.slane %v927_v36, 2  ;;  %v732_v61 = vld [vmem:[#allocation2 + $0x110] sm:$0xff] }
 0x176   : > { %4483 = vst [vmem:[#allocation10_spill] sm:$0xff] %v2915_v29  ;;  %v2470_v4 = vpop.eup %2469  ;;  %v624_v52 = vadd.f32 1.0, %v2468_v32  ;;  %v2928_v49 = vmul.f32 %v622_v2, %v574_v1  ;;  %690 = vst.msk [vmem:[#allocation2 + $0x91] sm:$0xff] %vm436_vm2, %v2915_v29  ;;  %v906_v55 = vadd.f32 %v844_v38, %v741_v10  ;;  %v733_v62 = vld [vmem:[#allocation2 + $0x118] sm:$0x3]  ;;  %v2996_v32 = vrot.slane %v736_v54, %v739_v44 }
 0x177   : > { %4484 = vst [vmem:[#allocation11_spill] sm:$0xff] %v2923_v5  ;;  %v2472_v6 = vpop.eup %2471  ;;  %v625_v9 = vadd.f32 1.0, %v2470_v4  ;;  %v2936_v11 = vmul.f32 %v623_v50, %v575_v3  ;;  %691 = vst.msk [vmem:[#allocation2 + $0xa1] sm:$0xff] %vm436_vm2, %v2923_v5  ;;  %v993_v57 = vsel %vm990_vm5, %v991_v39, %v992_v51  ;;  %v2988_v60 = vld [vmem:[#allocation2 + $0x30] sm:$0xff]  ;;  %v2990_v0 = vld [vmem:[#allocation2 + $0x38] sm:$0x3]  ;;  %v2999_v3 = vrot.slane %v736_v54, %v2883_v21 }
 0x178   : > { %4485 = vst [vmem:[#allocation12_spill] sm:$0xff] %v2928_v49  ;;  %v2474_v13 = vpop.eup %2473  ;;  %v626_v15 = vadd.f32 1.0, %v2472_v6  ;;  %v2942_v40 = vmul.f32 %v624_v52, %v576_v43  ;;  %692 = vst.msk [vmem:[#allocation2 + $0xb1] sm:$0xff] %vm436_vm2, %v2928_v49  ;;  %v2992_v1 = vld [vmem:[#allocation2 + $0x40] sm:$0xff]  ;;  %v3002_v50 = vrot.slane %v735_v56, %v2883_v21  ;;  %v3004_v35 = vld [vmem:[#allocation2 + $0x48] sm:$0x3]  ;;  %v3010_v52 = vadd.f32 %v993_v57, %v906_v55 }
 0x179   : > { %4486 = vst [vmem:[#allocation13_spill] sm:$0xff] %v2936_v11  ;;  %v2476_v45 = vpop.eup %2475  ;;  %v627_v18 = vadd.f32 1.0, %v2474_v13  ;;  %v2948_v41 = vmul.f32 %v625_v9, %v577_v7  ;;  %693 = vst.msk [vmem:[#allocation2 + $0xc1] sm:$0xff] %vm436_vm2, %v2936_v11  ;;  %v2994_v2 = vld [vmem:[#allocation2 + $0x50] sm:$0xff]  ;;  %v3012_v42 = vrot.slane %v735_v56, %v739_v44  ;;  %v3015_v6 = vrot.slane %v735_v56, %v2907_v59  ;;  %v3017_v7 = vld [vmem:[#allocation2 + $0x58] sm:$0x3] }
 0x17a   : > { %4487 = vst [vmem:[#allocation14_spill] sm:$0xff] %v2942_v40  ;;  %v2478_v46 = vpop.eup %2477  ;;  %v2953_v19 = vmul.f32 %v626_v15, %v578_v14  ;;  %694 = vst.msk [vmem:[#allocation2 + $0xd1] sm:$0xff] %vm436_vm2, %v2942_v40  ;;  %v612_v22 = vadd.f32 1.0, %v2476_v45  ;;  %v3006_v4 = vld [vmem:[#allocation2 + $0x60] sm:$0xff]  ;;  %v3023_v21 = vmul.f32 %v2967_v28, %v2988_v60  ;;  %v3026_v13 = vmul.f32 %v2996_v32, %v732_v61  ;;  %v3034_v15 = vld [vmem:[#allocation2 + $0x68] sm:$0x3] }
 0x17b   : > { %4488 = vst [vmem:[#allocation15_spill] sm:$0xff] %v2948_v41  ;;  %v2958_v23 = vmul.f32 %v627_v18, %v579_v17  ;;  %695 = vst.msk [vmem:[#allocation2 + $0xe1] sm:$0xff] %vm436_vm2, %v2948_v41  ;;  %v613_v24 = vadd.f32 1.0, %v2478_v46  ;;  %v3008_v43 = vld [vmem:[#allocation2 + $0x70] sm:$0xff]  ;;  %v3029_v14 = vmul.f32 %v2999_v3, %v732_v61  ;;  %v3032_v44 = vmul.f32 %v2999_v3, %v733_v62  ;;  %v3036_v16 = vld [vmem:[#allocation2 + $0x78] sm:$0x3] }
 0x17c   : > { %4489 = vst [vmem:[#allocation16_spill] sm:$0xff] %v2953_v19  ;;  %696 = vst.msk [vmem:[#allocation2 + $0xf1] sm:$0xff] %vm436_vm2, %v2953_v19  ;;  %v2965_v27 = vmul.f32 %v612_v22, %v564_v20  ;;  %v3019_v9 = vld [vmem:[#allocation2 + $0x80] sm:$0xff]  ;;  %v3042_v17 = vmul.f32 %v2967_v28, %v2992_v1  ;;  %v3046_v18 = vmul.f32 %v2967_v28, %v2994_v2  ;;  %v3056_v20 = vld [vmem:[#allocation2 + $0x88] sm:$0x3] }
 0x17d   : > { %4490 = vst [vmem:[#allocation17_spill] sm:$0xff] %v2958_v23  ;;  %697 = vst.msk [vmem:[#allocation2 + $0x101] sm:$0xff] %vm436_vm2, %v2958_v23  ;;  %v2971_v8 = vmul.f32 %v613_v24, %v565_v48  ;;  %v3038_v45 = vld [vmem:[#allocation2 + $0x90] sm:$0xff]  ;;  %v3050_v12 = vmul.f32 %v2920_v33, %v2988_v60  ;;  %v3054_v46 = vmul.f32 %v2920_v33, %v2990_v0  ;;  %v3076_v34 = vld [vmem:[#allocation2 + $0x98] sm:$0x3] }
 0x17e   : > { %4491 = vst [vmem:[#allocation18_spill] sm:$0xff] %v2965_v27  ;;  %682 = vst.msk [vmem:[#allocation2 + $0x11] sm:$0xff] %vm436_vm2, %v2965_v27  ;;  %v3058_v22 = vld [vmem:[#allocation2 + $0xa0] sm:$0xff]  ;;  %v3062_v48 = vmul.f32 %v2967_v28, %v3006_v4  ;;  %v3066_v24 = vmul.f32 %v2967_v28, %v3008_v43  ;;  %v3070_v30 = vmul.f32 %v2920_v33, %v2992_v1  ;;  %v3078_v36 = vld [vmem:[#allocation2 + $0xa8] sm:$0x3] }
 0x17f   : > { %4492 = vst [vmem:[#allocation19_spill] sm:$0xff] %v2971_v8  ;;  %683 = vst.msk [vmem:[#allocation2 + $0x21] sm:$0xff] %vm436_vm2, %v2971_v8  ;;  %v3074_v26 = vmul.f32 %v2920_v33, %v3004_v35  ;;  %v3080_v10 = vld [vmem:[#allocation2 + $0xb0] sm:$0xff]  ;;  %v3084_v38 = vmul.f32 %v2967_v28, %v3019_v9  ;;  %v3088_v39 = vmul.f32 %v2920_v33, %v2994_v2  ;;  %v3100_v56 = vld [vmem:[#allocation2 + $0xb8] sm:$0x3] }
 0x180   : > { %4493 = vst [vmem:[#allocation20_spill] sm:$0xff] %v2988_v60  ;;  %4494 = vst [vmem:[#allocation21_spill] sm:$0xff] %v2990_v0  ;;  %v3092_v51 = vmul.f32 %v2920_v33, %v3017_v7  ;;  %v3096_v54 = vmul.f32 %v2920_v33, %v3006_v4  ;;  %v3098_v55 = vld [vmem:[#allocation2 + $0xc0] sm:$0xff]  ;;  %v3102_v57 = vld [vmem:[#allocation2 + $0xc8] sm:$0x3]  ;;  %v3106_v61 = vmul.f32 %v2967_v28, %v3038_v45 }
 0x181   : > { %4495 = vst [vmem:[#allocation22_spill] sm:$0xff] %v2992_v1  ;;  %4496 = vst [vmem:[#allocation23_spill] sm:$0xff] %v2994_v2  ;;  %v3110_v62 = vmul.f32 %v2920_v33, %v3034_v15  ;;  %v3114_v23 = vmul.f32 %v2920_v33, %v3008_v43  ;;  %v3118_v19 = vmul.f32 %v2920_v33, %v3036_v16  ;;  %v3120_v41 = vld [vmem:[#allocation2 + $0xd0] sm:$0xff]  ;;  %v3162_v27 = vld [vmem:[#allocation2 + $0xd8] sm:$0x3]  ;;  %v857_v2 = vrot.slane %v3088_v39, 1 }
 0x182   : > { %4497 = vst [vmem:[#allocation24_spill] sm:$0xff] %v2996_v32  ;;  %4498 = vst [vmem:[#allocation25_spill] sm:$0xff] %v2999_v3  ;;  %v3128_v49 = vmul.f32 %v2967_v28, %v3058_v22  ;;  %v3132_v5 = vmul.f32 %v2920_v33, %v3019_v9  ;;  %v3136_v29 = vmul.f32 %v2920_v33, %v3056_v20  ;;  %v3142_v58 = vld [vmem:[#allocation2 + $0xe8] sm:$0x3]  ;;  %v3160_v8 = vld [vmem:[#allocation2 + $0xe0] sm:$0xff] }
 0x183   : > { %4499 = vst [vmem:[#allocation26_spill] sm:$0xff] %v3002_v50  ;;  %4500 = vst [vmem:[#allocation27_spill] sm:$0xff] %v3004_v35  ;;  %v3140_v63 = vmul.f32 %v2920_v33, %v3038_v45  ;;  %v3146_v53 = vmul.f32 %v2967_v28, %v3080_v10  ;;  %v3150_v37 = vmul.f32 %v2920_v33, %v3076_v34 }
 0x184   : > { %4501 = vst [vmem:[#allocation28_spill] sm:$0xff] %v3006_v4  ;;  %4502 = vst [vmem:[#allocation29_spill] sm:$0xff] %v3008_v43  ;;  %v3154_v31 = vmul.f32 %v2920_v33, %v3058_v22  ;;  %v3158_v25 = vmul.f32 %v2920_v33, %v3078_v36  ;;  %v3166_v59 = vmul.f32 %v2967_v28, %v3098_v55 }
 0x185   : > { %4503 = vst [vmem:[#allocation30_spill] sm:$0xff] %v3010_v52  ;;  %4504 = vst [vmem:[#allocation31_spill] sm:$0xff] %v3012_v42  ;;  %v3122_v40 = vld [vmem:[#allocation2 + $0x10] sm:$0xff]  ;;  %v3124_v11 = vld [vmem:[#allocation2 + $0x18] sm:$0x3]  ;;  %v3178_v3 = vmul.f32 %v2920_v33, %v3098_v55  ;;  %v3188_v52 = vmul.f32 %v2967_v28, %v3120_v41  ;;  %v805_v43 = vmul.f32 %v2920_v33, %v3160_v8 }
 0x186   : > { %4505 = vst [vmem:[#allocation32_spill] sm:$0xff] %v3015_v6  ;;  %4506 = vst [vmem:[#allocation33_spill] sm:$0xff] %v3017_v7  ;;  %v3182_v32 = vld [vmem:[#allocation2 + $0x20] sm:$0xff]  ;;  %v3184_v6 = vld [vmem:[#allocation2 + $0x28] sm:$0x3]  ;;  %v779_v42 = vmul.f32 %v2920_v33, %v3122_v40  ;;  %v3239_v35 = vmul.f32 %v2933_v47, %v2988_v60  ;;  %v855_v7 = vrot.slane %v3074_v26, 1 }
 0x187   : > { %4507 = vst [vmem:[#allocation34_spill] sm:$0xff] %v3019_v9  ;;  %4508 = vst [vmem:[#allocation35_spill] sm:$0xff] %v3026_v13  ;;  %v3180_v13 = vld [vmem:[#allocation2 + $0xf0] sm:$0xff]  ;;  %v851_v9 = vrot.slane %v3050_v12, 1  ;;  %v858_v60 = vrot.slane %v3092_v51, 1  ;;  %v873_v26 = vrot.slane %v3158_v25, 1 }
 0x188   : > { %4509 = vst [vmem:[#allocation36_spill] sm:$0xff] %v3029_v14  ;;  %4510 = vst [vmem:[#allocation37_spill] sm:$0xff] %v3032_v44  ;;  %v3170_v44 = vmul.f32 %v2920_v33, %v3080_v10  ;;  %v3174_v14 = vmul.f32 %v2920_v33, %v3100_v56 }
 0x189   : > { %4511 = vst [vmem:[#allocation38_spill] sm:$0xff] %v3034_v15  ;;  %4512 = vst [vmem:[#allocation39_spill] sm:$0xff] %v3036_v16  ;;  %v852_v16 = vrot.slane %v3054_v46, 1  ;;  %v845_v46 = vrot.slane %v779_v42, 1  ;;  %v854_v42 = vrot.slane %v3070_v30, 1  ;;  %v870_v30 = vrot.slane %v3150_v37, 1 }
 0x18a   : > { %4513 = vst [vmem:[#allocation40_spill] sm:$0xff] %v3038_v45  ;;  %4514 = vst [vmem:[#allocation41_spill] sm:$0xff] %v3056_v20  ;;  %v803_v45 = vmul.f32 %v2920_v33, %v3120_v41  ;;  %v804_v20 = vmul.f32 %v2920_v33, %v3162_v27  ;;  %v875_v39 = vrot.slane %v3170_v44, 1  ;;  %v876_v51 = vrot.slane %v3174_v14, 1 }
 0x18b   : > { %4515 = vst [vmem:[#allocation42_spill] sm:$0xff] %v3058_v22  ;;  %4516 = vst [vmem:[#allocation43_spill] sm:$0xff] %v3076_v34  ;;  %v3206_v22 = vmul.f32 %v3002_v50, %v3142_v58  ;;  %v3208_v34 = vld [vmem:[#allocation2 + $0xf8] sm:$0x3]  ;;  %v781_v50 = vmul.f32 %v2920_v33, %v3182_v32  ;;  %v859_v37 = vsel %vm841_vm4, %v857_v2, %v858_v60 }
 0x18c   : > { %4517 = vst [vmem:[#allocation44_spill] sm:$0xff] %v3078_v36  ;;  %4518 = vst [vmem:[#allocation45_spill] sm:$0xff] %v3080_v10  ;;  %v3198_v10 = vmul.f32 %v2920_v33, %v3142_v58  ;;  %v3202_v36 = vmul.f32 %v2933_v47, %v3142_v58  ;;  %v808_v12 = vmul.f32 %v2920_v33, %v3208_v34 }
 0x18d   : > { %4519 = vst [vmem:[#allocation46_spill] sm:$0xff] %v3098_v55  ;;  %4520 = vst [vmem:[#allocation47_spill] sm:$0xff] %v3100_v56  ;;  %v780_v56 = vmul.f32 %v2920_v33, %v3124_v11  ;;  %v802_v55 = vmul.f32 %v2920_v33, %v3102_v57 }
 0x18e   : > { %4521 = vst [vmem:[#allocation48_spill] sm:$0xff] %v3102_v57  ;;  %4522 = vst [vmem:[#allocation49_spill] sm:$0xff] %v3120_v41  ;;  %v3214_v57 = vmul.f32 %v2967_v28, %v3160_v8  ;;  %v782_v41 = vmul.f32 %v2920_v33, %v3184_v6  ;;  %v885_v4 = vrot.slane %v3198_v10, 1 }
 0x18f   : > { %4523 = vst [vmem:[#allocation50_spill] sm:$0xff] %v3122_v40  ;;  %4524 = vst [vmem:[#allocation51_spill] sm:$0xff] %v3124_v11  ;;  %v846_v15 = vrot.slane %v780_v56, 1  ;;  %v848_v56 = vrot.slane %v781_v50, 1  ;;  %v869_v50 = vrot.slane %v3140_v63, 1 }
 0x190   : > { %4525 = vst [vmem:[#allocation52_spill] sm:$0xff] %v3142_v58  ;;  %4526 = vst [vmem:[#allocation53_spill] sm:$0xff] %v3160_v8  ;;  %v3222_v58 = vmul.f32 %v2967_v28, %v3180_v13  ;;  %v742_v8 = vmul.f32 %v2967_v28, %v3122_v40  ;;  %v849_v10 = vrot.slane %v782_v41, 1  ;;  %v867_v41 = vrot.slane %v3136_v29, 1 }
 0x191   : > { %4527 = vst [vmem:[#allocation54_spill] sm:$0xff] %v3162_v27  ;;  %4528 = vst [vmem:[#allocation55_spill] sm:$0xff] %v3180_v13  ;;  %v807_v27 = vmul.f32 %v2920_v33, %v3180_v13  ;;  %v743_v13 = vmul.f32 %v2967_v28, %v3182_v32  ;;  %v853_v33 = vsel %vm841_vm4, %v851_v9, %v852_v16  ;;  %v863_v28 = vrot.slane %v3114_v23, 1 }
 0x192   : > { %4529 = vst [vmem:[#allocation56_spill] sm:$0xff] %v3182_v32  ;;  %4530 = vst [vmem:[#allocation57_spill] sm:$0xff] %v3184_v6  ;;  %v864_v9 = vrot.slane %v3118_v19, 1  ;;  %v866_v16 = vrot.slane %v3132_v5, 1  ;;  %v878_v23 = vrot.slane %v3178_v3, 1  ;;  %v856_v19 = vsel %vm841_vm4, %v854_v42, %v855_v7  ;;  %v4536_v42 = vld [vmem:[#allocation23_spill] sm:$0xff] }
 0x193   : > { %4531 = vst [vmem:[#allocation58_spill] sm:$0xff] %v3202_v36  ;;  %4532 = vst [vmem:[#allocation59_spill] sm:$0xff] %v3206_v22  ;;  %v847_v22 = vsel %vm841_vm4, %v845_v46, %v846_v15  ;;  %v860_v36 = vrot.slane %v3096_v54, 1  ;;  %v872_v15 = vrot.slane %v3154_v31, 1  ;;  %v879_v54 = vrot.slane %v802_v55, 1 }
 0x194   : > { %4533 = vst [vmem:[#allocation60_spill] sm:$0xff] %v3208_v34  ;;  %4534 = vst [vmem:[#allocation61_spill] sm:$0xff] %v3239_v35  ;;  %v861_v35 = vrot.slane %v3110_v62, 1  ;;  %v881_v5 = vrot.slane %v803_v45, 1  ;;  %v882_v62 = vrot.slane %v804_v20, 1  ;;  %v884_v29 = vrot.slane %v805_v43, 1 }
 0x195   : > { %v850_v63 = vsel %vm841_vm4, %v848_v56, %v849_v10  ;;  %v887_v46 = vrot.slane %v807_v27, 1  ;;  %v888_v31 = vrot.slane %v808_v12, 1  ;;  %v865_v44 = vsel %vm841_vm4, %v863_v28, %v864_v9  ;;  %v4537_v10 = vld [vmem:[#allocation33_spill] sm:$0xff]  ;;  %v4538_v9 = vld [vmem:[#allocation28_spill] sm:$0xff] }
 0x196   : > { %v862_v25 = vsel %vm841_vm4, %v860_v36, %v861_v35  ;;  %v868_v14 = vsel %vm841_vm4, %v866_v16, %v867_v41  ;;  %v871_v3 = vsel %vm841_vm4, %v869_v50, %v870_v30  ;;  %v874_v55 = vsel %vm841_vm4, %v872_v15, %v873_v26  ;;  %v4539_v41 = vld [vmem:[#allocation38_spill] sm:$0xff]  ;;  %v4540_v30 = vld [vmem:[#allocation29_spill] sm:$0xff]  ;;  %v4541_v26 = vld [vmem:[#allocation39_spill] sm:$0xff] }
 0x197   : > { %v877_v7 = vsel %vm841_vm4, %v875_v39, %v876_v51  ;;  %v880_v43 = vsel %vm841_vm4, %v878_v23, %v879_v54  ;;  %v3274_v45 = vadd.f32 %v847_v22, %v742_v8  ;;  %v883_v60 = vsel %vm841_vm4, %v881_v5, %v882_v62  ;;  %v4542_v51 = vld [vmem:[#allocation34_spill] sm:$0xff]  ;;  %v4543_v54 = vld [vmem:[#allocation41_spill] sm:$0xff]  ;;  %v4544_v5 = vld [vmem:[#allocation40_spill] sm:$0xff] }
 0x198   : > { %v886_v27 = vsel %vm841_vm4, %v884_v29, %v885_v4  ;;  %v3278_v2 = vadd.f32 %v850_v63, %v743_v13  ;;  %v3281_v35 = vadd.f32 %v853_v33, %v3023_v21  ;;  %v889_v20 = vsel %vm841_vm4, %v887_v46, %v888_v31  ;;  %v4545_v29 = vld [vmem:[#allocation43_spill] sm:$0xff]  ;;  %v4547_v31 = vld [vmem:[#allocation44_spill] sm:$0xff] }
 0x199   : > { %v3285_v36 = vadd.f32 %v856_v19, %v3042_v17  ;;  %v3288_v12 = vadd.f32 %v859_v37, %v3046_v18  ;;  %v3291_v8 = vadd.f32 %v862_v25, %v3062_v48  ;;  %v3294_v22 = vadd.f32 %v865_v44, %v3066_v24  ;;  %v4546_v37 = vld [vmem:[#allocation42_spill] sm:$0xff]  ;;  %v4548_v44 = vld [vmem:[#allocation45_spill] sm:$0xff] }
 0x19a   : > { %v3297_v4 = vadd.f32 %v868_v14, %v3084_v38  ;;  %v3300_v21 = vadd.f32 %v871_v3, %v3106_v61  ;;  %v3303_v13 = vadd.f32 %v874_v55, %v3128_v49  ;;  %v3306_v17 = vadd.f32 %v877_v7, %v3146_v53  ;;  %v4549_v3 = vld [vmem:[#allocation47_spill] sm:$0xff] }
 0x19b   : > { %v3309_v18 = vadd.f32 %v880_v43, %v3166_v59  ;;  %v3312_v48 = vadd.f32 %v883_v60, %v3188_v52  ;;  %v3315_v24 = vadd.f32 %v886_v27, %v3214_v57  ;;  %v3318_v38 = vadd.f32 %v889_v20, %v3222_v58  ;;  %v4535_v58 = vld [vmem:[#allocation27_spill] sm:$0xff]  ;;  %v4550_v60 = vld [vmem:[#allocation46_spill] sm:$0xff]  ;;  %v4551_v20 = vld [vmem:[#allocation48_spill] sm:$0xff] }
 0x19c   : > { %v928_v61 = vmul.f32 %v2933_v47, %v3122_v40  ;;  %v929_v49 = vmul.f32 %v2933_v47, %v3124_v11  ;;  %v930_v53 = vmul.f32 %v2933_v47, %v3182_v32  ;;  %v931_v59 = vmul.f32 %v2933_v47, %v3184_v6  ;;  %v4556_v11 = vld [vmem:[#allocation61_spill] sm:$0xff] }
 0x19d   : > { %v933_v52 = vmul.f32 %v2933_v47, %v2990_v0  ;;  %v934_v57 = vmul.f32 %v2933_v47, %v2992_v1  ;;  %v935_v33 = vmul.f32 %v2933_v47, %v4535_v58  ;;  %v936_v56 = vmul.f32 %v2933_v47, %v4536_v42  ;;  %v4555_v0 = vld [vmem:[#allocation55_spill] sm:$0xff] }
 0x19e   : > { %v937_v28 = vmul.f32 %v2933_v47, %v4537_v10  ;;  %v938_v16 = vmul.f32 %v2933_v47, %v4538_v9  ;;  %v939_v50 = vmul.f32 %v2933_v47, %v4539_v41  ;;  %v940_v15 = vmul.f32 %v2933_v47, %v4540_v30  ;;  %v4553_v41 = vld [vmem:[#allocation54_spill] sm:$0xff]  ;;  %v4554_v10 = vld [vmem:[#allocation53_spill] sm:$0xff] }
 0x19f   : > { %v941_v39 = vmul.f32 %v2933_v47, %v4541_v26  ;;  %v942_v23 = vmul.f32 %v2933_v47, %v4542_v51  ;;  %v943_v19 = vmul.f32 %v2933_v47, %v4543_v54  ;;  %v944_v62 = vmul.f32 %v2933_v47, %v4544_v5  ;;  %v4552_v54 = vld [vmem:[#allocation49_spill] sm:$0xff] }
 0x1a0   : > { %v945_v63 = vmul.f32 %v2933_v47, %v4545_v29  ;;  %v946_v46 = vmul.f32 %v2933_v47, %v4546_v37  ;;  %v947_v25 = vmul.f32 %v2933_v47, %v4547_v31  ;;  %v948_v14 = vmul.f32 %v2933_v47, %v4548_v44 }
 0x1a1   : > { %v949_v55 = vmul.f32 %v2933_v47, %v4549_v3  ;;  %v994_v7 = vrot.slane %v928_v61, 2  ;;  %v995_v43 = vrot.slane %v929_v49, 2  ;;  %v950_v27 = vmul.f32 %v2933_v47, %v4550_v60 }
 0x1a2   : > { %v951_v29 = vmul.f32 %v2933_v47, %v4551_v20  ;;  %v952_v26 = vmul.f32 %v2933_v47, %v4552_v54  ;;  %v953_v31 = vmul.f32 %v2933_v47, %v4553_v41  ;;  %v954_v58 = vmul.f32 %v2933_v47, %v4554_v10 }
 0x1a3   : > { %v956_v3 = vmul.f32 %v2933_v47, %v4555_v0  ;;  %v957_v61 = vmul.f32 %v2933_v47, %v3208_v34  ;;  %v997_v49 = vrot.slane %v930_v53, 2  ;;  %v998_v6 = vrot.slane %v931_v59, 2 }
 0x1a4   : > { %v1000_v60 = vrot.slane %v4556_v11, 2  ;;  %v1001_v20 = vrot.slane %v933_v52, 2  ;;  %v1003_v44 = vrot.slane %v934_v57, 2  ;;  %v996_v54 = vsel %vm990_vm5, %v994_v7, %v995_v43  ;;  %v4569_v43 = vld [vmem:[#allocation40_spill] sm:$0xff] }
 0x1a5   : > { %v1004_v37 = vrot.slane %v935_v33, 2  ;;  %v1006_v5 = vrot.slane %v936_v56, 2  ;;  %v1007_v41 = vrot.slane %v937_v28, 2  ;;  %v1009_v51 = vrot.slane %v938_v16, 2 }
 0x1a6   : > { %v1010_v30 = vrot.slane %v939_v50, 2  ;;  %v1012_v10 = vrot.slane %v940_v15, 2  ;;  %v1013_v9 = vrot.slane %v941_v39, 2  ;;  %v1015_v42 = vrot.slane %v942_v23, 2 }
 0x1a7   : > { %v1016_v0 = vrot.slane %v943_v19, 2  ;;  %v1018_v1 = vrot.slane %v944_v62, 2  ;;  %v1019_v32 = vrot.slane %v945_v63, 2  ;;  %v1021_v47 = vrot.slane %v946_v46, 2  ;;  %v4557_v46 = vld [vmem:[#allocation58_spill] sm:$0xff] }
 0x1a8   : > { %v1022_v53 = vrot.slane %v947_v25, 2  ;;  %v1024_v59 = vrot.slane %v948_v14, 2  ;;  %v1025_v34 = vrot.slane %v949_v55, 2  ;;  %v1027_v11 = vrot.slane %v950_v27, 2  ;;  %v4563_v25 = vld [vmem:[#allocation20_spill] sm:$0xff]  ;;  %v4567_v14 = vld [vmem:[#allocation29_spill] sm:$0xff] }
 0x1a9   : > { %v1028_v52 = vrot.slane %v951_v29, 2  ;;  %v1030_v57 = vrot.slane %v952_v26, 2  ;;  %v1031_v40 = vrot.slane %v953_v31, 2  ;;  %v999_v33 = vsel %vm990_vm5, %v997_v49, %v998_v6  ;;  %v4568_v55 = vld [vmem:[#allocation34_spill] sm:$0xff] }
 0x1aa   : > { %v1033_v56 = vrot.slane %v954_v58, 2  ;;  %v1036_v28 = vrot.slane %v956_v3, 2  ;;  %v1037_v16 = vrot.slane %v957_v61, 2  ;;  %v1002_v50 = vsel %vm990_vm5, %v1000_v60, %v1001_v20  ;;  %v4570_v27 = vld [vmem:[#allocation42_spill] sm:$0xff]  ;;  %v4571_v61 = vld [vmem:[#allocation45_spill] sm:$0xff] }
 0x1ab   : > { %v1005_v15 = vsel %vm990_vm5, %v1003_v44, %v1004_v37  ;;  %v1008_v39 = vsel %vm990_vm5, %v1006_v5, %v1007_v41  ;;  %v1011_v23 = vsel %vm990_vm5, %v1009_v51, %v1010_v30  ;;  %v1014_v19 = vsel %vm990_vm5, %v1012_v10, %v1013_v9  ;;  %v3409_v5 = vld [vmem:[#allocation2 + $0x100] sm:$0xff] }
 0x1ac   : > { %v1017_v62 = vsel %vm990_vm5, %v1015_v42, %v1016_v0  ;;  %v1020_v26 = vsel %vm990_vm5, %v1018_v1, %v1019_v32  ;;  %v1023_v29 = vsel %vm990_vm5, %v1021_v47, %v1022_v53  ;;  %v1026_v6 = vsel %vm990_vm5, %v1024_v59, %v1025_v34  ;;  %4559 = vst [vmem:[#allocation61_spill] sm:$0xff] %v3409_v5  ;;  %v4565_v44 = vld [vmem:[#allocation23_spill] sm:$0xff]  ;;  %v4572_v47 = vld [vmem:[#allocation46_spill] sm:$0xff]  ;;  %v4573_v59 = vld [vmem:[#allocation49_spill] sm:$0xff] }
 0x1ad   : > { %v1029_v58 = vsel %vm990_vm5, %v1027_v11, %v1028_v52  ;;  %v1032_v63 = vsel %vm990_vm5, %v1030_v57, %v1031_v40  ;;  %v1056_v37 = vadd.f32 %v996_v54, %v3274_v45  ;;  %v4558_v41 = vrot.slane %v4557_v46, 2  ;;  %v4574_v52 = vld [vmem:[#allocation53_spill] sm:$0xff] }
 0x1ae   : > { %v1038_v10 = vsel %vm990_vm5, %v1036_v28, %v1037_v16  ;;  %v1057_v0 = vadd.f32 %v999_v33, %v3278_v2  ;;  %v1058_v1 = vadd.f32 %v1002_v50, %v3281_v35  ;;  %v1059_v32 = vadd.f32 %v1005_v15, %v3285_v36  ;;  %v4575_v33 = vld [vmem:[#allocation55_spill] sm:$0xff]  ;;  %v4576_v16 = vld [vmem:[#allocation30_spill] sm:$0xff] }
 0x1af   : > { %v1035_v30 = vsel %vm990_vm5, %v1033_v56, %v4558_v41  ;;  %v1060_v34 = vadd.f32 %v1008_v39, %v3288_v12  ;;  %v1061_v42 = vadd.f32 %v1011_v23, %v3291_v8  ;;  %v1062_v40 = vadd.f32 %v1014_v19, %v3294_v22  ;;  %v4560_v8 = vld [vmem:[#allocation50_spill] sm:$0xff]  ;;  %v4561_v22 = vld [vmem:[#allocation31_spill] sm:$0xff] }
 0x1b0   : > { %v1063_v45 = vadd.f32 %v1017_v62, %v3297_v4  ;;  %v1064_v9 = vadd.f32 %v1020_v26, %v3300_v21  ;;  %v1065_v51 = vadd.f32 %v1023_v29, %v3303_v13  ;;  %v1066_v54 = vadd.f32 %v1026_v6, %v3306_v17  ;;  %v4562_v4 = vld [vmem:[#allocation56_spill] sm:$0xff]  ;;  %v4564_v17 = vld [vmem:[#allocation22_spill] sm:$0xff] }
 0x1b1   : > { %v1067_v2 = vadd.f32 %v1029_v58, %v3309_v18  ;;  %v1068_v35 = vadd.f32 %v1032_v63, %v3312_v48  ;;  %v1069_v36 = vadd.f32 %v1035_v30, %v3315_v24  ;;  %v1070_v12 = vadd.f32 %v1038_v10, %v3318_v38  ;;  %v4566_v24 = vld [vmem:[#allocation28_spill] sm:$0xff] }
 0x1b2   : > { %v1075_v31 = vmul.f32 %v4561_v22, %v4560_v8  ;;  %v1076_v21 = vmul.f32 %v4561_v22, %v4562_v4  ;;  %v1077_v13 = vmul.f32 %v4561_v22, %v4563_v25  ;;  %v1078_v18 = vmul.f32 %v4561_v22, %v4564_v17 }
 0x1b3   : > { %v1079_v48 = vmul.f32 %v4561_v22, %v4565_v44  ;;  %v1080_v38 = vmul.f32 %v4561_v22, %v4566_v24  ;;  %v1081_v3 = vmul.f32 %v4561_v22, %v4567_v14  ;;  %v1082_v7 = vmul.f32 %v4561_v22, %v4568_v55 }
 0x1b4   : > { %v1083_v60 = vmul.f32 %v4561_v22, %v4569_v43  ;;  %v1084_v20 = vmul.f32 %v4561_v22, %v4570_v27  ;;  %v1085_v49 = vmul.f32 %v4561_v22, %v4571_v61  ;;  %v1086_v53 = vmul.f32 %v4561_v22, %v4572_v47 }
 0x1b5   : > { %v1087_v11 = vmul.f32 %v4561_v22, %v4573_v59  ;;  %v1088_v57 = vmul.f32 %v4561_v22, %v4574_v52  ;;  %v1089_v56 = vmul.f32 %v4561_v22, %v4575_v33  ;;  %v1090_v28 = vmul.f32 %v4561_v22, %v3409_v5  ;;  %v4584_v22 = vld [vmem:[#allocation33_spill] sm:$0xff] }
 0x1b6   : > { %v3444_v50 = vadd.f32 %v1075_v31, %v4576_v16  ;;  %v3446_v15 = vadd.f32 %v1076_v21, %v1056_v37  ;;  %v3448_v39 = vadd.f32 %v1077_v13, %v1057_v0  ;;  %v3450_v23 = vadd.f32 %v1078_v18, %v1058_v1  ;;  %v4579_v0 = vld [vmem:[#allocation26_spill] sm:$0xff]  ;;  %v3516_v16 = vld [vmem:[#allocation2 + $0x108] sm:$0x3] }
 0x1b7   : > { %v3452_v19 = vadd.f32 %v1079_v48, %v1059_v32  ;;  %v3454_v62 = vadd.f32 %v1080_v38, %v1060_v34  ;;  %v3456_v26 = vadd.f32 %v1081_v3, %v1061_v42  ;;  %v3458_v29 = vadd.f32 %v1082_v7, %v1062_v40  ;;  %v4580_v32 = vld [vmem:[#allocation51_spill] sm:$0xff]  ;;  %v4581_v40 = vld [vmem:[#allocation57_spill] sm:$0xff]  ;;  %v4585_v13 = vld [vmem:[#allocation38_spill] sm:$0xff]  ;;  %4590 = vst [vmem:[#allocation30_spill] sm:$0xff] %v3516_v16 }
 0x1b8   : > { %v3460_v6 = vadd.f32 %v1083_v60, %v1063_v45  ;;  %v3462_v58 = vadd.f32 %v1084_v20, %v1064_v9  ;;  %v3464_v63 = vadd.f32 %v1085_v49, %v1065_v51  ;;  %v3466_v37 = vadd.f32 %v1086_v53, %v1066_v54  ;;  %v4582_v51 = vld [vmem:[#allocation21_spill] sm:$0xff]  ;;  %v4586_v38 = vld [vmem:[#allocation39_spill] sm:$0xff] }
 0x1b9   : > { %v3468_v46 = vadd.f32 %v1087_v11, %v1067_v2  ;;  %v3470_v41 = vadd.f32 %v1088_v57, %v1068_v35  ;;  %v3472_v30 = vadd.f32 %v1089_v56, %v1069_v36  ;;  %v3474_v10 = vadd.f32 %v1090_v28, %v1070_v12  ;;  %v4583_v35 = vld [vmem:[#allocation27_spill] sm:$0xff]  ;;  %v4587_v60 = vld [vmem:[#allocation41_spill] sm:$0xff]  ;;  %v4589_v56 = vld [vmem:[#allocation44_spill] sm:$0xff] }
 0x1ba   : > { %v1111_v1 = vmul.f32 %v4579_v0, %v4560_v8  ;;  %v1112_v34 = vmul.f32 %v4579_v0, %v4580_v32  ;;  %v1113_v42 = vmul.f32 %v4579_v0, %v4562_v4  ;;  %v1114_v45 = vmul.f32 %v4579_v0, %v4581_v40  ;;  %v4588_v53 = vld [vmem:[#allocation43_spill] sm:$0xff] }
 0x1bb   : > { %4577 = vst [vmem:[#allocation58_spill] sm:$0xff] %v3472_v30  ;;  %4578 = vst [vmem:[#allocation31_spill] sm:$0xff] %v3474_v10  ;;  %v1115_v9 = vmul.f32 %v4579_v0, %v4563_v25  ;;  %v1116_v54 = vmul.f32 %v4579_v0, %v4582_v51  ;;  %v1117_v2 = vmul.f32 %v4579_v0, %v4564_v17 }
 0x1bc   : > { %v1118_v36 = vmul.f32 %v4579_v0, %v4583_v35  ;;  %v1119_v12 = vmul.f32 %v4579_v0, %v4565_v44  ;;  %v1120_v31 = vmul.f32 %v4579_v0, %v4584_v22  ;;  %v1121_v21 = vmul.f32 %v4579_v0, %v4566_v24  ;;  %v4593_v44 = vld [vmem:[#allocation54_spill] sm:$0xff] }
 0x1bd   : > { %v1122_v18 = vmul.f32 %v4579_v0, %v4585_v13  ;;  %v1123_v48 = vmul.f32 %v4579_v0, %v4567_v14  ;;  %v1124_v3 = vmul.f32 %v4579_v0, %v4586_v38  ;;  %v1125_v7 = vmul.f32 %v4579_v0, %v4568_v55  ;;  %v4591_v38 = vld [vmem:[#allocation47_spill] sm:$0xff] }
 0x1be   : > { %v1126_v20 = vmul.f32 %v4579_v0, %v4587_v60  ;;  %v1127_v49 = vmul.f32 %v4579_v0, %v4569_v43  ;;  %v1128_v11 = vmul.f32 %v4579_v0, %v4588_v53  ;;  %v1129_v57 = vmul.f32 %v4579_v0, %v4570_v27  ;;  %v4592_v53 = vld [vmem:[#allocation48_spill] sm:$0xff] }
 0x1bf   : > { %v1130_v28 = vmul.f32 %v4579_v0, %v4589_v56  ;;  %v1131_v55 = vmul.f32 %v4579_v0, %v4571_v61  ;;  %v1132_v60 = vmul.f32 %v4579_v0, %v4591_v38  ;;  %v1175_v14 = vrot.slane %v1111_v1, 1 }
 0x1c0   : > { %v1176_v13 = vrot.slane %v1112_v34, 1  ;;  %v1133_v43 = vmul.f32 %v4579_v0, %v4572_v47  ;;  %v1134_v24 = vmul.f32 %v4579_v0, %v4592_v53  ;;  %v1178_v27 = vrot.slane %v1113_v42, 1  ;;  %v4594_v34 = vld [vmem:[#allocation60_spill] sm:$0xff] }
 0x1c1   : > { %v1179_v22 = vrot.slane %v1114_v45, 1  ;;  %v1135_v56 = vmul.f32 %v4579_v0, %v4573_v59  ;;  %v1136_v35 = vmul.f32 %v4579_v0, %v4593_v44  ;;  %v1137_v61 = vmul.f32 %v4579_v0, %v4574_v52 }
 0x1c2   : > { %v1139_v1 = vmul.f32 %v4579_v0, %v4575_v33  ;;  %v1140_v47 = vmul.f32 %v4579_v0, %v4594_v34  ;;  %v1141_v53 = vmul.f32 %v4579_v0, %v3409_v5  ;;  %v1142_v42 = vmul.f32 %v4579_v0, %v3516_v16 }
 0x1c3   : > { %v1181_v45 = vrot.slane %v1115_v9, 1  ;;  %v1177_v59 = vsel %vm841_vm4, %v1175_v14, %v1176_v13  ;;  %v1182_v38 = vrot.slane %v1116_v54, 1  ;;  %v1184_v44 = vrot.slane %v1117_v2, 1 }
 0x1c4   : > { %v1185_v17 = vrot.slane %v1118_v36, 1  ;;  %v1180_v52 = vsel %vm841_vm4, %v1178_v27, %v1179_v22  ;;  %v1187_v51 = vrot.slane %v1119_v12, 1  ;;  %v1188_v25 = vrot.slane %v1120_v31, 1 }
 0x1c5   : > { %v1190_v33 = vrot.slane %v1121_v21, 1  ;;  %v1191_v40 = vrot.slane %v1122_v18, 1  ;;  %v1193_v4 = vrot.slane %v1123_v48, 1  ;;  %v1194_v34 = vrot.slane %v1124_v3, 1 }
 0x1c6   : > { %v1196_v32 = vrot.slane %v1125_v7, 1  ;;  %v1197_v8 = vrot.slane %v1126_v20, 1  ;;  %v1199_v5 = vrot.slane %v1127_v49, 1  ;;  %v1200_v10 = vrot.slane %v1128_v11, 1  ;;  %v4603_v7 = vld [vmem:[#allocation32_spill] sm:$0xff] }
 0x1c7   : > { %v1202_v30 = vrot.slane %v1129_v57, 1  ;;  %v1203_v0 = vrot.slane %v1130_v28, 1  ;;  %v1205_v9 = vrot.slane %v1131_v55, 1  ;;  %v1206_v16 = vrot.slane %v1132_v60, 1  ;;  %v4608_v57 = vld [vmem:[#allocation21_spill] sm:$0xff]  ;;  %v4609_v28 = vld [vmem:[#allocation22_spill] sm:$0xff] }
 0x1c8   : > { %v1208_v14 = vrot.slane %v1133_v43, 1  ;;  %v1209_v54 = vrot.slane %v1134_v24, 1  ;;  %v1211_v2 = vrot.slane %v1135_v56, 1  ;;  %v1212_v36 = vrot.slane %v1136_v35, 1 }
 0x1c9   : > { %v1214_v13 = vrot.slane %v1137_v61, 1  ;;  %v1183_v27 = vsel %vm841_vm4, %v1181_v45, %v1182_v38  ;;  %v1186_v12 = vsel %vm841_vm4, %v1184_v44, %v1185_v17  ;;  %v1217_v22 = vrot.slane %v1139_v1, 1  ;;  %v4610_v1 = vld [vmem:[#allocation27_spill] sm:$0xff] }
 0x1ca   : > { %v1218_v31 = vrot.slane %v1140_v47, 1  ;;  %v1189_v21 = vsel %vm841_vm4, %v1187_v51, %v1188_v25  ;;  %v1192_v18 = vsel %vm841_vm4, %v1190_v33, %v1191_v40  ;;  %v1220_v48 = vrot.slane %v1141_v53, 1  ;;  %v4595_v47 = vld [vmem:[#allocation59_spill] sm:$0xff] }
 0x1cb   : > { %v1221_v3 = vrot.slane %v1142_v42, 1  ;;  %v1195_v55 = vsel %vm841_vm4, %v1193_v4, %v1194_v34  ;;  %v1198_v43 = vsel %vm841_vm4, %v1196_v32, %v1197_v8  ;;  %v1201_v24 = vsel %vm841_vm4, %v1199_v5, %v1200_v10  ;;  %v4611_v42 = vld [vmem:[#allocation23_spill] sm:$0xff] }
 0x1cc   : > { %v1204_v61 = vsel %vm841_vm4, %v1202_v30, %v1203_v0  ;;  %v1207_v35 = vsel %vm841_vm4, %v1205_v9, %v1206_v16  ;;  %v1210_v17 = vsel %vm841_vm4, %v1208_v14, %v1209_v54  ;;  %v1213_v44 = vsel %vm841_vm4, %v1211_v2, %v1212_v36  ;;  %v4612_v0 = vld [vmem:[#allocation33_spill] sm:$0xff]  ;;  %v4613_v14 = vld [vmem:[#allocation28_spill] sm:$0xff]  ;;  %v4614_v2 = vld [vmem:[#allocation38_spill] sm:$0xff] }
 0x1cd   : > { %v4596_v25 = vrot.slane %v4595_v47, 1  ;;  %v1219_v40 = vsel %vm841_vm4, %v1217_v22, %v1218_v31  ;;  %v3558_v4 = vadd.f32 %v1177_v59, %v3444_v50  ;;  %v3561_v8 = vadd.f32 %v1180_v52, %v3446_v15  ;;  %v4617_v31 = vld [vmem:[#allocation34_spill] sm:$0xff]  ;;  %v4623_v47 = vld [vmem:[#allocation45_spill] sm:$0xff] }
 0x1ce   : > { %v3564_v5 = vadd.f32 %v1183_v27, %v3448_v39  ;;  %v1222_v30 = vsel %vm841_vm4, %v1220_v48, %v1221_v3  ;;  %v3568_v10 = vadd.f32 %v1186_v12, %v3450_v23  ;;  %v3571_v32 = vadd.f32 %v1189_v21, %v3452_v19  ;;  %v4616_v12 = vld [vmem:[#allocation39_spill] sm:$0xff]  ;;  %v4619_v3 = vld [vmem:[#allocation40_spill] sm:$0xff] }
 0x1cf   : > { %v1216_v33 = vsel %vm841_vm4, %v1214_v13, %v4596_v25  ;;  %v3574_v51 = vadd.f32 %v1192_v18, %v3454_v62  ;;  %v3577_v59 = vadd.f32 %v1195_v55, %v3456_v26  ;;  %v3580_v52 = vadd.f32 %v1198_v43, %v3458_v29  ;;  %v4598_v26 = vld [vmem:[#allocation58_spill] sm:$0xff]  ;;  %v4615_v13 = vld [vmem:[#allocation29_spill] sm:$0xff]  ;;  %v4620_v43 = vld [vmem:[#allocation43_spill] sm:$0xff] }
 0x1d0   : > { %v3583_v50 = vadd.f32 %v1201_v24, %v3460_v6  ;;  %v3586_v15 = vadd.f32 %v1204_v61, %v3462_v58  ;;  %v3589_v39 = vadd.f32 %v1207_v35, %v3464_v63  ;;  %v3592_v23 = vadd.f32 %v1210_v17, %v3466_v37  ;;  %v4600_v6 = vld [vmem:[#allocation31_spill] sm:$0xff]  ;;  %v4602_v58 = vld [vmem:[#allocation50_spill] sm:$0xff]  ;;  %v4605_v37 = vld [vmem:[#allocation56_spill] sm:$0xff] }
 0x1d1   : > { %v3595_v19 = vadd.f32 %v1213_v44, %v3468_v46  ;;  %v3598_v62 = vadd.f32 %v1216_v33, %v3470_v41  ;;  %v3601_v29 = vadd.f32 %v1219_v40, %v4598_v26  ;;  %v3604_v38 = vadd.f32 %v1222_v30, %v4600_v6  ;;  %v4604_v63 = vld [vmem:[#allocation51_spill] sm:$0xff]  ;;  %v4606_v46 = vld [vmem:[#allocation57_spill] sm:$0xff]  ;;  %v4607_v41 = vld [vmem:[#allocation20_spill] sm:$0xff] }
 0x1d2   : > { %v1259_v60 = vmul.f32 %v4603_v7, %v4602_v58  ;;  %v1260_v20 = vmul.f32 %v4603_v7, %v4604_v63  ;;  %v1261_v49 = vmul.f32 %v4603_v7, %v4605_v37  ;;  %v1262_v53 = vmul.f32 %v4603_v7, %v4606_v46  ;;  %v4618_v18 = vld [vmem:[#allocation41_spill] sm:$0xff]  ;;  %v4621_v61 = vld [vmem:[#allocation42_spill] sm:$0xff]  ;;  %v4622_v17 = vld [vmem:[#allocation44_spill] sm:$0xff] }
 0x1d3   : > { %4597 = vst [vmem:[#allocation26_spill] sm:$0xff] %v3598_v62  ;;  %4599 = vst [vmem:[#allocation59_spill] sm:$0xff] %v3601_v29  ;;  %v1263_v11 = vmul.f32 %v4603_v7, %v4607_v41  ;;  %v1264_v56 = vmul.f32 %v4603_v7, %v4608_v57  ;;  %v1265_v16 = vmul.f32 %v4603_v7, %v4609_v28  ;;  %v4624_v33 = vld [vmem:[#allocation47_spill] sm:$0xff]  ;;  %v4625_v30 = vld [vmem:[#allocation46_spill] sm:$0xff] }
 0x1d4   : > { %4601 = vst [vmem:[#allocation58_spill] sm:$0xff] %v3604_v38  ;;  %v1266_v34 = vmul.f32 %v4603_v7, %v4610_v1  ;;  %v1267_v45 = vmul.f32 %v4603_v7, %v4611_v42  ;;  %v1268_v9 = vmul.f32 %v4603_v7, %v4612_v0  ;;  %v1269_v54 = vmul.f32 %v4603_v7, %v4613_v14  ;;  %v4626_v6 = vld [vmem:[#allocation48_spill] sm:$0xff]  ;;  %v4629_v57 = vld [vmem:[#allocation53_spill] sm:$0xff] }
 0x1d5   : > { %v1270_v36 = vmul.f32 %v4603_v7, %v4614_v2  ;;  %v1271_v27 = vmul.f32 %v4603_v7, %v4615_v13  ;;  %v1272_v22 = vmul.f32 %v4603_v7, %v4616_v12  ;;  %v1273_v21 = vmul.f32 %v4603_v7, %v4617_v31  ;;  %v4628_v2 = vld [vmem:[#allocation54_spill] sm:$0xff] }
 0x1d6   : > { %v1274_v48 = vmul.f32 %v4603_v7, %v4618_v18  ;;  %v1275_v55 = vmul.f32 %v4603_v7, %v4619_v3  ;;  %v1276_v24 = vmul.f32 %v4603_v7, %v4620_v43  ;;  %v1277_v35 = vmul.f32 %v4603_v7, %v4621_v61  ;;  %v4627_v18 = vld [vmem:[#allocation49_spill] sm:$0xff]  ;;  %v4634_v3 = vld [vmem:[#allocation30_spill] sm:$0xff] }
 0x1d7   : > { %v1278_v44 = vmul.f32 %v4603_v7, %v4622_v17  ;;  %v1279_v25 = vmul.f32 %v4603_v7, %v4623_v47  ;;  %v1280_v40 = vmul.f32 %v4603_v7, %v4624_v33  ;;  %v1281_v26 = vmul.f32 %v4603_v7, %v4625_v30  ;;  %v4630_v33 = vld [vmem:[#allocation52_spill] sm:$0xff]  ;;  %v4631_v30 = vld [vmem:[#allocation55_spill] sm:$0xff] }
 0x1d8   : > { %v1282_v58 = vmul.f32 %v4603_v7, %v4626_v6  ;;  %v1323_v63 = vrot.slane %v1259_v60, 2  ;;  %v1324_v43 = vrot.slane %v1260_v20, 2  ;;  %v1283_v12 = vmul.f32 %v4603_v7, %v4627_v18  ;;  %v4632_v6 = vld [vmem:[#allocation60_spill] sm:$0xff]  ;;  %v4633_v20 = vld [vmem:[#allocation61_spill] sm:$0xff] }
 0x1d9   : > { %v1284_v17 = vmul.f32 %v4603_v7, %v4628_v2  ;;  %v1326_v0 = vrot.slane %v1261_v49, 2  ;;  %v1327_v1 = vrot.slane %v1262_v53, 2  ;;  %v1285_v46 = vmul.f32 %v4603_v7, %v4629_v57 }
 0x1da   : > { %v1286_v47 = vmul.f32 %v4603_v7, %v4630_v33  ;;  %v1287_v61 = vmul.f32 %v4603_v7, %v4631_v30  ;;  %v1288_v60 = vmul.f32 %v4603_v7, %v4632_v6  ;;  %v1289_v18 = vmul.f32 %v4603_v7, %v4633_v20 }
 0x1db   : > { %v1290_v2 = vmul.f32 %v4603_v7, %v4634_v3  ;;  %v1329_v49 = vrot.slane %v1263_v11, 2  ;;  %v1330_v53 = vrot.slane %v1264_v56, 2  ;;  %v1325_v31 = vsel %vm990_vm5, %v1323_v63, %v1324_v43 }
 0x1dc   : > { %v1332_v57 = vrot.slane %v1265_v16, 2  ;;  %v1333_v13 = vrot.slane %v1266_v34, 2  ;;  %v1335_v14 = vrot.slane %v1267_v45, 2  ;;  %v1328_v33 = vsel %vm990_vm5, %v1326_v0, %v1327_v1 }
 0x1dd   : > { %v1336_v42 = vrot.slane %v1268_v9, 2  ;;  %v1338_v30 = vrot.slane %v1269_v54, 2  ;;  %v1339_v28 = vrot.slane %v1270_v36, 2  ;;  %v1341_v41 = vrot.slane %v1271_v27, 2 }
 0x1de   : > { %v1342_v6 = vrot.slane %v1272_v22, 2  ;;  %v1344_v37 = vrot.slane %v1273_v21, 2  ;;  %v1345_v38 = vrot.slane %v1274_v48, 2  ;;  %v1347_v20 = vrot.slane %v1275_v55, 2 }
 0x1df   : > { %v1348_v29 = vrot.slane %v1276_v24, 2  ;;  %v1350_v62 = vrot.slane %v1277_v35, 2  ;;  %v1351_v7 = vrot.slane %v1278_v44, 2  ;;  %v1353_v11 = vrot.slane %v1279_v25, 2  ;;  %v4635_v35 = vld [vmem:[#allocation26_spill] sm:$0xff] }
 0x1e0   : > { %v1354_v56 = vrot.slane %v1280_v40, 2  ;;  %v1356_v3 = vrot.slane %v1281_v26, 2  ;;  %v1357_v43 = vrot.slane %v1282_v58, 2  ;;  %v1359_v16 = vrot.slane %v1283_v12, 2  ;;  %v4637_v44 = vld [vmem:[#allocation58_spill] sm:$0xff]  ;;  %v4643_v40 = vld [vmem:[#allocation28_spill] sm:$0xff] }
 0x1e1   : > { %v1360_v34 = vrot.slane %v1284_v17, 2  ;;  %v1362_v45 = vrot.slane %v1285_v46, 2  ;;  %v1363_v63 = vrot.slane %v1286_v47, 2  ;;  %v1331_v1 = vsel %vm990_vm5, %v1329_v49, %v1330_v53  ;;  %v4636_v17 = vld [vmem:[#allocation59_spill] sm:$0xff]  ;;  %v4638_v47 = vld [vmem:[#allocation56_spill] sm:$0xff]  ;;  %v4647_v49 = vld [vmem:[#allocation42_spill] sm:$0xff] }
 0x1e2   : > { %v1334_v0 = vsel %vm990_vm5, %v1332_v57, %v1333_v13  ;;  %v1365_v9 = vrot.slane %v1287_v61, 2  ;;  %v1366_v54 = vrot.slane %v1288_v60, 2  ;;  %v1337_v36 = vsel %vm990_vm5, %v1335_v14, %v1336_v42  ;;  %v4646_v60 = vld [vmem:[#allocation40_spill] sm:$0xff] }
 0x1e3   : > { %v1340_v27 = vsel %vm990_vm5, %v1338_v30, %v1339_v28  ;;  %v1368_v22 = vrot.slane %v1289_v18, 2  ;;  %v1369_v21 = vrot.slane %v1290_v2, 2  ;;  %v1343_v48 = vsel %vm990_vm5, %v1341_v41, %v1342_v6  ;;  %v4644_v30 = vld [vmem:[#allocation29_spill] sm:$0xff]  ;;  %v4645_v6 = vld [vmem:[#allocation34_spill] sm:$0xff] }
 0x1e4   : > { %v1346_v55 = vsel %vm990_vm5, %v1344_v37, %v1345_v38  ;;  %v1349_v12 = vsel %vm990_vm5, %v1347_v20, %v1348_v29  ;;  %v1352_v46 = vsel %vm990_vm5, %v1350_v62, %v1351_v7  ;;  %v1355_v24 = vsel %vm990_vm5, %v1353_v11, %v1354_v56  ;;  %v4648_v7 = vld [vmem:[#allocation45_spill] sm:$0xff]  ;;  %v4649_v56 = vld [vmem:[#allocation46_spill] sm:$0xff] }
 0x1e5   : > { %v1358_v57 = vsel %vm990_vm5, %v1356_v3, %v1357_v43  ;;  %v1361_v13 = vsel %vm990_vm5, %v1359_v16, %v1360_v34  ;;  %v1364_v42 = vsel %vm990_vm5, %v1362_v45, %v1363_v63  ;;  %v1367_v28 = vsel %vm990_vm5, %v1365_v9, %v1366_v54  ;;  %v4650_v16 = vld [vmem:[#allocation49_spill] sm:$0xff] }
 0x1e6   : > { %v1387_v14 = vadd.f32 %v1325_v31, %v3558_v4  ;;  %v1388_v41 = vadd.f32 %v1328_v33, %v3561_v8  ;;  %v1389_v38 = vadd.f32 %v1331_v1, %v3564_v5  ;;  %v1370_v29 = vsel %vm990_vm5, %v1368_v22, %v1369_v21  ;;  %v4641_v33 = vld [vmem:[#allocation22_spill] sm:$0xff]  ;;  %v4651_v45 = vld [vmem:[#allocation53_spill] sm:$0xff]  ;;  %v4652_v1 = vld [vmem:[#allocation55_spill] sm:$0xff] }
 0x1e7   : > { %v1390_v62 = vadd.f32 %v1334_v0, %v3568_v10  ;;  %v1391_v37 = vadd.f32 %v1337_v36, %v3571_v32  ;;  %v1392_v2 = vadd.f32 %v1340_v27, %v3574_v51  ;;  %v1393_v18 = vadd.f32 %v1343_v48, %v3577_v59  ;;  %v4639_v59 = vld [vmem:[#allocation24_spill] sm:$0xff]  ;;  %v4653_v9 = vld [vmem:[#allocation61_spill] sm:$0xff] }
 0x1e8   : > { %v1394_v3 = vadd.f32 %v1346_v55, %v3580_v52  ;;  %v1395_v61 = vadd.f32 %v1349_v12, %v3583_v50  ;;  %v1396_v4 = vadd.f32 %v1352_v46, %v3586_v15  ;;  %v1397_v8 = vadd.f32 %v1355_v24, %v3589_v39  ;;  %v4640_v52 = vld [vmem:[#allocation20_spill] sm:$0xff]  ;;  %v4642_v39 = vld [vmem:[#allocation23_spill] sm:$0xff] }
 0x1e9   : > { %v1398_v5 = vadd.f32 %v1358_v57, %v3592_v23  ;;  %v1399_v31 = vadd.f32 %v1361_v13, %v3595_v19  ;;  %v1400_v10 = vadd.f32 %v1364_v42, %v4635_v35  ;;  %v1401_v32 = vadd.f32 %v1367_v28, %v4636_v17 }
 0x1ea   : > { %v1402_v51 = vadd.f32 %v1370_v29, %v4637_v44  ;;  %v1407_v25 = vmul.f32 %v4639_v59, %v4638_v47  ;;  %v1408_v50 = vmul.f32 %v4639_v59, %v4640_v52  ;;  %v1409_v15 = vmul.f32 %v4639_v59, %v4641_v33  ;;  %v4662_v44 = vld [vmem:[#allocation38_spill] sm:$0xff] }
 0x1eb   : > { %v1410_v23 = vmul.f32 %v4639_v59, %v4642_v39  ;;  %v1411_v19 = vmul.f32 %v4639_v59, %v4643_v40  ;;  %v1412_v26 = vmul.f32 %v4639_v59, %v4644_v30  ;;  %v1413_v58 = vmul.f32 %v4639_v59, %v4645_v6 }
 0x1ec   : > { %v1414_v20 = vmul.f32 %v4639_v59, %v4646_v60  ;;  %v1415_v53 = vmul.f32 %v4639_v59, %v4647_v49  ;;  %v1416_v11 = vmul.f32 %v4639_v59, %v4648_v7  ;;  %v1417_v43 = vmul.f32 %v4639_v59, %v4649_v56 }
 0x1ed   : > { %v1418_v34 = vmul.f32 %v4639_v59, %v4650_v16  ;;  %v1419_v63 = vmul.f32 %v4639_v59, %v4651_v45  ;;  %v1420_v0 = vmul.f32 %v4639_v59, %v4652_v1  ;;  %v1421_v54 = vmul.f32 %v4639_v59, %v4653_v9 }
 0x1ee   : > { %v3732_v36 = vadd.f32 %v1407_v25, %v1387_v14  ;;  %v3734_v27 = vadd.f32 %v1408_v50, %v1388_v41  ;;  %v3736_v22 = vadd.f32 %v1409_v15, %v1389_v38  ;;  %v3738_v21 = vadd.f32 %v1410_v23, %v1390_v62  ;;  %v4655_v38 = vld [vmem:[#allocation35_spill] sm:$0xff]  ;;  %v4657_v62 = vld [vmem:[#allocation25_spill] sm:$0xff] }
 0x1ef   : > { %v3740_v48 = vadd.f32 %v1411_v19, %v1391_v37  ;;  %v3742_v55 = vadd.f32 %v1412_v26, %v1392_v2  ;;  %v3744_v12 = vadd.f32 %v1413_v58, %v1393_v18  ;;  %v3746_v46 = vadd.f32 %v1414_v20, %v1394_v3  ;;  %v4658_v2 = vld [vmem:[#allocation57_spill] sm:$0xff]  ;;  %v4663_v25 = vld [vmem:[#allocation39_spill] sm:$0xff]  ;;  %v4666_v26 = vld [vmem:[#allocation44_spill] sm:$0xff] }
 0x1f0   : > { %v3748_v24 = vadd.f32 %v1415_v53, %v1395_v61  ;;  %v3750_v57 = vadd.f32 %v1416_v11, %v1396_v4  ;;  %v3752_v13 = vadd.f32 %v1417_v43, %v1397_v8  ;;  %v3754_v42 = vadd.f32 %v1418_v34, %v1398_v5  ;;  %v4659_v61 = vld [vmem:[#allocation21_spill] sm:$0xff]  ;;  %v4660_v5 = vld [vmem:[#allocation27_spill] sm:$0xff] }
 0x1f1   : > { %v3756_v28 = vadd.f32 %v1419_v63, %v1399_v31  ;;  %v3758_v14 = vadd.f32 %v1420_v0, %v1400_v10  ;;  %v3760_v41 = vadd.f32 %v1421_v54, %v1401_v32  ;;  %v3763_v29 = vadd.f32 %v4655_v38, %v1402_v51  ;;  %v4661_v10 = vld [vmem:[#allocation33_spill] sm:$0xff]  ;;  %v4665_v23 = vld [vmem:[#allocation43_spill] sm:$0xff]  ;;  %v4668_v54 = vld [vmem:[#allocation48_spill] sm:$0xff] }
 0x1f2   : > { %v1443_v37 = vmul.f32 %v4657_v62, %v4638_v47  ;;  %v1444_v18 = vmul.f32 %v4657_v62, %v4658_v2  ;;  %v1445_v3 = vmul.f32 %v4657_v62, %v4640_v52  ;;  %v1446_v4 = vmul.f32 %v4657_v62, %v4659_v61  ;;  %v4667_v20 = vld [vmem:[#allocation47_spill] sm:$0xff]  ;;  %v4669_v61 = vld [vmem:[#allocation54_spill] sm:$0xff] }
 0x1f3   : > { %4654 = vst [vmem:[#allocation31_spill] sm:$0xff] %v3760_v41  ;;  %4656 = vst [vmem:[#allocation50_spill] sm:$0xff] %v3763_v29  ;;  %v1447_v8 = vmul.f32 %v4657_v62, %v4641_v33  ;;  %v1448_v31 = vmul.f32 %v4657_v62, %v4660_v5  ;;  %v1449_v35 = vmul.f32 %v4657_v62, %v4642_v39  ;;  %v4664_v33 = vld [vmem:[#allocation41_spill] sm:$0xff] }
 0x1f4   : > { %v1450_v17 = vmul.f32 %v4657_v62, %v4661_v10  ;;  %v1451_v32 = vmul.f32 %v4657_v62, %v4643_v40  ;;  %v1452_v51 = vmul.f32 %v4657_v62, %v4662_v44  ;;  %v1453_v59 = vmul.f32 %v4657_v62, %v4644_v30  ;;  %v4670_v10 = vld [vmem:[#allocation52_spill] sm:$0xff] }
 0x1f5   : > { %v1454_v52 = vmul.f32 %v4657_v62, %v4663_v25  ;;  %v1455_v50 = vmul.f32 %v4657_v62, %v4645_v6  ;;  %v1456_v15 = vmul.f32 %v4657_v62, %v4664_v33  ;;  %v1457_v39 = vmul.f32 %v4657_v62, %v4646_v60 }
 0x1f6   : > { %v1458_v40 = vmul.f32 %v4657_v62, %v4665_v23  ;;  %v1459_v19 = vmul.f32 %v4657_v62, %v4647_v49  ;;  %v1460_v30 = vmul.f32 %v4657_v62, %v4666_v26  ;;  %v1461_v58 = vmul.f32 %v4657_v62, %v4648_v7 }
 0x1f7   : > { %v1462_v6 = vmul.f32 %v4657_v62, %v4667_v20  ;;  %v1463_v53 = vmul.f32 %v4657_v62, %v4649_v56  ;;  %v1507_v11 = vrot.slane %v1443_v37, 1  ;;  %v1508_v60 = vrot.slane %v1444_v18, 1  ;;  %v4671_v18 = vld [vmem:[#allocation60_spill] sm:$0xff] }
 0x1f8   : > { %v1510_v43 = vrot.slane %v1445_v3, 1  ;;  %v1511_v34 = vrot.slane %v1446_v4, 1  ;;  %v1513_v63 = vrot.slane %v1447_v8, 1  ;;  %v1514_v0 = vrot.slane %v1448_v31, 1  ;;  %v4672_v8 = vld [vmem:[#allocation30_spill] sm:$0xff] }
 0x1f9   : > { %v1464_v49 = vmul.f32 %v4657_v62, %v4668_v54  ;;  %v1465_v38 = vmul.f32 %v4657_v62, %v4650_v16  ;;  %v1466_v7 = vmul.f32 %v4657_v62, %v4669_v61  ;;  %v1467_v5 = vmul.f32 %v4657_v62, %v4651_v45 }
 0x1fa   : > { %v1468_v56 = vmul.f32 %v4657_v62, %v4670_v10  ;;  %v1469_v37 = vmul.f32 %v4657_v62, %v4652_v1  ;;  %v1470_v3 = vmul.f32 %v4657_v62, %v4671_v18  ;;  %v1471_v4 = vmul.f32 %v4657_v62, %v4653_v9 }
 0x1fb   : > { %v1472_v16 = vmul.f32 %v4657_v62, %v4672_v8  ;;  %v1509_v31 = vsel %vm841_vm4, %v1507_v11, %v1508_v60  ;;  %v1516_v44 = vrot.slane %v1449_v35, 1  ;;  %v1517_v25 = vrot.slane %v1450_v17, 1 }
 0x1fc   : > { %v1512_v45 = vsel %vm841_vm4, %v1510_v43, %v1511_v34  ;;  %v1515_v33 = vsel %vm841_vm4, %v1513_v63, %v1514_v0  ;;  %v1519_v23 = vrot.slane %v1451_v32, 1  ;;  %v1520_v26 = vrot.slane %v1452_v51, 1 }
 0x1fd   : > { %v1522_v1 = vrot.slane %v1453_v59, 1  ;;  %v1523_v20 = vrot.slane %v1454_v52, 1  ;;  %v1525_v54 = vrot.slane %v1455_v50, 1  ;;  %v1526_v61 = vrot.slane %v1456_v15, 1  ;;  %v4673_v50 = vld [vmem:[#allocation36_spill] sm:$0xff] }
 0x1fe   : > { %v1528_v10 = vrot.slane %v1457_v39, 1  ;;  %v1529_v18 = vrot.slane %v1458_v40, 1  ;;  %v1531_v29 = vrot.slane %v1459_v19, 1  ;;  %v1532_v41 = vrot.slane %v1460_v30, 1  ;;  %v4674_v39 = vld [vmem:[#allocation37_spill] sm:$0xff] }
 0x1ff   : > { %v1534_v9 = vrot.slane %v1461_v58, 1  ;;  %v1535_v62 = vrot.slane %v1462_v6, 1  ;;  %v1537_v8 = vrot.slane %v1463_v53, 1  ;;  %v1538_v11 = vrot.slane %v1464_v49, 1  ;;  %v2515_v6 = vld [vmem:[%s4364_s3 + $0x8] sm:$0x7] }
 0x200   : > { %v1540_v35 = vrot.slane %v1465_v38, 1  ;;  %v1541_v17 = vrot.slane %v1466_v7, 1  ;;  %v1543_v60 = vrot.slane %v1467_v5, 1  ;;  %v1544_v43 = vrot.slane %v1468_v56, 1  ;;  %v4675_v53 = vld [vmem:[#allocation8_spill] sm:$0xff] }
 0x201   : > { %v1546_v34 = vrot.slane %v1469_v37, 1  ;;  %v1547_v63 = vrot.slane %v1470_v3, 1  ;;  %v1549_v32 = vrot.slane %v1471_v4, 1  ;;  %v1550_v51 = vrot.slane %v1472_v16, 1 }
 0x202   : > { %v1518_v59 = vsel %vm841_vm4, %v1516_v44, %v1517_v25  ;;  %v1521_v52 = vsel %vm841_vm4, %v1519_v23, %v1520_v26  ;;  %v1552_v15 = vrot.slane %v4673_v50, 1  ;;  %v1553_v40 = vrot.slane %v4674_v39, 1  ;;  %v2516_v25 = vld [vmem:[#allocation2 + $0x30] sm:$0xff]  ;;  %v2529_v39 = vld [vmem:[#allocation2 + $0x98] sm:$0x3] }
 0x203   : > { %v1524_v19 = vsel %vm841_vm4, %v1522_v1, %v1523_v20  ;;  %v1527_v30 = vsel %vm841_vm4, %v1525_v54, %v1526_v61  ;;  %v1530_v58 = vsel %vm841_vm4, %v1528_v10, %v1529_v18  ;;  %v3839_v0 = vrot.slane %v2515_v6, %v4675_v53  ;;  %v2528_v50 = vld [vmem:[#allocation2 + $0x90] sm:$0xff]  ;;  %v2530_v53 = vld [vmem:[#allocation2 + $0xa0] sm:$0xff] }
 0x204   : > { %v1533_v49 = vsel %vm841_vm4, %v1531_v29, %v1532_v41  ;;  %v1536_v38 = vsel %vm841_vm4, %v1534_v9, %v1535_v62  ;;  %v1539_v7 = vsel %vm841_vm4, %v1537_v8, %v1538_v11  ;;  %v1542_v5 = vsel %vm841_vm4, %v1540_v35, %v1541_v17  ;;  %v2523_v35 = vld [vmem:[#allocation2 + $0x68] sm:$0x3] }
 0x205   : > { %v1545_v56 = vsel %vm841_vm4, %v1543_v60, %v1544_v43  ;;  %v1548_v37 = vsel %vm841_vm4, %v1546_v34, %v1547_v63  ;;  %v3848_v3 = vsel %vm841_vm4, %v1549_v32, %v1550_v51  ;;  %v1571_v4 = vadd.f32 %v1509_v31, %v3732_v36  ;;  %v2517_v31 = vld [vmem:[#allocation2 + $0x38] sm:$0x3]  ;;  %v2524_v60 = vld [vmem:[#allocation2 + $0x70] sm:$0xff] }
 0x206   : > { %v3852_v16 = vsel %vm841_vm4, %v1552_v15, %v1553_v40  ;;  %v1572_v41 = vadd.f32 %v1512_v45, %v3734_v27  ;;  %v3856_v9 = vadd.f32 %v1515_v33, %v3736_v22  ;;  %v3859_v29 = vadd.f32 %v1518_v59, %v3738_v21  ;;  %v2518_v33 = vld [vmem:[#allocation2 + $0x40] sm:$0xff]  ;;  %v2525_v34 = vld [vmem:[#allocation2 + $0x78] sm:$0x3] }
 0x207   : > { %v1591_v8 = vmul.f32 %v3839_v0, %v4638_v47  ;;  %v1592_v44 = vmul.f32 %v3839_v0, %v4658_v2  ;;  %v1593_v36 = vmul.f32 %v2516_v25, %v3839_v0  ;;  %v1594_v23 = vmul.f32 %v2517_v31, %v3839_v0  ;;  %v2526_v59 = vld [vmem:[#allocation2 + $0x80] sm:$0xff] }
 0x208   : > { %v3868_v27 = vadd.f32 %v1521_v52, %v3740_v48  ;;  %v3871_v22 = vadd.f32 %v1524_v19, %v3742_v55  ;;  %v3874_v21 = vadd.f32 %v1527_v30, %v3744_v12  ;;  %v3877_v47 = vadd.f32 %v1530_v58, %v3746_v46  ;;  %v2519_v48 = vld [vmem:[#allocation2 + $0x48] sm:$0x3]  ;;  %v2520_v46 = vld [vmem:[#allocation2 + $0x50] sm:$0xff]  ;;  %v3928_v31 = vld [vmem:[%s4365_s4] ss:$0 sm:$0xff] }
 0x209   : > { %v3880_v2 = vadd.f32 %v1533_v49, %v3748_v24  ;;  %v3883_v45 = vadd.f32 %v1536_v38, %v3750_v57  ;;  %v1595_v26 = vmul.f32 %v2518_v33, %v3839_v0  ;;  %v1596_v1 = vmul.f32 %v2519_v48, %v3839_v0  ;;  %v2521_v24 = vld [vmem:[#allocation2 + $0x58] sm:$0x3]  ;;  %v2527_v52 = vld [vmem:[#allocation2 + $0x88] sm:$0x3] }
 0x20a   : > { %v3888_v55 = vadd.f32 %v1539_v7, %v3752_v13  ;;  %v3891_v12 = vadd.f32 %v1542_v5, %v3754_v42  ;;  %v1597_v20 = vmul.f32 %v2520_v46, %v3839_v0  ;;  %v1598_v54 = vmul.f32 %v2521_v24, %v3839_v0  ;;  %v2522_v13 = vld [vmem:[#allocation2 + $0x60] sm:$0xff]  ;;  %v2531_v38 = vld [vmem:[#allocation2 + $0xa8] sm:$0x3]  ;;  %v2536_v46 = vld [vmem:[#allocation2 + $0xd0] sm:$0xff] }
 0x20b   : > { %v1655_v57 = vrot.slane %v1591_v8, 2  ;;  %v1656_v61 = vrot.slane %v1592_v44, 2  ;;  %v1658_v10 = vrot.slane %v1593_v36, 2  ;;  %v1659_v18 = vrot.slane %v1594_v23, 2  ;;  %v2533_v23 = vld [vmem:[#allocation2 + $0xb8] sm:$0x3] }
 0x20c   : > { %v3896_v62 = vadd.f32 %v1545_v56, %v3756_v28  ;;  %v3899_v11 = vadd.f32 %v1548_v37, %v3758_v14  ;;  %v1599_v42 = vmul.f32 %v2522_v13, %v3839_v0  ;;  %v1600_v17 = vmul.f32 %v2523_v35, %v3839_v0  ;;  %v2532_v37 = vld [vmem:[#allocation2 + $0xb0] sm:$0xff] }
 0x20d   : > { %v1601_v43 = vmul.f32 %v2524_v60, %v3839_v0  ;;  %v1602_v63 = vmul.f32 %v2525_v34, %v3839_v0  ;;  %v1661_v32 = vrot.slane %v1595_v26, 2  ;;  %v1662_v51 = vrot.slane %v1596_v1, 2  ;;  %v2534_v26 = vld [vmem:[#allocation2 + $0xc0] sm:$0xff]  ;;  %v2539_v34 = vld [vmem:[#allocation2 + $0xe8] sm:$0x3] }
 0x20e   : > { %v1603_v28 = vmul.f32 %v2526_v59, %v3839_v0  ;;  %v1604_v14 = vmul.f32 %v2527_v52, %v3839_v0  ;;  %v3908_v15 = vmul.f32 %v2528_v50, %v3839_v0  ;;  %v3911_v40 = vmul.f32 %v2529_v39, %v3839_v0  ;;  %v2541_v52 = vld [vmem:[#allocation2 + $0xf8] sm:$0x3] }
 0x20f   : > { %v1657_v19 = vsel %vm990_vm5, %v1655_v57, %v1656_v61  ;;  %v1660_v30 = vsel %vm990_vm5, %v1658_v10, %v1659_v18  ;;  %v1664_v58 = vrot.slane %v1597_v20, 2  ;;  %v1665_v6 = vrot.slane %v1598_v54, 2  ;;  %v2537_v61 = vld [vmem:[#allocation2 + $0xd8] sm:$0x3] }
 0x210   : > { %v3916_v49 = vmul.f32 %v2530_v53, %v3839_v0  ;;  %v3919_v7 = vmul.f32 %v2531_v38, %v3839_v0  ;;  %v1719_v5 = vadd.f32 %v1657_v19, %v1571_v4  ;;  %v1720_v56 = vadd.f32 %v1660_v30, %v1572_v41  ;;  %v2535_v41 = vld [vmem:[#allocation2 + $0xc8] sm:$0x3] }
 0x211   : > { %v3922_v8 = vmul.f32 %v2532_v37, %v3839_v0  ;;  %v1663_v44 = vsel %vm990_vm5, %v1661_v32, %v1662_v51  ;;  %v1667_v25 = vrot.slane %v1599_v42, 2  ;;  %v1668_v36 = vrot.slane %v1600_v17, 2  ;;  %v2540_v32 = vld [vmem:[#allocation2 + $0xf0] sm:$0xff] }
 0x212   : > { %v1610_v33 = vmul.f32 %v2533_v23, %v3839_v0  ;;  %v3932_v4 = vmul.f32 %v2534_v26, %v3839_v0  ;;  %v3935_v48 = vmul.f32 %v2535_v41, %v3839_v0  ;;  %v1721_v1 = vadd.f32 %v1663_v44, %v3856_v9  ;;  %v2538_v9 = vld [vmem:[#allocation2 + $0xe0] sm:$0xff]  ;;  %v4677_v23 = vld [vmem:[#allocation30_spill] sm:$0xff] }
 0x213   : > { %v3939_v20 = vmul.f32 %v2536_v46, %v3839_v0  ;;  %v1666_v24 = vsel %vm990_vm5, %v1664_v58, %v1665_v6  ;;  %v1670_v54 = vrot.slane %v1601_v43, 2  ;;  %v1671_v57 = vrot.slane %v1602_v63, 2 }
 0x214   : > { %v3943_v10 = vmul.f32 %v2537_v61, %v3839_v0  ;;  %v1722_v18 = vadd.f32 %v1666_v24, %v3859_v29  ;;  %v3947_v13 = vadd.f32 %v3928_v31, %v1719_v5  ;;  %v3950_v42 = vadd.f32 %v3928_v31, %v1720_v56  ;;  %v4676_v5 = vld [vmem:[#allocation61_spill] sm:$0xff] }
 0x215   : > { %v3953_v35 = vmul.f32 %v2538_v9, %v3839_v0  ;;  %v1669_v17 = vsel %vm990_vm5, %v1667_v25, %v1668_v36  ;;  %v1673_v60 = vrot.slane %v1603_v28, 2  ;;  %v1674_v43 = vrot.slane %v1604_v14, 2 }
 0x216   : > { %v1616_v63 = vmul.f32 %v2539_v34, %v3839_v0  ;;  %v3958_v29 = vmul.f32 %v2540_v32, %v3839_v0  ;;  %v1723_v51 = vadd.f32 %v1669_v17, %v3868_v27  ;;  %v3962_v59 = vadd.f32 %v3928_v31, %v1721_v1  ;;  %v2543_v34 = vld [vmem:[#allocation2 + $0x118] sm:$0x3] }
 0x217   : > { %v3965_v50 = vmul.f32 %v2541_v52, %v3839_v0  ;;  %v1672_v39 = vsel %vm990_vm5, %v1670_v54, %v1671_v57  ;;  %v1676_v28 = vrot.slane %v3908_v15, 2  ;;  %v1677_v14 = vrot.slane %v3911_v40, 2 }
 0x218   : > { %v1724_v19 = vadd.f32 %v1672_v39, %v3871_v22  ;;  %v3972_v30 = vadd.f32 %v3928_v31, %v1722_v18  ;;  %v1758_v27 = vsel %vm436_vm2, %v3947_v13, 0.0  ;;  %v1759_v58 = vsel %vm436_vm2, %v3950_v42, 0.0 }
 0x219   : > { %v1675_v6 = vsel %vm990_vm5, %v1673_v60, %v1674_v43  ;;  %v1679_v53 = vrot.slane %v3916_v49, 2  ;;  %v1680_v38 = vrot.slane %v3919_v7, 2  ;;  %v1760_v15 = vadd.f32 %v1759_v58, %v1758_v27  ;;  %v2542_v60 = vld [vmem:[#allocation2 + $0x110] sm:$0xff] }
 0x21a   : > { %v1619_v40 = vmul.f32 %v3839_v0, %v4676_v5  ;;  %v1725_v22 = vadd.f32 %v1675_v6, %v3874_v21  ;;  %v3985_v56 = vadd.f32 %v3928_v31, %v1723_v51  ;;  %v1761_v37 = vsel %vm436_vm2, %v3962_v59, 0.0 }
 0x21b   : > { %v1678_v44 = vsel %vm990_vm5, %v1676_v28, %v1677_v14  ;;  %v1682_v25 = vrot.slane %v3922_v8, 2  ;;  %v1683_v36 = vrot.slane %v1610_v33, 2  ;;  %v1762_v49 = vadd.f32 %v1761_v37, %v1760_v15  ;;  %v4678_v15 = vld [vmem:[#allocation31_spill] sm:$0xff] }
 0x21c   : > { %v1620_v7 = vmul.f32 %v3839_v0, %v4677_v23  ;;  %v1726_v26 = vadd.f32 %v1678_v44, %v3877_v47  ;;  %v3995_v41 = vadd.f32 %v3928_v31, %v1724_v19  ;;  %v1763_v21 = vsel %vm436_vm2, %v3972_v30, 0.0  ;;  %v4679_v44 = vld [vmem:[#allocation50_spill] sm:$0xff] }
 0x21d   : > { %v1681_v1 = vsel %vm990_vm5, %v1679_v53, %v1680_v38  ;;  %v1685_v46 = vrot.slane %v3932_v4, 2  ;;  %v1686_v24 = vrot.slane %v3935_v48, 2  ;;  %v1764_v8 = vadd.f32 %v1763_v21, %v1762_v49 }
 0x21e   : > { %v1688_v33 = vrot.slane %v3939_v20, 2  ;;  %v1727_v54 = vadd.f32 %v1681_v1, %v3880_v2  ;;  %v4005_v57 = vadd.f32 %v3928_v31, %v1725_v22  ;;  %v1765_v47 = vsel %vm436_vm2, %v3985_v56, 0.0 }
 0x21f   : > { %v1684_v61 = vsel %vm990_vm5, %v1682_v25, %v1683_v36  ;;  %v1689_v18 = vrot.slane %v3943_v10, 2  ;;  %v1691_v9 = vrot.slane %v3953_v35, 2  ;;  %v1766_v4 = vadd.f32 %v1765_v47, %v1764_v8 }
 0x220   : > { %v1692_v17 = vrot.slane %v1616_v63, 2  ;;  %v1728_v48 = vadd.f32 %v1684_v61, %v3883_v45  ;;  %v4014_v20 = vadd.f32 %v3928_v31, %v1726_v26  ;;  %v1767_v2 = vsel %vm436_vm2, %v3995_v41, 0.0 }
 0x221   : > { %v1621_v43 = vmul.f32 %v2542_v60, %v3839_v0  ;;  %v1622_v32 = vmul.f32 %v2543_v34, %v3839_v0  ;;  %v1687_v10 = vsel %vm990_vm5, %v1685_v46, %v1686_v24  ;;  %v1768_v51 = vadd.f32 %v1767_v2, %v1766_v4 }
 0x222   : > { %v1694_v35 = vrot.slane %v3958_v29, 2  ;;  %v1729_v63 = vadd.f32 %v1687_v10, %v3888_v55  ;;  %v4024_v45 = vadd.f32 %v3928_v31, %v1727_v54  ;;  %v1769_v52 = vsel %vm436_vm2, %v4005_v57, 0.0 }
 0x223   : > { %v1690_v39 = vsel %vm990_vm5, %v1688_v33, %v1689_v18  ;;  %v1695_v28 = vrot.slane %v3965_v50, 2  ;;  %v1697_v14 = vrot.slane %v1619_v40, 2  ;;  %v1770_v19 = vadd.f32 %v1769_v52, %v1768_v51 }
 0x224   : > { %v1693_v0 = vsel %vm990_vm5, %v1691_v9, %v1692_v17  ;;  %v1730_v27 = vadd.f32 %v1690_v39, %v3891_v12  ;;  %v4033_v29 = vadd.f32 %v3928_v31, %v1728_v48  ;;  %v1771_v55 = vsel %vm436_vm2, %v4014_v20, 0.0 }
 0x225   : > { %v1698_v58 = vrot.slane %v1620_v7, 2  ;;  %v1700_v6 = vrot.slane %v1621_v43, 2  ;;  %v1701_v53 = vrot.slane %v1622_v32, 2  ;;  %v1772_v38 = vadd.f32 %v1771_v55, %v1770_v19 }
 0x226   : > { %v1585_v5 = vadd.f32 %v3848_v3, %v4678_v15  ;;  %v1731_v50 = vadd.f32 %v1693_v0, %v3896_v62  ;;  %v4041_v40 = vadd.f32 %v3928_v31, %v1729_v63  ;;  %v1773_v12 = vsel %vm436_vm2, %v4024_v45, 0.0 }
 0x227   : > { %v1696_v22 = vsel %vm990_vm5, %v1694_v35, %v1695_v28  ;;  %v1774_v37 = vadd.f32 %v1773_v12, %v1772_v38  ;;  %v1586_v25 = vadd.f32 %v3852_v16, %v4679_v44  ;;  %v4050_v49 = vadd.f32 %v3928_v31, %v1730_v27 }
 0x228   : > { %v1732_v36 = vadd.f32 %v1696_v22, %v3899_v11  ;;  %v1775_v3 = vsel %vm436_vm2, %v4033_v29, 0.0  ;;  %v1699_v62 = vsel %vm990_vm5, %v1697_v14, %v1698_v58  ;;  %v1702_v23 = vsel %vm990_vm5, %v1700_v6, %v1701_v53 }
 0x229   : > { %v1776_v7 = vadd.f32 %v1775_v3, %v1774_v37  ;;  %v1733_v26 = vadd.f32 %v1699_v62, %v1585_v5  ;;  %v1754_v21 = vadd.f32 %v3928_v31, %v1731_v50  ;;  %v1777_v1 = vsel %vm436_vm2, %v4041_v40, 0.0 }
 0x22a   : > { %v1734_v46 = vadd.f32 %v1702_v23, %v1586_v25  ;;  %v1755_v11 = vadd.f32 %v3928_v31, %v1732_v36  ;;  %v1779_v24 = vsel %vm436_vm2, %v4050_v49, 0.0 }
 0x22b   : > { %v1778_v16 = vadd.f32 %v1777_v1, %v1776_v7  ;;  %v1756_v33 = vadd.f32 %v3928_v31, %v1733_v26  ;;  %v1781_v54 = vsel %vm436_vm2, %v1754_v21, 0.0 }
 0x22c   : > { %v4065_v61 = vadd.f32 %v3928_v31, %v1734_v46  ;;  %v1783_v18 = vsel %vm436_vm2, %v1755_v11, 0.0 }
 0x22d   : > { %v1780_v8 = vadd.f32 %v1779_v24, %v1778_v16  ;;  %v1785_v4 = vsel %vm436_vm2, %v1756_v33, 0.0 }
 0x22e   : > { %v1787_v48 = vsel %vm436_vm2, %v4065_v61, 0.0 }
 0x22f   : > { %v1782_v47 = vadd.f32 %v1781_v54, %v1780_v8 }
 0x231   : > { %v1784_v9 = vadd.f32 %v1783_v18, %v1782_v47 }
 0x233   : > { %v1786_v17 = vadd.f32 %v1785_v4, %v1784_v9 }
 0x235   : > { %v1788_v2 = vadd.f32 %v1787_v48, %v1786_v17 }
 0x237   : > { %v1789_v60 = vrot.slane %v1788_v2, 4 }
 0x239   : > { %v1790_v43 = vadd.f32 %v1789_v60, %v1788_v2 }
 0x23b   : > { %v1791_v34 = vrot.slane %v1790_v43, 2 }
 0x23d   : > { %v1792_v32 = vadd.f32 %v1791_v34, %v1790_v43 }
 0x23f   : > { %v1793_v10 = vrot.slane %v1792_v32, 1 }
 0x241   : > { %v1794_v51 = vadd.f32 %v1793_v10, %v1792_v32 }
 0x243   : > { %v1795_v35 = vmul.f32 0.0078125, %v1794_v51 }
 0x245   : > { %v4072_v31 = vsub.f32 %v3947_v13, %v1795_v35  ;;  %v4075_v63 = vsub.f32 %v3950_v42, %v1795_v35  ;;  %v4078_v52 = vsub.f32 %v3962_v59, %v1795_v35  ;;  %v4081_v39 = vsub.f32 %v3972_v30, %v1795_v35 }
 0x246   : > { %v4088_v19 = vsub.f32 %v3985_v56, %v1795_v35  ;;  %v4093_v42 = vsub.f32 %v3995_v41, %v1795_v35  ;;  %v4100_v55 = vsub.f32 %v4005_v57, %v1795_v35  ;;  %v4106_v41 = vsub.f32 %v4014_v20, %v1795_v35 }
 0x247   : > { %v1812_v28 = vmul.f32 %v4072_v31, %v4072_v31  ;;  %v1813_v14 = vmul.f32 %v4075_v63, %v4075_v63  ;;  %v1814_v13 = vmul.f32 %v4078_v52, %v4078_v52  ;;  %v1815_v59 = vmul.f32 %v4081_v39, %v4081_v39 }
 0x248   : > { %v1816_v56 = vmul.f32 %v4088_v19, %v4088_v19  ;;  %v1817_v53 = vmul.f32 %v4093_v42, %v4093_v42  ;;  %v4112_v5 = vsub.f32 %v4024_v45, %v1795_v35  ;;  %v1818_v57 = vmul.f32 %v4100_v55, %v4100_v55 }
 0x249   : > { %v1828_v30 = vsel %vm436_vm2, %v1812_v28, 0.0  ;;  %v1829_v0 = vsel %vm436_vm2, %v1813_v14, 0.0  ;;  %v1831_v58 = vsel %vm436_vm2, %v1814_v13, 0.0  ;;  %v1833_v38 = vsel %vm436_vm2, %v1815_v59, 0.0 }
 0x24a   : > { %v1830_v27 = vadd.f32 %v1829_v0, %v1828_v30  ;;  %v1835_v50 = vsel %vm436_vm2, %v1816_v56, 0.0  ;;  %v4118_v22 = vsub.f32 %v4033_v29, %v1795_v35  ;;  %v1819_v20 = vmul.f32 %v4106_v41, %v4106_v41 }
 0x24b   : > { %v1837_v37 = vsel %vm436_vm2, %v1817_v53, 0.0  ;;  %v4124_v25 = vsub.f32 %v4041_v40, %v1795_v35  ;;  %v1820_v45 = vmul.f32 %v4112_v5, %v4112_v5  ;;  %v1839_v36 = vsel %vm436_vm2, %v1818_v57, 0.0 }
 0x24c   : > { %v1832_v6 = vadd.f32 %v1831_v58, %v1830_v27  ;;  %v4130_v62 = vsub.f32 %v4050_v49, %v1795_v35  ;;  %v1821_v29 = vmul.f32 %v4118_v22, %v4118_v22  ;;  %v1841_v23 = vsel %vm436_vm2, %v1819_v20, 0.0 }
 0x24d   : > { %v1808_v26 = vsub.f32 %v1754_v21, %v1795_v35  ;;  %v1822_v40 = vmul.f32 %v4124_v25, %v4124_v25  ;;  %v1843_v1 = vsel %vm436_vm2, %v1820_v45, 0.0  ;;  %v4138_v46 = vsub.f32 %v1755_v11, %v1795_v35 }
 0x24e   : > { %v1834_v15 = vadd.f32 %v1833_v38, %v1832_v6  ;;  %v1823_v24 = vmul.f32 %v4130_v62, %v4130_v62  ;;  %v1845_v49 = vsel %vm436_vm2, %v1821_v29, 0.0  ;;  %v4143_v54 = vsub.f32 %v1756_v33, %v1795_v35 }
 0x24f   : > { %v1824_v47 = vmul.f32 %v1808_v26, %v1808_v26  ;;  %v1847_v18 = vsel %vm436_vm2, %v1822_v40, 0.0  ;;  %v4147_v9 = vsub.f32 %v4065_v61, %v1795_v35  ;;  %v1825_v4 = vmul.f32 %v4138_v46, %v4138_v46 }
 0x250   : > { %v1836_v12 = vadd.f32 %v1835_v50, %v1834_v15  ;;  %v1849_v11 = vsel %vm436_vm2, %v1823_v24, 0.0  ;;  %v1826_v48 = vmul.f32 %v4143_v54, %v4143_v54 }
 0x251   : > { %v1851_v2 = vsel %vm436_vm2, %v1824_v47, 0.0  ;;  %v1827_v60 = vmul.f32 %v4147_v9, %v4147_v9  ;;  %v1853_v43 = vsel %vm436_vm2, %v1825_v4, 0.0 }
 0x252   : > { %v1838_v44 = vadd.f32 %v1837_v37, %v1836_v12  ;;  %v1855_v61 = vsel %vm436_vm2, %v1826_v48, 0.0 }
 0x253   : > { %v1857_v10 = vsel %vm436_vm2, %v1827_v60, 0.0 }
 0x254   : > { %v1840_v3 = vadd.f32 %v1839_v36, %v1838_v44 }
 0x256   : > { %v1842_v7 = vadd.f32 %v1841_v23, %v1840_v3 }
 0x258   : > { %v1844_v16 = vadd.f32 %v1843_v1, %v1842_v7 }
 0x25a   : > { %v1846_v8 = vadd.f32 %v1845_v49, %v1844_v16 }
 0x25c   : > { %v1848_v21 = vadd.f32 %v1847_v18, %v1846_v8 }
 0x25e   : > { %v1850_v17 = vadd.f32 %v1849_v11, %v1848_v21 }
 0x260   : > { %v1852_v33 = vadd.f32 %v1851_v2, %v1850_v17 }
 0x262   : > { %v1854_v34 = vadd.f32 %v1853_v43, %v1852_v33 }
 0x264   : > { %v1856_v32 = vadd.f32 %v1855_v61, %v1854_v34 }
 0x266   : > { %v1858_v51 = vadd.f32 %v1857_v10, %v1856_v32  ;;  %v4680_v10 = vld [vmem:[#allocation18_spill] sm:$0xff] }
 0x268   : > { %v1859_v35 = vrot.slane %v1858_v51, 4 }
 0x26a   : > { %v1860_v28 = vadd.f32 %v1859_v35, %v1858_v51 }
 0x26c   : > { %v1861_v14 = vrot.slane %v1860_v28, 2 }
 0x26e   : > { %v1862_v13 = vadd.f32 %v1861_v14, %v1860_v28 }
 0x270   : > { %v1863_v59 = vrot.slane %v1862_v13, 1 }
 0x272   : > { %v1864_v30 = vadd.f32 %v1863_v59, %v1862_v13  ;;  %v4681_v13 = vld [vmem:[#allocation19_spill] sm:$0xff] }
 0x274   : > { %v1865_v0 = vmul.f32 0.0078125, %v1864_v30 }
 0x276   : > { %v1866_v27 = vadd.f32 1e-05, %v1865_v0 }
 0x278   : > { %2479 = vrsqrt.f32 %v1866_v27 }
 0x282   : > { %v2480_v56 = vpop.eup %2479 }
 0x283   : > { %v1868_v58 = vmul.f32 %v2480_v56, %v4072_v31  ;;  %v1869_v6 = vmul.f32 %v2480_v56, %v4075_v63  ;;  %v1870_v53 = vmul.f32 %v2480_v56, %v4078_v52  ;;  %v1871_v38 = vmul.f32 %v2480_v56, %v4081_v39 }
 0x284   : > { %v1872_v15 = vmul.f32 %v2480_v56, %v4088_v19  ;;  %v1873_v57 = vmul.f32 %v2480_v56, %v4093_v42  ;;  %v1874_v20 = vmul.f32 %v2480_v56, %v4100_v55  ;;  %v1875_v37 = vmul.f32 %v2480_v56, %v4106_v41 }
 0x285   : > { %v1900_v50 = vmul.f32 0.70710677, %v1868_v58  ;;  %v1901_v12 = vmul.f32 0.70710677, %v1869_v6  ;;  %v1902_v44 = vmul.f32 0.70710677, %v1870_v53  ;;  %v1876_v39 = vmul.f32 %v2480_v56, %v4112_v5 }
 0x286   : > { %v1903_v45 = vmul.f32 0.70710677, %v1871_v38  ;;  %v1904_v31 = vmul.f32 0.70710677, %v1872_v15  ;;  %v1905_v63 = vmul.f32 0.70710677, %v1873_v57  ;;  %v1877_v19 = vmul.f32 %v2480_v56, %v4118_v22 }
 0x287   : > { %2481 = verf.f32 %v1900_v50  ;;  %v1906_v52 = vmul.f32 0.70710677, %v1874_v20  ;;  %v1907_v36 = vmul.f32 0.70710677, %v1875_v37  ;;  %v4171_v42 = vmul.f32 %v2480_v56, %v4124_v25  ;;  %v4683_v50 = vld [vmem:[#allocation4_spill] sm:$0xff] }
 0x288   : > { %2483 = verf.f32 %v1901_v12  ;;  %v4174_v55 = vmul.f32 %v2480_v56, %v4130_v62  ;;  %v1908_v41 = vmul.f32 0.70710677, %v1876_v39  ;;  %v4176_v3 = vmul.f32 %v2480_v56, %v1808_v26 }
 0x289   : > { %2485 = verf.f32 %v1902_v44  ;;  %v1909_v29 = vmul.f32 0.70710677, %v1877_v19  ;;  %v1910_v23 = vmul.f32 0.70710677, %v4171_v42  ;;  %v4181_v22 = vmul.f32 %v2480_v56, %v4138_v46 }
 0x28a   : > { %2487 = verf.f32 %v1903_v45  ;;  %v1911_v5 = vmul.f32 0.70710677, %v4174_v55  ;;  %v1912_v25 = vmul.f32 0.70710677, %v4176_v3  ;;  %v1884_v62 = vmul.f32 0.5, %v1868_v58  ;;  %v4682_v58 = vld [vmem:[#allocation3_spill] sm:$0xff] }
 0x28b   : > { %2489 = verf.f32 %v1904_v31  ;;  %v1913_v7 = vmul.f32 0.70710677, %v4181_v22  ;;  %v4186_v26 = vmul.f32 %v2480_v56, %v4143_v54  ;;  %v1885_v1 = vmul.f32 0.5, %v1869_v6  ;;  %v4684_v45 = vld [vmem:[#allocation5_spill] sm:$0xff] }
 0x28c   : > { %2491 = verf.f32 %v1905_v63  ;;  %v1886_v16 = vmul.f32 0.5, %v1870_v53  ;;  %v1887_v24 = vmul.f32 0.5, %v1871_v38  ;;  %v1888_v47 = vmul.f32 0.5, %v1872_v15 }
 0x28d   : > { %2493 = verf.f32 %v1906_v52  ;;  %v4189_v46 = vmul.f32 %v2480_v56, %v4147_v9  ;;  %v1889_v4 = vmul.f32 0.5, %v1873_v57  ;;  %v1890_v11 = vmul.f32 0.5, %v1874_v20 }
 0x28e   : > { %2495 = verf.f32 %v1907_v36  ;;  %v1914_v2 = vmul.f32 0.70710677, %v4186_v26  ;;  %v1891_v34 = vmul.f32 0.5, %v1875_v37  ;;  %v1892_v61 = vmul.f32 0.5, %v1876_v39 }
 0x28f   : > { %2497 = verf.f32 %v1908_v41  ;;  %v1915_v28 = vmul.f32 0.70710677, %v4189_v46  ;;  %v1893_v27 = vmul.f32 0.5, %v1877_v19  ;;  %v4685_v19 = vld [vmem:[#allocation6_spill] sm:$0xff] }
 0x290   : > { %2499 = verf.f32 %v1909_v29 }
 0x291   : > { %v2482_v40 = vpop.eup %2481  ;;  %2501 = verf.f32 %v1910_v23 }
 0x292   : > { %v2484_v49 = vpop.eup %2483  ;;  %v1932_v8 = vadd.f32 1.0, %v2482_v40  ;;  %2503 = verf.f32 %v1911_v5 }
 0x293   : > { %v2486_v18 = vpop.eup %2485  ;;  %v1933_v21 = vadd.f32 1.0, %v2484_v49  ;;  %2505 = verf.f32 %v1912_v25  ;;  %v4687_v49 = vld [vmem:[#allocation9_spill] sm:$0xff] }
 0x294   : > { %v2488_v17 = vpop.eup %2487  ;;  %v1948_v54 = vmul.f32 %v1932_v8, %v1884_v62  ;;  %v1934_v48 = vadd.f32 1.0, %v2486_v18  ;;  %2507 = verf.f32 %v1913_v7 }
 0x295   : > { %v2490_v33 = vpop.eup %2489  ;;  %v1949_v60 = vmul.f32 %v1933_v21, %v1885_v1  ;;  %v1935_v43 = vadd.f32 1.0, %v2488_v17  ;;  %2509 = verf.f32 %v1914_v2  ;;  %v4688_v21 = vld [vmem:[#allocation10_spill] sm:$0xff]  ;;  %v1894_v2 = vmul.f32 0.5, %v4171_v42 }
 0x296   : > { %v2492_v32 = vpop.eup %2491  ;;  %v1964_v9 = vadd.f32 %v1948_v54, %v4680_v10  ;;  %v1950_v51 = vmul.f32 %v1934_v48, %v1886_v16  ;;  %v1936_v35 = vadd.f32 1.0, %v2490_v33  ;;  %2511 = verf.f32 %v1915_v28  ;;  %v4686_v16 = vld [vmem:[#allocation7_spill] sm:$0xff] }
 0x297   : > { %v2494_v14 = vpop.eup %2493  ;;  %v1965_v59 = vadd.f32 %v1949_v60, %v4681_v13  ;;  %v1951_v30 = vmul.f32 %v1935_v43, %v1887_v24  ;;  %v1937_v0 = vadd.f32 1.0, %v2492_v32  ;;  %v1895_v33 = vmul.f32 0.5, %v4174_v55  ;;  %v4691_v13 = vld [vmem:[#allocation13_spill] sm:$0xff] }
 0x298   : > { %v2496_v56 = vpop.eup %2495  ;;  %v1966_v6 = vadd.f32 %v1950_v51, %v4682_v58  ;;  %v1952_v53 = vmul.f32 %v1936_v35, %v1888_v47  ;;  %v1938_v38 = vadd.f32 1.0, %v2494_v14  ;;  %v1896_v43 = vmul.f32 0.5, %v4176_v3  ;;  %v4690_v14 = vld [vmem:[#allocation12_spill] sm:$0xff]  ;;  %v4692_v3 = vld [vmem:[#allocation14_spill] sm:$0xff] }
 0x299   : > { %v2498_v15 = vpop.eup %2497  ;;  %v1980_v57 = vpack.c.bf16 %v1965_v59, %v1964_v9  ;;  %v1967_v12 = vadd.f32 %v1951_v30, %v4683_v50  ;;  %v1953_v20 = vmul.f32 %v1937_v0, %v1889_v4  ;;  %v1939_v37 = vadd.f32 1.0, %v2496_v56 }
 0x29a   : > { %v2500_v44 = vpop.eup %2499  ;;  %v1968_v31 = vadd.f32 %v1952_v53, %v4684_v45  ;;  %v1954_v63 = vmul.f32 %v1938_v38, %v1890_v11  ;;  %v1940_v52 = vadd.f32 1.0, %v2498_v15  ;;  %v4689_v11 = vld [vmem:[#allocation11_spill] sm:$0xff]  ;;  %v1898_v56 = vmul.f32 0.5, %v4186_v26 }
 0x29b   : > { %v2502_v36 = vpop.eup %2501  ;;  %2417 = vmatprep.mubr.msk.bf16.mxu1 %vm436_vm2, %v1980_v57  ;;  %v1981_v39 = vpack.c.bf16 %v1967_v12, %v1966_v6  ;;  %v1969_v41 = vadd.f32 %v1953_v20, %v4685_v19  ;;  %v1955_v29 = vmul.f32 %v1939_v37, %v1891_v34  ;;  %v1941_v23 = vadd.f32 1.0, %v2500_v44  ;;  %v4694_v57 = vld [vmem:[#allocation16_spill] sm:$0xff]  ;;  %v4695_v12 = vld [vmem:[#allocation17_spill] sm:$0xff]  ;;  %v2362_v26 = vld [vmem:[%s4367_s6] ss:$0 sm:$0xff] }
 0x29c   : > { %v2504_v5 = vpop.eup %2503  ;;  %v1956_v25 = vmul.f32 %v1940_v52, %v1892_v61  ;;  %v1970_v24 = vadd.f32 %v1954_v63, %v4686_v16  ;;  %v1942_v47 = vadd.f32 1.0, %v2502_v36  ;;  %v1897_v34 = vmul.f32 0.5, %v4181_v22  ;;  %v4693_v22 = vld [vmem:[#allocation15_spill] sm:$0xff] }
 0x29d   : > { %v2506_v62 = vpop.eup %2505  ;;  %2418 = vmatmul.mubr.msk.bf16.vlgmr.msra.gmra.mrb[0].mxu1 %vm436_vm2, %v1981_v39  ;;  %v1982_v7 = vpack.c.bf16 %v1969_v41, %v1968_v31  ;;  %v1957_v40 = vmul.f32 %v1941_v23, %v1893_v27  ;;  %v1971_v8 = vadd.f32 %v1955_v29, %v4687_v49  ;;  %v1943_v18 = vadd.f32 1.0, %v2504_v5 }
 0x29e   : > { %v2508_v1 = vpop.eup %2507  ;;  %v1972_v4 = vadd.f32 %v1956_v25, %v4688_v21  ;;  %v1944_v54 = vadd.f32 1.0, %v2506_v62  ;;  %v1958_v32 = vmul.f32 %v1942_v47, %v1894_v2  ;;  %v1899_v58 = vmul.f32 0.5, %v4189_v46 }
 0x29f   : > { %2421 = vmatprep.mubr.msk.bf16.mxu1 %vm436_vm2, %v1982_v7  ;;  %v1973_v17 = vadd.f32 %v1957_v40, %v4689_v11  ;;  %v1945_v48 = vadd.f32 1.0, %v2508_v1  ;;  %v2510_v60 = vpop.eup %2509  ;;  %v1983_v61 = vpack.c.bf16 %v1971_v8, %v1970_v24  ;;  %v1959_v10 = vmul.f32 %v1943_v18, %v1895_v33 }
 0x2a0   : > { %v2512_v9 = vpop.eup %2511  ;;  %v1960_v35 = vmul.f32 %v1944_v54, %v1896_v43  ;;  %v1974_v42 = vadd.f32 %v1958_v32, %v4690_v14  ;;  %v1946_v59 = vadd.f32 1.0, %v2510_v60 }
 0x2a1   : > { %v1984_v51 = vpack.c.bf16 %v1973_v17, %v1972_v4  ;;  %v1961_v28 = vmul.f32 %v1945_v48, %v1897_v34  ;;  %v1975_v55 = vadd.f32 %v1959_v10, %v4691_v13  ;;  %v1947_v30 = vadd.f32 1.0, %v2512_v9 }
 0x2a2   : > { %v1976_v0 = vadd.f32 %v1960_v35, %v4692_v3  ;;  %v1962_v53 = vmul.f32 %v1946_v59, %v1898_v56 }
 0x2a3   : > { %v1977_v27 = vadd.f32 %v1961_v28, %v4693_v22  ;;  %v1985_v6 = vpack.c.bf16 %v1975_v55, %v1974_v42  ;;  %v1963_v38 = vmul.f32 %v1947_v30, %v1899_v58 }
 0x2a4   : > { %v1978_v50 = vadd.f32 %v1962_v53, %v4694_v57 }
 0x2a5   : > { %2422 = vmatmul.mubr.msk.bf16.gmra.mrb[4].mxu1 %vm436_vm2, %v1983_v61  ;;  %v1986_v15 = vpack.c.bf16 %v1977_v27, %v1976_v0  ;;  %v1979_v20 = vadd.f32 %v1963_v38, %v4695_v12 }
 0x2a6   : > { %2425 = vmatprep.mubr.msk.bf16.mxu1 %vm436_vm2, %v1984_v51 }
 0x2a7   : > { %v1987_v37 = vpack.c.bf16 %v1979_v20, %v1978_v50 }
 0x2ad   : > { %2426 = vmatmul.mubr.msk.bf16.gmra.mrb[8].mxu1 %vm436_vm2, %v1985_v6 }
 0x2ae   : > { %2429 = vmatprep.mubr.msk.bf16.mxu1 %vm436_vm2, %v1986_v15 }
 0x2b5   : > { %2430 = vmatmul.mubr.msk.bf16.gmra.mrb[12].mxu1 %vm436_vm2, %v1987_v37 }
 0x370   : > { %v2419_v46 = vpop.f32.mrb[0].mxu1 }
 0x371   : > { %v2069_v44 = vpop.f32.mrb[1].mxu1  ;;  %v4228_v52 = vadd.f32 %v2419_v46, %v2362_v26 }
 0x372   : > { %v4226_v45 = vadd.f32 %v2362_v26, %v2069_v44  ;;  %v2420_v31 = vpop.f32.mrb[2].mxu1 }
 0x373   : > { %v2072_v63 = vpop.f32.mrb[3].mxu1  ;;  %v4234_v19 = vadd.f32 %v2420_v31, %v2362_v26  ;;  %v2135_v23 = vsel %vm310_vm1, %v4228_v52, 0.0 }
 0x374   : > { %v4230_v36 = vadd.f32 %v2362_v26, %v2072_v63  ;;  %v2132_v39 = vsel %vm310_vm1, %v4226_v45, 0.0 }
 0x375   : > { %v2137_v7 = vsel %vm310_vm1, %v4234_v19, 0.0 }
 0x376   : > { %v2133_v41 = vsel %vm310_vm1, %v4230_v36, 0.0 }
 0x377   : > { %v2134_v29 = vadd.f32 %v2133_v41, %v2132_v39 }
 0x378   : > { %v2423_v5 = vpop.f32.mrb[4].mxu1 }
 0x379   : > { %v2136_v25 = vadd.f32 %v2135_v23, %v2134_v29  ;;  %v2085_v62 = vpop.f32.mrb[5].mxu1  ;;  %v2094_v49 = vadd.f32 %v2423_v5, %v2362_v26 }
 0x37a   : > { %v2086_v40 = vadd.f32 %v2362_v26, %v2085_v62  ;;  %v2424_v1 = vpop.f32.mrb[6].mxu1 }
 0x37b   : > { %v2138_v16 = vadd.f32 %v2137_v7, %v2136_v25  ;;  %v2088_v24 = vpop.f32.mrb[7].mxu1  ;;  %v2097_v21 = vadd.f32 %v2424_v1, %v2362_v26  ;;  %v2143_v17 = vsel %vm310_vm1, %v2094_v49, 0.0 }
 0x37c   : > { %v2139_v8 = vsel %vm310_vm1, %v2086_v40, 0.0  ;;  %v2089_v47 = vadd.f32 %v2362_v26, %v2088_v24 }
 0x37d   : > { %v2140_v18 = vadd.f32 %v2139_v8, %v2138_v16  ;;  %v2145_v33 = vsel %vm310_vm1, %v2097_v21, 0.0 }
 0x37e   : > { %v2141_v4 = vsel %vm310_vm1, %v2089_v47, 0.0 }
 0x37f   : > { %v2142_v11 = vadd.f32 %v2141_v4, %v2140_v18 }
 0x380   : > { %v2427_v54 = vpop.f32.mrb[8].mxu1 }
 0x381   : > { %v2144_v48 = vadd.f32 %v2143_v17, %v2142_v11  ;;  %v2101_v2 = vpop.f32.mrb[9].mxu1  ;;  %v2110_v32 = vadd.f32 %v2427_v54, %v2362_v26 }
 0x382   : > { %v2102_v60 = vadd.f32 %v2362_v26, %v2101_v2  ;;  %v2428_v43 = vpop.f32.mrb[10].mxu1 }
 0x383   : > { %v2146_v34 = vadd.f32 %v2145_v33, %v2144_v48  ;;  %v2104_v61 = vpop.f32.mrb[11].mxu1  ;;  %v2113_v35 = vadd.f32 %v2428_v43, %v2362_v26  ;;  %v2151_v42 = vsel %vm310_vm1, %v2110_v32, 0.0 }
 0x384   : > { %v2147_v10 = vsel %vm310_vm1, %v2102_v60, 0.0  ;;  %v2105_v9 = vadd.f32 %v2362_v26, %v2104_v61 }
 0x385   : > { %v2148_v51 = vadd.f32 %v2147_v10, %v2146_v34  ;;  %v2153_v30 = vsel %vm310_vm1, %v2113_v35, 0.0 }
 0x386   : > { %v2149_v28 = vsel %vm310_vm1, %v2105_v9, 0.0 }
 0x387   : > { %v2150_v14 = vadd.f32 %v2149_v28, %v2148_v51 }
 0x388   : > { %v2431_v13 = vpop.f32.mrb[12].mxu1 }
 0x389   : > { %v2152_v55 = vadd.f32 %v2151_v42, %v2150_v14  ;;  %v2117_v59 = vpop.f32.mrb[13].mxu1  ;;  %v2126_v56 = vadd.f32 %v2431_v13, %v2362_v26 }
 0x38a   : > { %v2118_v3 = vadd.f32 %v2362_v26, %v2117_v59  ;;  %v2432_v0 = vpop.f32.mrb[14].mxu1 }
 0x38b   : > { %v2154_v22 = vadd.f32 %v2153_v30, %v2152_v55  ;;  %v2120_v27 = vpop.f32.mrb[15].mxu1  ;;  %v2129_v38 = vadd.f32 %v2432_v0, %v2362_v26  ;;  %v2159_v50 = vsel %vm310_vm1, %v2126_v56, 0.0 }
 0x38c   : > { %v2155_v58 = vsel %vm310_vm1, %v2118_v3, 0.0  ;;  %v2121_v6 = vadd.f32 %v2362_v26, %v2120_v27 }
 0x38d   : > { %v2156_v53 = vadd.f32 %v2155_v58, %v2154_v22  ;;  %v2161_v20 = vsel %vm310_vm1, %v2129_v38, 0.0 }
 0x38e   : > { %v2157_v15 = vsel %vm310_vm1, %v2121_v6, 0.0 }
 0x38f   : > { %v2158_v57 = vadd.f32 %v2157_v15, %v2156_v53 }
 0x391   : > { %v2160_v12 = vadd.f32 %v2159_v50, %v2158_v57 }
 0x393   : > { %v2162_v37 = vadd.f32 %v2161_v20, %v2160_v12 }
 0x395   : > { %v2163_v46 = vrot.slane %v2162_v37, 4 }
 0x397   : > { %v2164_v44 = vadd.f32 %v2163_v46, %v2162_v37 }
 0x399   : > { %v2165_v31 = vrot.slane %v2164_v44, 2 }
 0x39b   : > { %v2166_v63 = vadd.f32 %v2165_v31, %v2164_v44 }
 0x39d   : > { %v2167_v39 = vrot.slane %v2166_v63, 1 }
 0x39f   : > { %v2168_v41 = vadd.f32 %v2167_v39, %v2166_v63 }
 0x3a1   : > { %v2169_v29 = vmul.f32 0.0078125, %v2168_v41 }
 0x3a3   : > { %v4254_v23 = vsub.f32 %v2121_v6, %v2169_v29  ;;  %v4257_v26 = vsub.f32 %v4226_v45, %v2169_v29  ;;  %v4260_v5 = vsub.f32 %v4230_v36, %v2169_v29  ;;  %v4263_v25 = vsub.f32 %v4228_v52, %v2169_v29 }
 0x3a4   : > { %v4266_v62 = vsub.f32 %v4234_v19, %v2169_v29  ;;  %v4268_v7 = vsub.f32 %v2086_v40, %v2169_v29  ;;  %v4270_v1 = vsub.f32 %v2089_v47, %v2169_v29  ;;  %v4272_v16 = vsub.f32 %v2094_v49, %v2169_v29 }
 0x3a5   : > { %v4274_v24 = vsub.f32 %v2097_v21, %v2169_v29  ;;  %v4276_v8 = vsub.f32 %v2102_v60, %v2169_v29  ;;  %v4278_v45 = vsub.f32 %v2105_v9, %v2169_v29  ;;  %v4280_v36 = vsub.f32 %v2110_v32, %v2169_v29 }
 0x3a6   : > { %v4282_v18 = vsub.f32 %v2113_v35, %v2169_v29  ;;  %v4284_v52 = vsub.f32 %v2118_v3, %v2169_v29  ;;  %v4286_v19 = vsub.f32 %v2126_v56, %v2169_v29  ;;  %v4288_v40 = vsub.f32 %v2129_v38, %v2169_v29 }
 0x3a7   : > { %v2186_v49 = vmul.f32 %v4257_v26, %v4257_v26  ;;  %v2187_v47 = vmul.f32 %v4260_v5, %v4260_v5  ;;  %v2188_v21 = vmul.f32 %v4263_v25, %v4263_v25  ;;  %v2189_v4 = vmul.f32 %v4266_v62, %v4266_v62 }
 0x3a8   : > { %v2190_v48 = vmul.f32 %v4268_v7, %v4268_v7  ;;  %v2191_v60 = vmul.f32 %v4270_v1, %v4270_v1  ;;  %v2192_v61 = vmul.f32 %v4272_v16, %v4272_v16  ;;  %v2193_v9 = vmul.f32 %v4274_v24, %v4274_v24 }
 0x3a9   : > { %v2202_v11 = vsel %vm310_vm1, %v2186_v49, 0.0  ;;  %v2203_v17 = vsel %vm310_vm1, %v2187_v47, 0.0  ;;  %v2205_v2 = vsel %vm310_vm1, %v2188_v21, 0.0  ;;  %v2207_v43 = vsel %vm310_vm1, %v2189_v4, 0.0 }
 0x3aa   : > { %v2204_v54 = vadd.f32 %v2203_v17, %v2202_v11  ;;  %v2209_v32 = vsel %vm310_vm1, %v2190_v48, 0.0  ;;  %v2211_v51 = vsel %vm310_vm1, %v2191_v60, 0.0  ;;  %v2194_v28 = vmul.f32 %v4276_v8, %v4276_v8 }
 0x3ab   : > { %v2213_v14 = vsel %vm310_vm1, %v2192_v61, 0.0  ;;  %v2195_v13 = vmul.f32 %v4278_v45, %v4278_v45  ;;  %v2215_v55 = vsel %vm310_vm1, %v2193_v9, 0.0  ;;  %v2196_v30 = vmul.f32 %v4280_v36, %v4280_v36 }
 0x3ac   : > { %v2206_v33 = vadd.f32 %v2205_v2, %v2204_v54  ;;  %v2217_v3 = vsel %vm310_vm1, %v2194_v28, 0.0  ;;  %v2197_v22 = vmul.f32 %v4282_v18, %v4282_v18  ;;  %v2198_v58 = vmul.f32 %v4284_v52, %v4284_v52 }
 0x3ad   : > { %v2219_v27 = vsel %vm310_vm1, %v2195_v13, 0.0  ;;  %v2221_v6 = vsel %vm310_vm1, %v2196_v30, 0.0  ;;  %v2199_v38 = vmul.f32 %v4254_v23, %v4254_v23  ;;  %v2200_v50 = vmul.f32 %v4286_v19, %v4286_v19 }
 0x3ae   : > { %v2208_v34 = vadd.f32 %v2207_v43, %v2206_v33  ;;  %v2223_v15 = vsel %vm310_vm1, %v2197_v22, 0.0  ;;  %v2225_v12 = vsel %vm310_vm1, %v2198_v58, 0.0  ;;  %v2201_v46 = vmul.f32 %v4288_v40, %v4288_v40 }
 0x3af   : > { %v2227_v37 = vsel %vm310_vm1, %v2199_v38, 0.0  ;;  %v2229_v31 = vsel %vm310_vm1, %v2200_v50, 0.0 }
 0x3b0   : > { %v2210_v10 = vadd.f32 %v2209_v32, %v2208_v34  ;;  %v2231_v39 = vsel %vm310_vm1, %v2201_v46, 0.0 }
 0x3b2   : > { %v2212_v35 = vadd.f32 %v2211_v51, %v2210_v10 }
 0x3b4   : > { %v2214_v42 = vadd.f32 %v2213_v14, %v2212_v35 }
 0x3b6   : > { %v2216_v59 = vadd.f32 %v2215_v55, %v2214_v42 }
 0x3b8   : > { %v2218_v0 = vadd.f32 %v2217_v3, %v2216_v59 }
 0x3ba   : > { %v2220_v56 = vadd.f32 %v2219_v27, %v2218_v0 }
 0x3bc   : > { %v2222_v53 = vadd.f32 %v2221_v6, %v2220_v56 }
 0x3be   : > { %v2224_v57 = vadd.f32 %v2223_v15, %v2222_v53 }
 0x3c0   : > { %v2226_v20 = vadd.f32 %v2225_v12, %v2224_v57 }
 0x3c2   : > { %v2228_v44 = vadd.f32 %v2227_v37, %v2226_v20 }
 0x3c4   : > { %v2230_v63 = vadd.f32 %v2229_v31, %v2228_v44 }
 0x3c6   : > { %v2232_v41 = vadd.f32 %v2231_v39, %v2230_v63 }
 0x3c8   : > { %v2233_v29 = vrot.slane %v2232_v41, 4 }
 0x3ca   : > { %v2234_v49 = vadd.f32 %v2233_v29, %v2232_v41 }
 0x3cc   : > { %v2235_v47 = vrot.slane %v2234_v49, 2 }
 0x3ce   : > { %v2236_v21 = vadd.f32 %v2235_v47, %v2234_v49 }
 0x3d0   : > { %v2237_v4 = vrot.slane %v2236_v21, 1 }
 0x3d2   : > { %v2238_v11 = vadd.f32 %v2237_v4, %v2236_v21 }
 0x3d4   : > { %v2239_v17 = vmul.f32 0.0078125, %v2238_v11 }
 0x3d6   : > { %v2240_v54 = vadd.f32 1e-05, %v2239_v17 }
 0x3d8   : > { %2513 = vrsqrt.f32 %v2240_v54 }
 0x3e2   : > { %v2514_v48 = vpop.eup %2513 }
 0x3e3   : > { %v2242_v2 = vmul.f32 %v2514_v48, %v4257_v26  ;;  %v2243_v33 = vmul.f32 %v2514_v48, %v4260_v5  ;;  %v2244_v60 = vmul.f32 %v2514_v48, %v4263_v25  ;;  %v2245_v43 = vmul.f32 %v2514_v48, %v4266_v62 }
 0x3e4   : > { %v2246_v34 = vmul.f32 %v2514_v48, %v4268_v7  ;;  %v2247_v61 = vmul.f32 %v2514_v48, %v4270_v1  ;;  %v2248_v32 = vmul.f32 %v2514_v48, %v4272_v16  ;;  %v2249_v10 = vmul.f32 %v2514_v48, %v4274_v24 }
 0x3e5   : > { %2258 = vxpose.xlu0.b32.start [1/16] (narrow) %v2242_v2, 8  ;;  %v2250_v9 = vmul.f32 %v2514_v48, %v4276_v8  ;;  %v2251_v51 = vmul.f32 %v2514_v48, %v4278_v45  ;;  %v2252_v26 = vmul.f32 %v2514_v48, %v4280_v36  ;;  %v2253_v5 = vmul.f32 %v2514_v48, %v4282_v18 }
 0x3e6   : > { %v2254_v25 = vmul.f32 %v2514_v48, %v4284_v52  ;;  %v2256_v62 = vmul.f32 %v2514_v48, %v4286_v19  ;;  %v2257_v7 = vmul.f32 %v2514_v48, %v4288_v40  ;;  %v2255_v1 = vmul.f32 %v2514_v48, %v4254_v23 }
 0x3e9   : > { %2259 = vxpose.xlu0.b32.cont [2/16] (narrow) %v2243_v33, 8 }
 0x3ed   : > { %2260 = vxpose.xlu0.b32.cont [3/16] (narrow) %v2244_v60, 8 }
 0x3f1   : > { %2261 = vxpose.xlu0.b32.cont [4/16] (narrow) %v2245_v43, 8 }
 0x3f5   : > { %2262 = vxpose.xlu0.b32.cont [5/16] (narrow) %v2246_v34, 8 }
 0x3f9   : > { %2263 = vxpose.xlu0.b32.cont [6/16] (narrow) %v2247_v61, 8 }
 0x3fd   : > { %2264 = vxpose.xlu0.b32.cont [7/16] (narrow) %v2248_v32, 8 }
 0x401   : > { %2265 = vxpose.xlu0.b32.cont [8/16] (narrow) %v2249_v10, 8 }
 0x405   : > { %2266 = vxpose.xlu0.b32.cont [9/16] (narrow) %v2250_v9, 8 }
 0x409   : > { %2267 = vxpose.xlu0.b32.cont [10/16] (narrow) %v2251_v51, 8 }
 0x40d   : > { %2268 = vxpose.xlu0.b32.cont [11/16] (narrow) %v2252_v26, 8 }
 0x411   : > { %2269 = vxpose.xlu0.b32.cont [12/16] (narrow) %v2253_v5, 8 }
 0x415   : > { %2270 = vxpose.xlu0.b32.cont [13/16] (narrow) %v2254_v25, 8 }
 0x419   : > { %2271 = vxpose.xlu0.b32.cont [14/16] (narrow) %v2255_v1, 8 }
 0x41d   : > { %2272 = vxpose.xlu0.b32.cont [15/16] (narrow) %v2256_v62, 8 }
 0x421   : > { %2273 = vxpose.xlu0.b32.end [16/16] (narrow) %v2257_v7, 8 }
 0x465   : > { %v2274_v16 = vpop.trf.xlu0 }
 0x466   : > { %2290 = vst [vmem:[%s276_s9] sm:$0xff] %v2274_v16 }
 0x467 PF: > { %s17_s24 = sadd.s32 1, %s2550_s24  }
 0x468   : > { %p14_p4 = scmp.ge.s32.totalorder %s17_s24, 4  }
 0x46a   :  { %16 = sbr.rel (!%p14_p4) target bundleno = 1 (0x1), region = 79 }

</bundles_post_ra>
